<compile_context>
chip_gen: v5e
topology: v5e:2x2
jax: 0.10.0
libtpu: 0.0.40
codegen_flags: <defaults>
</compile_context>

<pallas_src>
import functools
import math

import jax
import jax.numpy as jnp
import numpy as np
from jax.experimental import pallas as pl
from jax.experimental.pallas import tpu as pltpu


# ----------------------------------------------------------------------------
# matmul helpers (MXU, f32 accumulation)
# ----------------------------------------------------------------------------
def _mm(a, b):
    # a @ b : contract a's last dim with b's first dim
    return jax.lax.dot_general(a, b, (((1,), (0,)), ((), ())),
                               preferred_element_type=jnp.float32)


def _mm_nt(a, b):
    # a @ b.T : contract last dims of both operands (avoids explicit transpose)
    return jax.lax.dot_general(a, b, (((1,), (1,)), ((), ())),
                               preferred_element_type=jnp.float32)


# ----------------------------------------------------------------------------
# one-time, guarded probe of pltpu.roll's rotation convention
# ----------------------------------------------------------------------------
@functools.lru_cache(maxsize=1)
def _roll_is_np_convention():
    # TODO(synk): pin this as a static constant once the Mosaic rotate
    # convention is fixed across releases; the try/except keeps AOT /
    # interpret / mock-TPU environments from crashing, and the probe only
    # runs once per process (trace-time, not steady-state).
    try:
        def probe(x_ref, o_ref):
            o_ref[...] = pltpu.roll(x_ref[...], 1, 1)

        x = jnp.broadcast_to(jnp.arange(128, dtype=jnp.float32)[None, :], (8, 128))
        y = pl.pallas_call(
            probe, out_shape=jax.ShapeDtypeStruct((8, 128), jnp.float32))(x)
        # np.roll convention: result[:, 1] == x[:, 0] == 0
        return bool(float(y[0, 1]) == 0.0)
    except Exception:
        return True  # current Mosaic behaviour matches np.roll


def _vpu_has_native_bf16():
    # v5e/v5p (and older) have no bf16 VALU; v6e / v7x do.
    try:
        kind = jax.devices()[0].device_kind.lower()
    except Exception:
        return True
    return not any(v in kind for v in ("v2", "v3", "v4", "v5"))


# ----------------------------------------------------------------------------
# kernel: one batch element per grid step
# ----------------------------------------------------------------------------
def _mhsa_kernel(x_ref, pep_ref, g_ref, beta_ref, wqkv_ref, bqkv_ref,
                 wo_ref, bo_ref, u_ref, vb_ref, out_ref, ctx_ref,
                 *, T, D, H, Dh, diag, eps, roll_like_np, skew_bf16):
    bf16 = jnp.bfloat16

    # --- pre-norm LayerNorm (f32) --------------------------------------------
    x = x_ref[0]                                         # (T, D)
    mean = jnp.mean(x, axis=-1, keepdims=True)
    xc = x - mean
    var = jnp.mean(xc * xc, axis=-1, keepdims=True)
    xn = xc * jax.lax.rsqrt(var + eps) * g_ref[...] + beta_ref[...]

    # --- fused full-width QKV projection (bf16 MXU operands, f32 accumulate) --
    # wqkv / pep / wo are pre-cast to bf16 in the wrapper (no in-kernel casts).
    qkv = _mm_nt(xn.astype(bf16), wqkv_ref[...]) + bqkv_ref[...]
    q = qkv[:, 0:D]                  # query path already carries 1/sqrt(d_model)
    kb = qkv[:, D:2 * D].astype(bf16)
    vv = qkv[:, 2 * D:3 * D].astype(bf16)
    pb = pep_ref[...]                # pos_proj(PE), bf16, precomputed outside

    # hoisted out of the head loop: u/v-biased queries for ALL heads at once
    # (u_ref / vb_ref are the (1, D) head-flattened, pre-scaled biases) so the
    # per-head score matmuls below issue back-to-back with no VALU prep between.
    qu = (q + u_ref[...]).astype(bf16)
    qv = (q + vb_ref[...]).astype(bf16)

    # hoisted constants: additive causal-mask bias + per-level barrel-shifter
    # row-selection masks (computed once, reused by every head)
    row = jax.lax.broadcasted_iota(jnp.int32, (T, T), 0)
    col = jax.lax.broadcasted_iota(jnp.int32, (T, T), 1)
    mask_bias = jnp.where(col > (row + diag),
                          jnp.float32(-1e9), jnp.float32(0.0))
    rows1 = jax.lax.broadcasted_iota(jnp.int32, (T, 1), 0)
    if roll_like_np:
        ramt = jnp.where(rows1 == T - 1, 0, rows1 + 1)   # right-rotate (i+1)%T
    else:
        ramt = (T - 1) - rows1                           # left-rotate by T-1-i
    shifts, sel = [], []
    shift = 1
    while shift < T:
        shifts.append(shift)
        sel.append((ramt & shift) != 0)
        shift *= 2

    skew_dtype = bf16 if skew_bf16 else jnp.float32

    for h in range(H):
        sl = slice(h * Dh, (h + 1) * Dh)
        content = _mm_nt(qu[:, sl], kb[:, sl])           # (T, T) f32
        s = _mm_nt(qv[:, sl], pb[:, sl])                 # (T, T) f32 raw pos score

        # Transformer-XL relative shift: pos[i, j] = s[i, T-1+j-i], i.e. rotate
        # row i right by (i+1) mod T, as a log2(T) barrel shifter of
        # constant-shift XLU lane rotations.  Wrapped upper-triangle garbage is
        # killed by the causal-mask bias (exact for causal_mask_diagonal == 0).
        skew = s.astype(skew_dtype)
        for sh, m in zip(shifts, sel):
            skew = jnp.where(m, pltpu.roll(skew, sh, 1), skew)

        score = content + skew.astype(jnp.float32) + mask_bias

        # softmax (attention dropout is identity at inference)
        mmax = jnp.max(score, axis=-1, keepdims=True)
        ex = jnp.exp(score - mmax)
        denom = jnp.sum(ex, axis=-1, keepdims=True)
        attn = ex * pl.reciprocal(denom, approx=True)

        # TODO(synk): these stores are lane-masked (Dh of 128 lanes); if store
        # pressure shows up at large T, accumulate per-head out-proj
        # contributions into a lane-dense f32 (T, D) accumulator instead.
        ctx_ref[:, sl] = _mm(attn.astype(bf16), vv[:, sl]).astype(bf16)

    # full-width out_proj (bf16 operands, f32 result)
    out_ref[0] = _mm_nt(ctx_ref[...], wo_ref[...]) + bo_ref[...]


# ----------------------------------------------------------------------------
# glue: positional encoding, parameter folding, pallas_call
# ----------------------------------------------------------------------------
def sinusoidal_positional_encoding(seq_len, d_model):
    pos = np.arange(seq_len, dtype=np.float32)[:, None]
    div = np.exp(np.arange(0, d_model, 2, dtype=np.float32)
                 * -(math.log(10000.0) / d_model))
    pe = np.zeros((seq_len, d_model), dtype=np.float32)
    pe[:, 0::2] = np.sin(pos * div)
    pe[:, 1::2] = np.cos(pos * div)
    return jnp.asarray(pe)


def causal_mask(batch, seq, diagonal=0):
    # NOTE: mask_strategy.causal_mask assumed == triu(ones, 1+diagonal); True = masked.
    i = jnp.arange(seq)[:, None]
    j = jnp.arange(seq)[None, :]
    return jnp.broadcast_to(j > (i + diagonal), (batch, seq, seq))


def multi_headed_self_attention(inputs, params, causal_diagonal=0):
    B, T, D = inputs.shape
    H = params["num_heads"]
    assert D % H == 0
    Dh = D // H
    if causal_diagonal != 0:
        # TODO(synk): diagonal>0 / non-causal masks would need the upper-diagonal
        # branch of _relative_shift (row-shifted skew); default module config is 0.
        raise NotImplementedError("kernel implements the default causalMask path")

    inv = 1.0 / math.sqrt(D)   # module scales by sqrt(d_model), not sqrt(d_head)
    bf16 = jnp.bfloat16

    # batch-invariant operands: computed once, pre-cast to bf16 (halves DMA
    # bytes / VMEM residency and removes per-grid-step casts in the kernel)
    pe = sinusoidal_positional_encoding(T, D)
    pe_p = (pe @ params["wp"].T).astype(bf16)                          # (T, D)
    wqkv = jnp.concatenate(
        [params["wq"] * inv, params["wk"], params["wv"]], axis=0).astype(bf16)
    wo = params["wo"].astype(bf16)

    # f32 bias-side operands (added after the f32-accumulating matmuls)
    bqkv = jnp.concatenate(
        [params["bq"] * inv, params["bk"], params["bv"]]).reshape(1, 3 * D)
    bo = params["bo"].reshape(1, D)
    gamma = params["ln_gamma"].reshape(1, D)
    beta = params["ln_beta"].reshape(1, D)
    # head-flattened, pre-scaled relative biases: column h*Dh+d holds bias[h, d]
    u = (params["u_bias"] * inv).reshape(1, D)
    vb = (params["v_bias"] * inv).reshape(1, D)

    roll_np = _roll_is_np_convention()
    prefer_bf16_skew = _vpu_has_native_bf16()   # v6e/v7x only (v5e lacks bf16 VALU)

    def const_spec(shape, single_buffer):
        idx = lambda b: (0,) * len(shape)
        if single_buffer:
            # constant index map => the block never changes; double buffering is
            # pure VMEM waste, so request a single buffer.
            return pl.BlockSpec(shape, idx, pipeline_mode=pl.Buffered(1))
        return pl.BlockSpec(shape, idx)

    def build(single_buffer, skew_bf16):
        kernel = functools.partial(
            _mhsa_kernel, T=T, D=D, H=H, Dh=Dh, diag=int(causal_diagonal),
            eps=1e-5, roll_like_np=roll_np, skew_bf16=skew_bf16)
        cs = lambda shape: const_spec(shape, single_buffer)
        return pl.pallas_call(
            kernel,
            out_shape=jax.ShapeDtypeStruct((B, T, D), jnp.float32),
            grid=(B,),
            in_specs=[
                pl.BlockSpec((1, T, D), lambda b: (b, 0, 0)),    # x
                cs((T, D)),                                      # pos_proj(PE), bf16
                cs((1, D)), cs((1, D)),                          # LN gamma / beta
                cs((3 * D, D)), cs((1, 3 * D)),                  # fused Wqkv (bf16) / bqkv
                cs((D, D)), cs((1, D)),                          # Wo (bf16) / bo
                cs((1, D)), cs((1, D)),                          # u_bias / v_bias (flat)
            ],
            out_specs=pl.BlockSpec((1, T, D), lambda b: (b, 0, 0)),
            scratch_shapes=[pltpu.VMEM((T, D), jnp.bfloat16)],   # per-head context slab
            compiler_params=pltpu.CompilerParams(
                dimension_semantics=("parallel",),
                # ample at these shapes on every chip (v7x per-TC VMEM = 64 MiB);
                # re-derive together with flash-style tiling for production T.
                vmem_limit_bytes=32 * 1024 * 1024),
        )

    args = (inputs, pe_p, gamma, beta, wqkv, bqkv, wo, bo, u, vb)
    # graceful degradation: use single-buffered weights + bf16 barrel shifter when
    # the installed Pallas / chip supports them, otherwise the conservative config.
    configs = ((True, prefer_bf16_skew),
               (False, prefer_bf16_skew),
               (False, False))
    last_err = None
    out = None
    for single_buffer, skew_bf16 in configs:
        try:
            out = jax.block_until_ready(build(single_buffer, skew_bf16)(*args))
            break
        except Exception as e:   # fall back to a safer configuration
            last_err = e
    if out is None:
        raise last_err
    # TODO(synk): final nn.Dropout is identity at inference (p only matters in training).
    # TODO(synk): for production T (>~1k) add flash-style query tiling (query axis
    # 'parallel', KV axis 'arbitrary' and last) so per-head (T,T) intermediates stay
    # within v7x's 64 MiB per-TC VMEM and both v7x TensorCores are fed; optionally
    # block 2-4 batch elements per grid step on v5e/v6e to amortize grid overhead.
    return out


# ----------------------------------------------------------------------------
# deterministic parameter init (shapes per RelativeMultiHeadAttention.__init__)
# ----------------------------------------------------------------------------
def init_params(key, d_model, num_heads):
    D, H = d_model, num_heads
    Dh = D // H
    ks = jax.random.split(key, 12)

    def xavier(k, out_f, in_f):
        lim = math.sqrt(6.0 / (in_f + out_f))
        return jax.random.uniform(k, (out_f, in_f), jnp.float32, -lim, lim)

    lim_uv = math.sqrt(6.0 / (H + Dh))
    return {
        "num_heads": H,
        "wq": xavier(ks[0], D, D), "bq": 0.02 * jax.random.normal(ks[1], (D,)),
        "wk": xavier(ks[2], D, D), "bk": 0.02 * jax.random.normal(ks[3], (D,)),
        "wv": xavier(ks[4], D, D), "bv": 0.02 * jax.random.normal(ks[5], (D,)),
        "wp": xavier(ks[6], D, D),
        "u_bias": jax.random.uniform(ks[7], (H, Dh), jnp.float32, -lim_uv, lim_uv),
        "v_bias": jax.random.uniform(ks[8], (H, Dh), jnp.float32, -lim_uv, lim_uv),
        "wo": xavier(ks[9], D, D), "bo": 0.02 * jax.random.normal(ks[10], (D,)),
        "ln_gamma": jnp.ones((D,), jnp.float32) + 0.05 * jax.random.normal(ks[11], (D,)),
        "ln_beta": jnp.zeros((D,), jnp.float32),
    }


# ----------------------------------------------------------------------------
# pure-JAX reference implementing the exact torch forward (incl. pad/reshape
# relative shift), kept at full f32 precision for validation
# ----------------------------------------------------------------------------
def reference_forward(x, params, mask_bool):
    with jax.default_matmul_precision("highest"):
        B, T, D = x.shape
        H = params["num_heads"]
        Dh = D // H
        pe = jnp.broadcast_to(sinusoidal_positional_encoding(T, D), (B, T, D))

        mean = jnp.mean(x, -1, keepdims=True)
        var = jnp.mean((x - mean) ** 2, -1, keepdims=True)
        xn = (x - mean) / jnp.sqrt(var + 1e-5) * params["ln_gamma"] + params["ln_beta"]

        q = xn @ params["wq"].T + params["bq"]
        k = xn @ params["wk"].T + params["bk"]
        v = xn @ params["wv"].T + params["bv"]
        p = pe @ params["wp"].T

        q4 = q.reshape(B, T, H, Dh)
        k4 = k.reshape(B, T, H, Dh).transpose(0, 2, 1, 3)
        v4 = v.reshape(B, T, H, Dh).transpose(0, 2, 1, 3)
        p4 = p.reshape(B, T, H, Dh)

        content = jnp.matmul((q4 + params["u_bias"]).transpose(0, 2, 1, 3),
                             k4.transpose(0, 1, 3, 2))
        pos = jnp.matmul((q4 + params["v_bias"]).transpose(0, 2, 1, 3),
                         p4.transpose(0, 2, 3, 1))
        # exact _relative_shift
        zeros = jnp.zeros((B, H, T, 1), pos.dtype)
        padded = jnp.concatenate([zeros, pos], axis=-1).reshape(B, H, T + 1, T)
        pos = padded[:, :, 1:].reshape(B, H, T, T)

        score = (content + pos) / math.sqrt(D)
        score = jnp.where(mask_bool[:, None, :, :], -1e9, score)
        attn = jax.nn.softmax(score, axis=-1)
        ctx = jnp.matmul(attn, v4).transpose(0, 2, 1, 3).reshape(B, T, D)
        return ctx @ params["wo"].T + params["bo"]


# ----------------------------------------------------------------------------
if __name__ == "__main__":
    B, T, D, H = 2, 128, 128, 4       # batch, time, d_model, num_heads

    key = jax.random.PRNGKey(0)
    kp, kx = jax.random.split(key)
    params = init_params(kp, D, H)
    x = jax.random.normal(kx, (B, T, D), jnp.float32)

    out = jax.block_until_ready(multi_headed_self_attention(x, params, causal_diagonal=0))
    assert out.shape == (B, T, D)

    mask = causal_mask(B, T, diagonal=0)
    ref = jax.block_until_ready(reference_forward(x, params, mask))
    # tolerance sized for bf16 MXU operands + bf16 relative-shift path
    # (f32 accumulation throughout) vs the full-f32 reference
    np.testing.assert_allclose(np.asarray(out), np.asarray(ref),
                               rtol=6e-2, atol=6e-2)
    print("KERNEL_OK")
</pallas_src>

<mosaic_0001>
module attributes {stable_mosaic.version = 11 : i64} {
  func.func @probe(%arg0: memref<8x128xf32, #tpu.memory_space<vmem>>, %arg1: memref<8x128xf32, #tpu.memory_space<vmem>>) attributes {dimension_semantics = [], scalar_prefetch = 0 : i64, scratch_operands = 0 : i64, tpu.core_type = #tpu.core_type<tc>} {
    %c0 = arith.constant 0 : index
    %c0_0 = arith.constant 0 : index
    %0 = vector.load %arg0[%c0, %c0_0] : memref<8x128xf32, #tpu.memory_space<vmem>>, vector<8x128xf32>
    %c1_i32 = arith.constant 1 : i32
    %1 = tpu.dynamic_rotate %0 by %c1_i32 dim 1 : vector<8x128xf32>, i32 -> vector<8x128xf32>
    %c0_1 = arith.constant 0 : index
    %c0_2 = arith.constant 0 : index
    %2 = vector.load %arg1[%c0_1, %c0_2] : memref<8x128xf32, #tpu.memory_space<vmem>>, vector<8x128xf32>
    tpu.vector_store %arg1[%c0_1, %c0_2], %1 {strides = array<i32>} : memref<8x128xf32, #tpu.memory_space<vmem>>, vector<8x128xf32>,
    return
  }
}

module attributes {stable_mosaic.version = 11 : i64} {
  func.func @_mhsa_kernel(%arg0: i32, %arg1: memref<1x128x128xf32, #tpu.memory_space<vmem>>, %arg2: memref<128x128xbf16, #tpu.memory_space<vmem>>, %arg3: memref<1x128xf32, #tpu.memory_space<vmem>>, %arg4: memref<1x128xf32, #tpu.memory_space<vmem>>, %arg5: memref<384x128xbf16, #tpu.memory_space<vmem>>, %arg6: memref<1x384xf32, #tpu.memory_space<vmem>>, %arg7: memref<128x128xbf16, #tpu.memory_space<vmem>>, %arg8: memref<1x128xf32, #tpu.memory_space<vmem>>, %arg9: memref<1x128xf32, #tpu.memory_space<vmem>>, %arg10: memref<1x128xf32, #tpu.memory_space<vmem>>, %arg11: memref<1x128x128xf32, #tpu.memory_space<vmem>>, %arg12: memref<128x128xbf16, #tpu.memory_space<vmem>>) attributes {dimension_semantics = [#tpu.dimension_semantics<parallel>], iteration_bounds = array<i64: 2>, scalar_prefetch = 0 : i64, scratch_operands = 1 : i64, tpu.core_type = #tpu.core_type<tc>, window_params = [{transform_indices = @transform_0, window_bounds = array<i64: 1, 128, 128>}, {pipeline_mode = #tpu.pipeline_mode<synchronous>, transform_indices = @transform_1, window_bounds = array<i64: 128, 128>}, {pipeline_mode = #tpu.pipeline_mode<synchronous>, transform_indices = @transform_2, window_bounds = array<i64: 1, 128>}, {pipeline_mode = #tpu.pipeline_mode<synchronous>, transform_indices = @transform_3, window_bounds = array<i64: 1, 128>}, {pipeline_mode = #tpu.pipeline_mode<synchronous>, transform_indices = @transform_4, window_bounds = array<i64: 384, 128>}, {pipeline_mode = #tpu.pipeline_mode<synchronous>, transform_indices = @transform_5, window_bounds = array<i64: 1, 384>}, {pipeline_mode = #tpu.pipeline_mode<synchronous>, transform_indices = @transform_6, window_bounds = array<i64: 128, 128>}, {pipeline_mode = #tpu.pipeline_mode<synchronous>, transform_indices = @transform_7, window_bounds = array<i64: 1, 128>}, {pipeline_mode = #tpu.pipeline_mode<synchronous>, transform_indices = @transform_8, window_bounds = array<i64: 1, 128>}, {pipeline_mode = #tpu.pipeline_mode<synchronous>, transform_indices = @transform_9, window_bounds = array<i64: 1, 128>}, {transform_indices = @transform_10, window_bounds = array<i64: 1, 128, 128>}]} {
    %c0 = arith.constant 0 : index
    %c0_0 = arith.constant 0 : index
    %c0_1 = arith.constant 0 : index
    %0 = vector.load %arg1[%c0, %c0_0, %c0_1] : memref<1x128x128xf32, #tpu.memory_space<vmem>>, vector<1x128x128xf32>
    %1 = vector.shape_cast %0 : vector<1x128x128xf32> to vector<128x128xf32>
    %cst = arith.constant dense<0.000000e+00> : vector<128xf32>
    %2 = vector.multi_reduction <add>, %1, %cst [1] : vector<128x128xf32> to vector<128xf32>
    %3 = vector.shape_cast %2 : vector<128xf32> to vector<128x1xf32>
    %cst_2 = arith.constant 1.280000e+02 : f32
    %4 = vector.broadcast %cst_2 : f32 to vector<128x1xf32>
    %5 = arith.divf %3, %4 : vector<128x1xf32>
    %6 = vector.broadcast %5 : vector<128x1xf32> to vector<128x128xf32>
    %7 = arith.subf %1, %6 : vector<128x128xf32>
    %8 = arith.mulf %7, %7 : vector<128x128xf32>
    %cst_3 = arith.constant dense<0.000000e+00> : vector<128xf32>
    %9 = vector.multi_reduction <add>, %8, %cst_3 [1] : vector<128x128xf32> to vector<128xf32>
    %10 = vector.shape_cast %9 : vector<128xf32> to vector<128x1xf32>
    %cst_4 = arith.constant 1.280000e+02 : f32
    %11 = vector.broadcast %cst_4 : f32 to vector<128x1xf32>
    %12 = arith.divf %10, %11 : vector<128x1xf32>
    %cst_5 = arith.constant 9.99999974E-6 : f32
    %13 = vector.broadcast %cst_5 : f32 to vector<128x1xf32>
    %14 = arith.addf %12, %13 : vector<128x1xf32>
    %15 = math.rsqrt %14 : vector<128x1xf32>
    %16 = vector.broadcast %15 : vector<128x1xf32> to vector<128x128xf32>
    %17 = arith.mulf %7, %16 : vector<128x128xf32>
    %c0_6 = arith.constant 0 : index
    %c0_7 = arith.constant 0 : index
    %18 = vector.load %arg3[%c0_6, %c0_7] : memref<1x128xf32, #tpu.memory_space<vmem>>, vector<1x128xf32>
    %19 = vector.broadcast %18 : vector<1x128xf32> to vector<128x128xf32>
    %20 = arith.mulf %17, %19 : vector<128x128xf32>
    %c0_8 = arith.constant 0 : index
    %c0_9 = arith.constant 0 : index
    %21 = vector.load %arg4[%c0_8, %c0_9] : memref<1x128xf32, #tpu.memory_space<vmem>>, vector<1x128xf32>
    %22 = vector.broadcast %21 : vector<1x128xf32> to vector<128x128xf32>
    %23 = arith.addf %20, %22 : vector<128x128xf32>
    %24 = arith.truncf %23 : vector<128x128xf32> to vector<128x128xbf16>
    %c0_10 = arith.constant 0 : index
    %c0_11 = arith.constant 0 : index
    %25 = vector.load %arg5[%c0_10, %c0_11] : memref<384x128xbf16, #tpu.memory_space<vmem>>, vector<384x128xbf16>
    %cst_12 = arith.constant dense<0.000000e+00> : vector<128x384xf32>
    %26 = tpu.matmul %24, %25, %cst_12 {dimension_numbers = #tpu.dot_dimension_numbers<[1], [1], [0], [0], [0, 0, 1, 0], [], []>} : vector<128x128xbf16>, vector<384x128xbf16>, vector<128x384xf32> -> vector<128x384xf32>
    %c0_13 = arith.constant 0 : index
    %c0_14 = arith.constant 0 : index
    %27 = vector.load %arg6[%c0_13, %c0_14] : memref<1x384xf32, #tpu.memory_space<vmem>>, vector<1x384xf32>
    %28 = vector.broadcast %27 : vector<1x384xf32> to vector<128x384xf32>
    %29 = arith.addf %26, %28 : vector<128x384xf32>
    %30 = vector.extract_strided_slice %29 {offsets = [0, 0], sizes = [128, 128], strides = [1, 1]} : vector<128x384xf32> to vector<128x128xf32>
    %31 = vector.extract_strided_slice %29 {offsets = [0, 128], sizes = [128, 128], strides = [1, 1]} : vector<128x384xf32> to vector<128x128xf32>
    %32 = arith.truncf %31 : vector<128x128xf32> to vector<128x128xbf16>
    %33 = vector.extract_strided_slice %29 {offsets = [0, 256], sizes = [128, 128], strides = [1, 1]} : vector<128x384xf32> to vector<128x128xf32>
    %34 = arith.truncf %33 : vector<128x128xf32> to vector<128x128xbf16>
    %c0_15 = arith.constant 0 : index
    %c0_16 = arith.constant 0 : index
    %35 = vector.load %arg2[%c0_15, %c0_16] : memref<128x128xbf16, #tpu.memory_space<vmem>>, vector<128x128xbf16>
    %c0_17 = arith.constant 0 : index
    %c0_18 = arith.constant 0 : index
    %36 = vector.load %arg9[%c0_17, %c0_18] : memref<1x128xf32, #tpu.memory_space<vmem>>, vector<1x128xf32>
    %37 = vector.broadcast %36 : vector<1x128xf32> to vector<128x128xf32>
    %38 = arith.addf %30, %37 : vector<128x128xf32>
    %39 = arith.truncf %38 : vector<128x128xf32> to vector<128x128xbf16>
    %c0_19 = arith.constant 0 : index
    %c0_20 = arith.constant 0 : index
    %40 = vector.load %arg10[%c0_19, %c0_20] : memref<1x128xf32, #tpu.memory_space<vmem>>, vector<1x128xf32>
    %41 = vector.broadcast %40 : vector<1x128xf32> to vector<128x128xf32>
    %42 = arith.addf %30, %41 : vector<128x128xf32>
    %43 = arith.truncf %42 : vector<128x128xf32> to vector<128x128xbf16>
    %44 = tpu.iota {dimensions = array<i32: 0>} : vector<128x128xi32>
    %45 = tpu.iota {dimensions = array<i32: 1>} : vector<128x128xi32>
    %c0_i32 = arith.constant 0 : i32
    %46 = vector.broadcast %c0_i32 : i32 to vector<128x128xi32>
    %47 = arith.addi %44, %46 : vector<128x128xi32>
    %48 = arith.cmpi sgt, %45, %47 : vector<128x128xi32>
    %cst_21 = arith.constant -1.000000e+09 : f32
    %cst_22 = arith.constant 0.000000e+00 : f32
    %49 = vector.broadcast %cst_21 : f32 to vector<128x128xf32>
    %50 = vector.broadcast %cst_22 : f32 to vector<128x128xf32>
    %51 = arith.select %48, %49, %50 : vector<128x128xi1>, vector<128x128xf32>
    %52 = tpu.iota {dimensions = array<i32: 0>} : vector<128x1xi32>
    %c127_i32 = arith.constant 127 : i32
    %53 = vector.broadcast %c127_i32 : i32 to vector<128x1xi32>
    %54 = arith.cmpi eq, %52, %53 : vector<128x1xi32>
    %c1_i32 = arith.constant 1 : i32
    %55 = vector.broadcast %c1_i32 : i32 to vector<128x1xi32>
    %56 = arith.addi %52, %55 : vector<128x1xi32>
    %c0_i32_23 = arith.constant 0 : i32
    %57 = vector.broadcast %c0_i32_23 : i32 to vector<128x1xi32>
    %58 = arith.select %54, %57, %56 : vector<128x1xi1>, vector<128x1xi32>
    %c1_i32_24 = arith.constant 1 : i32
    %59 = vector.broadcast %c1_i32_24 : i32 to vector<128x1xi32>
    %60 = arith.andi %58, %59 : vector<128x1xi32>
    %c0_i32_25 = arith.constant 0 : i32
    %61 = vector.broadcast %c0_i32_25 : i32 to vector<128x1xi32>
    %62 = arith.cmpi ne, %60, %61 : vector<128x1xi32>
    %c2_i32 = arith.constant 2 : i32
    %63 = vector.broadcast %c2_i32 : i32 to vector<128x1xi32>
    %64 = arith.andi %58, %63 : vector<128x1xi32>
    %c0_i32_26 = arith.constant 0 : i32
    %65 = vector.broadcast %c0_i32_26 : i32 to vector<128x1xi32>
    %66 = arith.cmpi ne, %64, %65 : vector<128x1xi32>
    %c4_i32 = arith.constant 4 : i32
    %67 = vector.broadcast %c4_i32 : i32 to vector<128x1xi32>
    %68 = arith.andi %58, %67 : vector<128x1xi32>
    %c0_i32_27 = arith.constant 0 : i32
    %69 = vector.broadcast %c0_i32_27 : i32 to vector<128x1xi32>
    %70 = arith.cmpi ne, %68, %69 : vector<128x1xi32>
    %c8_i32 = arith.constant 8 : i32
    %71 = vector.broadcast %c8_i32 : i32 to vector<128x1xi32>
    %72 = arith.andi %58, %71 : vector<128x1xi32>
    %c0_i32_28 = arith.constant 0 : i32
    %73 = vector.broadcast %c0_i32_28 : i32 to vector<128x1xi32>
    %74 = arith.cmpi ne, %72, %73 : vector<128x1xi32>
    %c16_i32 = arith.constant 16 : i32
    %75 = vector.broadcast %c16_i32 : i32 to vector<128x1xi32>
    %76 = arith.andi %58, %75 : vector<128x1xi32>
    %c0_i32_29 = arith.constant 0 : i32
    %77 = vector.broadcast %c0_i32_29 : i32 to vector<128x1xi32>
    %78 = arith.cmpi ne, %76, %77 : vector<128x1xi32>
    %c32_i32 = arith.constant 32 : i32
    %79 = vector.broadcast %c32_i32 : i32 to vector<128x1xi32>
    %80 = arith.andi %58, %79 : vector<128x1xi32>
    %c0_i32_30 = arith.constant 0 : i32
    %81 = vector.broadcast %c0_i32_30 : i32 to vector<128x1xi32>
    %82 = arith.cmpi ne, %80, %81 : vector<128x1xi32>
    %c64_i32 = arith.constant 64 : i32
    %83 = vector.broadcast %c64_i32 : i32 to vector<128x1xi32>
    %84 = arith.andi %58, %83 : vector<128x1xi32>
    %c0_i32_31 = arith.constant 0 : i32
    %85 = vector.broadcast %c0_i32_31 : i32 to vector<128x1xi32>
    %86 = arith.cmpi ne, %84, %85 : vector<128x1xi32>
    %87 = vector.extract_strided_slice %39 {offsets = [0, 0], sizes = [128, 32], strides = [1, 1]} : vector<128x128xbf16> to vector<128x32xbf16>
    %88 = vector.extract_strided_slice %32 {offsets = [0, 0], sizes = [128, 32], strides = [1, 1]} : vector<128x128xbf16> to vector<128x32xbf16>
    %cst_32 = arith.constant dense<0.000000e+00> : vector<128x128xf32>
    %89 = tpu.matmul %87, %88, %cst_32 {dimension_numbers = #tpu.dot_dimension_numbers<[1], [1], [0], [0], [0, 0, 1, 0], [], []>} : vector<128x32xbf16>, vector<128x32xbf16>, vector<128x128xf32> -> vector<128x128xf32>
    %90 = vector.extract_strided_slice %43 {offsets = [0, 0], sizes = [128, 32], strides = [1, 1]} : vector<128x128xbf16> to vector<128x32xbf16>
    %91 = vector.extract_strided_slice %35 {offsets = [0, 0], sizes = [128, 32], strides = [1, 1]} : vector<128x128xbf16> to vector<128x32xbf16>
    %cst_33 = arith.constant dense<0.000000e+00> : vector<128x128xf32>
    %92 = tpu.matmul %90, %91, %cst_33 {dimension_numbers = #tpu.dot_dimension_numbers<[1], [1], [0], [0], [0, 0, 1, 0], [], []>} : vector<128x32xbf16>, vector<128x32xbf16>, vector<128x128xf32> -> vector<128x128xf32>
    %93 = arith.truncf %92 : vector<128x128xf32> to vector<128x128xbf16>
    %c1_i32_34 = arith.constant 1 : i32
    %94 = tpu.dynamic_rotate %93 by %c1_i32_34 dim 1 : vector<128x128xbf16>, i32 -> vector<128x128xbf16>
    %95 = vector.shape_cast %62 : vector<128x1xi1> to vector<128x1xi1>
    %96 = vector.broadcast %95 : vector<128x1xi1> to vector<128x128xi1>
    %97 = arith.select %96, %94, %93 : vector<128x128xi1>, vector<128x128xbf16>
    %c2_i32_35 = arith.constant 2 : i32
    %98 = tpu.dynamic_rotate %97 by %c2_i32_35 dim 1 : vector<128x128xbf16>, i32 -> vector<128x128xbf16>
    %99 = vector.shape_cast %66 : vector<128x1xi1> to vector<128x1xi1>
    %100 = vector.broadcast %99 : vector<128x1xi1> to vector<128x128xi1>
    %101 = arith.select %100, %98, %97 : vector<128x128xi1>, vector<128x128xbf16>
    %c4_i32_36 = arith.constant 4 : i32
    %102 = tpu.dynamic_rotate %101 by %c4_i32_36 dim 1 : vector<128x128xbf16>, i32 -> vector<128x128xbf16>
    %103 = vector.shape_cast %70 : vector<128x1xi1> to vector<128x1xi1>
    %104 = vector.broadcast %103 : vector<128x1xi1> to vector<128x128xi1>
    %105 = arith.select %104, %102, %101 : vector<128x128xi1>, vector<128x128xbf16>
    %c8_i32_37 = arith.constant 8 : i32
    %106 = tpu.dynamic_rotate %105 by %c8_i32_37 dim 1 : vector<128x128xbf16>, i32 -> vector<128x128xbf16>
    %107 = vector.shape_cast %74 : vector<128x1xi1> to vector<128x1xi1>
    %108 = vector.broadcast %107 : vector<128x1xi1> to vector<128x128xi1>
    %109 = arith.select %108, %106, %105 : vector<128x128xi1>, vector<128x128xbf16>
    %c16_i32_38 = arith.constant 16 : i32
    %110 = tpu.dynamic_rotate %109 by %c16_i32_38 dim 1 : vector<128x128xbf16>, i32 -> vector<128x128xbf16>
    %111 = vector.shape_cast %78 : vector<128x1xi1> to vector<128x1xi1>
    %112 = vector.broadcast %111 : vector<128x1xi1> to vector<128x128xi1>
    %113 = arith.select %112, %110, %109 : vector<128x128xi1>, vector<128x128xbf16>
    %c32_i32_39 = arith.constant 32 : i32
    %114 = tpu.dynamic_rotate %113 by %c32_i32_39 dim 1 : vector<128x128xbf16>, i32 -> vector<128x128xbf16>
    %115 = vector.shape_cast %82 : vector<128x1xi1> to vector<128x1xi1>
    %116 = vector.broadcast %115 : vector<128x1xi1> to vector<128x128xi1>
    %117 = arith.select %116, %114, %113 : vector<128x128xi1>, vector<128x128xbf16>
    %c64_i32_40 = arith.constant 64 : i32
    %118 = tpu.dynamic_rotate %117 by %c64_i32_40 dim 1 : vector<128x128xbf16>, i32 -> vector<128x128xbf16>
    %119 = vector.shape_cast %86 : vector<128x1xi1> to vector<128x1xi1>
    %120 = vector.broadcast %119 : vector<128x1xi1> to vector<128x128xi1>
    %121 = arith.select %120, %118, %117 : vector<128x128xi1>, vector<128x128xbf16>
    %122 = arith.extf %121 : vector<128x128xbf16> to vector<128x128xf32>
    %123 = arith.addf %89, %122 : vector<128x128xf32>
    %124 = arith.addf %123, %51 : vector<128x128xf32>
    %cst_41 = arith.constant dense<0xFF800000> : vector<128xf32>
    %125 = vector.multi_reduction <maximumf>, %124, %cst_41 [1] : vector<128x128xf32> to vector<128xf32>
    %126 = vector.shape_cast %125 : vector<128xf32> to vector<128x1xf32>
    %127 = vector.broadcast %126 : vector<128x1xf32> to vector<128x128xf32>
    %128 = arith.subf %124, %127 : vector<128x128xf32>
    %129 = math.exp %128 : vector<128x128xf32>
    %cst_42 = arith.constant dense<0.000000e+00> : vector<128xf32>
    %130 = vector.multi_reduction <add>, %129, %cst_42 [1] : vector<128x128xf32> to vector<128xf32>
    %131 = vector.shape_cast %130 : vector<128xf32> to vector<128x1xf32>
    %132 = tpu.reciprocal %131 {approx = true} : vector<128x1xf32> -> vector<128x1xf32>
    %133 = vector.broadcast %132 : vector<128x1xf32> to vector<128x128xf32>
    %134 = arith.mulf %129, %133 : vector<128x128xf32>
    %135 = arith.truncf %134 : vector<128x128xf32> to vector<128x128xbf16>
    %136 = vector.extract_strided_slice %34 {offsets = [0, 0], sizes = [128, 32], strides = [1, 1]} : vector<128x128xbf16> to vector<128x32xbf16>
    %cst_43 = arith.constant dense<0.000000e+00> : vector<128x32xf32>
    %137 = tpu.matmul %135, %136, %cst_43 {dimension_numbers = #tpu.dot_dimension_numbers<[1], [0], [0], [1], [0, 0, 1, 1], [], []>} : vector<128x128xbf16>, vector<128x32xbf16>, vector<128x32xf32> -> vector<128x32xf32>
    %138 = arith.truncf %137 : vector<128x32xf32> to vector<128x32xbf16>
    %c0_44 = arith.constant 0 : index
    %c0_45 = arith.constant 0 : index
    %139 = vector.load %arg12[%c0_44, %c0_45] : memref<128x128xbf16, #tpu.memory_space<vmem>>, vector<128x32xbf16>
    tpu.vector_store %arg12[%c0_44, %c0_45], %138 {strides = array<i32>} : memref<128x128xbf16, #tpu.memory_space<vmem>>, vector<128x32xbf16>,
    %140 = vector.extract_strided_slice %39 {offsets = [0, 32], sizes = [128, 32], strides = [1, 1]} : vector<128x128xbf16> to vector<128x32xbf16>
    %141 = vector.extract_strided_slice %32 {offsets = [0, 32], sizes = [128, 32], strides = [1, 1]} : vector<128x128xbf16> to vector<128x32xbf16>
    %cst_46 = arith.constant dense<0.000000e+00> : vector<128x128xf32>
    %142 = tpu.matmul %140, %141, %cst_46 {dimension_numbers = #tpu.dot_dimension_numbers<[1], [1], [0], [0], [0, 0, 1, 0], [], []>} : vector<128x32xbf16>, vector<128x32xbf16>, vector<128x128xf32> -> vector<128x128xf32>
    %143 = vector.extract_strided_slice %43 {offsets = [0, 32], sizes = [128, 32], strides = [1, 1]} : vector<128x128xbf16> to vector<128x32xbf16>
    %144 = vector.extract_strided_slice %35 {offsets = [0, 32], sizes = [128, 32], strides = [1, 1]} : vector<128x128xbf16> to vector<128x32xbf16>
    %cst_47 = arith.constant dense<0.000000e+00> : vector<128x128xf32>
    %145 = tpu.matmul %143, %144, %cst_47 {dimension_numbers = #tpu.dot_dimension_numbers<[1], [1], [0], [0], [0, 0, 1, 0], [], []>} : vector<128x32xbf16>, vector<128x32xbf16>, vector<128x128xf32> -> vector<128x128xf32>
    %146 = arith.truncf %145 : vector<128x128xf32> to vector<128x128xbf16>
    %c1_i32_48 = arith.constant 1 : i32
    %147 = tpu.dynamic_rotate %146 by %c1_i32_48 dim 1 : vector<128x128xbf16>, i32 -> vector<128x128xbf16>
    %148 = vector.shape_cast %62 : vector<128x1xi1> to vector<128x1xi1>
    %149 = vector.broadcast %148 : vector<128x1xi1> to vector<128x128xi1>
    %150 = arith.select %149, %147, %146 : vector<128x128xi1>, vector<128x128xbf16>
    %c2_i32_49 = arith.constant 2 : i32
    %151 = tpu.dynamic_rotate %150 by %c2_i32_49 dim 1 : vector<128x128xbf16>, i32 -> vector<128x128xbf16>
    %152 = vector.shape_cast %66 : vector<128x1xi1> to vector<128x1xi1>
    %153 = vector.broadcast %152 : vector<128x1xi1> to vector<128x128xi1>
    %154 = arith.select %153, %151, %150 : vector<128x128xi1>, vector<128x128xbf16>
    %c4_i32_50 = arith.constant 4 : i32
    %155 = tpu.dynamic_rotate %154 by %c4_i32_50 dim 1 : vector<128x128xbf16>, i32 -> vector<128x128xbf16>
    %156 = vector.shape_cast %70 : vector<128x1xi1> to vector<128x1xi1>
    %157 = vector.broadcast %156 : vector<128x1xi1> to vector<128x128xi1>
    %158 = arith.select %157, %155, %154 : vector<128x128xi1>, vector<128x128xbf16>
    %c8_i32_51 = arith.constant 8 : i32
    %159 = tpu.dynamic_rotate %158 by %c8_i32_51 dim 1 : vector<128x128xbf16>, i32 -> vector<128x128xbf16>
    %160 = vector.shape_cast %74 : vector<128x1xi1> to vector<128x1xi1>
    %161 = vector.broadcast %160 : vector<128x1xi1> to vector<128x128xi1>
    %162 = arith.select %161, %159, %158 : vector<128x128xi1>, vector<128x128xbf16>
    %c16_i32_52 = arith.constant 16 : i32
    %163 = tpu.dynamic_rotate %162 by %c16_i32_52 dim 1 : vector<128x128xbf16>, i32 -> vector<128x128xbf16>
    %164 = vector.shape_cast %78 : vector<128x1xi1> to vector<128x1xi1>
    %165 = vector.broadcast %164 : vector<128x1xi1> to vector<128x128xi1>
    %166 = arith.select %165, %163, %162 : vector<128x128xi1>, vector<128x128xbf16>
    %c32_i32_53 = arith.constant 32 : i32
    %167 = tpu.dynamic_rotate %166 by %c32_i32_53 dim 1 : vector<128x128xbf16>, i32 -> vector<128x128xbf16>
    %168 = vector.shape_cast %82 : vector<128x1xi1> to vector<128x1xi1>
    %169 = vector.broadcast %168 : vector<128x1xi1> to vector<128x128xi1>
    %170 = arith.select %169, %167, %166 : vector<128x128xi1>, vector<128x128xbf16>
    %c64_i32_54 = arith.constant 64 : i32
    %171 = tpu.dynamic_rotate %170 by %c64_i32_54 dim 1 : vector<128x128xbf16>, i32 -> vector<128x128xbf16>
    %172 = vector.shape_cast %86 : vector<128x1xi1> to vector<128x1xi1>
    %173 = vector.broadcast %172 : vector<128x1xi1> to vector<128x128xi1>
    %174 = arith.select %173, %171, %170 : vector<128x128xi1>, vector<128x128xbf16>
    %175 = arith.extf %174 : vector<128x128xbf16> to vector<128x128xf32>
    %176 = arith.addf %142, %175 : vector<128x128xf32>
    %177 = arith.addf %176, %51 : vector<128x128xf32>
    %cst_55 = arith.constant dense<0xFF800000> : vector<128xf32>
    %178 = vector.multi_reduction <maximumf>, %177, %cst_55 [1] : vector<128x128xf32> to vector<128xf32>
    %179 = vector.shape_cast %178 : vector<128xf32> to vector<128x1xf32>
    %180 = vector.broadcast %179 : vector<128x1xf32> to vector<128x128xf32>
    %181 = arith.subf %177, %180 : vector<128x128xf32>
    %182 = math.exp %181 : vector<128x128xf32>
    %cst_56 = arith.constant dense<0.000000e+00> : vector<128xf32>
    %183 = vector.multi_reduction <add>, %182, %cst_56 [1] : vector<128x128xf32> to vector<128xf32>
    %184 = vector.shape_cast %183 : vector<128xf32> to vector<128x1xf32>
    %185 = tpu.reciprocal %184 {approx = true} : vector<128x1xf32> -> vector<128x1xf32>
    %186 = vector.broadcast %185 : vector<128x1xf32> to vector<128x128xf32>
    %187 = arith.mulf %182, %186 : vector<128x128xf32>
    %188 = arith.truncf %187 : vector<128x128xf32> to vector<128x128xbf16>
    %189 = vector.extract_strided_slice %34 {offsets = [0, 32], sizes = [128, 32], strides = [1, 1]} : vector<128x128xbf16> to vector<128x32xbf16>
    %cst_57 = arith.constant dense<0.000000e+00> : vector<128x32xf32>
    %190 = tpu.matmul %188, %189, %cst_57 {dimension_numbers = #tpu.dot_dimension_numbers<[1], [0], [0], [1], [0, 0, 1, 1], [], []>} : vector<128x128xbf16>, vector<128x32xbf16>, vector<128x32xf32> -> vector<128x32xf32>
    %191 = arith.truncf %190 : vector<128x32xf32> to vector<128x32xbf16>
    %c0_58 = arith.constant 0 : index
    %c32 = arith.constant 32 : index
    %192 = vector.load %arg12[%c0_58, %c32] : memref<128x128xbf16, #tpu.memory_space<vmem>>, vector<128x32xbf16>
    tpu.vector_store %arg12[%c0_58, %c32], %191 {strides = array<i32>} : memref<128x128xbf16, #tpu.memory_space<vmem>>, vector<128x32xbf16>,
    %193 = vector.extract_strided_slice %39 {offsets = [0, 64], sizes = [128, 32], strides = [1, 1]} : vector<128x128xbf16> to vector<128x32xbf16>
    %194 = vector.extract_strided_slice %32 {offsets = [0, 64], sizes = [128, 32], strides = [1, 1]} : vector<128x128xbf16> to vector<128x32xbf16>
    %cst_59 = arith.constant dense<0.000000e+00> : vector<128x128xf32>
    %195 = tpu.matmul %193, %194, %cst_59 {dimension_numbers = #tpu.dot_dimension_numbers<[1], [1], [0], [0], [0, 0, 1, 0], [], []>} : vector<128x32xbf16>, vector<128x32xbf16>, vector<128x128xf32> -> vector<128x128xf32>
    %196 = vector.extract_strided_slice %43 {offsets = [0, 64], sizes = [128, 32], strides = [1, 1]} : vector<128x128xbf16> to vector<128x32xbf16>
    %197 = vector.extract_strided_slice %35 {offsets = [0, 64], sizes = [128, 32], strides = [1, 1]} : vector<128x128xbf16> to vector<128x32xbf16>
    %cst_60 = arith.constant dense<0.000000e+00> : vector<128x128xf32>
    %198 = tpu.matmul %196, %197, %cst_60 {dimension_numbers = #tpu.dot_dimension_numbers<[1], [1], [0], [0], [0, 0, 1, 0], [], []>} : vector<128x32xbf16>, vector<128x32xbf16>, vector<128x128xf32> -> vector<128x128xf32>
    %199 = arith.truncf %198 : vector<128x128xf32> to vector<128x128xbf16>
    %c1_i32_61 = arith.constant 1 : i32
    %200 = tpu.dynamic_rotate %199 by %c1_i32_61 dim 1 : vector<128x128xbf16>, i32 -> vector<128x128xbf16>
    %201 = vector.shape_cast %62 : vector<128x1xi1> to vector<128x1xi1>
    %202 = vector.broadcast %201 : vector<128x1xi1> to vector<128x128xi1>
    %203 = arith.select %202, %200, %199 : vector<128x128xi1>, vector<128x128xbf16>
    %c2_i32_62 = arith.constant 2 : i32
    %204 = tpu.dynamic_rotate %203 by %c2_i32_62 dim 1 : vector<128x128xbf16>, i32 -> vector<128x128xbf16>
    %205 = vector.shape_cast %66 : vector<128x1xi1> to vector<128x1xi1>
    %206 = vector.broadcast %205 : vector<128x1xi1> to vector<128x128xi1>
    %207 = arith.select %206, %204, %203 : vector<128x128xi1>, vector<128x128xbf16>
    %c4_i32_63 = arith.constant 4 : i32
    %208 = tpu.dynamic_rotate %207 by %c4_i32_63 dim 1 : vector<128x128xbf16>, i32 -> vector<128x128xbf16>
    %209 = vector.shape_cast %70 : vector<128x1xi1> to vector<128x1xi1>
    %210 = vector.broadcast %209 : vector<128x1xi1> to vector<128x128xi1>
    %211 = arith.select %210, %208, %207 : vector<128x128xi1>, vector<128x128xbf16>
    %c8_i32_64 = arith.constant 8 : i32
    %212 = tpu.dynamic_rotate %211 by %c8_i32_64 dim 1 : vector<128x128xbf16>, i32 -> vector<128x128xbf16>
    %213 = vector.shape_cast %74 : vector<128x1xi1> to vector<128x1xi1>
    %214 = vector.broadcast %213 : vector<128x1xi1> to vector<128x128xi1>
    %215 = arith.select %214, %212, %211 : vector<128x128xi1>, vector<128x128xbf16>
    %c16_i32_65 = arith.constant 16 : i32
    %216 = tpu.dynamic_rotate %215 by %c16_i32_65 dim 1 : vector<128x128xbf16>, i32 -> vector<128x128xbf16>
    %217 = vector.shape_cast %78 : vector<128x1xi1> to vector<128x1xi1>
    %218 = vector.broadcast %217 : vector<128x1xi1> to vector<128x128xi1>
    %219 = arith.select %218, %216, %215 : vector<128x128xi1>, vector<128x128xbf16>
    %c32_i32_66 = arith.constant 32 : i32
    %220 = tpu.dynamic_rotate %219 by %c32_i32_66 dim 1 : vector<128x128xbf16>, i32 -> vector<128x128xbf16>
    %221 = vector.shape_cast %82 : vector<128x1xi1> to vector<128x1xi1>
    %222 = vector.broadcast %221 : vector<128x1xi1> to vector<128x128xi1>
    %223 = arith.select %222, %220, %219 : vector<128x128xi1>, vector<128x128xbf16>
    %c64_i32_67 = arith.constant 64 : i32
    %224 = tpu.dynamic_rotate %223 by %c64_i32_67 dim 1 : vector<128x128xbf16>, i32 -> vector<128x128xbf16>
    %225 = vector.shape_cast %86 : vector<128x1xi1> to vector<128x1xi1>
    %226 = vector.broadcast %225 : vector<128x1xi1> to vector<128x128xi1>
    %227 = arith.select %226, %224, %223 : vector<128x128xi1>, vector<128x128xbf16>
    %228 = arith.extf %227 : vector<128x128xbf16> to vector<128x128xf32>
    %229 = arith.addf %195, %228 : vector<128x128xf32>
    %230 = arith.addf %229, %51 : vector<128x128xf32>
    %cst_68 = arith.constant dense<0xFF800000> : vector<128xf32>
    %231 = vector.multi_reduction <maximumf>, %230, %cst_68 [1] : vector<128x128xf32> to vector<128xf32>
    %232 = vector.shape_cast %231 : vector<128xf32> to vector<128x1xf32>
    %233 = vector.broadcast %232 : vector<128x1xf32> to vector<128x128xf32>
    %234 = arith.subf %230, %233 : vector<128x128xf32>
    %235 = math.exp %234 : vector<128x128xf32>
    %cst_69 = arith.constant dense<0.000000e+00> : vector<128xf32>
    %236 = vector.multi_reduction <add>, %235, %cst_69 [1] : vector<128x128xf32> to vector<128xf32>
    %237 = vector.shape_cast %236 : vector<128xf32> to vector<128x1xf32>
    %238 = tpu.reciprocal %237 {approx = true} : vector<128x1xf32> -> vector<128x1xf32>
    %239 = vector.broadcast %238 : vector<128x1xf32> to vector<128x128xf32>
    %240 = arith.mulf %235, %239 : vector<128x128xf32>
    %241 = arith.truncf %240 : vector<128x128xf32> to vector<128x128xbf16>
    %242 = vector.extract_strided_slice %34 {offsets = [0, 64], sizes = [128, 32], strides = [1, 1]} : vector<128x128xbf16> to vector<128x32xbf16>
    %cst_70 = arith.constant dense<0.000000e+00> : vector<128x32xf32>
    %243 = tpu.matmul %241, %242, %cst_70 {dimension_numbers = #tpu.dot_dimension_numbers<[1], [0], [0], [1], [0, 0, 1, 1], [], []>} : vector<128x128xbf16>, vector<128x32xbf16>, vector<128x32xf32> -> vector<128x32xf32>
    %244 = arith.truncf %243 : vector<128x32xf32> to vector<128x32xbf16>
    %c0_71 = arith.constant 0 : index
    %c64 = arith.constant 64 : index
    %245 = vector.load %arg12[%c0_71, %c64] : memref<128x128xbf16, #tpu.memory_space<vmem>>, vector<128x32xbf16>
    tpu.vector_store %arg12[%c0_71, %c64], %244 {strides = array<i32>} : memref<128x128xbf16, #tpu.memory_space<vmem>>, vector<128x32xbf16>,
    %246 = vector.extract_strided_slice %39 {offsets = [0, 96], sizes = [128, 32], strides = [1, 1]} : vector<128x128xbf16> to vector<128x32xbf16>
    %247 = vector.extract_strided_slice %32 {offsets = [0, 96], sizes = [128, 32], strides = [1, 1]} : vector<128x128xbf16> to vector<128x32xbf16>
    %cst_72 = arith.constant dense<0.000000e+00> : vector<128x128xf32>
    %248 = tpu.matmul %246, %247, %cst_72 {dimension_numbers = #tpu.dot_dimension_numbers<[1], [1], [0], [0], [0, 0, 1, 0], [], []>} : vector<128x32xbf16>, vector<128x32xbf16>, vector<128x128xf32> -> vector<128x128xf32>
    %249 = vector.extract_strided_slice %43 {offsets = [0, 96], sizes = [128, 32], strides = [1, 1]} : vector<128x128xbf16> to vector<128x32xbf16>
    %250 = vector.extract_strided_slice %35 {offsets = [0, 96], sizes = [128, 32], strides = [1, 1]} : vector<128x128xbf16> to vector<128x32xbf16>
    %cst_73 = arith.constant dense<0.000000e+00> : vector<128x128xf32>
    %251 = tpu.matmul %249, %250, %cst_73 {dimension_numbers = #tpu.dot_dimension_numbers<[1], [1], [0], [0], [0, 0, 1, 0], [], []>} : vector<128x32xbf16>, vector<128x32xbf16>, vector<128x128xf32> -> vector<128x128xf32>
    %252 = arith.truncf %251 : vector<128x128xf32> to vector<128x128xbf16>
    %c1_i32_74 = arith.constant 1 : i32
    %253 = tpu.dynamic_rotate %252 by %c1_i32_74 dim 1 : vector<128x128xbf16>, i32 -> vector<128x128xbf16>
    %254 = vector.shape_cast %62 : vector<128x1xi1> to vector<128x1xi1>
    %255 = vector.broadcast %254 : vector<128x1xi1> to vector<128x128xi1>
    %256 = arith.select %255, %253, %252 : vector<128x128xi1>, vector<128x128xbf16>
    %c2_i32_75 = arith.constant 2 : i32
    %257 = tpu.dynamic_rotate %256 by %c2_i32_75 dim 1 : vector<128x128xbf16>, i32 -> vector<128x128xbf16>
    %258 = vector.shape_cast %66 : vector<128x1xi1> to vector<128x1xi1>
    %259 = vector.broadcast %258 : vector<128x1xi1> to vector<128x128xi1>
    %260 = arith.select %259, %257, %256 : vector<128x128xi1>, vector<128x128xbf16>
    %c4_i32_76 = arith.constant 4 : i32
    %261 = tpu.dynamic_rotate %260 by %c4_i32_76 dim 1 : vector<128x128xbf16>, i32 -> vector<128x128xbf16>
    %262 = vector.shape_cast %70 : vector<128x1xi1> to vector<128x1xi1>
    %263 = vector.broadcast %262 : vector<128x1xi1> to vector<128x128xi1>
    %264 = arith.select %263, %261, %260 : vector<128x128xi1>, vector<128x128xbf16>
    %c8_i32_77 = arith.constant 8 : i32
    %265 = tpu.dynamic_rotate %264 by %c8_i32_77 dim 1 : vector<128x128xbf16>, i32 -> vector<128x128xbf16>
    %266 = vector.shape_cast %74 : vector<128x1xi1> to vector<128x1xi1>
    %267 = vector.broadcast %266 : vector<128x1xi1> to vector<128x128xi1>
    %268 = arith.select %267, %265, %264 : vector<128x128xi1>, vector<128x128xbf16>
    %c16_i32_78 = arith.constant 16 : i32
    %269 = tpu.dynamic_rotate %268 by %c16_i32_78 dim 1 : vector<128x128xbf16>, i32 -> vector<128x128xbf16>
    %270 = vector.shape_cast %78 : vector<128x1xi1> to vector<128x1xi1>
    %271 = vector.broadcast %270 : vector<128x1xi1> to vector<128x128xi1>
    %272 = arith.select %271, %269, %268 : vector<128x128xi1>, vector<128x128xbf16>
    %c32_i32_79 = arith.constant 32 : i32
    %273 = tpu.dynamic_rotate %272 by %c32_i32_79 dim 1 : vector<128x128xbf16>, i32 -> vector<128x128xbf16>
    %274 = vector.shape_cast %82 : vector<128x1xi1> to vector<128x1xi1>
    %275 = vector.broadcast %274 : vector<128x1xi1> to vector<128x128xi1>
    %276 = arith.select %275, %273, %272 : vector<128x128xi1>, vector<128x128xbf16>
    %c64_i32_80 = arith.constant 64 : i32
    %277 = tpu.dynamic_rotate %276 by %c64_i32_80 dim 1 : vector<128x128xbf16>, i32 -> vector<128x128xbf16>
    %278 = vector.shape_cast %86 : vector<128x1xi1> to vector<128x1xi1>
    %279 = vector.broadcast %278 : vector<128x1xi1> to vector<128x128xi1>
    %280 = arith.select %279, %277, %276 : vector<128x128xi1>, vector<128x128xbf16>
    %281 = arith.extf %280 : vector<128x128xbf16> to vector<128x128xf32>
    %282 = arith.addf %248, %281 : vector<128x128xf32>
    %283 = arith.addf %282, %51 : vector<128x128xf32>
    %cst_81 = arith.constant dense<0xFF800000> : vector<128xf32>
    %284 = vector.multi_reduction <maximumf>, %283, %cst_81 [1] : vector<128x128xf32> to vector<128xf32>
    %285 = vector.shape_cast %284 : vector<128xf32> to vector<128x1xf32>
    %286 = vector.broadcast %285 : vector<128x1xf32> to vector<128x128xf32>
    %287 = arith.subf %283, %286 : vector<128x128xf32>
    %288 = math.exp %287 : vector<128x128xf32>
    %cst_82 = arith.constant dense<0.000000e+00> : vector<128xf32>
    %289 = vector.multi_reduction <add>, %288, %cst_82 [1] : vector<128x128xf32> to vector<128xf32>
    %290 = vector.shape_cast %289 : vector<128xf32> to vector<128x1xf32>
    %291 = tpu.reciprocal %290 {approx = true} : vector<128x1xf32> -> vector<128x1xf32>
    %292 = vector.broadcast %291 : vector<128x1xf32> to vector<128x128xf32>
    %293 = arith.mulf %288, %292 : vector<128x128xf32>
    %294 = arith.truncf %293 : vector<128x128xf32> to vector<128x128xbf16>
    %295 = vector.extract_strided_slice %34 {offsets = [0, 96], sizes = [128, 32], strides = [1, 1]} : vector<128x128xbf16> to vector<128x32xbf16>
    %cst_83 = arith.constant dense<0.000000e+00> : vector<128x32xf32>
    %296 = tpu.matmul %294, %295, %cst_83 {dimension_numbers = #tpu.dot_dimension_numbers<[1], [0], [0], [1], [0, 0, 1, 1], [], []>} : vector<128x128xbf16>, vector<128x32xbf16>, vector<128x32xf32> -> vector<128x32xf32>
    %297 = arith.truncf %296 : vector<128x32xf32> to vector<128x32xbf16>
    %c0_84 = arith.constant 0 : index
    %c96 = arith.constant 96 : index
    %298 = vector.load %arg12[%c0_84, %c96] : memref<128x128xbf16, #tpu.memory_space<vmem>>, vector<128x32xbf16>
    tpu.vector_store %arg12[%c0_84, %c96], %297 {strides = array<i32>} : memref<128x128xbf16, #tpu.memory_space<vmem>>, vector<128x32xbf16>,
    %c0_85 = arith.constant 0 : index
    %c0_86 = arith.constant 0 : index
    %299 = vector.load %arg12[%c0_85, %c0_86] : memref<128x128xbf16, #tpu.memory_space<vmem>>, vector<128x128xbf16>
    %c0_87 = arith.constant 0 : index
    %c0_88 = arith.constant 0 : index
    %300 = vector.load %arg7[%c0_87, %c0_88] : memref<128x128xbf16, #tpu.memory_space<vmem>>, vector<128x128xbf16>
    %cst_89 = arith.constant dense<0.000000e+00> : vector<128x128xf32>
    %301 = tpu.matmul %299, %300, %cst_89 {dimension_numbers = #tpu.dot_dimension_numbers<[1], [1], [0], [0], [0, 0, 1, 0], [], []>} : vector<128x128xbf16>, vector<128x128xbf16>, vector<128x128xf32> -> vector<128x128xf32>
    %c0_90 = arith.constant 0 : index
    %c0_91 = arith.constant 0 : index
    %302 = vector.load %arg8[%c0_90, %c0_91] : memref<1x128xf32, #tpu.memory_space<vmem>>, vector<1x128xf32>
    %303 = vector.broadcast %302 : vector<1x128xf32> to vector<128x128xf32>
    %304 = arith.addf %301, %303 : vector<128x128xf32>
    %c0_92 = arith.constant 0 : index
    %c0_93 = arith.constant 0 : index
    %c0_94 = arith.constant 0 : index
    %305 = vector.load %arg11[%c0_92, %c0_93, %c0_94] : memref<1x128x128xf32, #tpu.memory_space<vmem>>, vector<1x128x128xf32>
    %306 = vector.shape_cast %305 : vector<1x128x128xf32> to vector<128x128xf32>
    %307 = vector.shape_cast %304 : vector<128x128xf32> to vector<1x128x128xf32>
    tpu.vector_store %arg11[%c0_92, %c0_93, %c0_94], %307 {strides = array<i32>} : memref<1x128x128xf32, #tpu.memory_space<vmem>>, vector<1x128x128xf32>,
    return
  }
  func.func @transform_0(%arg0: i32) -> (i32, i32, i32) {
    %c0_i32 = arith.constant 0 : i32
    %c0_i32_0 = arith.constant 0 : i32
    %c0_i32_1 = arith.constant 0 : i32
    return %arg0, %c0_i32, %c0_i32_0 : i32, i32, i32
  }
  func.func @transform_1(%arg0: i32) -> (i32, i32) {
    %c0_i32 = arith.constant 0 : i32
    %c0_i32_0 = arith.constant 0 : i32
    %c0_i32_1 = arith.constant 0 : i32
    return %c0_i32, %c0_i32_0 : i32, i32
  }
  func.func @transform_2(%arg0: i32) -> (i32, i32) {
    %c0_i32 = arith.constant 0 : i32
    %c0_i32_0 = arith.constant 0 : i32
    %c0_i32_1 = arith.constant 0 : i32
    return %c0_i32, %c0_i32_0 : i32, i32
  }
  func.func @transform_3(%arg0: i32) -> (i32, i32) {
    %c0_i32 = arith.constant 0 : i32
    %c0_i32_0 = arith.constant 0 : i32
    %c0_i32_1 = arith.constant 0 : i32
    return %c0_i32, %c0_i32_0 : i32, i32
  }
  func.func @transform_4(%arg0: i32) -> (i32, i32) {
    %c0_i32 = arith.constant 0 : i32
    %c0_i32_0 = arith.constant 0 : i32
    %c0_i32_1 = arith.constant 0 : i32
    return %c0_i32, %c0_i32_0 : i32, i32
  }
  func.func @transform_5(%arg0: i32) -> (i32, i32) {
    %c0_i32 = arith.constant 0 : i32
    %c0_i32_0 = arith.constant 0 : i32
    %c0_i32_1 = arith.constant 0 : i32
    return %c0_i32, %c0_i32_0 : i32, i32
  }
  func.func @transform_6(%arg0: i32) -> (i32, i32) {
    %c0_i32 = arith.constant 0 : i32
    %c0_i32_0 = arith.constant 0 : i32
    %c0_i32_1 = arith.constant 0 : i32
    return %c0_i32, %c0_i32_0 : i32, i32
  }
  func.func @transform_7(%arg0: i32) -> (i32, i32) {
    %c0_i32 = arith.constant 0 : i32
    %c0_i32_0 = arith.constant 0 : i32
    %c0_i32_1 = arith.constant 0 : i32
    return %c0_i32, %c0_i32_0 : i32, i32
  }
  func.func @transform_8(%arg0: i32) -> (i32, i32) {
    %c0_i32 = arith.constant 0 : i32
    %c0_i32_0 = arith.constant 0 : i32
    %c0_i32_1 = arith.constant 0 : i32
    return %c0_i32, %c0_i32_0 : i32, i32
  }
  func.func @transform_9(%arg0: i32) -> (i32, i32) {
    %c0_i32 = arith.constant 0 : i32
    %c0_i32_0 = arith.constant 0 : i32
    %c0_i32_1 = arith.constant 0 : i32
    return %c0_i32, %c0_i32_0 : i32, i32
  }
  func.func @transform_10(%arg0: i32) -> (i32, i32, i32) {
    %c0_i32 = arith.constant 0 : i32
    %c0_i32_0 = arith.constant 0 : i32
    %c0_i32_1 = arith.constant 0 : i32
    return %arg0, %c0_i32, %c0_i32_0 : i32, i32, i32
  }
}

module attributes {stable_mosaic.version = 11 : i64} {
  func.func @_mhsa_kernel(%arg0: i32, %arg1: memref<1x128x128xf32, #tpu.memory_space<vmem>>, %arg2: memref<128x128xbf16, #tpu.memory_space<vmem>>, %arg3: memref<1x128xf32, #tpu.memory_space<vmem>>, %arg4: memref<1x128xf32, #tpu.memory_space<vmem>>, %arg5: memref<384x128xbf16, #tpu.memory_space<vmem>>, %arg6: memref<1x384xf32, #tpu.memory_space<vmem>>, %arg7: memref<128x128xbf16, #tpu.memory_space<vmem>>, %arg8: memref<1x128xf32, #tpu.memory_space<vmem>>, %arg9: memref<1x128xf32, #tpu.memory_space<vmem>>, %arg10: memref<1x128xf32, #tpu.memory_space<vmem>>, %arg11: memref<1x128x128xf32, #tpu.memory_space<vmem>>, %arg12: memref<128x128xbf16, #tpu.memory_space<vmem>>) attributes {dimension_semantics = [#tpu.dimension_semantics<parallel>], iteration_bounds = array<i64: 2>, scalar_prefetch = 0 : i64, scratch_operands = 1 : i64, tpu.core_type = #tpu.core_type<tc>, window_params = [{transform_indices = @transform_0, window_bounds = array<i64: 1, 128, 128>}, {pipeline_mode = #tpu.pipeline_mode<synchronous>, transform_indices = @transform_1, window_bounds = array<i64: 128, 128>}, {pipeline_mode = #tpu.pipeline_mode<synchronous>, transform_indices = @transform_2, window_bounds = array<i64: 1, 128>}, {pipeline_mode = #tpu.pipeline_mode<synchronous>, transform_indices = @transform_3, window_bounds = array<i64: 1, 128>}, {pipeline_mode = #tpu.pipeline_mode<synchronous>, transform_indices = @transform_4, window_bounds = array<i64: 384, 128>}, {pipeline_mode = #tpu.pipeline_mode<synchronous>, transform_indices = @transform_5, window_bounds = array<i64: 1, 384>}, {pipeline_mode = #tpu.pipeline_mode<synchronous>, transform_indices = @transform_6, window_bounds = array<i64: 128, 128>}, {pipeline_mode = #tpu.pipeline_mode<synchronous>, transform_indices = @transform_7, window_bounds = array<i64: 1, 128>}, {pipeline_mode = #tpu.pipeline_mode<synchronous>, transform_indices = @transform_8, window_bounds = array<i64: 1, 128>}, {pipeline_mode = #tpu.pipeline_mode<synchronous>, transform_indices = @transform_9, window_bounds = array<i64: 1, 128>}, {transform_indices = @transform_10, window_bounds = array<i64: 1, 128, 128>}]} {
    %c0 = arith.constant 0 : index
    %c0_0 = arith.constant 0 : index
    %c0_1 = arith.constant 0 : index
    %0 = vector.load %arg1[%c0, %c0_0, %c0_1] : memref<1x128x128xf32, #tpu.memory_space<vmem>>, vector<1x128x128xf32>
    %1 = vector.shape_cast %0 : vector<1x128x128xf32> to vector<128x128xf32>
    %cst = arith.constant dense<0.000000e+00> : vector<128xf32>
    %2 = vector.multi_reduction <add>, %1, %cst [1] : vector<128x128xf32> to vector<128xf32>
    %3 = vector.shape_cast %2 : vector<128xf32> to vector<128x1xf32>
    %cst_2 = arith.constant 1.280000e+02 : f32
    %4 = vector.broadcast %cst_2 : f32 to vector<128x1xf32>
    %5 = arith.divf %3, %4 : vector<128x1xf32>
    %6 = vector.broadcast %5 : vector<128x1xf32> to vector<128x128xf32>
    %7 = arith.subf %1, %6 : vector<128x128xf32>
    %8 = arith.mulf %7, %7 : vector<128x128xf32>
    %cst_3 = arith.constant dense<0.000000e+00> : vector<128xf32>
    %9 = vector.multi_reduction <add>, %8, %cst_3 [1] : vector<128x128xf32> to vector<128xf32>
    %10 = vector.shape_cast %9 : vector<128xf32> to vector<128x1xf32>
    %cst_4 = arith.constant 1.280000e+02 : f32
    %11 = vector.broadcast %cst_4 : f32 to vector<128x1xf32>
    %12 = arith.divf %10, %11 : vector<128x1xf32>
    %cst_5 = arith.constant 9.99999974E-6 : f32
    %13 = vector.broadcast %cst_5 : f32 to vector<128x1xf32>
    %14 = arith.addf %12, %13 : vector<128x1xf32>
    %15 = math.rsqrt %14 : vector<128x1xf32>
    %16 = vector.broadcast %15 : vector<128x1xf32> to vector<128x128xf32>
    %17 = arith.mulf %7, %16 : vector<128x128xf32>
    %c0_6 = arith.constant 0 : index
    %c0_7 = arith.constant 0 : index
    %18 = vector.load %arg3[%c0_6, %c0_7] : memref<1x128xf32, #tpu.memory_space<vmem>>, vector<1x128xf32>
    %19 = vector.broadcast %18 : vector<1x128xf32> to vector<128x128xf32>
    %20 = arith.mulf %17, %19 : vector<128x128xf32>
    %c0_8 = arith.constant 0 : index
    %c0_9 = arith.constant 0 : index
    %21 = vector.load %arg4[%c0_8, %c0_9] : memref<1x128xf32, #tpu.memory_space<vmem>>, vector<1x128xf32>
    %22 = vector.broadcast %21 : vector<1x128xf32> to vector<128x128xf32>
    %23 = arith.addf %20, %22 : vector<128x128xf32>
    %24 = arith.truncf %23 : vector<128x128xf32> to vector<128x128xbf16>
    %c0_10 = arith.constant 0 : index
    %c0_11 = arith.constant 0 : index
    %25 = vector.load %arg5[%c0_10, %c0_11] : memref<384x128xbf16, #tpu.memory_space<vmem>>, vector<384x128xbf16>
    %cst_12 = arith.constant dense<0.000000e+00> : vector<128x384xf32>
    %26 = tpu.matmul %24, %25, %cst_12 {dimension_numbers = #tpu.dot_dimension_numbers<[1], [1], [0], [0], [0, 0, 1, 0], [], []>} : vector<128x128xbf16>, vector<384x128xbf16>, vector<128x384xf32> -> vector<128x384xf32>
    %c0_13 = arith.constant 0 : index
    %c0_14 = arith.constant 0 : index
    %27 = vector.load %arg6[%c0_13, %c0_14] : memref<1x384xf32, #tpu.memory_space<vmem>>, vector<1x384xf32>
    %28 = vector.broadcast %27 : vector<1x384xf32> to vector<128x384xf32>
    %29 = arith.addf %26, %28 : vector<128x384xf32>
    %30 = vector.extract_strided_slice %29 {offsets = [0, 0], sizes = [128, 128], strides = [1, 1]} : vector<128x384xf32> to vector<128x128xf32>
    %31 = vector.extract_strided_slice %29 {offsets = [0, 128], sizes = [128, 128], strides = [1, 1]} : vector<128x384xf32> to vector<128x128xf32>
    %32 = arith.truncf %31 : vector<128x128xf32> to vector<128x128xbf16>
    %33 = vector.extract_strided_slice %29 {offsets = [0, 256], sizes = [128, 128], strides = [1, 1]} : vector<128x384xf32> to vector<128x128xf32>
    %34 = arith.truncf %33 : vector<128x128xf32> to vector<128x128xbf16>
    %c0_15 = arith.constant 0 : index
    %c0_16 = arith.constant 0 : index
    %35 = vector.load %arg2[%c0_15, %c0_16] : memref<128x128xbf16, #tpu.memory_space<vmem>>, vector<128x128xbf16>
    %c0_17 = arith.constant 0 : index
    %c0_18 = arith.constant 0 : index
    %36 = vector.load %arg9[%c0_17, %c0_18] : memref<1x128xf32, #tpu.memory_space<vmem>>, vector<1x128xf32>
    %37 = vector.broadcast %36 : vector<1x128xf32> to vector<128x128xf32>
    %38 = arith.addf %30, %37 : vector<128x128xf32>
    %39 = arith.truncf %38 : vector<128x128xf32> to vector<128x128xbf16>
    %c0_19 = arith.constant 0 : index
    %c0_20 = arith.constant 0 : index
    %40 = vector.load %arg10[%c0_19, %c0_20] : memref<1x128xf32, #tpu.memory_space<vmem>>, vector<1x128xf32>
    %41 = vector.broadcast %40 : vector<1x128xf32> to vector<128x128xf32>
    %42 = arith.addf %30, %41 : vector<128x128xf32>
    %43 = arith.truncf %42 : vector<128x128xf32> to vector<128x128xbf16>
    %44 = tpu.iota {dimensions = array<i32: 0>} : vector<128x128xi32>
    %45 = tpu.iota {dimensions = array<i32: 1>} : vector<128x128xi32>
    %c0_i32 = arith.constant 0 : i32
    %46 = vector.broadcast %c0_i32 : i32 to vector<128x128xi32>
    %47 = arith.addi %44, %46 : vector<128x128xi32>
    %48 = arith.cmpi sgt, %45, %47 : vector<128x128xi32>
    %cst_21 = arith.constant -1.000000e+09 : f32
    %cst_22 = arith.constant 0.000000e+00 : f32
    %49 = vector.broadcast %cst_21 : f32 to vector<128x128xf32>
    %50 = vector.broadcast %cst_22 : f32 to vector<128x128xf32>
    %51 = arith.select %48, %49, %50 : vector<128x128xi1>, vector<128x128xf32>
    %52 = tpu.iota {dimensions = array<i32: 0>} : vector<128x1xi32>
    %c127_i32 = arith.constant 127 : i32
    %53 = vector.broadcast %c127_i32 : i32 to vector<128x1xi32>
    %54 = arith.cmpi eq, %52, %53 : vector<128x1xi32>
    %c1_i32 = arith.constant 1 : i32
    %55 = vector.broadcast %c1_i32 : i32 to vector<128x1xi32>
    %56 = arith.addi %52, %55 : vector<128x1xi32>
    %c0_i32_23 = arith.constant 0 : i32
    %57 = vector.broadcast %c0_i32_23 : i32 to vector<128x1xi32>
    %58 = arith.select %54, %57, %56 : vector<128x1xi1>, vector<128x1xi32>
    %c1_i32_24 = arith.constant 1 : i32
    %59 = vector.broadcast %c1_i32_24 : i32 to vector<128x1xi32>
    %60 = arith.andi %58, %59 : vector<128x1xi32>
    %c0_i32_25 = arith.constant 0 : i32
    %61 = vector.broadcast %c0_i32_25 : i32 to vector<128x1xi32>
    %62 = arith.cmpi ne, %60, %61 : vector<128x1xi32>
    %c2_i32 = arith.constant 2 : i32
    %63 = vector.broadcast %c2_i32 : i32 to vector<128x1xi32>
    %64 = arith.andi %58, %63 : vector<128x1xi32>
    %c0_i32_26 = arith.constant 0 : i32
    %65 = vector.broadcast %c0_i32_26 : i32 to vector<128x1xi32>
    %66 = arith.cmpi ne, %64, %65 : vector<128x1xi32>
    %c4_i32 = arith.constant 4 : i32
    %67 = vector.broadcast %c4_i32 : i32 to vector<128x1xi32>
    %68 = arith.andi %58, %67 : vector<128x1xi32>
    %c0_i32_27 = arith.constant 0 : i32
    %69 = vector.broadcast %c0_i32_27 : i32 to vector<128x1xi32>
    %70 = arith.cmpi ne, %68, %69 : vector<128x1xi32>
    %c8_i32 = arith.constant 8 : i32
    %71 = vector.broadcast %c8_i32 : i32 to vector<128x1xi32>
    %72 = arith.andi %58, %71 : vector<128x1xi32>
    %c0_i32_28 = arith.constant 0 : i32
    %73 = vector.broadcast %c0_i32_28 : i32 to vector<128x1xi32>
    %74 = arith.cmpi ne, %72, %73 : vector<128x1xi32>
    %c16_i32 = arith.constant 16 : i32
    %75 = vector.broadcast %c16_i32 : i32 to vector<128x1xi32>
    %76 = arith.andi %58, %75 : vector<128x1xi32>
    %c0_i32_29 = arith.constant 0 : i32
    %77 = vector.broadcast %c0_i32_29 : i32 to vector<128x1xi32>
    %78 = arith.cmpi ne, %76, %77 : vector<128x1xi32>
    %c32_i32 = arith.constant 32 : i32
    %79 = vector.broadcast %c32_i32 : i32 to vector<128x1xi32>
    %80 = arith.andi %58, %79 : vector<128x1xi32>
    %c0_i32_30 = arith.constant 0 : i32
    %81 = vector.broadcast %c0_i32_30 : i32 to vector<128x1xi32>
    %82 = arith.cmpi ne, %80, %81 : vector<128x1xi32>
    %c64_i32 = arith.constant 64 : i32
    %83 = vector.broadcast %c64_i32 : i32 to vector<128x1xi32>
    %84 = arith.andi %58, %83 : vector<128x1xi32>
    %c0_i32_31 = arith.constant 0 : i32
    %85 = vector.broadcast %c0_i32_31 : i32 to vector<128x1xi32>
    %86 = arith.cmpi ne, %84, %85 : vector<128x1xi32>
    %87 = vector.extract_strided_slice %39 {offsets = [0, 0], sizes = [128, 32], strides = [1, 1]} : vector<128x128xbf16> to vector<128x32xbf16>
    %88 = vector.extract_strided_slice %32 {offsets = [0, 0], sizes = [128, 32], strides = [1, 1]} : vector<128x128xbf16> to vector<128x32xbf16>
    %cst_32 = arith.constant dense<0.000000e+00> : vector<128x128xf32>
    %89 = tpu.matmul %87, %88, %cst_32 {dimension_numbers = #tpu.dot_dimension_numbers<[1], [1], [0], [0], [0, 0, 1, 0], [], []>} : vector<128x32xbf16>, vector<128x32xbf16>, vector<128x128xf32> -> vector<128x128xf32>
    %90 = vector.extract_strided_slice %43 {offsets = [0, 0], sizes = [128, 32], strides = [1, 1]} : vector<128x128xbf16> to vector<128x32xbf16>
    %91 = vector.extract_strided_slice %35 {offsets = [0, 0], sizes = [128, 32], strides = [1, 1]} : vector<128x128xbf16> to vector<128x32xbf16>
    %cst_33 = arith.constant dense<0.000000e+00> : vector<128x128xf32>
    %92 = tpu.matmul %90, %91, %cst_33 {dimension_numbers = #tpu.dot_dimension_numbers<[1], [1], [0], [0], [0, 0, 1, 0], [], []>} : vector<128x32xbf16>, vector<128x32xbf16>, vector<128x128xf32> -> vector<128x128xf32>
    %93 = arith.truncf %92 : vector<128x128xf32> to vector<128x128xbf16>
    %c1_i32_34 = arith.constant 1 : i32
    %94 = tpu.dynamic_rotate %93 by %c1_i32_34 dim 1 : vector<128x128xbf16>, i32 -> vector<128x128xbf16>
    %95 = vector.shape_cast %62 : vector<128x1xi1> to vector<128x1xi1>
    %96 = vector.broadcast %95 : vector<128x1xi1> to vector<128x128xi1>
    %97 = arith.select %96, %94, %93 : vector<128x128xi1>, vector<128x128xbf16>
    %c2_i32_35 = arith.constant 2 : i32
    %98 = tpu.dynamic_rotate %97 by %c2_i32_35 dim 1 : vector<128x128xbf16>, i32 -> vector<128x128xbf16>
    %99 = vector.shape_cast %66 : vector<128x1xi1> to vector<128x1xi1>
    %100 = vector.broadcast %99 : vector<128x1xi1> to vector<128x128xi1>
    %101 = arith.select %100, %98, %97 : vector<128x128xi1>, vector<128x128xbf16>
    %c4_i32_36 = arith.constant 4 : i32
    %102 = tpu.dynamic_rotate %101 by %c4_i32_36 dim 1 : vector<128x128xbf16>, i32 -> vector<128x128xbf16>
    %103 = vector.shape_cast %70 : vector<128x1xi1> to vector<128x1xi1>
    %104 = vector.broadcast %103 : vector<128x1xi1> to vector<128x128xi1>
    %105 = arith.select %104, %102, %101 : vector<128x128xi1>, vector<128x128xbf16>
    %c8_i32_37 = arith.constant 8 : i32
    %106 = tpu.dynamic_rotate %105 by %c8_i32_37 dim 1 : vector<128x128xbf16>, i32 -> vector<128x128xbf16>
    %107 = vector.shape_cast %74 : vector<128x1xi1> to vector<128x1xi1>
    %108 = vector.broadcast %107 : vector<128x1xi1> to vector<128x128xi1>
    %109 = arith.select %108, %106, %105 : vector<128x128xi1>, vector<128x128xbf16>
    %c16_i32_38 = arith.constant 16 : i32
    %110 = tpu.dynamic_rotate %109 by %c16_i32_38 dim 1 : vector<128x128xbf16>, i32 -> vector<128x128xbf16>
    %111 = vector.shape_cast %78 : vector<128x1xi1> to vector<128x1xi1>
    %112 = vector.broadcast %111 : vector<128x1xi1> to vector<128x128xi1>
    %113 = arith.select %112, %110, %109 : vector<128x128xi1>, vector<128x128xbf16>
    %c32_i32_39 = arith.constant 32 : i32
    %114 = tpu.dynamic_rotate %113 by %c32_i32_39 dim 1 : vector<128x128xbf16>, i32 -> vector<128x128xbf16>
    %115 = vector.shape_cast %82 : vector<128x1xi1> to vector<128x1xi1>
    %116 = vector.broadcast %115 : vector<128x1xi1> to vector<128x128xi1>
    %117 = arith.select %116, %114, %113 : vector<128x128xi1>, vector<128x128xbf16>
    %c64_i32_40 = arith.constant 64 : i32
    %118 = tpu.dynamic_rotate %117 by %c64_i32_40 dim 1 : vector<128x128xbf16>, i32 -> vector<128x128xbf16>
    %119 = vector.shape_cast %86 : vector<128x1xi1> to vector<128x1xi1>
    %120 = vector.broadcast %119 : vector<128x1xi1> to vector<128x128xi1>
    %121 = arith.select %120, %118, %117 : vector<128x128xi1>, vector<128x128xbf16>
    %122 = arith.extf %121 : vector<128x128xbf16> to vector<128x128xf32>
    %123 = arith.addf %89, %122 : vector<128x128xf32>
    %124 = arith.addf %123, %51 : vector<128x128xf32>
    %cst_41 = arith.constant dense<0xFF800000> : vector<128xf32>
    %125 = vector.multi_reduction <maximumf>, %124, %cst_41 [1] : vector<128x128xf32> to vector<128xf32>
    %126 = vector.shape_cast %125 : vector<128xf32> to vector<128x1xf32>
    %127 = vector.broadcast %126 : vector<128x1xf32> to vector<128x128xf32>
    %128 = arith.subf %124, %127 : vector<128x128xf32>
    %129 = math.exp %128 : vector<128x128xf32>
    %cst_42 = arith.constant dense<0.000000e+00> : vector<128xf32>
    %130 = vector.multi_reduction <add>, %129, %cst_42 [1] : vector<128x128xf32> to vector<128xf32>
    %131 = vector.shape_cast %130 : vector<128xf32> to vector<128x1xf32>
    %132 = tpu.reciprocal %131 {approx = true} : vector<128x1xf32> -> vector<128x1xf32>
    %133 = vector.broadcast %132 : vector<128x1xf32> to vector<128x128xf32>
    %134 = arith.mulf %129, %133 : vector<128x128xf32>
    %135 = arith.truncf %134 : vector<128x128xf32> to vector<128x128xbf16>
    %136 = vector.extract_strided_slice %34 {offsets = [0, 0], sizes = [128, 32], strides = [1, 1]} : vector<128x128xbf16> to vector<128x32xbf16>
    %cst_43 = arith.constant dense<0.000000e+00> : vector<128x32xf32>
    %137 = tpu.matmul %135, %136, %cst_43 {dimension_numbers = #tpu.dot_dimension_numbers<[1], [0], [0], [1], [0, 0, 1, 1], [], []>} : vector<128x128xbf16>, vector<128x32xbf16>, vector<128x32xf32> -> vector<128x32xf32>
    %138 = arith.truncf %137 : vector<128x32xf32> to vector<128x32xbf16>
    %c0_44 = arith.constant 0 : index
    %c0_45 = arith.constant 0 : index
    %139 = vector.load %arg12[%c0_44, %c0_45] : memref<128x128xbf16, #tpu.memory_space<vmem>>, vector<128x32xbf16>
    tpu.vector_store %arg12[%c0_44, %c0_45], %138 {strides = array<i32>} : memref<128x128xbf16, #tpu.memory_space<vmem>>, vector<128x32xbf16>,
    %140 = vector.extract_strided_slice %39 {offsets = [0, 32], sizes = [128, 32], strides = [1, 1]} : vector<128x128xbf16> to vector<128x32xbf16>
    %141 = vector.extract_strided_slice %32 {offsets = [0, 32], sizes = [128, 32], strides = [1, 1]} : vector<128x128xbf16> to vector<128x32xbf16>
    %cst_46 = arith.constant dense<0.000000e+00> : vector<128x128xf32>
    %142 = tpu.matmul %140, %141, %cst_46 {dimension_numbers = #tpu.dot_dimension_numbers<[1], [1], [0], [0], [0, 0, 1, 0], [], []>} : vector<128x32xbf16>, vector<128x32xbf16>, vector<128x128xf32> -> vector<128x128xf32>
    %143 = vector.extract_strided_slice %43 {offsets = [0, 32], sizes = [128, 32], strides = [1, 1]} : vector<128x128xbf16> to vector<128x32xbf16>
    %144 = vector.extract_strided_slice %35 {offsets = [0, 32], sizes = [128, 32], strides = [1, 1]} : vector<128x128xbf16> to vector<128x32xbf16>
    %cst_47 = arith.constant dense<0.000000e+00> : vector<128x128xf32>
    %145 = tpu.matmul %143, %144, %cst_47 {dimension_numbers = #tpu.dot_dimension_numbers<[1], [1], [0], [0], [0, 0, 1, 0], [], []>} : vector<128x32xbf16>, vector<128x32xbf16>, vector<128x128xf32> -> vector<128x128xf32>
    %146 = arith.truncf %145 : vector<128x128xf32> to vector<128x128xbf16>
    %c1_i32_48 = arith.constant 1 : i32
    %147 = tpu.dynamic_rotate %146 by %c1_i32_48 dim 1 : vector<128x128xbf16>, i32 -> vector<128x128xbf16>
    %148 = vector.shape_cast %62 : vector<128x1xi1> to vector<128x1xi1>
    %149 = vector.broadcast %148 : vector<128x1xi1> to vector<128x128xi1>
    %150 = arith.select %149, %147, %146 : vector<128x128xi1>, vector<128x128xbf16>
    %c2_i32_49 = arith.constant 2 : i32
    %151 = tpu.dynamic_rotate %150 by %c2_i32_49 dim 1 : vector<128x128xbf16>, i32 -> vector<128x128xbf16>
    %152 = vector.shape_cast %66 : vector<128x1xi1> to vector<128x1xi1>
    %153 = vector.broadcast %152 : vector<128x1xi1> to vector<128x128xi1>
    %154 = arith.select %153, %151, %150 : vector<128x128xi1>, vector<128x128xbf16>
    %c4_i32_50 = arith.constant 4 : i32
    %155 = tpu.dynamic_rotate %154 by %c4_i32_50 dim 1 : vector<128x128xbf16>, i32 -> vector<128x128xbf16>
    %156 = vector.shape_cast %70 : vector<128x1xi1> to vector<128x1xi1>
    %157 = vector.broadcast %156 : vector<128x1xi1> to vector<128x128xi1>
    %158 = arith.select %157, %155, %154 : vector<128x128xi1>, vector<128x128xbf16>
    %c8_i32_51 = arith.constant 8 : i32
    %159 = tpu.dynamic_rotate %158 by %c8_i32_51 dim 1 : vector<128x128xbf16>, i32 -> vector<128x128xbf16>
    %160 = vector.shape_cast %74 : vector<128x1xi1> to vector<128x1xi1>
    %161 = vector.broadcast %160 : vector<128x1xi1> to vector<128x128xi1>
    %162 = arith.select %161, %159, %158 : vector<128x128xi1>, vector<128x128xbf16>
    %c16_i32_52 = arith.constant 16 : i32
    %163 = tpu.dynamic_rotate %162 by %c16_i32_52 dim 1 : vector<128x128xbf16>, i32 -> vector<128x128xbf16>
    %164 = vector.shape_cast %78 : vector<128x1xi1> to vector<128x1xi1>
    %165 = vector.broadcast %164 : vector<128x1xi1> to vector<128x128xi1>
    %166 = arith.select %165, %163, %162 : vector<128x128xi1>, vector<128x128xbf16>
    %c32_i32_53 = arith.constant 32 : i32
    %167 = tpu.dynamic_rotate %166 by %c32_i32_53 dim 1 : vector<128x128xbf16>, i32 -> vector<128x128xbf16>
    %168 = vector.shape_cast %82 : vector<128x1xi1> to vector<128x1xi1>
    %169 = vector.broadcast %168 : vector<128x1xi1> to vector<128x128xi1>
    %170 = arith.select %169, %167, %166 : vector<128x128xi1>, vector<128x128xbf16>
    %c64_i32_54 = arith.constant 64 : i32
    %171 = tpu.dynamic_rotate %170 by %c64_i32_54 dim 1 : vector<128x128xbf16>, i32 -> vector<128x128xbf16>
    %172 = vector.shape_cast %86 : vector<128x1xi1> to vector<128x1xi1>
    %173 = vector.broadcast %172 : vector<128x1xi1> to vector<128x128xi1>
    %174 = arith.select %173, %171, %170 : vector<128x128xi1>, vector<128x128xbf16>
    %175 = arith.extf %174 : vector<128x128xbf16> to vector<128x128xf32>
    %176 = arith.addf %142, %175 : vector<128x128xf32>
    %177 = arith.addf %176, %51 : vector<128x128xf32>
    %cst_55 = arith.constant dense<0xFF800000> : vector<128xf32>
    %178 = vector.multi_reduction <maximumf>, %177, %cst_55 [1] : vector<128x128xf32> to vector<128xf32>
    %179 = vector.shape_cast %178 : vector<128xf32> to vector<128x1xf32>
    %180 = vector.broadcast %179 : vector<128x1xf32> to vector<128x128xf32>
    %181 = arith.subf %177, %180 : vector<128x128xf32>
    %182 = math.exp %181 : vector<128x128xf32>
    %cst_56 = arith.constant dense<0.000000e+00> : vector<128xf32>
    %183 = vector.multi_reduction <add>, %182, %cst_56 [1] : vector<128x128xf32> to vector<128xf32>
    %184 = vector.shape_cast %183 : vector<128xf32> to vector<128x1xf32>
    %185 = tpu.reciprocal %184 {approx = true} : vector<128x1xf32> -> vector<128x1xf32>
    %186 = vector.broadcast %185 : vector<128x1xf32> to vector<128x128xf32>
    %187 = arith.mulf %182, %186 : vector<128x128xf32>
    %188 = arith.truncf %187 : vector<128x128xf32> to vector<128x128xbf16>
    %189 = vector.extract_strided_slice %34 {offsets = [0, 32], sizes = [128, 32], strides = [1, 1]} : vector<128x128xbf16> to vector<128x32xbf16>
    %cst_57 = arith.constant dense<0.000000e+00> : vector<128x32xf32>
    %190 = tpu.matmul %188, %189, %cst_57 {dimension_numbers = #tpu.dot_dimension_numbers<[1], [0], [0], [1], [0, 0, 1, 1], [], []>} : vector<128x128xbf16>, vector<128x32xbf16>, vector<128x32xf32> -> vector<128x32xf32>
    %191 = arith.truncf %190 : vector<128x32xf32> to vector<128x32xbf16>
    %c0_58 = arith.constant 0 : index
    %c32 = arith.constant 32 : index
    %192 = vector.load %arg12[%c0_58, %c32] : memref<128x128xbf16, #tpu.memory_space<vmem>>, vector<128x32xbf16>
    tpu.vector_store %arg12[%c0_58, %c32], %191 {strides = array<i32>} : memref<128x128xbf16, #tpu.memory_space<vmem>>, vector<128x32xbf16>,
    %193 = vector.extract_strided_slice %39 {offsets = [0, 64], sizes = [128, 32], strides = [1, 1]} : vector<128x128xbf16> to vector<128x32xbf16>
    %194 = vector.extract_strided_slice %32 {offsets = [0, 64], sizes = [128, 32], strides = [1, 1]} : vector<128x128xbf16> to vector<128x32xbf16>
    %cst_59 = arith.constant dense<0.000000e+00> : vector<128x128xf32>
    %195 = tpu.matmul %193, %194, %cst_59 {dimension_numbers = #tpu.dot_dimension_numbers<[1], [1], [0], [0], [0, 0, 1, 0], [], []>} : vector<128x32xbf16>, vector<128x32xbf16>, vector<128x128xf32> -> vector<128x128xf32>
    %196 = vector.extract_strided_slice %43 {offsets = [0, 64], sizes = [128, 32], strides = [1, 1]} : vector<128x128xbf16> to vector<128x32xbf16>
    %197 = vector.extract_strided_slice %35 {offsets = [0, 64], sizes = [128, 32], strides = [1, 1]} : vector<128x128xbf16> to vector<128x32xbf16>
    %cst_60 = arith.constant dense<0.000000e+00> : vector<128x128xf32>
    %198 = tpu.matmul %196, %197, %cst_60 {dimension_numbers = #tpu.dot_dimension_numbers<[1], [1], [0], [0], [0, 0, 1, 0], [], []>} : vector<128x32xbf16>, vector<128x32xbf16>, vector<128x128xf32> -> vector<128x128xf32>
    %199 = arith.truncf %198 : vector<128x128xf32> to vector<128x128xbf16>
    %c1_i32_61 = arith.constant 1 : i32
    %200 = tpu.dynamic_rotate %199 by %c1_i32_61 dim 1 : vector<128x128xbf16>, i32 -> vector<128x128xbf16>
    %201 = vector.shape_cast %62 : vector<128x1xi1> to vector<128x1xi1>
    %202 = vector.broadcast %201 : vector<128x1xi1> to vector<128x128xi1>
    %203 = arith.select %202, %200, %199 : vector<128x128xi1>, vector<128x128xbf16>
    %c2_i32_62 = arith.constant 2 : i32
    %204 = tpu.dynamic_rotate %203 by %c2_i32_62 dim 1 : vector<128x128xbf16>, i32 -> vector<128x128xbf16>
    %205 = vector.shape_cast %66 : vector<128x1xi1> to vector<128x1xi1>
    %206 = vector.broadcast %205 : vector<128x1xi1> to vector<128x128xi1>
    %207 = arith.select %206, %204, %203 : vector<128x128xi1>, vector<128x128xbf16>
    %c4_i32_63 = arith.constant 4 : i32
    %208 = tpu.dynamic_rotate %207 by %c4_i32_63 dim 1 : vector<128x128xbf16>, i32 -> vector<128x128xbf16>
    %209 = vector.shape_cast %70 : vector<128x1xi1> to vector<128x1xi1>
    %210 = vector.broadcast %209 : vector<128x1xi1> to vector<128x128xi1>
    %211 = arith.select %210, %208, %207 : vector<128x128xi1>, vector<128x128xbf16>
    %c8_i32_64 = arith.constant 8 : i32
    %212 = tpu.dynamic_rotate %211 by %c8_i32_64 dim 1 : vector<128x128xbf16>, i32 -> vector<128x128xbf16>
    %213 = vector.shape_cast %74 : vector<128x1xi1> to vector<128x1xi1>
    %214 = vector.broadcast %213 : vector<128x1xi1> to vector<128x128xi1>
    %215 = arith.select %214, %212, %211 : vector<128x128xi1>, vector<128x128xbf16>
    %c16_i32_65 = arith.constant 16 : i32
    %216 = tpu.dynamic_rotate %215 by %c16_i32_65 dim 1 : vector<128x128xbf16>, i32 -> vector<128x128xbf16>
    %217 = vector.shape_cast %78 : vector<128x1xi1> to vector<128x1xi1>
    %218 = vector.broadcast %217 : vector<128x1xi1> to vector<128x128xi1>
    %219 = arith.select %218, %216, %215 : vector<128x128xi1>, vector<128x128xbf16>
    %c32_i32_66 = arith.constant 32 : i32
    %220 = tpu.dynamic_rotate %219 by %c32_i32_66 dim 1 : vector<128x128xbf16>, i32 -> vector<128x128xbf16>
    %221 = vector.shape_cast %82 : vector<128x1xi1> to vector<128x1xi1>
    %222 = vector.broadcast %221 : vector<128x1xi1> to vector<128x128xi1>
    %223 = arith.select %222, %220, %219 : vector<128x128xi1>, vector<128x128xbf16>
    %c64_i32_67 = arith.constant 64 : i32
    %224 = tpu.dynamic_rotate %223 by %c64_i32_67 dim 1 : vector<128x128xbf16>, i32 -> vector<128x128xbf16>
    %225 = vector.shape_cast %86 : vector<128x1xi1> to vector<128x1xi1>
    %226 = vector.broadcast %225 : vector<128x1xi1> to vector<128x128xi1>
    %227 = arith.select %226, %224, %223 : vector<128x128xi1>, vector<128x128xbf16>
    %228 = arith.extf %227 : vector<128x128xbf16> to vector<128x128xf32>
    %229 = arith.addf %195, %228 : vector<128x128xf32>
    %230 = arith.addf %229, %51 : vector<128x128xf32>
    %cst_68 = arith.constant dense<0xFF800000> : vector<128xf32>
    %231 = vector.multi_reduction <maximumf>, %230, %cst_68 [1] : vector<128x128xf32> to vector<128xf32>
    %232 = vector.shape_cast %231 : vector<128xf32> to vector<128x1xf32>
    %233 = vector.broadcast %232 : vector<128x1xf32> to vector<128x128xf32>
    %234 = arith.subf %230, %233 : vector<128x128xf32>
    %235 = math.exp %234 : vector<128x128xf32>
    %cst_69 = arith.constant dense<0.000000e+00> : vector<128xf32>
    %236 = vector.multi_reduction <add>, %235, %cst_69 [1] : vector<128x128xf32> to vector<128xf32>
    %237 = vector.shape_cast %236 : vector<128xf32> to vector<128x1xf32>
    %238 = tpu.reciprocal %237 {approx = true} : vector<128x1xf32> -> vector<128x1xf32>
    %239 = vector.broadcast %238 : vector<128x1xf32> to vector<128x128xf32>
    %240 = arith.mulf %235, %239 : vector<128x128xf32>
    %241 = arith.truncf %240 : vector<128x128xf32> to vector<128x128xbf16>
    %242 = vector.extract_strided_slice %34 {offsets = [0, 64], sizes = [128, 32], strides = [1, 1]} : vector<128x128xbf16> to vector<128x32xbf16>
    %cst_70 = arith.constant dense<0.000000e+00> : vector<128x32xf32>
    %243 = tpu.matmul %241, %242, %cst_70 {dimension_numbers = #tpu.dot_dimension_numbers<[1], [0], [0], [1], [0, 0, 1, 1], [], []>} : vector<128x128xbf16>, vector<128x32xbf16>, vector<128x32xf32> -> vector<128x32xf32>
    %244 = arith.truncf %243 : vector<128x32xf32> to vector<128x32xbf16>
    %c0_71 = arith.constant 0 : index
    %c64 = arith.constant 64 : index
    %245 = vector.load %arg12[%c0_71, %c64] : memref<128x128xbf16, #tpu.memory_space<vmem>>, vector<128x32xbf16>
    tpu.vector_store %arg12[%c0_71, %c64], %244 {strides = array<i32>} : memref<128x128xbf16, #tpu.memory_space<vmem>>, vector<128x32xbf16>,
    %246 = vector.extract_strided_slice %39 {offsets = [0, 96], sizes = [128, 32], strides = [1, 1]} : vector<128x128xbf16> to vector<128x32xbf16>
    %247 = vector.extract_strided_slice %32 {offsets = [0, 96], sizes = [128, 32], strides = [1, 1]} : vector<128x128xbf16> to vector<128x32xbf16>
    %cst_72 = arith.constant dense<0.000000e+00> : vector<128x128xf32>
    %248 = tpu.matmul %246, %247, %cst_72 {dimension_numbers = #tpu.dot_dimension_numbers<[1], [1], [0], [0], [0, 0, 1, 0], [], []>} : vector<128x32xbf16>, vector<128x32xbf16>, vector<128x128xf32> -> vector<128x128xf32>
    %249 = vector.extract_strided_slice %43 {offsets = [0, 96], sizes = [128, 32], strides = [1, 1]} : vector<128x128xbf16> to vector<128x32xbf16>
    %250 = vector.extract_strided_slice %35 {offsets = [0, 96], sizes = [128, 32], strides = [1, 1]} : vector<128x128xbf16> to vector<128x32xbf16>
    %cst_73 = arith.constant dense<0.000000e+00> : vector<128x128xf32>
    %251 = tpu.matmul %249, %250, %cst_73 {dimension_numbers = #tpu.dot_dimension_numbers<[1], [1], [0], [0], [0, 0, 1, 0], [], []>} : vector<128x32xbf16>, vector<128x32xbf16>, vector<128x128xf32> -> vector<128x128xf32>
    %252 = arith.truncf %251 : vector<128x128xf32> to vector<128x128xbf16>
    %c1_i32_74 = arith.constant 1 : i32
    %253 = tpu.dynamic_rotate %252 by %c1_i32_74 dim 1 : vector<128x128xbf16>, i32 -> vector<128x128xbf16>
    %254 = vector.shape_cast %62 : vector<128x1xi1> to vector<128x1xi1>
    %255 = vector.broadcast %254 : vector<128x1xi1> to vector<128x128xi1>
    %256 = arith.select %255, %253, %252 : vector<128x128xi1>, vector<128x128xbf16>
    %c2_i32_75 = arith.constant 2 : i32
    %257 = tpu.dynamic_rotate %256 by %c2_i32_75 dim 1 : vector<128x128xbf16>, i32 -> vector<128x128xbf16>
    %258 = vector.shape_cast %66 : vector<128x1xi1> to vector<128x1xi1>
    %259 = vector.broadcast %258 : vector<128x1xi1> to vector<128x128xi1>
    %260 = arith.select %259, %257, %256 : vector<128x128xi1>, vector<128x128xbf16>
    %c4_i32_76 = arith.constant 4 : i32
    %261 = tpu.dynamic_rotate %260 by %c4_i32_76 dim 1 : vector<128x128xbf16>, i32 -> vector<128x128xbf16>
    %262 = vector.shape_cast %70 : vector<128x1xi1> to vector<128x1xi1>
    %263 = vector.broadcast %262 : vector<128x1xi1> to vector<128x128xi1>
    %264 = arith.select %263, %261, %260 : vector<128x128xi1>, vector<128x128xbf16>
    %c8_i32_77 = arith.constant 8 : i32
    %265 = tpu.dynamic_rotate %264 by %c8_i32_77 dim 1 : vector<128x128xbf16>, i32 -> vector<128x128xbf16>
    %266 = vector.shape_cast %74 : vector<128x1xi1> to vector<128x1xi1>
    %267 = vector.broadcast %266 : vector<128x1xi1> to vector<128x128xi1>
    %268 = arith.select %267, %265, %264 : vector<128x128xi1>, vector<128x128xbf16>
    %c16_i32_78 = arith.constant 16 : i32
    %269 = tpu.dynamic_rotate %268 by %c16_i32_78 dim 1 : vector<128x128xbf16>, i32 -> vector<128x128xbf16>
    %270 = vector.shape_cast %78 : vector<128x1xi1> to vector<128x1xi1>
    %271 = vector.broadcast %270 : vector<128x1xi1> to vector<128x128xi1>
    %272 = arith.select %271, %269, %268 : vector<128x128xi1>, vector<128x128xbf16>
    %c32_i32_79 = arith.constant 32 : i32
    %273 = tpu.dynamic_rotate %272 by %c32_i32_79 dim 1 : vector<128x128xbf16>, i32 -> vector<128x128xbf16>
    %274 = vector.shape_cast %82 : vector<128x1xi1> to vector<128x1xi1>
    %275 = vector.broadcast %274 : vector<128x1xi1> to vector<128x128xi1>
    %276 = arith.select %275, %273, %272 : vector<128x128xi1>, vector<128x128xbf16>
    %c64_i32_80 = arith.constant 64 : i32
    %277 = tpu.dynamic_rotate %276 by %c64_i32_80 dim 1 : vector<128x128xbf16>, i32 -> vector<128x128xbf16>
    %278 = vector.shape_cast %86 : vector<128x1xi1> to vector<128x1xi1>
    %279 = vector.broadcast %278 : vector<128x1xi1> to vector<128x128xi1>
    %280 = arith.select %279, %277, %276 : vector<128x128xi1>, vector<128x128xbf16>
    %281 = arith.extf %280 : vector<128x128xbf16> to vector<128x128xf32>
    %282 = arith.addf %248, %281 : vector<128x128xf32>
    %283 = arith.addf %282, %51 : vector<128x128xf32>
    %cst_81 = arith.constant dense<0xFF800000> : vector<128xf32>
    %284 = vector.multi_reduction <maximumf>, %283, %cst_81 [1] : vector<128x128xf32> to vector<128xf32>
    %285 = vector.shape_cast %284 : vector<128xf32> to vector<128x1xf32>
    %286 = vector.broadcast %285 : vector<128x1xf32> to vector<128x128xf32>
    %287 = arith.subf %283, %286 : vector<128x128xf32>
    %288 = math.exp %287 : vector<128x128xf32>
    %cst_82 = arith.constant dense<0.000000e+00> : vector<128xf32>
    %289 = vector.multi_reduction <add>, %288, %cst_82 [1] : vector<128x128xf32> to vector<128xf32>
    %290 = vector.shape_cast %289 : vector<128xf32> to vector<128x1xf32>
    %291 = tpu.reciprocal %290 {approx = true} : vector<128x1xf32> -> vector<128x1xf32>
    %292 = vector.broadcast %291 : vector<128x1xf32> to vector<128x128xf32>
    %293 = arith.mulf %288, %292 : vector<128x128xf32>
    %294 = arith.truncf %293 : vector<128x128xf32> to vector<128x128xbf16>
    %295 = vector.extract_strided_slice %34 {offsets = [0, 96], sizes = [128, 32], strides = [1, 1]} : vector<128x128xbf16> to vector<128x32xbf16>
    %cst_83 = arith.constant dense<0.000000e+00> : vector<128x32xf32>
    %296 = tpu.matmul %294, %295, %cst_83 {dimension_numbers = #tpu.dot_dimension_numbers<[1], [0], [0], [1], [0, 0, 1, 1], [], []>} : vector<128x128xbf16>, vector<128x32xbf16>, vector<128x32xf32> -> vector<128x32xf32>
    %297 = arith.truncf %296 : vector<128x32xf32> to vector<128x32xbf16>
    %c0_84 = arith.constant 0 : index
    %c96 = arith.constant 96 : index
    %298 = vector.load %arg12[%c0_84, %c96] : memref<128x128xbf16, #tpu.memory_space<vmem>>, vector<128x32xbf16>
    tpu.vector_store %arg12[%c0_84, %c96], %297 {strides = array<i32>} : memref<128x128xbf16, #tpu.memory_space<vmem>>, vector<128x32xbf16>,
    %c0_85 = arith.constant 0 : index
    %c0_86 = arith.constant 0 : index
    %299 = vector.load %arg12[%c0_85, %c0_86] : memref<128x128xbf16, #tpu.memory_space<vmem>>, vector<128x128xbf16>
    %c0_87 = arith.constant 0 : index
    %c0_88 = arith.constant 0 : index
    %300 = vector.load %arg7[%c0_87, %c0_88] : memref<128x128xbf16, #tpu.memory_space<vmem>>, vector<128x128xbf16>
    %cst_89 = arith.constant dense<0.000000e+00> : vector<128x128xf32>
    %301 = tpu.matmul %299, %300, %cst_89 {dimension_numbers = #tpu.dot_dimension_numbers<[1], [1], [0], [0], [0, 0, 1, 0], [], []>} : vector<128x128xbf16>, vector<128x128xbf16>, vector<128x128xf32> -> vector<128x128xf32>
    %c0_90 = arith.constant 0 : index
    %c0_91 = arith.constant 0 : index
    %302 = vector.load %arg8[%c0_90, %c0_91] : memref<1x128xf32, #tpu.memory_space<vmem>>, vector<1x128xf32>
    %303 = vector.broadcast %302 : vector<1x128xf32> to vector<128x128xf32>
    %304 = arith.addf %301, %303 : vector<128x128xf32>
    %c0_92 = arith.constant 0 : index
    %c0_93 = arith.constant 0 : index
    %c0_94 = arith.constant 0 : index
    %305 = vector.load %arg11[%c0_92, %c0_93, %c0_94] : memref<1x128x128xf32, #tpu.memory_space<vmem>>, vector<1x128x128xf32>
    %306 = vector.shape_cast %305 : vector<1x128x128xf32> to vector<128x128xf32>
    %307 = vector.shape_cast %304 : vector<128x128xf32> to vector<1x128x128xf32>
    tpu.vector_store %arg11[%c0_92, %c0_93, %c0_94], %307 {strides = array<i32>} : memref<1x128x128xf32, #tpu.memory_space<vmem>>, vector<1x128x128xf32>,
    return
  }
  func.func @transform_0(%arg0: i32) -> (i32, i32, i32) {
    %c0_i32 = arith.constant 0 : i32
    %c0_i32_0 = arith.constant 0 : i32
    %c0_i32_1 = arith.constant 0 : i32
    return %arg0, %c0_i32, %c0_i32_0 : i32, i32, i32
  }
  func.func @transform_1(%arg0: i32) -> (i32, i32) {
    %c0_i32 = arith.constant 0 : i32
    %c0_i32_0 = arith.constant 0 : i32
    %c0_i32_1 = arith.constant 0 : i32
    return %c0_i32, %c0_i32_0 : i32, i32
  }
  func.func @transform_2(%arg0: i32) -> (i32, i32) {
    %c0_i32 = arith.constant 0 : i32
    %c0_i32_0 = arith.constant 0 : i32
    %c0_i32_1 = arith.constant 0 : i32
    return %c0_i32, %c0_i32_0 : i32, i32
  }
  func.func @transform_3(%arg0: i32) -> (i32, i32) {
    %c0_i32 = arith.constant 0 : i32
    %c0_i32_0 = arith.constant 0 : i32
    %c0_i32_1 = arith.constant 0 : i32
    return %c0_i32, %c0_i32_0 : i32, i32
  }
  func.func @transform_4(%arg0: i32) -> (i32, i32) {
    %c0_i32 = arith.constant 0 : i32
    %c0_i32_0 = arith.constant 0 : i32
    %c0_i32_1 = arith.constant 0 : i32
    return %c0_i32, %c0_i32_0 : i32, i32
  }
  func.func @transform_5(%arg0: i32) -> (i32, i32) {
    %c0_i32 = arith.constant 0 : i32
    %c0_i32_0 = arith.constant 0 : i32
    %c0_i32_1 = arith.constant 0 : i32
    return %c0_i32, %c0_i32_0 : i32, i32
  }
  func.func @transform_6(%arg0: i32) -> (i32, i32) {
    %c0_i32 = arith.constant 0 : i32
    %c0_i32_0 = arith.constant 0 : i32
    %c0_i32_1 = arith.constant 0 : i32
    return %c0_i32, %c0_i32_0 : i32, i32
  }
  func.func @transform_7(%arg0: i32) -> (i32, i32) {
    %c0_i32 = arith.constant 0 : i32
    %c0_i32_0 = arith.constant 0 : i32
    %c0_i32_1 = arith.constant 0 : i32
    return %c0_i32, %c0_i32_0 : i32, i32
  }
  func.func @transform_8(%arg0: i32) -> (i32, i32) {
    %c0_i32 = arith.constant 0 : i32
    %c0_i32_0 = arith.constant 0 : i32
    %c0_i32_1 = arith.constant 0 : i32
    return %c0_i32, %c0_i32_0 : i32, i32
  }
  func.func @transform_9(%arg0: i32) -> (i32, i32) {
    %c0_i32 = arith.constant 0 : i32
    %c0_i32_0 = arith.constant 0 : i32
    %c0_i32_1 = arith.constant 0 : i32
    return %c0_i32, %c0_i32_0 : i32, i32
  }
  func.func @transform_10(%arg0: i32) -> (i32, i32, i32) {
    %c0_i32 = arith.constant 0 : i32
    %c0_i32_0 = arith.constant 0 : i32
    %c0_i32_1 = arith.constant 0 : i32
    return %arg0, %c0_i32, %c0_i32_0 : i32, i32, i32
  }
}

module attributes {stable_mosaic.version = 11 : i64} {
  func.func @_mhsa_kernel(%arg0: i32, %arg1: memref<1x128x128xf32, #tpu.memory_space<vmem>>, %arg2: memref<128x128xbf16, #tpu.memory_space<vmem>>, %arg3: memref<1x128xf32, #tpu.memory_space<vmem>>, %arg4: memref<1x128xf32, #tpu.memory_space<vmem>>, %arg5: memref<384x128xbf16, #tpu.memory_space<vmem>>, %arg6: memref<1x384xf32, #tpu.memory_space<vmem>>, %arg7: memref<128x128xbf16, #tpu.memory_space<vmem>>, %arg8: memref<1x128xf32, #tpu.memory_space<vmem>>, %arg9: memref<1x128xf32, #tpu.memory_space<vmem>>, %arg10: memref<1x128xf32, #tpu.memory_space<vmem>>, %arg11: memref<1x128x128xf32, #tpu.memory_space<vmem>>, %arg12: memref<128x128xbf16, #tpu.memory_space<vmem>>) attributes {dimension_semantics = [#tpu.dimension_semantics<parallel>], iteration_bounds = array<i64: 2>, scalar_prefetch = 0 : i64, scratch_operands = 1 : i64, tpu.core_type = #tpu.core_type<tc>, window_params = [{transform_indices = @transform_0, window_bounds = array<i64: 1, 128, 128>}, {pipeline_mode = #tpu.pipeline_mode<synchronous>, transform_indices = @transform_1, window_bounds = array<i64: 128, 128>}, {pipeline_mode = #tpu.pipeline_mode<synchronous>, transform_indices = @transform_2, window_bounds = array<i64: 1, 128>}, {pipeline_mode = #tpu.pipeline_mode<synchronous>, transform_indices = @transform_3, window_bounds = array<i64: 1, 128>}, {pipeline_mode = #tpu.pipeline_mode<synchronous>, transform_indices = @transform_4, window_bounds = array<i64: 384, 128>}, {pipeline_mode = #tpu.pipeline_mode<synchronous>, transform_indices = @transform_5, window_bounds = array<i64: 1, 384>}, {pipeline_mode = #tpu.pipeline_mode<synchronous>, transform_indices = @transform_6, window_bounds = array<i64: 128, 128>}, {pipeline_mode = #tpu.pipeline_mode<synchronous>, transform_indices = @transform_7, window_bounds = array<i64: 1, 128>}, {pipeline_mode = #tpu.pipeline_mode<synchronous>, transform_indices = @transform_8, window_bounds = array<i64: 1, 128>}, {pipeline_mode = #tpu.pipeline_mode<synchronous>, transform_indices = @transform_9, window_bounds = array<i64: 1, 128>}, {transform_indices = @transform_10, window_bounds = array<i64: 1, 128, 128>}]} {
    %c0 = arith.constant 0 : index
    %c0_0 = arith.constant 0 : index
    %c0_1 = arith.constant 0 : index
    %0 = vector.load %arg1[%c0, %c0_0, %c0_1] : memref<1x128x128xf32, #tpu.memory_space<vmem>>, vector<1x128x128xf32>
    %1 = vector.shape_cast %0 : vector<1x128x128xf32> to vector<128x128xf32>
    %cst = arith.constant dense<0.000000e+00> : vector<128xf32>
    %2 = vector.multi_reduction <add>, %1, %cst [1] : vector<128x128xf32> to vector<128xf32>
    %3 = vector.shape_cast %2 : vector<128xf32> to vector<128x1xf32>
    %cst_2 = arith.constant 1.280000e+02 : f32
    %4 = vector.broadcast %cst_2 : f32 to vector<128x1xf32>
    %5 = arith.divf %3, %4 : vector<128x1xf32>
    %6 = vector.broadcast %5 : vector<128x1xf32> to vector<128x128xf32>
    %7 = arith.subf %1, %6 : vector<128x128xf32>
    %8 = arith.mulf %7, %7 : vector<128x128xf32>
    %cst_3 = arith.constant dense<0.000000e+00> : vector<128xf32>
    %9 = vector.multi_reduction <add>, %8, %cst_3 [1] : vector<128x128xf32> to vector<128xf32>
    %10 = vector.shape_cast %9 : vector<128xf32> to vector<128x1xf32>
    %cst_4 = arith.constant 1.280000e+02 : f32
    %11 = vector.broadcast %cst_4 : f32 to vector<128x1xf32>
    %12 = arith.divf %10, %11 : vector<128x1xf32>
    %cst_5 = arith.constant 9.99999974E-6 : f32
    %13 = vector.broadcast %cst_5 : f32 to vector<128x1xf32>
    %14 = arith.addf %12, %13 : vector<128x1xf32>
    %15 = math.rsqrt %14 : vector<128x1xf32>
    %16 = vector.broadcast %15 : vector<128x1xf32> to vector<128x128xf32>
    %17 = arith.mulf %7, %16 : vector<128x128xf32>
    %c0_6 = arith.constant 0 : index
    %c0_7 = arith.constant 0 : index
    %18 = vector.load %arg3[%c0_6, %c0_7] : memref<1x128xf32, #tpu.memory_space<vmem>>, vector<1x128xf32>
    %19 = vector.broadcast %18 : vector<1x128xf32> to vector<128x128xf32>
    %20 = arith.mulf %17, %19 : vector<128x128xf32>
    %c0_8 = arith.constant 0 : index
    %c0_9 = arith.constant 0 : index
    %21 = vector.load %arg4[%c0_8, %c0_9] : memref<1x128xf32, #tpu.memory_space<vmem>>, vector<1x128xf32>
    %22 = vector.broadcast %21 : vector<1x128xf32> to vector<128x128xf32>
    %23 = arith.addf %20, %22 : vector<128x128xf32>
    %24 = arith.truncf %23 : vector<128x128xf32> to vector<128x128xbf16>
    %c0_10 = arith.constant 0 : index
    %c0_11 = arith.constant 0 : index
    %25 = vector.load %arg5[%c0_10, %c0_11] : memref<384x128xbf16, #tpu.memory_space<vmem>>, vector<384x128xbf16>
    %cst_12 = arith.constant dense<0.000000e+00> : vector<128x384xf32>
    %26 = tpu.matmul %24, %25, %cst_12 {dimension_numbers = #tpu.dot_dimension_numbers<[1], [1], [0], [0], [0, 0, 1, 0], [], []>} : vector<128x128xbf16>, vector<384x128xbf16>, vector<128x384xf32> -> vector<128x384xf32>
    %c0_13 = arith.constant 0 : index
    %c0_14 = arith.constant 0 : index
    %27 = vector.load %arg6[%c0_13, %c0_14] : memref<1x384xf32, #tpu.memory_space<vmem>>, vector<1x384xf32>
    %28 = vector.broadcast %27 : vector<1x384xf32> to vector<128x384xf32>
    %29 = arith.addf %26, %28 : vector<128x384xf32>
    %30 = vector.extract_strided_slice %29 {offsets = [0, 0], sizes = [128, 128], strides = [1, 1]} : vector<128x384xf32> to vector<128x128xf32>
    %31 = vector.extract_strided_slice %29 {offsets = [0, 128], sizes = [128, 128], strides = [1, 1]} : vector<128x384xf32> to vector<128x128xf32>
    %32 = arith.truncf %31 : vector<128x128xf32> to vector<128x128xbf16>
    %33 = vector.extract_strided_slice %29 {offsets = [0, 256], sizes = [128, 128], strides = [1, 1]} : vector<128x384xf32> to vector<128x128xf32>
    %34 = arith.truncf %33 : vector<128x128xf32> to vector<128x128xbf16>
    %c0_15 = arith.constant 0 : index
    %c0_16 = arith.constant 0 : index
    %35 = vector.load %arg2[%c0_15, %c0_16] : memref<128x128xbf16, #tpu.memory_space<vmem>>, vector<128x128xbf16>
    %c0_17 = arith.constant 0 : index
    %c0_18 = arith.constant 0 : index
    %36 = vector.load %arg9[%c0_17, %c0_18] : memref<1x128xf32, #tpu.memory_space<vmem>>, vector<1x128xf32>
    %37 = vector.broadcast %36 : vector<1x128xf32> to vector<128x128xf32>
    %38 = arith.addf %30, %37 : vector<128x128xf32>
    %39 = arith.truncf %38 : vector<128x128xf32> to vector<128x128xbf16>
    %c0_19 = arith.constant 0 : index
    %c0_20 = arith.constant 0 : index
    %40 = vector.load %arg10[%c0_19, %c0_20] : memref<1x128xf32, #tpu.memory_space<vmem>>, vector<1x128xf32>
    %41 = vector.broadcast %40 : vector<1x128xf32> to vector<128x128xf32>
    %42 = arith.addf %30, %41 : vector<128x128xf32>
    %43 = arith.truncf %42 : vector<128x128xf32> to vector<128x128xbf16>
    %44 = tpu.iota {dimensions = array<i32: 0>} : vector<128x128xi32>
    %45 = tpu.iota {dimensions = array<i32: 1>} : vector<128x128xi32>
    %c0_i32 = arith.constant 0 : i32
    %46 = vector.broadcast %c0_i32 : i32 to vector<128x128xi32>
    %47 = arith.addi %44, %46 : vector<128x128xi32>
    %48 = arith.cmpi sgt, %45, %47 : vector<128x128xi32>
    %cst_21 = arith.constant -1.000000e+09 : f32
    %cst_22 = arith.constant 0.000000e+00 : f32
    %49 = vector.broadcast %cst_21 : f32 to vector<128x128xf32>
    %50 = vector.broadcast %cst_22 : f32 to vector<128x128xf32>
    %51 = arith.select %48, %49, %50 : vector<128x128xi1>, vector<128x128xf32>
    %52 = tpu.iota {dimensions = array<i32: 0>} : vector<128x1xi32>
    %c127_i32 = arith.constant 127 : i32
    %53 = vector.broadcast %c127_i32 : i32 to vector<128x1xi32>
    %54 = arith.cmpi eq, %52, %53 : vector<128x1xi32>
    %c1_i32 = arith.constant 1 : i32
    %55 = vector.broadcast %c1_i32 : i32 to vector<128x1xi32>
    %56 = arith.addi %52, %55 : vector<128x1xi32>
    %c0_i32_23 = arith.constant 0 : i32
    %57 = vector.broadcast %c0_i32_23 : i32 to vector<128x1xi32>
    %58 = arith.select %54, %57, %56 : vector<128x1xi1>, vector<128x1xi32>
    %c1_i32_24 = arith.constant 1 : i32
    %59 = vector.broadcast %c1_i32_24 : i32 to vector<128x1xi32>
    %60 = arith.andi %58, %59 : vector<128x1xi32>
    %c0_i32_25 = arith.constant 0 : i32
    %61 = vector.broadcast %c0_i32_25 : i32 to vector<128x1xi32>
    %62 = arith.cmpi ne, %60, %61 : vector<128x1xi32>
    %c2_i32 = arith.constant 2 : i32
    %63 = vector.broadcast %c2_i32 : i32 to vector<128x1xi32>
    %64 = arith.andi %58, %63 : vector<128x1xi32>
    %c0_i32_26 = arith.constant 0 : i32
    %65 = vector.broadcast %c0_i32_26 : i32 to vector<128x1xi32>
    %66 = arith.cmpi ne, %64, %65 : vector<128x1xi32>
    %c4_i32 = arith.constant 4 : i32
    %67 = vector.broadcast %c4_i32 : i32 to vector<128x1xi32>
    %68 = arith.andi %58, %67 : vector<128x1xi32>
    %c0_i32_27 = arith.constant 0 : i32
    %69 = vector.broadcast %c0_i32_27 : i32 to vector<128x1xi32>
    %70 = arith.cmpi ne, %68, %69 : vector<128x1xi32>
    %c8_i32 = arith.constant 8 : i32
    %71 = vector.broadcast %c8_i32 : i32 to vector<128x1xi32>
    %72 = arith.andi %58, %71 : vector<128x1xi32>
    %c0_i32_28 = arith.constant 0 : i32
    %73 = vector.broadcast %c0_i32_28 : i32 to vector<128x1xi32>
    %74 = arith.cmpi ne, %72, %73 : vector<128x1xi32>
    %c16_i32 = arith.constant 16 : i32
    %75 = vector.broadcast %c16_i32 : i32 to vector<128x1xi32>
    %76 = arith.andi %58, %75 : vector<128x1xi32>
    %c0_i32_29 = arith.constant 0 : i32
    %77 = vector.broadcast %c0_i32_29 : i32 to vector<128x1xi32>
    %78 = arith.cmpi ne, %76, %77 : vector<128x1xi32>
    %c32_i32 = arith.constant 32 : i32
    %79 = vector.broadcast %c32_i32 : i32 to vector<128x1xi32>
    %80 = arith.andi %58, %79 : vector<128x1xi32>
    %c0_i32_30 = arith.constant 0 : i32
    %81 = vector.broadcast %c0_i32_30 : i32 to vector<128x1xi32>
    %82 = arith.cmpi ne, %80, %81 : vector<128x1xi32>
    %c64_i32 = arith.constant 64 : i32
    %83 = vector.broadcast %c64_i32 : i32 to vector<128x1xi32>
    %84 = arith.andi %58, %83 : vector<128x1xi32>
    %c0_i32_31 = arith.constant 0 : i32
    %85 = vector.broadcast %c0_i32_31 : i32 to vector<128x1xi32>
    %86 = arith.cmpi ne, %84, %85 : vector<128x1xi32>
    %87 = vector.extract_strided_slice %39 {offsets = [0, 0], sizes = [128, 32], strides = [1, 1]} : vector<128x128xbf16> to vector<128x32xbf16>
    %88 = vector.extract_strided_slice %32 {offsets = [0, 0], sizes = [128, 32], strides = [1, 1]} : vector<128x128xbf16> to vector<128x32xbf16>
    %cst_32 = arith.constant dense<0.000000e+00> : vector<128x128xf32>
    %89 = tpu.matmul %87, %88, %cst_32 {dimension_numbers = #tpu.dot_dimension_numbers<[1], [1], [0], [0], [0, 0, 1, 0], [], []>} : vector<128x32xbf16>, vector<128x32xbf16>, vector<128x128xf32> -> vector<128x128xf32>
    %90 = vector.extract_strided_slice %43 {offsets = [0, 0], sizes = [128, 32], strides = [1, 1]} : vector<128x128xbf16> to vector<128x32xbf16>
    %91 = vector.extract_strided_slice %35 {offsets = [0, 0], sizes = [128, 32], strides = [1, 1]} : vector<128x128xbf16> to vector<128x32xbf16>
    %cst_33 = arith.constant dense<0.000000e+00> : vector<128x128xf32>
    %92 = tpu.matmul %90, %91, %cst_33 {dimension_numbers = #tpu.dot_dimension_numbers<[1], [1], [0], [0], [0, 0, 1, 0], [], []>} : vector<128x32xbf16>, vector<128x32xbf16>, vector<128x128xf32> -> vector<128x128xf32>
    %c1_i32_34 = arith.constant 1 : i32
    %93 = tpu.dynamic_rotate %92 by %c1_i32_34 dim 1 : vector<128x128xf32>, i32 -> vector<128x128xf32>
    %94 = vector.shape_cast %62 : vector<128x1xi1> to vector<128x1xi1>
    %95 = vector.broadcast %94 : vector<128x1xi1> to vector<128x128xi1>
    %96 = arith.select %95, %93, %92 : vector<128x128xi1>, vector<128x128xf32>
    %c2_i32_35 = arith.constant 2 : i32
    %97 = tpu.dynamic_rotate %96 by %c2_i32_35 dim 1 : vector<128x128xf32>, i32 -> vector<128x128xf32>
    %98 = vector.shape_cast %66 : vector<128x1xi1> to vector<128x1xi1>
    %99 = vector.broadcast %98 : vector<128x1xi1> to vector<128x128xi1>
    %100 = arith.select %99, %97, %96 : vector<128x128xi1>, vector<128x128xf32>
    %c4_i32_36 = arith.constant 4 : i32
    %101 = tpu.dynamic_rotate %100 by %c4_i32_36 dim 1 : vector<128x128xf32>, i32 -> vector<128x128xf32>
    %102 = vector.shape_cast %70 : vector<128x1xi1> to vector<128x1xi1>
    %103 = vector.broadcast %102 : vector<128x1xi1> to vector<128x128xi1>
    %104 = arith.select %103, %101, %100 : vector<128x128xi1>, vector<128x128xf32>
    %c8_i32_37 = arith.constant 8 : i32
    %105 = tpu.dynamic_rotate %104 by %c8_i32_37 dim 1 : vector<128x128xf32>, i32 -> vector<128x128xf32>
    %106 = vector.shape_cast %74 : vector<128x1xi1> to vector<128x1xi1>
    %107 = vector.broadcast %106 : vector<128x1xi1> to vector<128x128xi1>
    %108 = arith.select %107, %105, %104 : vector<128x128xi1>, vector<128x128xf32>
    %c16_i32_38 = arith.constant 16 : i32
    %109 = tpu.dynamic_rotate %108 by %c16_i32_38 dim 1 : vector<128x128xf32>, i32 -> vector<128x128xf32>
    %110 = vector.shape_cast %78 : vector<128x1xi1> to vector<128x1xi1>
    %111 = vector.broadcast %110 : vector<128x1xi1> to vector<128x128xi1>
    %112 = arith.select %111, %109, %108 : vector<128x128xi1>, vector<128x128xf32>
    %c32_i32_39 = arith.constant 32 : i32
    %113 = tpu.dynamic_rotate %112 by %c32_i32_39 dim 1 : vector<128x128xf32>, i32 -> vector<128x128xf32>
    %114 = vector.shape_cast %82 : vector<128x1xi1> to vector<128x1xi1>
    %115 = vector.broadcast %114 : vector<128x1xi1> to vector<128x128xi1>
    %116 = arith.select %115, %113, %112 : vector<128x128xi1>, vector<128x128xf32>
    %c64_i32_40 = arith.constant 64 : i32
    %117 = tpu.dynamic_rotate %116 by %c64_i32_40 dim 1 : vector<128x128xf32>, i32 -> vector<128x128xf32>
    %118 = vector.shape_cast %86 : vector<128x1xi1> to vector<128x1xi1>
    %119 = vector.broadcast %118 : vector<128x1xi1> to vector<128x128xi1>
    %120 = arith.select %119, %117, %116 : vector<128x128xi1>, vector<128x128xf32>
    %121 = arith.addf %89, %120 : vector<128x128xf32>
    %122 = arith.addf %121, %51 : vector<128x128xf32>
    %cst_41 = arith.constant dense<0xFF800000> : vector<128xf32>
    %123 = vector.multi_reduction <maximumf>, %122, %cst_41 [1] : vector<128x128xf32> to vector<128xf32>
    %124 = vector.shape_cast %123 : vector<128xf32> to vector<128x1xf32>
    %125 = vector.broadcast %124 : vector<128x1xf32> to vector<128x128xf32>
    %126 = arith.subf %122, %125 : vector<128x128xf32>
    %127 = math.exp %126 : vector<128x128xf32>
    %cst_42 = arith.constant dense<0.000000e+00> : vector<128xf32>
    %128 = vector.multi_reduction <add>, %127, %cst_42 [1] : vector<128x128xf32> to vector<128xf32>
    %129 = vector.shape_cast %128 : vector<128xf32> to vector<128x1xf32>
    %130 = tpu.reciprocal %129 {approx = true} : vector<128x1xf32> -> vector<128x1xf32>
    %131 = vector.broadcast %130 : vector<128x1xf32> to vector<128x128xf32>
    %132 = arith.mulf %127, %131 : vector<128x128xf32>
    %133 = arith.truncf %132 : vector<128x128xf32> to vector<128x128xbf16>
    %134 = vector.extract_strided_slice %34 {offsets = [0, 0], sizes = [128, 32], strides = [1, 1]} : vector<128x128xbf16> to vector<128x32xbf16>
    %cst_43 = arith.constant dense<0.000000e+00> : vector<128x32xf32>
    %135 = tpu.matmul %133, %134, %cst_43 {dimension_numbers = #tpu.dot_dimension_numbers<[1], [0], [0], [1], [0, 0, 1, 1], [], []>} : vector<128x128xbf16>, vector<128x32xbf16>, vector<128x32xf32> -> vector<128x32xf32>
    %136 = arith.truncf %135 : vector<128x32xf32> to vector<128x32xbf16>
    %c0_44 = arith.constant 0 : index
    %c0_45 = arith.constant 0 : index
    %137 = vector.load %arg12[%c0_44, %c0_45] : memref<128x128xbf16, #tpu.memory_space<vmem>>, vector<128x32xbf16>
    tpu.vector_store %arg12[%c0_44, %c0_45], %136 {strides = array<i32>} : memref<128x128xbf16, #tpu.memory_space<vmem>>, vector<128x32xbf16>,
    %138 = vector.extract_strided_slice %39 {offsets = [0, 32], sizes = [128, 32], strides = [1, 1]} : vector<128x128xbf16> to vector<128x32xbf16>
    %139 = vector.extract_strided_slice %32 {offsets = [0, 32], sizes = [128, 32], strides = [1, 1]} : vector<128x128xbf16> to vector<128x32xbf16>
    %cst_46 = arith.constant dense<0.000000e+00> : vector<128x128xf32>
    %140 = tpu.matmul %138, %139, %cst_46 {dimension_numbers = #tpu.dot_dimension_numbers<[1], [1], [0], [0], [0, 0, 1, 0], [], []>} : vector<128x32xbf16>, vector<128x32xbf16>, vector<128x128xf32> -> vector<128x128xf32>
    %141 = vector.extract_strided_slice %43 {offsets = [0, 32], sizes = [128, 32], strides = [1, 1]} : vector<128x128xbf16> to vector<128x32xbf16>
    %142 = vector.extract_strided_slice %35 {offsets = [0, 32], sizes = [128, 32], strides = [1, 1]} : vector<128x128xbf16> to vector<128x32xbf16>
    %cst_47 = arith.constant dense<0.000000e+00> : vector<128x128xf32>
    %143 = tpu.matmul %141, %142, %cst_47 {dimension_numbers = #tpu.dot_dimension_numbers<[1], [1], [0], [0], [0, 0, 1, 0], [], []>} : vector<128x32xbf16>, vector<128x32xbf16>, vector<128x128xf32> -> vector<128x128xf32>
    %c1_i32_48 = arith.constant 1 : i32
    %144 = tpu.dynamic_rotate %143 by %c1_i32_48 dim 1 : vector<128x128xf32>, i32 -> vector<128x128xf32>
    %145 = vector.shape_cast %62 : vector<128x1xi1> to vector<128x1xi1>
    %146 = vector.broadcast %145 : vector<128x1xi1> to vector<128x128xi1>
    %147 = arith.select %146, %144, %143 : vector<128x128xi1>, vector<128x128xf32>
    %c2_i32_49 = arith.constant 2 : i32
    %148 = tpu.dynamic_rotate %147 by %c2_i32_49 dim 1 : vector<128x128xf32>, i32 -> vector<128x128xf32>
    %149 = vector.shape_cast %66 : vector<128x1xi1> to vector<128x1xi1>
    %150 = vector.broadcast %149 : vector<128x1xi1> to vector<128x128xi1>
    %151 = arith.select %150, %148, %147 : vector<128x128xi1>, vector<128x128xf32>
    %c4_i32_50 = arith.constant 4 : i32
    %152 = tpu.dynamic_rotate %151 by %c4_i32_50 dim 1 : vector<128x128xf32>, i32 -> vector<128x128xf32>
    %153 = vector.shape_cast %70 : vector<128x1xi1> to vector<128x1xi1>
    %154 = vector.broadcast %153 : vector<128x1xi1> to vector<128x128xi1>
    %155 = arith.select %154, %152, %151 : vector<128x128xi1>, vector<128x128xf32>
    %c8_i32_51 = arith.constant 8 : i32
    %156 = tpu.dynamic_rotate %155 by %c8_i32_51 dim 1 : vector<128x128xf32>, i32 -> vector<128x128xf32>
    %157 = vector.shape_cast %74 : vector<128x1xi1> to vector<128x1xi1>
    %158 = vector.broadcast %157 : vector<128x1xi1> to vector<128x128xi1>
    %159 = arith.select %158, %156, %155 : vector<128x128xi1>, vector<128x128xf32>
    %c16_i32_52 = arith.constant 16 : i32
    %160 = tpu.dynamic_rotate %159 by %c16_i32_52 dim 1 : vector<128x128xf32>, i32 -> vector<128x128xf32>
    %161 = vector.shape_cast %78 : vector<128x1xi1> to vector<128x1xi1>
    %162 = vector.broadcast %161 : vector<128x1xi1> to vector<128x128xi1>
    %163 = arith.select %162, %160, %159 : vector<128x128xi1>, vector<128x128xf32>
    %c32_i32_53 = arith.constant 32 : i32
    %164 = tpu.dynamic_rotate %163 by %c32_i32_53 dim 1 : vector<128x128xf32>, i32 -> vector<128x128xf32>
    %165 = vector.shape_cast %82 : vector<128x1xi1> to vector<128x1xi1>
    %166 = vector.broadcast %165 : vector<128x1xi1> to vector<128x128xi1>
    %167 = arith.select %166, %164, %163 : vector<128x128xi1>, vector<128x128xf32>
    %c64_i32_54 = arith.constant 64 : i32
    %168 = tpu.dynamic_rotate %167 by %c64_i32_54 dim 1 : vector<128x128xf32>, i32 -> vector<128x128xf32>
    %169 = vector.shape_cast %86 : vector<128x1xi1> to vector<128x1xi1>
    %170 = vector.broadcast %169 : vector<128x1xi1> to vector<128x128xi1>
    %171 = arith.select %170, %168, %167 : vector<128x128xi1>, vector<128x128xf32>
    %172 = arith.addf %140, %171 : vector<128x128xf32>
    %173 = arith.addf %172, %51 : vector<128x128xf32>
    %cst_55 = arith.constant dense<0xFF800000> : vector<128xf32>
    %174 = vector.multi_reduction <maximumf>, %173, %cst_55 [1] : vector<128x128xf32> to vector<128xf32>
    %175 = vector.shape_cast %174 : vector<128xf32> to vector<128x1xf32>
    %176 = vector.broadcast %175 : vector<128x1xf32> to vector<128x128xf32>
    %177 = arith.subf %173, %176 : vector<128x128xf32>
    %178 = math.exp %177 : vector<128x128xf32>
    %cst_56 = arith.constant dense<0.000000e+00> : vector<128xf32>
    %179 = vector.multi_reduction <add>, %178, %cst_56 [1] : vector<128x128xf32> to vector<128xf32>
    %180 = vector.shape_cast %179 : vector<128xf32> to vector<128x1xf32>
    %181 = tpu.reciprocal %180 {approx = true} : vector<128x1xf32> -> vector<128x1xf32>
    %182 = vector.broadcast %181 : vector<128x1xf32> to vector<128x128xf32>
    %183 = arith.mulf %178, %182 : vector<128x128xf32>
    %184 = arith.truncf %183 : vector<128x128xf32> to vector<128x128xbf16>
    %185 = vector.extract_strided_slice %34 {offsets = [0, 32], sizes = [128, 32], strides = [1, 1]} : vector<128x128xbf16> to vector<128x32xbf16>
    %cst_57 = arith.constant dense<0.000000e+00> : vector<128x32xf32>
    %186 = tpu.matmul %184, %185, %cst_57 {dimension_numbers = #tpu.dot_dimension_numbers<[1], [0], [0], [1], [0, 0, 1, 1], [], []>} : vector<128x128xbf16>, vector<128x32xbf16>, vector<128x32xf32> -> vector<128x32xf32>
    %187 = arith.truncf %186 : vector<128x32xf32> to vector<128x32xbf16>
    %c0_58 = arith.constant 0 : index
    %c32 = arith.constant 32 : index
    %188 = vector.load %arg12[%c0_58, %c32] : memref<128x128xbf16, #tpu.memory_space<vmem>>, vector<128x32xbf16>
    tpu.vector_store %arg12[%c0_58, %c32], %187 {strides = array<i32>} : memref<128x128xbf16, #tpu.memory_space<vmem>>, vector<128x32xbf16>,
    %189 = vector.extract_strided_slice %39 {offsets = [0, 64], sizes = [128, 32], strides = [1, 1]} : vector<128x128xbf16> to vector<128x32xbf16>
    %190 = vector.extract_strided_slice %32 {offsets = [0, 64], sizes = [128, 32], strides = [1, 1]} : vector<128x128xbf16> to vector<128x32xbf16>
    %cst_59 = arith.constant dense<0.000000e+00> : vector<128x128xf32>
    %191 = tpu.matmul %189, %190, %cst_59 {dimension_numbers = #tpu.dot_dimension_numbers<[1], [1], [0], [0], [0, 0, 1, 0], [], []>} : vector<128x32xbf16>, vector<128x32xbf16>, vector<128x128xf32> -> vector<128x128xf32>
    %192 = vector.extract_strided_slice %43 {offsets = [0, 64], sizes = [128, 32], strides = [1, 1]} : vector<128x128xbf16> to vector<128x32xbf16>
    %193 = vector.extract_strided_slice %35 {offsets = [0, 64], sizes = [128, 32], strides = [1, 1]} : vector<128x128xbf16> to vector<128x32xbf16>
    %cst_60 = arith.constant dense<0.000000e+00> : vector<128x128xf32>
    %194 = tpu.matmul %192, %193, %cst_60 {dimension_numbers = #tpu.dot_dimension_numbers<[1], [1], [0], [0], [0, 0, 1, 0], [], []>} : vector<128x32xbf16>, vector<128x32xbf16>, vector<128x128xf32> -> vector<128x128xf32>
    %c1_i32_61 = arith.constant 1 : i32
    %195 = tpu.dynamic_rotate %194 by %c1_i32_61 dim 1 : vector<128x128xf32>, i32 -> vector<128x128xf32>
    %196 = vector.shape_cast %62 : vector<128x1xi1> to vector<128x1xi1>
    %197 = vector.broadcast %196 : vector<128x1xi1> to vector<128x128xi1>
    %198 = arith.select %197, %195, %194 : vector<128x128xi1>, vector<128x128xf32>
    %c2_i32_62 = arith.constant 2 : i32
    %199 = tpu.dynamic_rotate %198 by %c2_i32_62 dim 1 : vector<128x128xf32>, i32 -> vector<128x128xf32>
    %200 = vector.shape_cast %66 : vector<128x1xi1> to vector<128x1xi1>
    %201 = vector.broadcast %200 : vector<128x1xi1> to vector<128x128xi1>
    %202 = arith.select %201, %199, %198 : vector<128x128xi1>, vector<128x128xf32>
    %c4_i32_63 = arith.constant 4 : i32
    %203 = tpu.dynamic_rotate %202 by %c4_i32_63 dim 1 : vector<128x128xf32>, i32 -> vector<128x128xf32>
    %204 = vector.shape_cast %70 : vector<128x1xi1> to vector<128x1xi1>
    %205 = vector.broadcast %204 : vector<128x1xi1> to vector<128x128xi1>
    %206 = arith.select %205, %203, %202 : vector<128x128xi1>, vector<128x128xf32>
    %c8_i32_64 = arith.constant 8 : i32
    %207 = tpu.dynamic_rotate %206 by %c8_i32_64 dim 1 : vector<128x128xf32>, i32 -> vector<128x128xf32>
    %208 = vector.shape_cast %74 : vector<128x1xi1> to vector<128x1xi1>
    %209 = vector.broadcast %208 : vector<128x1xi1> to vector<128x128xi1>
    %210 = arith.select %209, %207, %206 : vector<128x128xi1>, vector<128x128xf32>
    %c16_i32_65 = arith.constant 16 : i32
    %211 = tpu.dynamic_rotate %210 by %c16_i32_65 dim 1 : vector<128x128xf32>, i32 -> vector<128x128xf32>
    %212 = vector.shape_cast %78 : vector<128x1xi1> to vector<128x1xi1>
    %213 = vector.broadcast %212 : vector<128x1xi1> to vector<128x128xi1>
    %214 = arith.select %213, %211, %210 : vector<128x128xi1>, vector<128x128xf32>
    %c32_i32_66 = arith.constant 32 : i32
    %215 = tpu.dynamic_rotate %214 by %c32_i32_66 dim 1 : vector<128x128xf32>, i32 -> vector<128x128xf32>
    %216 = vector.shape_cast %82 : vector<128x1xi1> to vector<128x1xi1>
    %217 = vector.broadcast %216 : vector<128x1xi1> to vector<128x128xi1>
    %218 = arith.select %217, %215, %214 : vector<128x128xi1>, vector<128x128xf32>
    %c64_i32_67 = arith.constant 64 : i32
    %219 = tpu.dynamic_rotate %218 by %c64_i32_67 dim 1 : vector<128x128xf32>, i32 -> vector<128x128xf32>
    %220 = vector.shape_cast %86 : vector<128x1xi1> to vector<128x1xi1>
    %221 = vector.broadcast %220 : vector<128x1xi1> to vector<128x128xi1>
    %222 = arith.select %221, %219, %218 : vector<128x128xi1>, vector<128x128xf32>
    %223 = arith.addf %191, %222 : vector<128x128xf32>
    %224 = arith.addf %223, %51 : vector<128x128xf32>
    %cst_68 = arith.constant dense<0xFF800000> : vector<128xf32>
    %225 = vector.multi_reduction <maximumf>, %224, %cst_68 [1] : vector<128x128xf32> to vector<128xf32>
    %226 = vector.shape_cast %225 : vector<128xf32> to vector<128x1xf32>
    %227 = vector.broadcast %226 : vector<128x1xf32> to vector<128x128xf32>
    %228 = arith.subf %224, %227 : vector<128x128xf32>
    %229 = math.exp %228 : vector<128x128xf32>
    %cst_69 = arith.constant dense<0.000000e+00> : vector<128xf32>
    %230 = vector.multi_reduction <add>, %229, %cst_69 [1] : vector<128x128xf32> to vector<128xf32>
    %231 = vector.shape_cast %230 : vector<128xf32> to vector<128x1xf32>
    %232 = tpu.reciprocal %231 {approx = true} : vector<128x1xf32> -> vector<128x1xf32>
    %233 = vector.broadcast %232 : vector<128x1xf32> to vector<128x128xf32>
    %234 = arith.mulf %229, %233 : vector<128x128xf32>
    %235 = arith.truncf %234 : vector<128x128xf32> to vector<128x128xbf16>
    %236 = vector.extract_strided_slice %34 {offsets = [0, 64], sizes = [128, 32], strides = [1, 1]} : vector<128x128xbf16> to vector<128x32xbf16>
    %cst_70 = arith.constant dense<0.000000e+00> : vector<128x32xf32>
    %237 = tpu.matmul %235, %236, %cst_70 {dimension_numbers = #tpu.dot_dimension_numbers<[1], [0], [0], [1], [0, 0, 1, 1], [], []>} : vector<128x128xbf16>, vector<128x32xbf16>, vector<128x32xf32> -> vector<128x32xf32>
    %238 = arith.truncf %237 : vector<128x32xf32> to vector<128x32xbf16>
    %c0_71 = arith.constant 0 : index
    %c64 = arith.constant 64 : index
    %239 = vector.load %arg12[%c0_71, %c64] : memref<128x128xbf16, #tpu.memory_space<vmem>>, vector<128x32xbf16>
    tpu.vector_store %arg12[%c0_71, %c64], %238 {strides = array<i32>} : memref<128x128xbf16, #tpu.memory_space<vmem>>, vector<128x32xbf16>,
    %240 = vector.extract_strided_slice %39 {offsets = [0, 96], sizes = [128, 32], strides = [1, 1]} : vector<128x128xbf16> to vector<128x32xbf16>
    %241 = vector.extract_strided_slice %32 {offsets = [0, 96], sizes = [128, 32], strides = [1, 1]} : vector<128x128xbf16> to vector<128x32xbf16>
    %cst_72 = arith.constant dense<0.000000e+00> : vector<128x128xf32>
    %242 = tpu.matmul %240, %241, %cst_72 {dimension_numbers = #tpu.dot_dimension_numbers<[1], [1], [0], [0], [0, 0, 1, 0], [], []>} : vector<128x32xbf16>, vector<128x32xbf16>, vector<128x128xf32> -> vector<128x128xf32>
    %243 = vector.extract_strided_slice %43 {offsets = [0, 96], sizes = [128, 32], strides = [1, 1]} : vector<128x128xbf16> to vector<128x32xbf16>
    %244 = vector.extract_strided_slice %35 {offsets = [0, 96], sizes = [128, 32], strides = [1, 1]} : vector<128x128xbf16> to vector<128x32xbf16>
    %cst_73 = arith.constant dense<0.000000e+00> : vector<128x128xf32>
    %245 = tpu.matmul %243, %244, %cst_73 {dimension_numbers = #tpu.dot_dimension_numbers<[1], [1], [0], [0], [0, 0, 1, 0], [], []>} : vector<128x32xbf16>, vector<128x32xbf16>, vector<128x128xf32> -> vector<128x128xf32>
    %c1_i32_74 = arith.constant 1 : i32
    %246 = tpu.dynamic_rotate %245 by %c1_i32_74 dim 1 : vector<128x128xf32>, i32 -> vector<128x128xf32>
    %247 = vector.shape_cast %62 : vector<128x1xi1> to vector<128x1xi1>
    %248 = vector.broadcast %247 : vector<128x1xi1> to vector<128x128xi1>
    %249 = arith.select %248, %246, %245 : vector<128x128xi1>, vector<128x128xf32>
    %c2_i32_75 = arith.constant 2 : i32
    %250 = tpu.dynamic_rotate %249 by %c2_i32_75 dim 1 : vector<128x128xf32>, i32 -> vector<128x128xf32>
    %251 = vector.shape_cast %66 : vector<128x1xi1> to vector<128x1xi1>
    %252 = vector.broadcast %251 : vector<128x1xi1> to vector<128x128xi1>
    %253 = arith.select %252, %250, %249 : vector<128x128xi1>, vector<128x128xf32>
    %c4_i32_76 = arith.constant 4 : i32
    %254 = tpu.dynamic_rotate %253 by %c4_i32_76 dim 1 : vector<128x128xf32>, i32 -> vector<128x128xf32>
    %255 = vector.shape_cast %70 : vector<128x1xi1> to vector<128x1xi1>
    %256 = vector.broadcast %255 : vector<128x1xi1> to vector<128x128xi1>
    %257 = arith.select %256, %254, %253 : vector<128x128xi1>, vector<128x128xf32>
    %c8_i32_77 = arith.constant 8 : i32
    %258 = tpu.dynamic_rotate %257 by %c8_i32_77 dim 1 : vector<128x128xf32>, i32 -> vector<128x128xf32>
    %259 = vector.shape_cast %74 : vector<128x1xi1> to vector<128x1xi1>
    %260 = vector.broadcast %259 : vector<128x1xi1> to vector<128x128xi1>
    %261 = arith.select %260, %258, %257 : vector<128x128xi1>, vector<128x128xf32>
    %c16_i32_78 = arith.constant 16 : i32
    %262 = tpu.dynamic_rotate %261 by %c16_i32_78 dim 1 : vector<128x128xf32>, i32 -> vector<128x128xf32>
    %263 = vector.shape_cast %78 : vector<128x1xi1> to vector<128x1xi1>
    %264 = vector.broadcast %263 : vector<128x1xi1> to vector<128x128xi1>
    %265 = arith.select %264, %262, %261 : vector<128x128xi1>, vector<128x128xf32>
    %c32_i32_79 = arith.constant 32 : i32
    %266 = tpu.dynamic_rotate %265 by %c32_i32_79 dim 1 : vector<128x128xf32>, i32 -> vector<128x128xf32>
    %267 = vector.shape_cast %82 : vector<128x1xi1> to vector<128x1xi1>
    %268 = vector.broadcast %267 : vector<128x1xi1> to vector<128x128xi1>
    %269 = arith.select %268, %266, %265 : vector<128x128xi1>, vector<128x128xf32>
    %c64_i32_80 = arith.constant 64 : i32
    %270 = tpu.dynamic_rotate %269 by %c64_i32_80 dim 1 : vector<128x128xf32>, i32 -> vector<128x128xf32>
    %271 = vector.shape_cast %86 : vector<128x1xi1> to vector<128x1xi1>
    %272 = vector.broadcast %271 : vector<128x1xi1> to vector<128x128xi1>
    %273 = arith.select %272, %270, %269 : vector<128x128xi1>, vector<128x128xf32>
    %274 = arith.addf %242, %273 : vector<128x128xf32>
    %275 = arith.addf %274, %51 : vector<128x128xf32>
    %cst_81 = arith.constant dense<0xFF800000> : vector<128xf32>
    %276 = vector.multi_reduction <maximumf>, %275, %cst_81 [1] : vector<128x128xf32> to vector<128xf32>
    %277 = vector.shape_cast %276 : vector<128xf32> to vector<128x1xf32>
    %278 = vector.broadcast %277 : vector<128x1xf32> to vector<128x128xf32>
    %279 = arith.subf %275, %278 : vector<128x128xf32>
    %280 = math.exp %279 : vector<128x128xf32>
    %cst_82 = arith.constant dense<0.000000e+00> : vector<128xf32>
    %281 = vector.multi_reduction <add>, %280, %cst_82 [1] : vector<128x128xf32> to vector<128xf32>
    %282 = vector.shape_cast %281 : vector<128xf32> to vector<128x1xf32>
    %283 = tpu.reciprocal %282 {approx = true} : vector<128x1xf32> -> vector<128x1xf32>
    %284 = vector.broadcast %283 : vector<128x1xf32> to vector<128x128xf32>
    %285 = arith.mulf %280, %284 : vector<128x128xf32>
    %286 = arith.truncf %285 : vector<128x128xf32> to vector<128x128xbf16>
    %287 = vector.extract_strided_slice %34 {offsets = [0, 96], sizes = [128, 32], strides = [1, 1]} : vector<128x128xbf16> to vector<128x32xbf16>
    %cst_83 = arith.constant dense<0.000000e+00> : vector<128x32xf32>
    %288 = tpu.matmul %286, %287, %cst_83 {dimension_numbers = #tpu.dot_dimension_numbers<[1], [0], [0], [1], [0, 0, 1, 1], [], []>} : vector<128x128xbf16>, vector<128x32xbf16>, vector<128x32xf32> -> vector<128x32xf32>
    %289 = arith.truncf %288 : vector<128x32xf32> to vector<128x32xbf16>
    %c0_84 = arith.constant 0 : index
    %c96 = arith.constant 96 : index
    %290 = vector.load %arg12[%c0_84, %c96] : memref<128x128xbf16, #tpu.memory_space<vmem>>, vector<128x32xbf16>
    tpu.vector_store %arg12[%c0_84, %c96], %289 {strides = array<i32>} : memref<128x128xbf16, #tpu.memory_space<vmem>>, vector<128x32xbf16>,
    %c0_85 = arith.constant 0 : index
    %c0_86 = arith.constant 0 : index
    %291 = vector.load %arg12[%c0_85, %c0_86] : memref<128x128xbf16, #tpu.memory_space<vmem>>, vector<128x128xbf16>
    %c0_87 = arith.constant 0 : index
    %c0_88 = arith.constant 0 : index
    %292 = vector.load %arg7[%c0_87, %c0_88] : memref<128x128xbf16, #tpu.memory_space<vmem>>, vector<128x128xbf16>
    %cst_89 = arith.constant dense<0.000000e+00> : vector<128x128xf32>
    %293 = tpu.matmul %291, %292, %cst_89 {dimension_numbers = #tpu.dot_dimension_numbers<[1], [1], [0], [0], [0, 0, 1, 0], [], []>} : vector<128x128xbf16>, vector<128x128xbf16>, vector<128x128xf32> -> vector<128x128xf32>
    %c0_90 = arith.constant 0 : index
    %c0_91 = arith.constant 0 : index
    %294 = vector.load %arg8[%c0_90, %c0_91] : memref<1x128xf32, #tpu.memory_space<vmem>>, vector<1x128xf32>
    %295 = vector.broadcast %294 : vector<1x128xf32> to vector<128x128xf32>
    %296 = arith.addf %293, %295 : vector<128x128xf32>
    %c0_92 = arith.constant 0 : index
    %c0_93 = arith.constant 0 : index
    %c0_94 = arith.constant 0 : index
    %297 = vector.load %arg11[%c0_92, %c0_93, %c0_94] : memref<1x128x128xf32, #tpu.memory_space<vmem>>, vector<1x128x128xf32>
    %298 = vector.shape_cast %297 : vector<1x128x128xf32> to vector<128x128xf32>
    %299 = vector.shape_cast %296 : vector<128x128xf32> to vector<1x128x128xf32>
    tpu.vector_store %arg11[%c0_92, %c0_93, %c0_94], %299 {strides = array<i32>} : memref<1x128x128xf32, #tpu.memory_space<vmem>>, vector<1x128x128xf32>,
    return
  }
  func.func @transform_0(%arg0: i32) -> (i32, i32, i32) {
    %c0_i32 = arith.constant 0 : i32
    %c0_i32_0 = arith.constant 0 : i32
    %c0_i32_1 = arith.constant 0 : i32
    return %arg0, %c0_i32, %c0_i32_0 : i32, i32, i32
  }
  func.func @transform_1(%arg0: i32) -> (i32, i32) {
    %c0_i32 = arith.constant 0 : i32
    %c0_i32_0 = arith.constant 0 : i32
    %c0_i32_1 = arith.constant 0 : i32
    return %c0_i32, %c0_i32_0 : i32, i32
  }
  func.func @transform_2(%arg0: i32) -> (i32, i32) {
    %c0_i32 = arith.constant 0 : i32
    %c0_i32_0 = arith.constant 0 : i32
    %c0_i32_1 = arith.constant 0 : i32
    return %c0_i32, %c0_i32_0 : i32, i32
  }
  func.func @transform_3(%arg0: i32) -> (i32, i32) {
    %c0_i32 = arith.constant 0 : i32
    %c0_i32_0 = arith.constant 0 : i32
    %c0_i32_1 = arith.constant 0 : i32
    return %c0_i32, %c0_i32_0 : i32, i32
  }
  func.func @transform_4(%arg0: i32) -> (i32, i32) {
    %c0_i32 = arith.constant 0 : i32
    %c0_i32_0 = arith.constant 0 : i32
    %c0_i32_1 = arith.constant 0 : i32
    return %c0_i32, %c0_i32_0 : i32, i32
  }
  func.func @transform_5(%arg0: i32) -> (i32, i32) {
    %c0_i32 = arith.constant 0 : i32
    %c0_i32_0 = arith.constant 0 : i32
    %c0_i32_1 = arith.constant 0 : i32
    return %c0_i32, %c0_i32_0 : i32, i32
  }
  func.func @transform_6(%arg0: i32) -> (i32, i32) {
    %c0_i32 = arith.constant 0 : i32
    %c0_i32_0 = arith.constant 0 : i32
    %c0_i32_1 = arith.constant 0 : i32
    return %c0_i32, %c0_i32_0 : i32, i32
  }
  func.func @transform_7(%arg0: i32) -> (i32, i32) {
    %c0_i32 = arith.constant 0 : i32
    %c0_i32_0 = arith.constant 0 : i32
    %c0_i32_1 = arith.constant 0 : i32
    return %c0_i32, %c0_i32_0 : i32, i32
  }
  func.func @transform_8(%arg0: i32) -> (i32, i32) {
    %c0_i32 = arith.constant 0 : i32
    %c0_i32_0 = arith.constant 0 : i32
    %c0_i32_1 = arith.constant 0 : i32
    return %c0_i32, %c0_i32_0 : i32, i32
  }
  func.func @transform_9(%arg0: i32) -> (i32, i32) {
    %c0_i32 = arith.constant 0 : i32
    %c0_i32_0 = arith.constant 0 : i32
    %c0_i32_1 = arith.constant 0 : i32
    return %c0_i32, %c0_i32_0 : i32, i32
  }
  func.func @transform_10(%arg0: i32) -> (i32, i32, i32) {
    %c0_i32 = arith.constant 0 : i32
    %c0_i32_0 = arith.constant 0 : i32
    %c0_i32_1 = arith.constant 0 : i32
    return %arg0, %c0_i32, %c0_i32_0 : i32, i32, i32
  }
}

</mosaic_0001>

<bundles_post_ra>
// kernel: tpu_custom_call.1
= control target key start
LH: loop header
LB: loop body
LE: loop exit
PB: predicated region body
PF: predicated region fallthrough
CT: control target
= control target key end

     0   :  { %6 = vsyncpa [#allocation3], 0  ;;  %s118_s0 = inlined_call_operand.hbm [shape: f32[8,128], index: 0, kind: input, shape index: {}]   ;;  %s119_s1 = inlined_call_operand.hbm [shape: f32[8,128], index: 1, kind: output, shape index: {}]  }
   0x1   :  { %7 = vsyncpa [#allocation4], 0  ;;  %s13_s8 = sshll.u32 %s118_s0, 4  ;;  %s99_s9 = smov [#allocation2]   ;;  %s14_s8 = int_to_ptr.hbm [resolvable:$true] %s13_s8 }
   0x2   :  { %s15_s10 = sshll.u32 %s99_s9, 4  ;;  %s16_s10 = int_to_ptr.vmem [resolvable:$true] %s15_s10 }
   0x3   :  { %18 = dma.hbm_to_vmem [thread:$0]  %s14_s8, 128, %s16_s10, [#allocation3]  }
   0x4   :  { %95 = dma.done.wait [#allocation3], 128  }
   0x5   :  { %96 = vsyncadd [#allocation3], 4294967168  ;;  %v23_v0 = vld [vmem:[#allocation2] sm:$0xff]  ;;  %s100_s11 = smov 1   ;;  %s101_s12 = smov [#allocation5]  }
   0x6   :  { %24 = vrot.lane.b32.xlu0 %v23_v0, %s100_s11  ;;  %s32_s13 = sshll.u32 %s101_s12, 4  ;;  %s34_s16 = sshll.u32 %s119_s1, 4  ;;  %s33_s13 = int_to_ptr.vmem [resolvable:$true] %s32_s13  ;;  %s35_s16 = int_to_ptr.hbm [resolvable:$true] %s34_s16 }
  0x78   :  { %v25_v1 = vpop.permute.xlu0 %24 }
  0x79   :  { %26 = vst [vmem:[#allocation5] sm:$0xff] %v25_v1 }
  0x7a   :  { %37 = dma.vmem_to_hbm [thread:$0]  %s33_s13, 128, %s35_s16, [#allocation4]  }
  0x7b   :  { %97 = dma.done.wait [#allocation4], 128  }
  0x7c   :  { %98 = vsyncadd [#allocation4], 4294967168 }
  0x7d   :  { %42 = vsyncpa [#allocation3], 1 }
  0x7e   :  { %43 = vsyncpa [#allocation4], 1 }

// kernel: tpu_custom_call.1
= control target key start
LH: loop header
LB: loop body
LE: loop exit
PB: predicated region body
PF: predicated region fallthrough
CT: control target
= control target key end

     0   :  { %s12323_s0 = inlined_call_operand.hbm [shape: f32[2,128,128], index: 0, kind: input, shape index: {}]   ;;  %s12324_s1 = inlined_call_operand.hbm [shape: bf16[128,128], index: 1, kind: input, shape index: {}]   ;;  %s12325_s2 = inlined_call_operand.vmem [shape: f32[1,128], index: 2, kind: input, shape index: {}]   ;;  %s12326_s3 = inlined_call_operand.hbm [shape: f32[1,128], index: 3, kind: input, shape index: {}]   ;;  %s12327_s4 = inlined_call_operand.hbm [shape: bf16[384,128], index: 4, kind: input, shape index: {}]   ;;  %s12328_s5 = inlined_call_operand.vmem [shape: f32[1,384], index: 5, kind: input, shape index: {}]   ;;  %s12329_s6 = inlined_call_operand.hbm [shape: bf16[128,128], index: 6, kind: input, shape index: {}]   ;;  %s12330_s7 = inlined_call_operand.vmem [shape: f32[1,128], index: 7, kind: input, shape index: {}]   ;;  %s12331_s8 = inlined_call_operand.vmem [shape: f32[1,128], index: 8, kind: input, shape index: {}]   ;;  %s12332_s9 = inlined_call_operand.vmem [shape: f32[1,128], index: 9, kind: input, shape index: {}]   ;;  %s12333_s10 = inlined_call_operand.hbm [shape: f32[2,128,128], index: 10, kind: output, shape index: {}]  }
   0x1   :  { %12730 = sst [smem:[#allocation137_spill]] %s12324_s1 }
   0x2   :  { %12731 = sst [smem:[#allocation138_spill]] %s12326_s3 }
   0x3   :  { %12732 = sst [smem:[#allocation139_spill]] %s12327_s4 }
   0x4   :  { %12733 = sst [smem:[#allocation140_spill]] %s12329_s6 }
   0x5   :  { %15 = vsyncpa [#allocation4], 0 }
   0x6   :  { %17 = vsyncpa [#allocation4 + $0x1], 0 }
   0x7   :  { %18 = vsyncpa [#allocation7], 0 }
   0x8   :  { %19 = vsyncpa [#allocation10], 0 }
   0x9   :  { %20 = vsyncpa [#allocation5], 0 }
   0xa   :  { %22 = vsyncpa [#allocation5 + $0x1], 0  ;;  %s6983_s13 = smov 0   ;;  %s6985_s14 = smov 0  }
   0xb   :  { %s6987_s15 = smov 0   ;;  %s6989_s16 = smov 0  }
   0xc LB: > { %s7004_s17 = sadd.s32 4294967295, %s6907_s16   ;;  %s5958_s18 = sadd.s32 4294967294, %s6907_s16   ;;  %s6907_s16 = sphi %s6989_s16, %s13456_s16   ;;  %s6903_s15 = sphi %s6987_s15, %s13455_s15   ;;  %s6899_s14 = sphi %s6985_s14, %s13454_s14   ;;  %s6895_s13 = sphi %s6983_s13, %s13453_s13  }
   0xd   : > { %p48_p0 = scmp.ne.s32.totalorder %s6899_s14, %s6895_s13  ;;  %p49_p1 = scmp.eq.s32.totalorder %s7004_s17, 0 }
   0xe   : > { %p261_p2 = scmp.eq.s32.totalorder %s7004_s17, 1  ;;  %p267_p3 = scmp.eq.s32.totalorder %s5958_s18, 1 }
   0xf   : > { %p7013_p4 = por %p49_p1, %p48_p0  ;;  %p5959_p5 = scmp.ge.s32.totalorder %s6907_s16, 1 }
  0x10   : > { %p7018_p6 = por %p267_p3, %p48_p0  ;;  %p274_p7 = scmp.lt.s32.totalorder %s6907_s16, 3 }
  0x11   : > { %s12736_s1 = sld [smem:[#allocation137_spill]]  ;;  %s6909_s25 = smov [#allocation6]  }
  0x12   : > { %p7026_p8 = pnand %p5959_p5, %p274_p7  ;;  %s287_s26 = sshll.u32 %s6909_s25, 4  ;;  %s288_s26 = int_to_ptr.vmem [resolvable:$true] %s287_s26 }
  0x13   : > { %s12739_s4 = sld [smem:[#allocation139_spill]]  ;;  %s6910_s11 = smov 64  }
  0x14   : > { %p6306_p9 = pneg %p7026_p8  ;;  %s6911_s12 = smov 4  }
  0x15   : > { %s6912_s18 = smov [#allocation9]   ;;  %s12740_s3 = sld [smem:[#allocation138_spill]] }
  0x16   : > { %p7034_p10 = pnand %p6306_p9, %p49_p1  ;;  %s316_s21 = sshll.u32 %s6912_s18, 4  ;;  %s317_s21 = int_to_ptr.vmem [resolvable:$true] %s316_s21 }
  0x17   : > { %s285_s23 = sshll.u32 %s12736_s1, 4  ;;  %s12741_s6 = sld [smem:[#allocation140_spill]]  ;;  %s286_s23 = int_to_ptr.hbm [resolvable:$true] %s285_s23 }
  0x18   : > { %6309 = dma.hbm_to_vmem [thread:$0]  (!%p7034_p10), %s286_s23, 1024, %s288_s26, [#allocation7], %s6910_s11, %s6910_s11, %s6911_s12  }
  0x19   : > { %s314_s30 = sshll.u32 %s12739_s4, 4  ;;  %s6913_s26 = smov [#allocation8]   ;;  %s315_s30 = int_to_ptr.hbm [resolvable:$true] %s314_s30 }
  0x1a   : > { %6315 = dma.hbm_to_vmem [thread:$0]  (!%p7034_p10), %s315_s30, 3072, %s317_s21, [#allocation10], %s6910_s11, %s6910_s11, %s6911_s12  }
  0x1b   : > { %s303_s1 = sshll.u32 %s12740_s3, 4  ;;  %s305_s18 = sshll.u32 %s6913_s26, 4  ;;  %s304_s1 = int_to_ptr.hbm [resolvable:$true] %s303_s1  ;;  %s306_s18 = int_to_ptr.vmem [resolvable:$true] %s305_s18 }
  0x1c   : > { %6312 = dma.hbm_to_vmem [thread:$0]  (!%p7034_p10), %s304_s1, 16, %s306_s18, [#allocation7]  }
  0x1d   : > { %s331_s23 = sshll.u32 %s12741_s6, 4  ;;  %s6914_s22 = smov [#allocation11]   ;;  %s332_s23 = int_to_ptr.hbm [resolvable:$true] %s331_s23 }
  0x1e   : > { %s333_s25 = sshll.u32 %s6914_s22, 4  ;;  %s7057_s30 = sadd.s32 1, %s6907_s16   ;;  %s334_s25 = int_to_ptr.vmem [resolvable:$true] %s333_s25 }
  0x1f   : > { %6318 = dma.hbm_to_vmem [thread:$0]  (!%p7034_p10), %s332_s23, 1024, %s334_s25, [#allocation10], %s6910_s11, %s6910_s11, %s6911_s12  }
  0x20   : > { %s35_s21 = sadd.s32 1, %s6903_s15  ;;  %s32_s28 = ssub.s32 %s6907_s16, %s7057_s30 }
  0x21   : > { %p42_p12 = scmp.ne.s32.totalorder %s6903_s15, %s6899_s14  ;;  %p33_p13 = scmp.eq.s32.totalorder %s32_s28, 0 }
  0x22   : > { %p43_p0 = scmp.eq.s32.totalorder %s6907_s16, 0  ;;  %p6331_p5 = scmp.lt.s32.totalorder %s6907_s16, 2 }
  0x23   : > { %p7067_p3 = por %p261_p2, %p42_p12  ;;  %s356_s26 = sand.u32 1, %s6903_s15  }
  0x24   : > { %s7073_s1 = scalar_select %p33_p13, %s6903_s15, %s35_s21  }
  0x25   : > { %p44_p7 = por %p43_p0, %p42_p12  ;;  %s5965_s27 = sshll.u32 %s356_s26, 7 }
  0x26   : > { %s6236_s11 = sshll.u32 %s6907_s16, 7  ;;  %s360_s22 = scalar_lea.vmem [#allocation3], %s5965_s27 }
  0x27   : > { %s365_s18 = scalar_lea.hbm %s12323_s0, %s6236_s11  ;;  %s368_s25 = sshll.u32 %s360_s22, 4  ;;  %s369_s25 = int_to_ptr.vmem [resolvable:$true] %s368_s25 }
  0x28   : > { %s366_s28 = sshll.u32 %s365_s18, 4  ;;  %p7080_p2 = pnand %p6331_p5, %p44_p7  ;;  %s367_s28 = int_to_ptr.hbm [resolvable:$true] %s366_s28 }
  0x29   : > { %s357_s21 = scalar_lea.sflag [#allocation4], %s356_s26  ;;  %s6803_s4 = sshra.s32 %s367_s28, 4  ;;  %s6804_s4 = int_to_ptr.hbm [resolvable:$true] %s6803_s4 }
  0x2a   : > { %s6805_s6 = scalar_lea.hbm %s6804_s4, 128  ;;  %p6807_p10 = pneg %p7080_p2 }
  0x2b   : > { %p6806_p9 = scmp.ne.s32.totalorder %s6804_s4, %s6805_s6  ;;  %s6810_s12 = scalar_lea.hbm %s12323_s0, 256 }
  0x2c   : > { %p6811_p0 = scmp.lt.s32.totalorder %s6804_s4, %s12323_s0  ;;  %p6812_p5 = scmp.lt.s32.totalorder %s6810_s12, %s6805_s6 }
  0x2d   : > { %p6808_p12 = pnand %p6807_p10, %p6806_p9 }
  0x2e   : > { %p6813_p7 = por %p6812_p5, %p6811_p0 }
  0x2f   : > { %p6809_p13 = pneg %p6808_p12 }
  0x31   : > { %p6814_p11 = pnand %p6813_p7, %p6809_p13 }
  0x33   : > { %6817 = shalt.err (!%p6814_p11)
}
  0x34   : > { %s6915_s26 = smov 128   ;;  %s6916_s22 = smov 8  }
  0x35   : > { %6322 = dma.hbm_to_vmem [thread:$0]  (!%p7080_p2), %s367_s28, 2048, %s369_s25, %s357_s21, %s6915_s26, %s6915_s26, %s6916_s22  }
  0x36   : > { %380 = sbr.rel (%p7026_p8) target bundleno = 4448 (0x1160), region = 60 }
  0x3b   : > { %s7097_s11 = sand.u32 1, %s6899_s14  }
  0x3c   : > { %s5969_s4 = sshll.u32 %s7097_s11, 7  ;;  %s383_s6 = scalar_lea.sflag [#allocation4], %s7097_s11 }
  0x3d   : > { %s7103_s27 = scalar_lea.vmem [#allocation3], %s5969_s4 }
  0x3e   : > { %6878 = dma.done.wait (%p7013_p4), %s383_s6, 2048  }
  0x3f   : > { %6880 = vsyncadd (%p7013_p4), %s383_s6, 4294965248 }
  0x40   : > { %6882 = dma.done.wait (%p49_p1), [#allocation7], 1040  }
  0x41   : > { %6884 = vsyncadd (%p49_p1), [#allocation7], 4294966256 }
  0x42   : > { %6886 = dma.done.wait (%p49_p1), [#allocation10], 4096  }
  0x43   : > { %6888 = vsyncadd (%p49_p1), [#allocation10], 4294963200  ;;  %v7118_v0 = vld [vmem:[%s7103_s27 + $0x10] sm:$0xff]  ;;  %v7121_v1 = vld [vmem:[%s7103_s27] sm:$0xff]  ;;  %s6917_s3 = smov 96   ;;  %v6918_v25 = vmov 128.0  }
  0x44   : > { %v7124_v2 = vld [vmem:[%s7103_s27 + $0x20] sm:$0xff]  ;;  %464 = vadd.xlane.f32.xlu1 %v7118_v0  ;;  %460 = vadd.xlane.f32.xlu0 %v7121_v1  ;;  %v7130_v3 = vld [vmem:[%s7103_s27 + $0x18] sm:$0xff]  ;;  %v7133_v4 = vld [vmem:[%s7103_s27 + $0x8] sm:$0xff]  ;;  %6393 = vrcp.f32 %v6918_v25  ;;  %vm12359_vm1 = vcmask 261120   ;;  %s6919_s19 = smov 32   ;;  %s6920_s24 = smov 64  }
  0x45   : > { %468 = vadd.xlane.f32.xlu2 %v7124_v2  ;;  %v7136_v5 = vld [vmem:[%s7103_s27 + $0x28] sm:$0xff]  ;;  %v7142_v6 = vld [vmem:[%s7103_s27 + $0x30] sm:$0xff]  ;;  %v7145_v7 = vld [vmem:[%s7103_s27 + $0x38] sm:$0xff]  ;;  %s6921_s6 = smov 1   ;;  %s6923_s25 = smov 4  }
  0x46   : > { %v7148_v8 = vld [vmem:[%s7103_s27 + $0x40] sm:$0xff]  ;;  %v7154_v9 = vld [vmem:[%s7103_s27 + $0x48] sm:$0xff]  ;;  %v7157_v10 = vld [vmem:[%s7103_s27 + $0x50] sm:$0xff]  ;;  %s6924_s28 = smov 8   ;;  %s6925_s21 = smov 16  }
  0x47   : > { %v7160_v11 = vld [vmem:[%s7103_s27 + $0x58] sm:$0xff]  ;;  %v7166_v12 = vld [vmem:[%s7103_s27 + $0x60] sm:$0xff]  ;;  %v7169_v13 = vld [vmem:[%s7103_s27 + $0x68] sm:$0xff]  ;;  %s12240_s12 = scalar_lea.vmem [#allocation12], %s5969_s4  ;;  %s6285_s4 = sshll.u32 %s7004_s17, 7 }
  0x48   : > { %v7172_v14 = vld [vmem:[%s7103_s27 + $0x70] sm:$0xff]  ;;  %v7178_v15 = vld [vmem:[%s7103_s27 + $0x78] sm:$0xff]  ;;  %v7183_v17 = vld [vmem:[#allocation6 + $0x28] sm:$0xff]  ;;  %s6922_s27 = smov 2   ;;  %s5843_s18 = scalar_lea.hbm %s12333_s10, %s6285_s4 }
  0x49   : > { %v7181_v16 = vld [vmem:[#allocation6 + $0x30] sm:$0xff]  ;;  %v7185_v18 = vld [vmem:[#allocation6 + $0x38] sm:$0xff]  ;;  %v7195_v20 = vld [vmem:[#allocation6 + $0x20] sm:$0xff]  ;;  %s5844_s26 = sshll.u32 %s12240_s12, 4  ;;  %s5846_s22 = sshll.u32 %s5843_s18, 4  ;;  %s5845_s26 = int_to_ptr.vmem [resolvable:$true] %s5844_s26  ;;  %s5847_s22 = int_to_ptr.hbm [resolvable:$true] %s5846_s22 }
  0x4a   : > { %v7193_v19 = vld [vmem:[#allocation6 + $0x10] sm:$0xff]  ;;  %v7201_v21 = vld [vmem:[#allocation6] sm:$0xff]  ;;  %v7203_v22 = vld [vmem:[#allocation6 + $0x18] sm:$0xff]  ;;  %v6394_v27 = vpop.eup %6393 }
  0x4b   : > { %v7209_v23 = vld [vmem:[#allocation6 + $0x8] sm:$0xff]  ;;  %v6260_v24 = vld [vmem:[#allocation9 + $0xb8] sm:$0xff]  ;;  %v6259_v26 = vld [vmem:[#allocation9 + $0xb0] sm:$0xff]  ;;  %v493_v28 = vmul.f32 128.0, %v6394_v27  ;;  %vm497_vm0 = vweird.f32 %v6394_v27 }
  0x4c   : > { %466 = vadd.xlane.f32.xlu1 %v7130_v3  ;;  %462 = vadd.xlane.f32.xlu0 %v7133_v4  ;;  %v6258_v30 = vld [vmem:[#allocation9 + $0xa8] sm:$0xff]  ;;  %v6257_v33 = vld [vmem:[#allocation9 + $0xa0] sm:$0xff]  ;;  %v6256_v40 = vld [vmem:[#allocation9 + $0x98] sm:$0xff] }
  0x4d   : > { %470 = vadd.xlane.f32.xlu2 %v7136_v5  ;;  %1133 = vmatpush.bf16.xpose.msra.mxu2 %v6260_v24  ;;  %v494_v29 = vsub.f32 1.0, %v493_v28  ;;  %v6255_v51 = vld [vmem:[#allocation9 + $0x90] sm:$0xff]  ;;  %v6254_v62 = vld [vmem:[#allocation9 + $0x88] sm:$0xff] }
  0x4f   : > { %v495_v31 = vmul.f32 %v6394_v27, %v494_v29 }
  0x51   : > { %v496_v32 = vadd.f32 %v6394_v27, %v495_v31 }
  0x53   : > { %v7213_v34 = vsel %vm497_vm0, %v6394_v27, %v496_v32 }
  0x54   : > { %472 = vadd.xlane.f32.xlu0 %v7142_v6  ;;  %474 = vadd.xlane.f32.xlu1 %v7145_v7 }
  0x55   : > { %476 = vadd.xlane.f32.xlu2 %v7148_v8  ;;  %1134 = vmatpush.bf16.xpose.msra.mxu2 %v6259_v26 }
  0x5c   : > { %478 = vadd.xlane.f32.xlu0 %v7154_v9  ;;  %480 = vadd.xlane.f32.xlu1 %v7157_v10 }
  0x5d   : > { %482 = vadd.xlane.f32.xlu2 %v7160_v11  ;;  %1135 = vmatpush.bf16.xpose.msra.mxu2 %v6258_v30  ;;  %v6253_v30 = vld [vmem:[#allocation9 + $0x80] sm:$0xff] }
  0x64   : > { %484 = vadd.xlane.f32.xlu0 %v7166_v12  ;;  %486 = vadd.xlane.f32.xlu1 %v7169_v13 }
  0x65   : > { %488 = vadd.xlane.f32.xlu2 %v7172_v14  ;;  %1136 = vmatpush.bf16.xpose.msra.mxu2 %v6257_v33 }
  0x6c   : > { %490 = vadd.xlane.f32.xlu0 %v7178_v15 }
  0x6d   : > { %1137 = vmatpush.bf16.xpose.msra.mxu2 %v6256_v40 }
  0x75   : > { %1138 = vmatpush.bf16.xpose.msra.mxu2 %v6255_v51  ;;  %v6244_v51 = vld [vmem:[#allocation9 + $0x38] sm:$0xff] }
  0x76   : > { %1035 = vmatpush.bf16.xpose.msra.mxu0 %v6244_v51 }
  0x7d   : > { %2866 = vrot.lane.b32.xlu1 %v7181_v16, %s6917_s3  ;;  %2864 = vrot.lane.b32.xlu2 %v7183_v17, %s6917_s3 }
  0x7e   : > { %1139 = vmatpush.bf16.xpose.msra.mxu2 %v6254_v62 }
  0x80   : > { %2868 = vrot.lane.b32.xlu0 %v7185_v18, %s6917_s3 }
  0x85   : > { %2858 = vrot.lane.b32.xlu2 %v7193_v19, %s6917_s3 }
  0x86   : > { %1140 = vmatpush.bf16.xpose.msra.mxu2 %v6253_v30 }
  0x88   : > { %2862 = vrot.lane.b32.xlu0 %v7195_v20, %s6917_s3 }
  0x8d   : > { %2854 = vrot.lane.b32.xlu2 %v7201_v21, %s6917_s3 }
  0x90   : > { %2860 = vrot.lane.b32.xlu0 %v7203_v22, %s6917_s3 }
  0x98   : > { %2856 = vrot.lane.b32.xlu0 %v7209_v23, %s6917_s3 }
  0xb7   : > { %v465_v35 = vpop.xlane.xlu1 %464  ;;  %v461_v36 = vpop.xlane.xlu0 %460 }
  0xb8   : > { %v501_v37 = vmul.f32 %v7213_v34, %v465_v35  ;;  %v499_v38 = vmul.f32 %v7213_v34, %v461_v36  ;;  %v469_v39 = vpop.xlane.xlu2 %468 }
  0xb9   : > { %v503_v52 = vmul.f32 %v7213_v34, %v469_v39 }
  0xba   : > { %v7218_v41 = vsub.f32 %v7121_v1, %v499_v38  ;;  %v7221_v42 = vsub.f32 %v7118_v0, %v501_v37 }
  0xbb   : > { %v7247_v59 = vsub.f32 %v7124_v2, %v503_v52  ;;  %v6252_v52 = vld [vmem:[#allocation9 + $0x78] sm:$0xff] }
  0xbc   : > { %v531_v43 = vmul.f32 %v7218_v41, %v7218_v41  ;;  %v533_v44 = vmul.f32 %v7221_v42, %v7221_v42  ;;  %1084 = vmatpush.bf16.xpose.msra.mxu1 %v6252_v52 }
  0xbe   : > { %547 = vadd.xlane.f32.xlu1 %v531_v43 }
  0xbf   : > { %v467_v45 = vpop.xlane.xlu1 %466  ;;  %v463_v46 = vpop.xlane.xlu0 %462 }
  0xc0   : > { %v502_v47 = vmul.f32 %v7213_v34, %v467_v45  ;;  %v500_v48 = vmul.f32 %v7213_v34, %v463_v46  ;;  %v471_v49 = vpop.xlane.xlu2 %470 }
  0xc1   : > { %v504_v50 = vmul.f32 %v7213_v34, %v471_v49 }
  0xc2   : > { %551 = vadd.xlane.f32.xlu0 %v533_v44  ;;  %v7232_v53 = vsub.f32 %v7130_v3, %v502_v47  ;;  %v7235_v54 = vsub.f32 %v7133_v4, %v500_v48  ;;  %v535_v3 = vmul.f32 %v7247_v59, %v7247_v59 }
  0xc3   : > { %v7238_v55 = vsub.f32 %v7136_v5, %v504_v50 }
  0xc4   : > { %v534_v56 = vmul.f32 %v7232_v53, %v7232_v53  ;;  %v532_v57 = vmul.f32 %v7235_v54, %v7235_v54 }
  0xc5   : > { %v536_v58 = vmul.f32 %v7238_v55, %v7238_v55 }
  0xc6   : > { %553 = vadd.xlane.f32.xlu1 %v534_v56  ;;  %549 = vadd.xlane.f32.xlu2 %v532_v57  ;;  %v6243_v57 = vld [vmem:[#allocation9 + $0x30] sm:$0xff] }
  0xc7   : > { %v473_v60 = vpop.xlane.xlu0 %472  ;;  %v475_v61 = vpop.xlane.xlu1 %474  ;;  %1036 = vmatpush.bf16.xpose.msra.mxu0 %v6243_v57 }
  0xc8   : > { %v505_v63 = vmul.f32 %v7213_v34, %v473_v60  ;;  %v477_v0 = vpop.xlane.xlu2 %476  ;;  %v506_v5 = vmul.f32 %v7213_v34, %v475_v61 }
  0xc9   : > { %v507_v1 = vmul.f32 %v7213_v34, %v477_v0  ;;  %v6250_v0 = vld [vmem:[#allocation9 + $0x68] sm:$0xff] }
  0xca   : > { %557 = vadd.xlane.f32.xlu0 %v536_v58  ;;  %v7254_v4 = vsub.f32 %v7142_v6, %v505_v63  ;;  %v7265_v26 = vsub.f32 %v7145_v7, %v506_v5  ;;  %v6251_v58 = vld [vmem:[#allocation9 + $0x70] sm:$0xff]  ;;  %v6242_v63 = vld [vmem:[#allocation9 + $0x28] sm:$0xff]  ;;  %v6249_v5 = vld [vmem:[#allocation9 + $0x60] sm:$0xff] }
  0xcb   : > { %v7258_v2 = vsub.f32 %v7148_v8, %v507_v1  ;;  %1085 = vmatpush.bf16.xpose.msra.mxu1 %v6251_v58 }
  0xcc   : > { %v537_v24 = vmul.f32 %v7254_v4, %v7254_v4  ;;  %v538_v31 = vmul.f32 %v7265_v26, %v7265_v26 }
  0xcd   : > { %v539_v25 = vmul.f32 %v7258_v2, %v7258_v2 }
  0xce   : > { %555 = vadd.xlane.f32.xlu2 %v535_v3  ;;  %559 = vadd.xlane.f32.xlu1 %v537_v24  ;;  %v6241_v3 = vld [vmem:[#allocation9 + $0x20] sm:$0xff] }
  0xcf   : > { %v479_v27 = vpop.xlane.xlu0 %478  ;;  %v481_v6 = vpop.xlane.xlu1 %480  ;;  %1037 = vmatpush.bf16.xpose.msra.mxu0 %v6242_v63 }
  0xd0   : > { %v508_v28 = vmul.f32 %v7213_v34, %v479_v27  ;;  %v483_v29 = vpop.xlane.xlu2 %482  ;;  %v509_v33 = vmul.f32 %v7213_v34, %v481_v6  ;;  %v6240_v6 = vld [vmem:[#allocation9 + $0x18] sm:$0xff] }
  0xd1   : > { %v510_v8 = vmul.f32 %v7213_v34, %v483_v29 }
  0xd2   : > { %563 = vadd.xlane.f32.xlu0 %v539_v25  ;;  %v7272_v32 = vsub.f32 %v7154_v9, %v508_v28  ;;  %v7283_v37 = vsub.f32 %v7157_v10, %v509_v33  ;;  %v6248_v28 = vld [vmem:[#allocation9 + $0x58] sm:$0xff] }
  0xd3   : > { %v7276_v7 = vsub.f32 %v7160_v11, %v510_v8  ;;  %1086 = vmatpush.bf16.xpose.msra.mxu1 %v6250_v0 }
  0xd4   : > { %v540_v35 = vmul.f32 %v7272_v32, %v7272_v32  ;;  %v541_v43 = vmul.f32 %v7283_v37, %v7283_v37 }
  0xd5   : > { %v542_v36 = vmul.f32 %v7276_v7, %v7276_v7 }
  0xd6   : > { %561 = vadd.xlane.f32.xlu2 %v538_v31  ;;  %565 = vadd.xlane.f32.xlu1 %v540_v35  ;;  %v6239_v35 = vld [vmem:[#allocation9 + $0x10] sm:$0xff] }
  0xd7   : > { %v485_v38 = vpop.xlane.xlu0 %484  ;;  %v487_v9 = vpop.xlane.xlu1 %486  ;;  %1038 = vmatpush.bf16.xpose.msra.mxu0 %v6241_v3 }
  0xd8   : > { %v511_v39 = vmul.f32 %v7213_v34, %v485_v38  ;;  %v489_v40 = vpop.xlane.xlu2 %488  ;;  %v512_v45 = vmul.f32 %v7213_v34, %v487_v9 }
  0xd9   : > { %v513_v11 = vmul.f32 %v7213_v34, %v489_v40  ;;  %v6246_v40 = vld [vmem:[#allocation9 + $0x48] sm:$0xff] }
  0xda   : > { %569 = vadd.xlane.f32.xlu0 %v542_v36  ;;  %v7290_v44 = vsub.f32 %v7166_v12, %v511_v39  ;;  %v7301_v48 = vsub.f32 %v7169_v13, %v512_v45  ;;  %v6247_v36 = vld [vmem:[#allocation9 + $0x50] sm:$0xff]  ;;  %v6238_v39 = vld [vmem:[#allocation9 + $0x8] sm:$0xff]  ;;  %v6237_v45 = vld [vmem:[#allocation9] sm:$0xff] }
  0xdb   : > { %v7294_v46 = vsub.f32 %v7172_v14, %v513_v11  ;;  %1087 = vmatpush.bf16.xpose.msra.mxu1 %v6249_v5 }
  0xdc   : > { %v543_v10 = vmul.f32 %v7290_v44, %v7290_v44  ;;  %v544_v12 = vmul.f32 %v7301_v48, %v7301_v48 }
  0xdd   : > { %v545_v47 = vmul.f32 %v7294_v46, %v7294_v46 }
  0xde   : > { %567 = vadd.xlane.f32.xlu2 %v541_v43  ;;  %571 = vadd.xlane.f32.xlu1 %v543_v10  ;;  %v6245_v10 = vld [vmem:[#allocation9 + $0x40] sm:$0xff] }
  0xdf   : > { %v491_v49 = vpop.xlane.xlu0 %490  ;;  %1039 = vmatpush.bf16.xpose.msra.mxu0 %v6240_v6 }
  0xe0   : > { %v2865_v60 = vpop.permute.xlu2 %2864  ;;  %v514_v27 = vmul.f32 %v7213_v34, %v491_v49 }
  0xe1   : > { %v2910_v61 = vsel %vm12359_vm1, %v2865_v60, 0 }
  0xe2   : > { %575 = vadd.xlane.f32.xlu0 %v545_v47  ;;  %v7315_v30 = vsub.f32 %v7178_v15, %v514_v27 }
  0xe3   : > { %1088 = vmatpush.bf16.xpose.msra.mxu1 %v6248_v28 }
  0xe4   : > { %v546_v33 = vmul.f32 %v7315_v30, %v7315_v30 }
  0xe6   : > { %573 = vadd.xlane.f32.xlu2 %v544_v12 }
  0xe7   : > { %1040 = vmatpush.bf16.xpose.msra.mxu0 %v6239_v35 }
  0xe8   : > { %v2859_v29 = vpop.permute.xlu2 %2858 }
  0xe9   : > { %v2901_v8 = vsel %vm12359_vm1, %v2859_v29, 0 }
  0xeb   : > { %1089 = vmatpush.bf16.xpose.msra.mxu1 %v6247_v36 }
  0xef   : > { %v2867_v56 = vpop.permute.xlu1 %2866  ;;  %1041 = vmatpush.bf16.xpose.msra.mxu0 %v6238_v39 }
  0xf0   : > { %v2913_v13 = vsel %vm12359_vm1, %v2867_v56, 0  ;;  %v2855_v9 = vpop.permute.xlu2 %2854 }
  0xf1   : > { %v2895_v11 = vsel %vm12359_vm1, %v2855_v9, 0 }
  0xf2   : > { %v2869_v50 = vpop.permute.xlu0 %2868 }
  0xf3   : > { %v2916_v14 = vsel %vm12359_vm1, %v2869_v50, 0  ;;  %1090 = vmatpush.bf16.xpose.msra.mxu1 %v6246_v40 }
  0xf4   : > { %2918 = vmatpush.bf16.xpose.msrb.mxu2 %v2916_v14 }
  0xf6   : > { %3798 = vrot.lane.b32.xlu0 %v7181_v16, %s6920_s24 }
  0xf7   : > { %4732 = vrot.lane.b32.xlu1 %v7185_v18, %s6919_s19  ;;  %1042 = vmatpush.bf16.xpose.msra.mxu0 %v6237_v45 }
  0xfa   : > { %v2863_v62 = vpop.permute.xlu0 %2862 }
  0xfb   : > { %v2907_v1 = vsel %vm12359_vm1, %v2863_v62, 0  ;;  %1091 = vmatpush.bf16.xpose.msra.mxu1 %v6245_v10  ;;  %v7379_v10 = vld [vmem:[%s12325_s2] ss:$0 sm:$0xff] }
  0xfc   : > { %2919 = vmatpush.bf16.xpose.msrb.mxu2 %v2913_v13 }
  0xfe   : > { %3800 = vrot.lane.b32.xlu2 %v7185_v18, %s6920_s24  ;;  %3794 = vrot.lane.b32.xlu0 %v7195_v20, %s6920_s24 }
 0x102   : > { %v2861_v24 = vpop.permute.xlu0 %2860 }
 0x103   : > { %v2904_v25 = vsel %vm12359_vm1, %v2861_v24, 0 }
 0x104   : > { %2920 = vmatpush.bf16.xpose.msrb.mxu2 %v2910_v61 }
 0x106   : > { %4730 = vrot.lane.b32.xlu2 %v7181_v16, %s6919_s19  ;;  %4726 = vrot.lane.b32.xlu0 %v7195_v20, %s6919_s19 }
 0x10a   : > { %v2857_v31 = vpop.permute.xlu0 %2856 }
 0x10b   : > { %v2898_v38 = vsel %vm12359_vm1, %v2857_v31, 0 }
 0x10c   : > { %2921 = vmatpush.bf16.xpose.msrb.mxu2 %v2907_v1 }
 0x10e   : > { %4728 = vrot.lane.b32.xlu2 %v7183_v17, %s6919_s19  ;;  %3792 = vrot.lane.b32.xlu0 %v7203_v22, %s6920_s24 }
 0x114   : > { %2922 = vmatpush.bf16.xpose.msrb.mxu2 %v2904_v25 }
 0x116   : > { %3790 = vrot.lane.b32.xlu2 %v7193_v19, %s6920_s24  ;;  %4724 = vrot.lane.b32.xlu0 %v7203_v22, %s6919_s19 }
 0x11c   : > { %2923 = vmatpush.bf16.xpose.msrb.mxu2 %v2901_v8 }
 0x11e   : > { %3788 = vrot.lane.b32.xlu2 %v7209_v23, %s6920_s24  ;;  %4718 = vrot.lane.b32.xlu0 %v7201_v21, %s6919_s19 }
 0x121   : > { %577 = vadd.xlane.f32.xlu1 %v546_v33 }
 0x124   : > { %2924 = vmatpush.bf16.xpose.msrb.mxu2 %v2898_v38 }
 0x126   : > { %3786 = vrot.lane.b32.xlu2 %v7201_v21, %s6920_s24 }
 0x12c   : > { %2925 = vmatpush.bf16.xpose.msrb.mxu2 %v2895_v11 }
 0x131   : > { %v548_v15 = vpop.xlane.xlu1 %547 }
 0x132   : > { %v579_v43 = vmul.f32 %v548_v15, %v7213_v34 }
 0x134   : > { %v595_v47 = vadd.f32 1e-05, %v579_v43 }
 0x135   : > { %v552_v12 = vpop.xlane.xlu0 %551 }
 0x136   : > { %6395 = vrsqrt.f32 %v595_v47  ;;  %v581_v14 = vmul.f32 %v552_v12, %v7213_v34  ;;  %vm617_vm4 = vweird.f32 %v595_v47 }
 0x138   : > { %v7337_v60 = vadd.f32 1e-05, %v581_v14 }
 0x139   : > { %v554_v49 = vpop.xlane.xlu1 %553  ;;  %v550_v50 = vpop.xlane.xlu2 %549 }
 0x13a   : > { %v582_v51 = vmul.f32 %v554_v49, %v7213_v34  ;;  %v580_v52 = vmul.f32 %v550_v50, %v7213_v34  ;;  %3796 = vrot.lane.b32.xlu1 %v7183_v17, %s6920_s24  ;;  %vm637_vm10 = vweird.f32 %v7337_v60 }
 0x13c   : > { %v6396_v56 = vpop.eup %6395  ;;  %v7335_v13 = vadd.f32 1e-05, %v582_v51  ;;  %v596_v57 = vadd.f32 1e-05, %v580_v52  ;;  %v7385_v52 = vld [vmem:[#allocation8] ss:$0 sm:$0xff] }
 0x13d   : > { %v612_v58 = vmul.f32 %v6396_v56, %v595_v47  ;;  %v558_v24 = vpop.xlane.xlu0 %557  ;;  %vm618_vm2 = vweird.f32 %v6396_v56 }
 0x13e   : > { %6397 = vrsqrt.f32 %v596_v57  ;;  %v584_v8 = vmul.f32 %v558_v24, %v7213_v34  ;;  %vm619_vm5 = vmor %vm617_vm4, %vm618_vm2  ;;  %vm627_vm6 = vweird.f32 %v596_v57  ;;  %vm647_vm8 = vweird.f32 %v7335_v13 }
 0x13f   : > { %v613_v61 = vmul.f32 %v6396_v56, %v612_v58  ;;  %6399 = vrsqrt.f32 %v7335_v13 }
 0x140   : > { %6401 = vrsqrt.f32 %v7337_v60  ;;  %v7366_v39 = vadd.f32 1e-05, %v584_v8 }
 0x141   : > { %v614_v62 = vmul.f32 0.5, %v613_v61  ;;  %v556_v0 = vpop.xlane.xlu2 %555 }
 0x142   : > { %4722 = vrot.lane.b32.xlu1 %v7193_v19, %s6919_s19  ;;  %v583_v6 = vmul.f32 %v556_v0, %v7213_v34  ;;  %vm667_vm15 = vweird.f32 %v7366_v39 }
 0x143   : > { %v615_v5 = vsub.f32 1.5, %v614_v62 }
 0x144   : > { %v6398_v63 = vpop.eup %6397  ;;  %v7363_v36 = vadd.f32 1e-05, %v583_v6 }
 0x145   : > { %v7347_v1 = vpop.eup %6399  ;;  %v622_v3 = vmul.f32 %v6398_v63, %v596_v57  ;;  %v616_v31 = vmul.f32 %v6396_v56, %v615_v5  ;;  %vm628_vm3 = vweird.f32 %v6398_v63 }
 0x146   : > { %v7349_v25 = vpop.eup %6401  ;;  %v642_v28 = vmul.f32 %v7347_v1, %v7335_v13  ;;  %vm629_vm7 = vmor %vm627_vm6, %vm628_vm3  ;;  %6403 = vrsqrt.f32 %v7363_v36  ;;  %vm648_vm9 = vweird.f32 %v7347_v1  ;;  %vm657_vm2 = vweird.f32 %v7363_v36 }
 0x147   : > { %v623_v27 = vmul.f32 %v6398_v63, %v622_v3  ;;  %v632_v33 = vmul.f32 %v7349_v25, %v7337_v60  ;;  %v620_v40 = vsel %vm619_vm5, %v6396_v56, %v616_v31  ;;  %6405 = vrsqrt.f32 %v7366_v39  ;;  %vm7402_vm12 = vmor %vm647_vm8, %vm648_vm9 }
 0x148   : > { %v643_v38 = vmul.f32 %v7347_v1, %v642_v28  ;;  %v771_v45 = vmul.f32 %v620_v40, %v7218_v41  ;;  %v560_v41 = vpop.xlane.xlu1 %559  ;;  %vm638_vm11 = vweird.f32 %v7349_v25 }
 0x149   : > { %v624_v29 = vmul.f32 0.5, %v623_v27  ;;  %v633_v11 = vmul.f32 %v7349_v25, %v632_v33  ;;  %v562_v50 = vpop.xlane.xlu2 %561  ;;  %vm639_vm13 = vmor %vm637_vm10, %vm638_vm11 }
 0x14a   : > { %4720 = vrot.lane.b32.xlu1 %v7209_v23, %s6919_s19  ;;  %v644_v43 = vmul.f32 0.5, %v643_v38  ;;  %v791_v51 = vmul.f32 %v7379_v10, %v771_v45  ;;  %v564_v45 = vpop.xlane.xlu0 %563 }
 0x14b   : > { %v625_v35 = vsub.f32 1.5, %v624_v29  ;;  %v634_v47 = vmul.f32 0.5, %v633_v11 }
 0x14c   : > { %v645_v49 = vsub.f32 1.5, %v644_v43  ;;  %v7382_v14 = vpop.eup %6403  ;;  %v811_v0 = vadd.f32 %v7385_v52, %v791_v51 }
 0x14d   : > { %v626_v9 = vmul.f32 %v6398_v63, %v625_v35  ;;  %v635_v56 = vsub.f32 1.5, %v634_v47  ;;  %v7390_v58 = vpop.eup %6405  ;;  %v652_v61 = vmul.f32 %v7382_v14, %v7363_v36  ;;  %vm658_vm14 = vweird.f32 %v7382_v14 }
 0x14e   : > { %v646_v13 = vmul.f32 %v7347_v1, %v645_v49  ;;  %v662_v60 = vmul.f32 %v7390_v58, %v7366_v39  ;;  %vm668_vm0 = vweird.f32 %v7390_v58  ;;  %vm659_vm3 = vmor %vm657_vm2, %vm658_vm14 }
 0x14f   : > { %v630_v15 = vsel %vm629_vm7, %v6398_v63, %v626_v9  ;;  %v585_v63 = vmul.f32 %v560_v41, %v7213_v34  ;;  %v636_v5 = vmul.f32 %v7349_v25, %v635_v56  ;;  %v653_v28 = vmul.f32 %v7382_v14, %v652_v61  ;;  %vm669_vm4 = vmor %vm667_vm15, %vm668_vm0 }
 0x150   : > { %v772_v12 = vmul.f32 %v630_v15, %v7235_v54  ;;  %v586_v54 = vmul.f32 %v562_v50, %v7213_v34  ;;  %v650_v6 = vsel %vm7402_vm12, %v7347_v1, %v646_v13  ;;  %v663_v31 = vmul.f32 %v7390_v58, %v662_v60  ;;  %v566_v11 = vpop.xlane.xlu1 %565 }
 0x151   : > { %v7418_v29 = vadd.f32 1e-05, %v585_v63  ;;  %v640_v8 = vsel %vm639_vm13, %v7349_v25, %v636_v5  ;;  %v774_v33 = vmul.f32 %v650_v6, %v7232_v53  ;;  %v654_v35 = vmul.f32 0.5, %v653_v28 }
 0x152   : > { %v792_v57 = vmul.f32 %v7379_v10, %v772_v12  ;;  %v7412_v24 = vadd.f32 1e-05, %v586_v54  ;;  %v773_v1 = vmul.f32 %v640_v8, %v7221_v42  ;;  %v664_v38 = vmul.f32 0.5, %v663_v31 }
 0x153   : > { %v794_v9 = vmul.f32 %v7379_v10, %v774_v33  ;;  %v655_v40 = vsub.f32 1.5, %v654_v35  ;;  %v588_v53 = vmul.f32 %v566_v11, %v7213_v34  ;;  %v587_v50 = vmul.f32 %v564_v45, %v7213_v34 }
 0x154   : > { %v812_v3 = vadd.f32 %v7385_v52, %v792_v57  ;;  %6407 = vrsqrt.f32 %v7412_v24  ;;  %v793_v25 = vmul.f32 %v7379_v10, %v773_v1  ;;  %v665_v43 = vsub.f32 1.5, %v664_v38 }
 0x155   : > { %6409 = vrsqrt.f32 %v7418_v29  ;;  %v814_v12 = vadd.f32 %v7385_v52, %v794_v9  ;;  %v656_v49 = vmul.f32 %v7382_v14, %v655_v40  ;;  %v7446_v57 = vadd.f32 1e-05, %v588_v53 }
 0x156   : > { %v827_v27 = vpack.c.bf16 %v812_v3, %v811_v0  ;;  %v813_v51 = vadd.f32 %v7385_v52, %v793_v25  ;;  %v666_v56 = vmul.f32 %v7390_v58, %v665_v43  ;;  %v7450_v61 = vadd.f32 1e-05, %v587_v50 }
 0x157   : > { %v660_v13 = vsel %vm659_vm3, %v7382_v14, %v656_v49  ;;  %6411 = vrsqrt.f32 %v7446_v57  ;;  %vm687_vm5 = vweird.f32 %v7412_v24  ;;  %vm677_vm7 = vweird.f32 %v7418_v29 }
 0x158   : > { %1043 = vmatmul.bf16.vlgmr.msra.gmra.mxu0 %v827_v27  ;;  %1092 = vmatmul.bf16.vlgmr.msra.gmra.mxu1 %v827_v27  ;;  %v828_v54 = vpack.c.bf16 %v814_v12, %v813_v51  ;;  %v670_v62 = vsel %vm669_vm4, %v7390_v58, %v666_v56  ;;  %v775_v63 = vmul.f32 %v660_v13, %v7247_v59  ;;  %6413 = vrsqrt.f32 %v7450_v61  ;;  %v570_v59 = vpop.xlane.xlu0 %569  ;;  %v572_v51 = vpop.xlane.xlu1 %571 }
 0x159   : > { %1141 = vmatmul.bf16.vlgmr.msra.gmra.mxu2 %v827_v27  ;;  %v776_v14 = vmul.f32 %v670_v62, %v7238_v55  ;;  %v568_v27 = vpop.xlane.xlu2 %567  ;;  %v590_v1 = vmul.f32 %v570_v59, %v7213_v34  ;;  %vm707_vm11 = vweird.f32 %v7446_v57  ;;  %vm697_vm14 = vweird.f32 %v7450_v61 }
 0x15a   : > { %v7427_v15 = vpop.eup %6407  ;;  %v795_v5 = vmul.f32 %v7379_v10, %v775_v63  ;;  %v589_v31 = vmul.f32 %v568_v27, %v7213_v34 }
 0x15b   : > { %v7430_v47 = vpop.eup %6409  ;;  %v682_v42 = vmul.f32 %v7427_v15, %v7412_v24  ;;  %v796_v58 = vmul.f32 %v7379_v10, %v776_v14  ;;  %vm688_vm6 = vweird.f32 %v7427_v15  ;;  %v7488_v45 = vadd.f32 1e-05, %v590_v1 }
 0x15c   : > { %v672_v41 = vmul.f32 %v7430_v47, %v7418_v29  ;;  %v815_v55 = vadd.f32 %v7385_v52, %v795_v5  ;;  %vm678_vm8 = vweird.f32 %v7430_v47  ;;  %vm7473_vm9 = vmor %vm687_vm5, %vm688_vm6  ;;  %v7482_v40 = vadd.f32 1e-05, %v589_v31 }
 0x15d   : > { %v683_v39 = vmul.f32 %v7427_v15, %v682_v42  ;;  %v7459_v6 = vpop.eup %6411  ;;  %v816_v38 = vadd.f32 %v7385_v52, %v796_v58  ;;  %vm679_vm10 = vmor %vm677_vm7, %vm678_vm8  ;;  %v591_v14 = vmul.f32 %v572_v51, %v7213_v34  ;;  %vm727_vm5 = vweird.f32 %v7488_v45 }
 0x15e   : > { %v673_v36 = vmul.f32 %v7430_v47, %v672_v41  ;;  %v7464_v8 = vpop.eup %6413  ;;  %v702_v35 = vmul.f32 %v7459_v6, %v7446_v57  ;;  %6415 = vrsqrt.f32 %v7482_v40  ;;  %vm708_vm12 = vweird.f32 %v7459_v6 }
 0x15f   : > { %v684_v0 = vmul.f32 0.5, %v683_v39  ;;  %v692_v29 = vmul.f32 %v7464_v8, %v7450_v61  ;;  %v829_v11 = vpack.c.bf16 %v816_v38, %v815_v55  ;;  %6417 = vrsqrt.f32 %v7488_v45  ;;  %vm7509_vm13 = vmor %vm707_vm11, %vm708_vm12 }
 0x160   : > { %v674_v3 = vmul.f32 0.5, %v673_v36  ;;  %v703_v43 = vmul.f32 %v7459_v6, %v702_v35  ;;  %vm698_vm15 = vweird.f32 %v7464_v8  ;;  %v7528_v31 = vadd.f32 1e-05, %v591_v14 }
 0x161   : > { %v685_v60 = vsub.f32 1.5, %v684_v0  ;;  %v693_v12 = vmul.f32 %v7464_v8, %v692_v29  ;;  %vm699_vm0 = vmor %vm697_vm14, %vm698_vm15  ;;  %v1749_v29 = vsel %vm12359_vm1, %v7181_v16, 0  ;;  %vm717_vm2 = vweird.f32 %v7482_v40 }
 0x162   : > { %v675_v28 = vsub.f32 1.5, %v674_v3  ;;  %v704_v42 = vmul.f32 0.5, %v703_v43  ;;  %v1743_v0 = vsel %vm12359_vm1, %v7195_v20, 0 }
 0x163   : > { %v686_v33 = vmul.f32 %v7427_v15, %v685_v60  ;;  %v694_v50 = vmul.f32 0.5, %v693_v12 }
 0x164   : > { %v676_v9 = vmul.f32 %v7430_v47, %v675_v28  ;;  %v705_v41 = vsub.f32 1.5, %v704_v42  ;;  %v7497_v13 = vpop.eup %6415 }
 0x165   : > { %v690_v25 = vsel %vm7473_vm9, %v7427_v15, %v686_v33  ;;  %v695_v39 = vsub.f32 1.5, %v694_v50  ;;  %v712_v63 = vmul.f32 %v7497_v13, %v7482_v40  ;;  %v1752_v33 = vsel %vm12359_vm1, %v7185_v18, 0 }
 0x166   : > { %v680_v53 = vsel %vm679_vm10, %v7430_v47, %v676_v9  ;;  %v778_v49 = vmul.f32 %v690_v25, %v7265_v26  ;;  %v7502_v26 = vpop.eup %6417  ;;  %v706_v36 = vmul.f32 %v7459_v6, %v705_v41  ;;  %1754 = vmatpush.bf16.xpose.msra.mxu3 %v1752_v33  ;;  %vm718_vm3 = vweird.f32 %v7497_v13 }
 0x167   : > { %v777_v15 = vmul.f32 %v680_v53, %v7254_v4  ;;  %v696_v3 = vmul.f32 %v7464_v8, %v695_v39  ;;  %v722_v5 = vmul.f32 %v7502_v26, %v7488_v45  ;;  %v713_v59 = vmul.f32 %v7497_v13, %v712_v63  ;;  %vm7553_vm4 = vmor %vm717_vm2, %vm718_vm3 }
 0x168   : > { %1048 = vmatmul.bf16.gmra.mxu0 %v828_v54  ;;  %1097 = vmatmul.bf16.gmra.mxu1 %v828_v54  ;;  %v798_v56 = vmul.f32 %v7379_v10, %v778_v49  ;;  %v710_v28 = vsel %vm7509_vm13, %v7459_v6, %v706_v36  ;;  %vm728_vm6 = vweird.f32 %v7502_v26  ;;  %v1746_v39 = vsel %vm12359_vm1, %v7183_v17, 0 }
 0x169   : > { %1146 = vmatmul.bf16.gmra.mxu2 %v828_v54  ;;  %v574_v54 = vpop.xlane.xlu2 %573  ;;  %v797_v47 = vmul.f32 %v7379_v10, %v777_v15  ;;  %v7520_v60 = vpop.permute.xlu1 %4732  ;;  %v700_v61 = vsel %vm699_vm0, %v7464_v8, %v696_v3  ;;  %v723_v55 = vmul.f32 %v7502_v26, %v722_v5  ;;  %v780_v35 = vmul.f32 %v710_v28, %v7272_v32  ;;  %vm729_vm7 = vmor %vm727_vm5, %vm728_vm6 }
 0x16a   : > { %v592_v62 = vmul.f32 %v574_v54, %v7213_v34  ;;  %v818_v4 = vadd.f32 %v7385_v52, %v798_v56  ;;  %12750 = vst [vmem:[#allocation17_spill] sm:$0xff] %v7520_v60  ;;  %v714_v6 = vmul.f32 0.5, %v713_v59  ;;  %v779_v24 = vmul.f32 %v700_v61, %v7258_v2  ;;  %v576_v32 = vpop.xlane.xlu0 %575 }
 0x16b   : > { %v817_v57 = vadd.f32 %v7385_v52, %v797_v47  ;;  %v724_v1 = vmul.f32 0.5, %v723_v55  ;;  %v800_v38 = vmul.f32 %v7379_v10, %v780_v35  ;;  %v593_v40 = vmul.f32 %v576_v32, %v7213_v34 }
 0x16c   : > { %v7522_v27 = vadd.f32 1e-05, %v592_v62  ;;  %v715_v8 = vsub.f32 1.5, %v714_v6  ;;  %v799_v18 = vmul.f32 %v7379_v10, %v779_v24  ;;  %vm737_vm10 = vweird.f32 %v7528_v31 }
 0x16d   : > { %v830_v58 = vpack.c.bf16 %v818_v4, %v817_v57  ;;  %v725_v25 = vsub.f32 1.5, %v724_v1  ;;  %v820_v53 = vadd.f32 %v7385_v52, %v800_v38  ;;  %v7570_v54 = vadd.f32 1e-05, %v593_v40 }
 0x16e   : > { %6419 = vrsqrt.f32 %v7522_v27  ;;  %1755 = vmatpush.bf16.xpose.msra.mxu3 %v1749_v29  ;;  %v716_v12 = vmul.f32 %v7497_v13, %v715_v8  ;;  %v819_v42 = vadd.f32 %v7385_v52, %v799_v18  ;;  %vm747_vm8 = vweird.f32 %v7522_v27 }
 0x16f   : > { %6421 = vrsqrt.f32 %v7528_v31  ;;  %v726_v15 = vmul.f32 %v7502_v26, %v725_v25  ;;  %v1740_v33 = vsel %vm12359_vm1, %v7203_v22, 0  ;;  %vm757_vm15 = vweird.f32 %v7570_v54 }
 0x170   : > { %v831_v56 = vpack.c.bf16 %v820_v53, %v819_v42  ;;  %v720_v41 = vsel %vm7553_vm4, %v7497_v13, %v716_v12  ;;  %v1734_v53 = vsel %vm12359_vm1, %v7209_v23, 0  ;;  %v883_v23 = vld [vmem:[%s12328_s5] sm:$0x7] }
 0x171   : > { %v730_v45 = vsel %vm729_vm7, %v7502_v26, %v726_v15  ;;  %v781_v62 = vmul.f32 %v720_v41, %v7283_v37  ;;  %v1731_v15 = vsel %vm12359_vm1, %v7201_v21, 0  ;;  %v7629_v21 = vld [vmem:[%s12332_s9] ss:$0 sm:$0xff] }
 0x172   : > { %v782_v4 = vmul.f32 %v730_v45, %v7276_v7 }
 0x173   : > { %v801_v63 = vmul.f32 %v7379_v10, %v781_v62  ;;  %v7638_v62 = vld [vmem:[%s12331_s8] ss:$0 sm:$0xff] }
 0x174   : > { %v802_v17 = vmul.f32 %v7379_v10, %v782_v4 }
 0x175   : > { %v821_v3 = vadd.f32 %v7385_v52, %v801_v63 }
 0x176   : > { %1756 = vmatpush.bf16.xpose.msra.mxu3 %v1746_v39  ;;  %v822_v5 = vadd.f32 %v7385_v52, %v802_v17 }
 0x178   : > { %1053 = vmatmul.bf16.gmra.mxu0 %v829_v11  ;;  %1102 = vmatmul.bf16.gmra.mxu1 %v829_v11  ;;  %v832_v28 = vpack.c.bf16 %v822_v5, %v821_v3 }
 0x179   : > { %1151 = vmatmul.bf16.gmra.mxu2 %v829_v11  ;;  %v7541_v11 = vpop.eup %6419 }
 0x17a   : > { %v7546_v43 = vpop.eup %6421  ;;  %v742_v16 = vmul.f32 %v7541_v11, %v7522_v27  ;;  %vm748_vm9 = vweird.f32 %v7541_v11 }
 0x17b   : > { %v732_v50 = vmul.f32 %v7546_v43, %v7528_v31  ;;  %vm738_vm11 = vweird.f32 %v7546_v43  ;;  %vm749_vm12 = vmor %vm747_vm8, %vm748_vm9 }
 0x17c   : > { %vm739_vm13 = vmor %vm737_vm10, %vm738_vm11 }
 0x17d   : > { %v733_v47 = vmul.f32 %v7546_v43, %v732_v50  ;;  %v7623_v50 = vperm.slane %v883_v23, 1 }
 0x17e   : > { %1757 = vmatpush.bf16.xpose.msra.mxu3 %v1743_v0 }
 0x17f   : > { %v734_v36 = vmul.f32 0.5, %v733_v47 }
 0x181   : > { %v735_v57 = vsub.f32 1.5, %v734_v36 }
 0x186   : > { %1758 = vmatpush.bf16.xpose.msra.mxu3 %v1740_v33 }
 0x188   : > { %1058 = vmatmul.bf16.gmra.mxu0 %v830_v58  ;;  %1107 = vmatmul.bf16.gmra.mxu1 %v830_v58 }
 0x189   : > { %1156 = vmatmul.bf16.gmra.mxu2 %v830_v58  ;;  %v736_v58 = vmul.f32 %v7546_v43, %v735_v57 }
 0x18b   : > { %v740_v31 = vsel %vm739_vm13, %v7546_v43, %v736_v58  ;;  %v7645_v58 = vperm.slane %v883_v23, 2 }
 0x18c   : > { %v783_v24 = vmul.f32 %v740_v31, %v7290_v44 }
 0x18e   : > { %v803_v29 = vmul.f32 %v7379_v10, %v783_v24 }
 0x194   : > { %v578_v9 = vpop.xlane.xlu1 %577 }
 0x195   : > { %v594_v2 = vmul.f32 %v578_v9, %v7213_v34  ;;  %v743_v34 = vmul.f32 %v7541_v11, %v742_v16  ;;  %v1737_v9 = vsel %vm12359_vm1, %v7193_v19, 0 }
 0x196   : > { %1759 = vmatpush.bf16.xpose.msra.mxu3 %v1737_v9 }
 0x197   : > { %v7564_v51 = vadd.f32 1e-05, %v594_v2  ;;  %v744_v13 = vmul.f32 0.5, %v743_v34 }
 0x198   : > { %1063 = vmatmul.bf16.gmra.mxu0 %v831_v56  ;;  %1112 = vmatmul.bf16.gmra.mxu1 %v831_v56 }
 0x199   : > { %1161 = vmatmul.bf16.gmra.mxu2 %v831_v56  ;;  %6423 = vrsqrt.f32 %v7564_v51  ;;  %v745_v26 = vsub.f32 1.5, %v744_v13  ;;  %vm767_vm2 = vweird.f32 %v7564_v51 }
 0x19a   : > { %6425 = vrsqrt.f32 %v7570_v54 }
 0x19b   : > { %v746_v7 = vmul.f32 %v7541_v11, %v745_v26 }
 0x19d   : > { %v750_v59 = vsel %vm749_vm12, %v7541_v11, %v746_v7 }
 0x19e   : > { %v784_v35 = vmul.f32 %v750_v59, %v7301_v48  ;;  %v823_v48 = vadd.f32 %v7385_v52, %v803_v29  ;;  %1760 = vmatpush.bf16.xpose.msra.mxu3 %v1734_v53 }
 0x19f   : > { %v6424_v14 = vpop.eup %6423 }
 0x1a0   : > { %v6426_v37 = vpop.eup %6425  ;;  %v762_v20 = vmul.f32 %v6424_v14, %v7564_v51  ;;  %v804_v38 = vmul.f32 %v7379_v10, %v784_v35  ;;  %vm768_vm14 = vweird.f32 %v6424_v14 }
 0x1a1   : > { %v752_v27 = vmul.f32 %v6426_v37, %v7570_v54  ;;  %vm758_vm0 = vweird.f32 %v6426_v37  ;;  %vm769_vm3 = vmor %vm767_vm2, %vm768_vm14 }
 0x1a2   : > { %v763_v61 = vmul.f32 %v6424_v14, %v762_v20  ;;  %v824_v18 = vadd.f32 %v7385_v52, %v804_v38  ;;  %vm759_vm4 = vmor %vm757_vm15, %vm758_vm0 }
 0x1a3   : > { %v753_v55 = vmul.f32 %v6426_v37, %v752_v27 }
 0x1a4   : > { %v764_v6 = vmul.f32 0.5, %v763_v61  ;;  %v833_v44 = vpack.c.bf16 %v824_v18, %v823_v48 }
 0x1a5   : > { %v754_v1 = vmul.f32 0.5, %v753_v55 }
 0x1a6   : > { %v765_v8 = vsub.f32 1.5, %v764_v6  ;;  %1761 = vmatpush.bf16.xpose.msra.mxu3 %v1731_v15 }
 0x1a7   : > { %v755_v11 = vsub.f32 1.5, %v754_v1 }
 0x1a8   : > { %1068 = vmatmul.bf16.gmra.mxu0 %v832_v28  ;;  %1117 = vmatmul.bf16.gmra.mxu1 %v832_v28  ;;  %v766_v22 = vmul.f32 %v6424_v14, %v765_v8 }
 0x1a9   : > { %1166 = vmatmul.bf16.gmra.mxu2 %v832_v28  ;;  %v756_v25 = vmul.f32 %v6426_v37, %v755_v11 }
 0x1aa   : > { %v770_v32 = vsel %vm769_vm3, %v6424_v14, %v766_v22 }
 0x1ab   : > { %v760_v19 = vsel %vm759_vm4, %v6426_v37, %v756_v25  ;;  %v786_v43 = vmul.f32 %v770_v32, %v7315_v30 }
 0x1ac   : > { %v785_v2 = vmul.f32 %v760_v19, %v7294_v46  ;;  %v7621_v46 = vperm.slane %v883_v23, 0 }
 0x1ad   : > { %v806_v12 = vmul.f32 %v7379_v10, %v786_v43 }
 0x1ae   : > { %v805_v16 = vmul.f32 %v7379_v10, %v785_v2 }
 0x1af   : > { %v826_v49 = vadd.f32 %v7385_v52, %v806_v12 }
 0x1b0   : > { %v825_v40 = vadd.f32 %v7385_v52, %v805_v16 }
 0x1b2   : > { %v834_v42 = vpack.c.bf16 %v826_v49, %v825_v40 }
 0x1b8   : > { %1073 = vmatmul.bf16.gmra.mxu0 %v833_v44  ;;  %1122 = vmatmul.bf16.gmra.mxu1 %v833_v44 }
 0x1b9   : > { %1171 = vmatmul.bf16.gmra.mxu2 %v833_v44 }
 0x1c8   : > { %1078 = vmatmul.bf16.gmra.mxu0 %v834_v42  ;;  %1127 = vmatmul.bf16.gmra.mxu1 %v834_v42 }
 0x1c9   : > { %1176 = vmatmul.bf16.gmra.mxu2 %v834_v42 }
 0x1d5   : > { %v1044_v30 = vpop.f32.mrf.mxu0  ;;  %v1093_v10 = vpop.f32.mrf.mxu1 }
 0x1d6   : > { %v1045_v52 = vadd.f32 %v1044_v30, %v7621_v46  ;;  %v1094_v51 = vadd.f32 %v1093_v10, %v7623_v50 }
 0x1d8   : > { %v1270_v56 = vadd.f32 %v7629_v21, %v1045_v52  ;;  %v1182_v45 = vpack.c.bf16 %v1094_v51, %v1094_v51  ;;  %v1234_v17 = vadd.f32 %v7638_v62, %v1045_v52 }
 0x1da   : > { %v1286_v13 = vpack.c.bf16 %v1270_v56, %v1270_v56  ;;  %v2419_v63 = vunpack.c.l.b16 %v1182_v45  ;;  %v1250_v59 = vpack.c.bf16 %v1234_v17, %v1234_v17 }
 0x1dc   : > { %v1142_v41 = vpop.f32.mrf.mxu2  ;;  %v1641_v57 = vunpack.c.l.b16 %v1286_v13  ;;  %v2379_v35 = vunpack.c.l.b16 %v1250_v59 }
 0x1dd   : > { %v1046_v34 = vpop.f32.mrf.mxu0  ;;  %v1095_v54 = vpop.f32.mrf.mxu1  ;;  %v1143_v55 = vadd.f32 %v1142_v41, %v7645_v58 }
 0x1de   : > { %v1047_v47 = vadd.f32 %v1046_v34, %v7621_v46  ;;  %v1096_v39 = vadd.f32 %v1095_v54, %v7623_v50 }
 0x1df   : > { %v1198_v9 = vpack.c.bf16 %v1143_v55, %v1143_v55 }
 0x1e0   : > { %v1271_v4 = vadd.f32 %v7629_v21, %v1047_v47  ;;  %v1183_v36 = vpack.c.bf16 %v1096_v39, %v1096_v39  ;;  %v1235_v26 = vadd.f32 %v7638_v62, %v1047_v47 }
 0x1e1   : > { %v2724_v25 = vunpack.c.l.b16 %v1198_v9 }
 0x1e2   : > { %v1287_v0 = vpack.c.bf16 %v1271_v4, %v1271_v4  ;;  %v2420_v14 = vunpack.c.l.b16 %v1183_v36  ;;  %v1251_v27 = vpack.c.bf16 %v1235_v26, %v1235_v26 }
 0x1e4   : > { %v1642_v37 = vunpack.c.l.b16 %v1287_v0  ;;  %v7643_v3 = vpack.c.b16 %v2420_v14, %v2419_v63  ;;  %v1144_v7 = vpop.f32.mrf.mxu2  ;;  %v2380_v33 = vunpack.c.l.b16 %v1251_v27 }
 0x1e5   : > { %v1049_v20 = vpop.f32.mrf.mxu0  ;;  %v1098_v5 = vpop.f32.mrf.mxu1  ;;  %v1145_v61 = vadd.f32 %v1144_v7, %v7645_v58 }
 0x1e6   : > { %v1657_v28 = vpack.c.b16 %v1642_v37, %v1641_v57  ;;  %4251 = vrot.lane.b32.xlu0 %v7643_v3, %s6920_s24  ;;  %3319 = vrot.lane.b32.xlu1 %v7643_v3, %s6917_s3  ;;  %v1050_v31 = vadd.f32 %v1049_v20, %v7621_v46  ;;  %v7659_v29 = vpack.c.b16 %v2380_v33, %v2379_v35  ;;  %v7711_v37 = vpop.permute.xlu2 %3800 }
 0x1e7   : > { %v1199_v6 = vpack.c.bf16 %v1145_v61, %v1145_v61  ;;  %v1099_v42 = vadd.f32 %v1098_v5, %v7623_v50 }
 0x1e8   : > { %4702 = vrot.lane.b32.xlu2 %v1657_v28, %s6919_s19  ;;  %6103 = vmatmul.msk.bf16.vlgmr.msra.gmra.mxu3 %vm12359_vm1, %v1657_v28  ;;  %v1272_v24 = vadd.f32 %v7629_v21, %v1050_v31  ;;  %v1236_v13 = vadd.f32 %v7638_v62, %v1050_v31 }
 0x1e9   : > { %v2725_v18 = vunpack.c.l.b16 %v1199_v6  ;;  %v1184_v51 = vpack.c.bf16 %v1099_v42, %v1099_v42 }
 0x1ea   : > { %v1288_v22 = vpack.c.bf16 %v1272_v24, %v1272_v24  ;;  %v1252_v7 = vpack.c.bf16 %v1236_v13, %v1236_v13 }
 0x1eb   : > { %v7668_v32 = vpack.c.b16 %v2725_v18, %v2724_v25  ;;  %v2421_v45 = vunpack.c.l.b16 %v1184_v51 }
 0x1ec   : > { %v7657_v1 = vpop.f32.mrf.mxu2  ;;  %v1643_v19 = vunpack.c.l.b16 %v1288_v22  ;;  %v2381_v31 = vunpack.c.l.b16 %v1252_v7 }
 0x1ed   : > { %v1051_v38 = vpop.f32.mrf.mxu0  ;;  %v1100_v8 = vpop.f32.mrf.mxu1  ;;  %v1148_v61 = vadd.f32 %v7657_v1, %v7645_v58 }
 0x1ee   : > { %v1052_v11 = vadd.f32 %v1051_v38, %v7621_v46  ;;  %2838 = vrot.lane.b32.xlu0 %v1657_v28, %s6917_s3  ;;  %5183 = vrot.lane.b32.xlu1 %v7643_v3, %s6919_s19  ;;  %v1101_v49 = vadd.f32 %v1100_v8, %v7623_v50  ;;  %v7744_v25 = vpop.permute.xlu2 %4730 }
 0x1ef   : > { %v1200_v1 = vpack.c.bf16 %v1148_v61, %v1148_v61  ;;  %12753 = vst [vmem:[#allocation18_spill] sm:$0xff] %v7744_v25 }
 0x1f0   : > { %v1273_v48 = vadd.f32 %v7629_v21, %v1052_v11  ;;  %4235 = vrot.lane.b32.xlu2 %v7659_v29, %s6920_s24  ;;  %v1185_v15 = vpack.c.bf16 %v1101_v49, %v1101_v49  ;;  %v1237_v47 = vadd.f32 %v7638_v62, %v1052_v11 }
 0x1f2   : > { %v1289_v44 = vpack.c.bf16 %v1273_v48, %v1273_v48  ;;  %v2422_v41 = vunpack.c.l.b16 %v1185_v15  ;;  %v1253_v17 = vpack.c.bf16 %v1237_v47, %v1237_v47 }
 0x1f4   : > { %v1644_v43 = vunpack.c.l.b16 %v1289_v44  ;;  %v1149_v2 = vpop.f32.mrf.mxu2  ;;  %v7701_v4 = vpack.c.b16 %v2422_v41, %v2421_v45 }
 0x1f5   : > { %v1054_v53 = vpop.f32.mrf.mxu0  ;;  %v1103_v12 = vpop.f32.mrf.mxu1  ;;  %v1150_v27 = vadd.f32 %v1149_v2, %v7645_v58  ;;  %v2726_v2 = vunpack.c.l.b16 %v1200_v1 }
 0x1f6   : > { %v7670_v16 = vpack.c.b16 %v1644_v43, %v1643_v19  ;;  %3600 = vrot.lane.b32.xlu0 %v7668_v32, %s6917_s3  ;;  %3303 = vrot.lane.b32.xlu1 %v7659_v29, %s6917_s3  ;;  %v7678_v40 = vadd.f32 %v1054_v53, %v7621_v46  ;;  %v1104_v59 = vadd.f32 %v1103_v12, %v7623_v50 }
 0x1f7   : > { %v1201_v6 = vpack.c.bf16 %v1150_v27, %v1150_v27 }
 0x1f8   : > { %5167 = vrot.lane.b32.xlu2 %v7659_v29, %s6919_s19  ;;  %6104 = vmatmul.msk.bf16.gmra.mxu3 %vm12359_vm1, %v7670_v16  ;;  %v1274_v23 = vadd.f32 %v7629_v21, %v7678_v40  ;;  %v1186_v9 = vpack.c.bf16 %v1104_v59, %v1104_v59 }
 0x1f9   : > { %v2727_v44 = vunpack.c.l.b16 %v1201_v6 }
 0x1fa   : > { %v1290_v34 = vpack.c.bf16 %v1274_v23, %v1274_v23  ;;  %v2423_v19 = vunpack.c.l.b16 %v1186_v9 }
 0x1fb   : > { %v7750_v15 = vpack.c.b16 %v2727_v44, %v2726_v2 }
 0x1fc   : > { %v7687_v30 = vpop.f32.mrf.mxu2  ;;  %v1645_v36 = vunpack.c.l.b16 %v1290_v34  ;;  %v1238_v34 = vadd.f32 %v7638_v62, %v7678_v40 }
 0x1fd   : > { %v1056_v10 = vpop.f32.mrf.mxu0  ;;  %v1105_v52 = vpop.f32.mrf.mxu1 }
 0x1fe   : > { %v7690_v56 = vadd.f32 %v1056_v10, %v7621_v46  ;;  %5464 = vrot.lane.b32.xlu0 %v7668_v32, %s6919_s19  ;;  %3770 = vrot.lane.b32.xlu1 %v1657_v28, %s6920_s24  ;;  %v1106_v20 = vadd.f32 %v1105_v52, %v7623_v50  ;;  %v2382_v28 = vunpack.c.l.b16 %v1253_v17 }
 0x200   : > { %v1275_v54 = vadd.f32 %v7629_v21, %v7690_v56  ;;  %4532 = vrot.lane.b32.xlu2 %v7668_v32, %s6920_s24  ;;  %v1187_v55 = vpack.c.bf16 %v1106_v20, %v1106_v20  ;;  %v7731_v8 = vpack.c.b16 %v2382_v28, %v2381_v31  ;;  %v1239_v51 = vadd.f32 %v7638_v62, %v7690_v56  ;;  %v7777_v56 = vpop.permute.xlu0 %3798 }
 0x202   : > { %v1291_v39 = vpack.c.bf16 %v1275_v54, %v1275_v54  ;;  %v2424_v18 = vunpack.c.l.b16 %v1187_v55  ;;  %v7771_v54 = vpop.permute.xlu2 %4728  ;;  %v1255_v45 = vpack.c.bf16 %v1239_v51, %v1239_v51 }
 0x203   : > { %12754 = vst [vmem:[#allocation19_spill] sm:$0xff] %v7771_v54 }
 0x204   : > { %v1646_v63 = vunpack.c.l.b16 %v1291_v39  ;;  %v7703_v26 = vpop.f32.mrf.mxu2  ;;  %v7746_v53 = vpack.c.b16 %v2424_v18, %v2423_v19  ;;  %v2384_v40 = vunpack.c.l.b16 %v1255_v45 }
 0x205   : > { %v1059_v0 = vpop.f32.mrf.mxu0  ;;  %v7705_v14 = vpop.f32.mrf.mxu1 }
 0x206   : > { %v7707_v57 = vpack.c.b16 %v1646_v63, %v1645_v36  ;;  %4253 = vrot.lane.b32.xlu0 %v7701_v4, %s6920_s24  ;;  %3321 = vrot.lane.b32.xlu1 %v7701_v4, %s6917_s3  ;;  %v7717_v5 = vadd.f32 %v1059_v0, %v7621_v46  ;;  %v1109_v18 = vadd.f32 %v7705_v14, %v7623_v50 }
 0x208   : > { %5185 = vrot.lane.b32.xlu2 %v7701_v4, %s6919_s19  ;;  %6105 = vmatmul.msk.bf16.gmra.mxu3 %vm12359_vm1, %v7707_v57  ;;  %v1276_v33 = vadd.f32 %v7629_v21, %v7717_v5  ;;  %v1188_v19 = vpack.c.bf16 %v1109_v18, %v1109_v18 }
 0x20a   : > { %v1292_v22 = vpack.c.bf16 %v1276_v33, %v1276_v33  ;;  %v7796_v31 = vpop.permute.xlu2 %3790 }
 0x20c   : > { %v7729_v35 = vpop.f32.mrf.mxu2  ;;  %v1647_v12 = vunpack.c.l.b16 %v1292_v22 }
 0x20d   : > { %v1061_v24 = vpop.f32.mrf.mxu0  ;;  %v1110_v38 = vpop.f32.mrf.mxu1 }
 0x20e   : > { %v7734_v11 = vadd.f32 %v1061_v24, %v7621_v46  ;;  %2840 = vrot.lane.b32.xlu0 %v7670_v16, %s6917_s3  ;;  %3772 = vrot.lane.b32.xlu1 %v7670_v16, %s6920_s24  ;;  %v7804_v24 = vpop.permute.xlu0 %3794  ;;  %v1111_v9 = vadd.f32 %v1110_v38, %v7623_v50 }
 0x210   : > { %v1277_v48 = vadd.f32 %v7629_v21, %v7734_v11  ;;  %3305 = vrot.lane.b32.xlu2 %v7731_v8, %s6917_s3  ;;  %v1189_v22 = vpack.c.bf16 %v1111_v9, %v1111_v9  ;;  %v1241_v14 = vadd.f32 %v7638_v62, %v7734_v11  ;;  %v1240_v11 = vadd.f32 %v7638_v62, %v7717_v5 }
 0x212   : > { %v1293_v43 = vpack.c.bf16 %v1277_v48, %v1277_v48 }
 0x214   : > { %v1648_v49 = vunpack.c.l.b16 %v1293_v43  ;;  %v7748_v42 = vpop.f32.mrf.mxu2 }
 0x215   : > { %v1064_v23 = vpop.f32.mrf.mxu0  ;;  %v7752_v10 = vpop.f32.mrf.mxu1 }
 0x216   : > { %v7754_v52 = vpack.c.b16 %v1648_v49, %v1647_v12  ;;  %3323 = vrot.lane.b32.xlu0 %v7746_v53, %s6917_s3  ;;  %5466 = vrot.lane.b32.xlu1 %v7750_v15, %s6919_s19  ;;  %v7763_v41 = vadd.f32 %v1064_v23, %v7621_v46  ;;  %v7825_v49 = vpop.permute.xlu2 %3788  ;;  %v2426_v23 = vunpack.c.l.b16 %v1189_v22 }
 0x218   : > { %4704 = vrot.lane.b32.xlu2 %v7670_v16, %s6919_s19  ;;  %6106 = vmatmul.msk.bf16.gmra.mxu3 %vm12359_vm1, %v7754_v52  ;;  %v1278_v47 = vadd.f32 %v7629_v21, %v7763_v41  ;;  %v1254_v16 = vpack.c.bf16 %v1238_v34, %v1238_v34 }
 0x21a   : > { %v1294_v0 = vpack.c.bf16 %v1278_v47, %v1278_v47  ;;  %v2383_v7 = vunpack.c.l.b16 %v1254_v16  ;;  %v2425_v16 = vunpack.c.l.b16 %v1188_v19 }
 0x21c   : > { %v7775_v39 = vpop.f32.mrf.mxu2  ;;  %v7792_v27 = vpack.c.b16 %v2384_v40, %v2383_v7  ;;  %v1649_v28 = vunpack.c.l.b16 %v1294_v0  ;;  %v1257_v7 = vpack.c.bf16 %v1241_v14, %v1241_v14 }
 0x21d   : > { %v1066_v13 = vpop.f32.mrf.mxu0  ;;  %v7779_v36 = vpop.f32.mrf.mxu1 }
 0x21e   : > { %v7782_v63 = vadd.f32 %v1066_v13, %v7621_v46  ;;  %4255 = vrot.lane.b32.xlu0 %v7746_v53, %s6920_s24  ;;  %2842 = vrot.lane.b32.xlu1 %v7707_v57, %s6917_s3  ;;  %12755 = vst [vmem:[#allocation20_spill] sm:$0xff] %v7792_v27  ;;  %v7835_v13 = vpop.permute.xlu0 %4726  ;;  %v2386_v19 = vunpack.c.l.b16 %v1257_v7 }
 0x21f   : > { %12756 = vst [vmem:[#allocation21_spill] sm:$0xff] %v7835_v13 }
 0x220   : > { %v1279_v17 = vadd.f32 %v7629_v21, %v7782_v63  ;;  %4237 = vrot.lane.b32.xlu2 %v7731_v8, %s6920_s24 }
 0x222   : > { %v1295_v20 = vpack.c.bf16 %v1279_v17, %v1279_v17  ;;  %v1153_v17 = vadd.f32 %v7687_v30, %v7645_v58 }
 0x224   : > { %v1650_v59 = vunpack.c.l.b16 %v1295_v20  ;;  %v7794_v61 = vpop.f32.mrf.mxu2  ;;  %v7843_v20 = vpack.c.b16 %v2426_v23, %v2425_v16  ;;  %v1202_v30 = vpack.c.bf16 %v1153_v17, %v1153_v17  ;;  %v7864_v23 = vpop.permute.xlu1 %3796 }
 0x225   : > { %v1069_v55 = vpop.f32.mrf.mxu0  ;;  %v7798_v33 = vpop.f32.mrf.mxu1 }
 0x226   : > { %v7800_v6 = vpack.c.b16 %v1650_v59, %v1649_v28  ;;  %3307 = vrot.lane.b32.xlu0 %v7792_v27, %s6917_s3  ;;  %4706 = vrot.lane.b32.xlu1 %v7707_v57, %s6919_s19  ;;  %v1070_v1 = vadd.f32 %v1069_v55, %v7621_v46 }
 0x228   : > { %5169 = vrot.lane.b32.xlu2 %v7731_v8, %s6919_s19  ;;  %6107 = vmatmul.msk.bf16.gmra.mxu3 %vm12359_vm1, %v7800_v6  ;;  %v1244_v48 = vadd.f32 %v7638_v62, %v1070_v1  ;;  %v1280_v44 = vadd.f32 %v7629_v21, %v1070_v1 }
 0x22a   : > { %v1260_v51 = vpack.c.bf16 %v1244_v48, %v1244_v48  ;;  %v1296_v34 = vpack.c.bf16 %v1280_v44, %v1280_v44  ;;  %v1256_v48 = vpack.c.bf16 %v1240_v11, %v1240_v11 }
 0x22c   : > { %v7818_v38 = vpop.f32.mrf.mxu2  ;;  %v1651_v28 = vunpack.c.l.b16 %v1296_v34  ;;  %v2389_v59 = vunpack.c.l.b16 %v1260_v51  ;;  %v2385_v51 = vunpack.c.l.b16 %v1256_v48  ;;  %v7866_v34 = vpop.permute.xlu0 %3792 }
 0x22d   : > { %v1071_v43 = vpop.f32.mrf.mxu0  ;;  %v7820_v2 = vpop.f32.mrf.mxu1 }
 0x22e   : > { %v1072_v12 = vadd.f32 %v1071_v43, %v7621_v46  ;;  %3774 = vrot.lane.b32.xlu0 %v7707_v57, %s6920_s24  ;;  %4239 = vrot.lane.b32.xlu1 %v7792_v27, %s6920_s24  ;;  %v1155_v57 = vadd.f32 %v7703_v26, %v7645_v58 }
 0x230   : > { %v1245_v45 = vadd.f32 %v7638_v62, %v1072_v12  ;;  %v1281_v47 = vadd.f32 %v7629_v21, %v1072_v12  ;;  %3602 = vrot.lane.b32.xlu2 %v7750_v15, %s6917_s3  ;;  %v1203_v18 = vpack.c.bf16 %v1155_v57, %v1155_v57  ;;  %v7862_v12 = vpop.permute.xlu2 %3786 }
 0x232   : > { %v1261_v40 = vpack.c.bf16 %v1245_v45, %v1245_v45  ;;  %v1297_v0 = vpack.c.bf16 %v1281_v47, %v1281_v47  ;;  %v2729_v14 = vunpack.c.l.b16 %v1203_v18  ;;  %v2728_v45 = vunpack.c.l.b16 %v1202_v30 }
 0x233   : > { %v7868_v47 = vpack.c.b16 %v2386_v19, %v2385_v51  ;;  %v1160_v18 = vadd.f32 %v7748_v42, %v7645_v58  ;;  %v1158_v19 = vadd.f32 %v7729_v35, %v7645_v58 }
 0x234   : > { %v1652_v55 = vunpack.c.l.b16 %v1297_v0  ;;  %v2390_v9 = vunpack.c.l.b16 %v1261_v40  ;;  %v7845_v1 = vpop.f32.mrf.mxu2  ;;  %v7874_v40 = vpack.c.b16 %v2729_v14, %v2728_v45 }
 0x235   : > { %v1074_v26 = vpop.f32.mrf.mxu0  ;;  %v7847_v22 = vpop.f32.mrf.mxu1  ;;  %v1204_v35 = vpack.c.bf16 %v1158_v19, %v1158_v19 }
 0x236   : > { %v7849_v5 = vpack.c.b16 %v1652_v55, %v1651_v28  ;;  %v7851_v44 = vpack.c.b16 %v2390_v9, %v2389_v59  ;;  %3325 = vrot.lane.b32.xlu0 %v7843_v20, %s6917_s3  ;;  %5171 = vrot.lane.b32.xlu1 %v7792_v27, %s6919_s19  ;;  %v1075_v43 = vadd.f32 %v1074_v26, %v7621_v46 }
 0x238   : > { %4534 = vrot.lane.b32.xlu2 %v7750_v15, %s6920_s24  ;;  %6108 = vmatmul.msk.bf16.gmra.mxu3 %vm12359_vm1, %v7849_v5  ;;  %v1246_v57 = vadd.f32 %v7638_v62, %v1075_v43  ;;  %v1282_v16 = vadd.f32 %v7629_v21, %v1075_v43  ;;  %v7891_v43 = vpop.permute.xlu1 %4722 }
 0x239   : > { %12758 = vst [vmem:[#allocation23_spill] sm:$0xff] %v7891_v43 }
 0x23a   : > { %v1262_v28 = vpack.c.bf16 %v1246_v57, %v1246_v57  ;;  %v1298_v59 = vpack.c.bf16 %v1282_v16, %v1282_v16 }
 0x23c   : > { %v7872_v11 = vpop.f32.mrf.mxu2  ;;  %v1653_v14 = vunpack.c.l.b16 %v1298_v59  ;;  %v2391_v51 = vunpack.c.l.b16 %v1262_v28  ;;  %v1116_v59 = vadd.f32 %v7779_v36, %v7623_v50  ;;  %v2730_v36 = vunpack.c.l.b16 %v1204_v35 }
 0x23d   : > { %v1076_v0 = vpop.f32.mrf.mxu0  ;;  %v1125_v17 = vpop.f32.mrf.mxu1 }
 0x23e   : > { %v1077_v7 = vadd.f32 %v1076_v0, %v7621_v46  ;;  %3309 = vrot.lane.b32.xlu0 %v7868_v47, %s6917_s3  ;;  %5468 = vrot.lane.b32.xlu1 %v7874_v40, %s6919_s19  ;;  %v7893_v0 = vpop.permute.xlu0 %4724  ;;  %v1191_v19 = vpack.c.bf16 %v1116_v59, %v1116_v59 }
 0x23f   : > { %12759 = vst [vmem:[#allocation24_spill] sm:$0xff] %v7893_v0 }
 0x240   : > { %v1247_v55 = vadd.f32 %v7638_v62, %v1077_v7  ;;  %v1283_v9 = vadd.f32 %v7629_v21, %v1077_v7  ;;  %5187 = vrot.lane.b32.xlu2 %v7746_v53, %s6919_s19  ;;  %v1205_v7 = vpack.c.bf16 %v1160_v18, %v1160_v18  ;;  %v1114_v18 = vadd.f32 %v7752_v10, %v7623_v50 }
 0x241   : > { %v1243_v10 = vadd.f32 %v7638_v62, %v7782_v63  ;;  %v1124_v63 = vadd.f32 %v7847_v22, %v7623_v50 }
 0x242   : > { %v1263_v26 = vpack.c.bf16 %v1247_v55, %v1247_v55  ;;  %v1299_v48 = vpack.c.bf16 %v1283_v9, %v1283_v9  ;;  %v7887_v30 = vpop.permute.xlu2 %4702  ;;  %v2731_v9 = vunpack.c.l.b16 %v1205_v7  ;;  %v1190_v7 = vpack.c.bf16 %v1114_v18, %v1114_v18 }
 0x243   : > { %12757 = vst [vmem:[#allocation22_spill] sm:$0xff] %v7887_v30  ;;  %v2428_v18 = vunpack.c.l.b16 %v1191_v19  ;;  %v1259_v19 = vpack.c.bf16 %v1243_v10, %v1243_v10 }
 0x244   : > { %v1654_v45 = vunpack.c.l.b16 %v1299_v48  ;;  %v2392_v57 = vunpack.c.l.b16 %v1263_v26  ;;  %v1174_v16 = vpop.f32.mrf.mxu2 }
 0x245   : > { %v1079_v13 = vpop.f32.mrf.mxu0  ;;  %v1128_v54 = vpop.f32.mrf.mxu1 }
 0x246   : > { %v7895_v42 = vpack.c.b16 %v1654_v45, %v1653_v14  ;;  %v7897_v55 = vpack.c.b16 %v2392_v57, %v2391_v51  ;;  %4708 = vrot.lane.b32.xlu0 %v7754_v52, %s6919_s19  ;;  %v1080_v28 = vadd.f32 %v1079_v13, %v7621_v46  ;;  %2844 = vrot.lane.b32.xlu1 %v7754_v52, %s6917_s3 }
 0x247   : > { %v1129_v26 = vadd.f32 %v1128_v54, %v7623_v50  ;;  %v7917_v13 = vadd.f32 %v7638_v62, %v7763_v41  ;;  %v7921_v57 = vpack.c.b16 %v2731_v9, %v2730_v36  ;;  %v1126_v54 = vadd.f32 %v1125_v17, %v7623_v50 }
 0x248   : > { %3604 = vrot.lane.b32.xlu2 %v7874_v40, %s6917_s3  ;;  %6109 = vmatmul.msk.bf16.gmra.mxu3 %vm12359_vm1, %v7895_v42  ;;  %v1284_v14 = vadd.f32 %v7629_v21, %v1080_v28  ;;  %v1248_v51 = vadd.f32 %v7638_v62, %v1080_v28  ;;  %v7930_v28 = vpop.permute.xlu0 %4718 }
 0x249   : > { %v1196_v43 = vpack.c.bf16 %v1129_v26, %v1129_v26  ;;  %12761 = vst [vmem:[#allocation26_spill] sm:$0xff] %v7930_v28  ;;  %v1258_v9 = vpack.c.bf16 %v7917_v13, %v7917_v13  ;;  %v7938_v26 = vpop.permute.xlu1 %4720  ;;  %v2427_v13 = vunpack.c.l.b16 %v1190_v7  ;;  %v1195_v28 = vpack.c.bf16 %v1126_v54, %v1126_v54 }
 0x24a   : > { %v7913_v48 = vpop.permute.xlu2 %4235  ;;  %v1300_v17 = vpack.c.bf16 %v1284_v14, %v1284_v14  ;;  %12762 = vst [vmem:[#allocation27_spill] sm:$0xff] %v7938_v26 }
 0x24b   : > { %12760 = vst [vmem:[#allocation25_spill] sm:$0xff] %v7913_v48  ;;  %v2433_v14 = vunpack.c.l.b16 %v1196_v43  ;;  %v1121_v43 = vadd.f32 %v7820_v2, %v7623_v50  ;;  %v1170_v2 = vadd.f32 %v7845_v1, %v7645_v58  ;;  %v1168_v1 = vadd.f32 %v7818_v38, %v7645_v58 }
 0x24c   : > { %v1177_v45 = vpop.f32.mrf.mxu2  ;;  %v1163_v38 = vadd.f32 %v7775_v39, %v7645_v58 }
 0x24d   : > { %v1081_v30 = vpop.f32.mrf.mxu0  ;;  %v1130_v35 = vpop.f32.mrf.mxu1  ;;  %v1178_v22 = vadd.f32 %v1177_v45, %v7645_v58  ;;  %v1173_v45 = vadd.f32 %v7872_v11, %v7645_v58  ;;  %v2388_v11 = vunpack.c.l.b16 %v1259_v19  ;;  %v1193_v19 = vpack.c.bf16 %v1121_v43, %v1121_v43 }
 0x24e   : > { %v1082_v41 = vadd.f32 %v1081_v30, %v7621_v46  ;;  %v1131_v59 = vadd.f32 %v1130_v35, %v7623_v50  ;;  %4241 = vrot.lane.b32.xlu0 %v7868_v47, %s6920_s24  ;;  %5470 = vrot.lane.b32.xlu1 %v7921_v57, %s6919_s19  ;;  %v1264_v46 = vpack.c.bf16 %v1248_v51, %v1248_v51 }
 0x24f   : > { %v7947_v51 = vpack.c.b16 %v2428_v18, %v2427_v13  ;;  %v1212_v54 = vpack.c.bf16 %v1178_v22, %v1178_v22  ;;  %v2387_v13 = vunpack.c.l.b16 %v1258_v9  ;;  %v1165_v22 = vadd.f32 %v7794_v61, %v7645_v58 }
 0x250   : > { %v1249_v30 = vadd.f32 %v7638_v62, %v1082_v41  ;;  %v1285_v36 = vadd.f32 %v7629_v21, %v1082_v41  ;;  %v1197_v35 = vpack.c.bf16 %v1131_v59, %v1131_v59  ;;  %4536 = vrot.lane.b32.xlu2 %v7874_v40, %s6920_s24  ;;  %v1194_v62 = vpack.c.bf16 %v1124_v63, %v1124_v63 }
 0x251   : > { %v1175_v21 = vadd.f32 %v1174_v16, %v7645_v58  ;;  %v1655_v41 = vunpack.c.l.b16 %v1300_v17  ;;  %v2393_v59 = vunpack.c.l.b16 %v1264_v46  ;;  %v2738_v46 = vunpack.c.l.b16 %v1212_v54 }
 0x252   : > { %v1265_v0 = vpack.c.bf16 %v1249_v30, %v1249_v30  ;;  %v1301_v48 = vpack.c.bf16 %v1285_v36, %v1285_v36  ;;  %v2434_v25 = vunpack.c.l.b16 %v1197_v35  ;;  %v7945_v60 = vpop.permute.xlu2 %5167  ;;  %v2432_v30 = vunpack.c.l.b16 %v1195_v28 }
 0x253   : > { %12763 = vst [vmem:[#allocation28_spill] sm:$0xff] %v7945_v60  ;;  %v2431_v28 = vunpack.c.l.b16 %v1194_v62  ;;  %v2430_v43 = vunpack.c.l.b16 %v1193_v19 }
 0x254   : > { %v1656_v26 = vunpack.c.l.b16 %v1301_v48  ;;  %v2394_v27 = vunpack.c.l.b16 %v1265_v0  ;;  %v7950_v7 = vpack.c.b16 %v2434_v25, %v2433_v14  ;;  %v1179_v10 = vpop.f32.mrf.mxu2  ;;  %v1211_v0 = vpack.c.bf16 %v1175_v21, %v1175_v21 }
 0x255   : > { %v1180_v18 = vadd.f32 %v1179_v10, %v7645_v58  ;;  %v1209_v14 = vpack.c.bf16 %v1170_v2, %v1170_v2  ;;  %v1208_v10 = vpack.c.bf16 %v1168_v1, %v1168_v1 }
 0x256   : > { %v7957_v63 = vpack.c.b16 %v1656_v26, %v1655_v41  ;;  %v7959_v16 = vpack.c.b16 %v2394_v27, %v2393_v59  ;;  %5173 = vrot.lane.b32.xlu0 %v7868_v47, %s6919_s19  ;;  %v2489_v25 = vsel %vm12359_vm1, %v7950_v7, 0  ;;  %5191 = vrot.lane.b32.xlu1 %v7947_v51, %s6919_s19  ;;  %v1119_v27 = vadd.f32 %v7798_v33, %v7623_v50 }
 0x257   : > { %v1213_v48 = vpack.c.bf16 %v1180_v18, %v1180_v18  ;;  %2491 = vmatpush.bf16.xpose.msrb.mxu0 %v2489_v25  ;;  %v1210_v26 = vpack.c.bf16 %v1173_v45, %v1173_v45  ;;  %v7981_v50 = vpack.c.b16 %v2432_v30, %v2431_v28  ;;  %v2737_v62 = vunpack.c.l.b16 %v1211_v0 }
 0x258   : > { %4257 = vrot.lane.b32.xlu2 %v7843_v20, %s6920_s24  ;;  %6110 = vmatmul.msk.bf16.gmra.mxu3 %vm12359_vm1, %v7957_v63  ;;  %v7975_v17 = vpop.permute.xlu0 %4251  ;;  %v7979_v35 = vpop.permute.xlu1 %3319  ;;  %v1192_v41 = vpack.c.bf16 %v1119_v27, %v1119_v27  ;;  %v7991_v59 = vpack.c.b16 %v2388_v11, %v2387_v13  ;;  %v1207_v45 = vpack.c.bf16 %v1165_v22, %v1165_v22  ;;  %v2735_v54 = vunpack.c.l.b16 %v1209_v14 }
 0x259   : > { %v2739_v36 = vunpack.c.l.b16 %v1213_v48  ;;  %v2736_v9 = vunpack.c.l.b16 %v1210_v26  ;;  %v2486_v61 = vsel %vm12359_vm1, %v7981_v50, 0  ;;  %v1206_v30 = vpack.c.bf16 %v1163_v38, %v1163_v38 }
 0x25a   : > { %v7983_v33 = vpop.permute.xlu2 %4532  ;;  %v2429_v58 = vunpack.c.l.b16 %v1192_v41  ;;  %v2734_v25 = vunpack.c.l.b16 %v1208_v10  ;;  %v2733_v11 = vunpack.c.l.b16 %v1207_v45  ;;  %v2480_v22 = vsel %vm12359_vm1, %v7947_v51, 0 }
 0x25b   : > { %v7987_v21 = vpack.c.b16 %v2739_v36, %v2738_v46  ;;  %v7998_v18 = vpack.c.b16 %v2737_v62, %v2736_v9  ;;  %v2732_v28 = vunpack.c.l.b16 %v1206_v30  ;;  %v2477_v41 = vsel %vm12359_vm1, %v7843_v20, 0 }
 0x25c   : > { %v8008_v0 = vpack.c.b16 %v2430_v43, %v2429_v58  ;;  %v8012_v27 = vpack.c.b16 %v2735_v54, %v2734_v25  ;;  %v3848_v38 = vsel %vm12359_vm1, %v7711_v37, 0  ;;  %v3842_v45 = vsel %vm12359_vm1, %v7864_v23, 0 }
 0x25d   : > { %2756 = vmatpush.bf16.msrb.mxu1 %v7987_v21  ;;  %v2744_v26 = vpack.c.b16 %v2733_v11, %v2732_v28  ;;  %v3839_v30 = vsel %vm12359_vm1, %v7804_v24, 0  ;;  %v3836_v11 = vsel %vm12359_vm1, %v7866_v34, 0  ;;  %v3833_v34 = vsel %vm12359_vm1, %v7796_v31, 0 }
 0x25e   : > { %3606 = vrot.lane.b32.xlu0 %v7921_v57, %s6917_s3  ;;  %3311 = vrot.lane.b32.xlu1 %v7991_v59, %s6917_s3  ;;  %v2483_v1 = vsel %vm12359_vm1, %v8008_v0, 0 }
 0x25f   : > { %2492 = vmatpush.bf16.xpose.msrb.mxu0 %v2486_v61 }
 0x260   : > { %5189 = vrot.lane.b32.xlu2 %v7843_v20, %s6919_s19  ;;  %v2839_v39 = vpop.permute.xlu0 %2838  ;;  %v8004_v2 = vpop.permute.xlu1 %5183 }
 0x261   : > { %12764 = vst [vmem:[#allocation29_spill] sm:$0xff] %v8004_v2  ;;  %2757 = vmatpush.bf16.msrb.mxu1 %v7998_v18  ;;  %6119 = vmatmul.msk.bf16.vlgmr.msrb.gmra.mxu2 %vm12359_vm1, %v2839_v39 }
 0x262   : > { %v8010_v48 = vpop.permute.xlu2 %5185 }
 0x263   : > { %12765 = vst [vmem:[#allocation30_spill] sm:$0xff] %v8010_v48 }
 0x265   : > { %2758 = vmatpush.bf16.msrb.mxu1 %v8012_v27 }
 0x266   : > { %4538 = vrot.lane.b32.xlu0 %v7921_v57, %s6920_s24  ;;  %3778 = vrot.lane.b32.xlu1 %v7800_v6, %s6920_s24 }
 0x267   : > { %2493 = vmatpush.bf16.xpose.msrb.mxu0 %v2483_v1 }
 0x268   : > { %3776 = vrot.lane.b32.xlu2 %v7754_v52, %s6920_s24  ;;  %v8023_v46 = vpop.permute.xlu0 %3600  ;;  %v8025_v36 = vpop.permute.xlu1 %3303 }
 0x269   : > { %2759 = vmatpush.bf16.msrb.mxu1 %v2744_v26 }
 0x26a   : > { %v8027_v13 = vpop.permute.xlu2 %3305 }
 0x26b   : > { %v8029_v19 = vpop.f32.mrf.mxu3 }
 0x26d   : > { %2760 = vmatpush.bf16.msrb.mxu1 %v7921_v57 }
 0x26e   : > { %3327 = vrot.lane.b32.xlu0 %v7947_v51, %s6917_s3  ;;  %4540 = vrot.lane.b32.xlu1 %v2744_v26, %s6920_s24 }
 0x26f   : > { %2494 = vmatpush.bf16.xpose.msrb.mxu0 %v2480_v22 }
 0x270   : > { %2846 = vrot.lane.b32.xlu2 %v7800_v6, %s6917_s3  ;;  %v8039_v52 = vpop.permute.xlu0 %5464  ;;  %v8041_v14 = vpop.permute.xlu1 %3770 }
 0x271   : > { %12766 = vst [vmem:[#allocation31_spill] sm:$0xff] %v8041_v14  ;;  %2761 = vmatpush.bf16.msrb.mxu1 %v7874_v40 }
 0x272   : > { %v8044_v62 = vpop.permute.xlu2 %4704 }
 0x273   : > { %12767 = vst [vmem:[#allocation32_spill] sm:$0xff] %v8044_v62  ;;  %v8046_v57 = vpop.f32.mrf.mxu3 }
 0x275   : > { %2762 = vmatpush.bf16.msrb.mxu1 %v7750_v15 }
 0x276   : > { %4259 = vrot.lane.b32.xlu0 %v7947_v51, %s6920_s24  ;;  %2848 = vrot.lane.b32.xlu1 %v7849_v5, %s6917_s3  ;;  %v3845_v51 = vsel %vm12359_vm1, %v7777_v56, 0 }
 0x277   : > { %2495 = vmatpush.bf16.xpose.msrb.mxu0 %v2477_v41  ;;  %v3830_v41 = vsel %vm12359_vm1, %v7825_v49, 0  ;;  %v3827_v49 = vsel %vm12359_vm1, %v7862_v12, 0 }
 0x278   : > { %4710 = vrot.lane.b32.xlu2 %v7800_v6, %s6919_s19  ;;  %v8057_v40 = vpop.permute.xlu0 %4253  ;;  %v8061_v10 = vpop.permute.xlu1 %3321  ;;  %v2474_v6 = vsel %vm12359_vm1, %v7746_v53, 0  ;;  %v2471_v53 = vsel %vm12359_vm1, %v7701_v4, 0  ;;  %v2468_v4 = vsel %vm12359_vm1, %v7643_v3, 0 }
 0x279   : > { %2763 = vmatpush.bf16.msrb.mxu1 %v7668_v32 }
 0x27a   : > { %v8064_v15 = vpop.permute.xlu2 %4237 }
 0x27b   : > { %v8066_v20 = vpop.f32.mrf.mxu3 }
 0x27d   : > { %3850 = vmatpush.bf16.xpose.msra.mxu1 %v3848_v38 }
 0x27e   : > { %4243 = vrot.lane.b32.xlu0 %v7991_v59, %s6920_s24  ;;  %4712 = vrot.lane.b32.xlu1 %v7849_v5, %s6919_s19 }
 0x27f   : > { %2496 = vmatpush.bf16.xpose.msrb.mxu0 %v2474_v6 }
 0x280   : > { %5175 = vrot.lane.b32.xlu2 %v7991_v59, %s6919_s19  ;;  %v2841_v37 = vpop.permute.xlu0 %2840  ;;  %v8076_v32 = vpop.permute.xlu1 %3772 }
 0x281   : > { %12768 = vst [vmem:[#allocation33_spill] sm:$0xff] %v8076_v32  ;;  %6120 = vmatmul.msk.bf16.gmra.mxu2 %vm12359_vm1, %v2841_v37 }
 0x282   : > { %v8081_v9 = vpop.permute.xlu2 %5169 }
 0x283   : > { %12769 = vst [vmem:[#allocation34_spill] sm:$0xff] %v8081_v9  ;;  %v8083_v43 = vpop.f32.mrf.mxu3 }
 0x285   : > { %3851 = vmatpush.bf16.xpose.msra.mxu1 %v3845_v51 }
 0x286   : > { %3608 = vrot.lane.b32.xlu0 %v2744_v26, %s6917_s3  ;;  %5177 = vrot.lane.b32.xlu1 %v7851_v44, %s6919_s19 }
 0x287   : > { %2497 = vmatpush.bf16.xpose.msrb.mxu0 %v2471_v53  ;;  %v12776_v53 = vld [vmem:[#allocation20_spill] sm:$0xff] }
 0x288   : > { %3329 = vrot.lane.b32.xlu2 %v8008_v0, %s6917_s3  ;;  %v8092_v61 = vpop.permute.xlu0 %3323  ;;  %v8094_v56 = vpop.permute.xlu1 %5466 }
 0x28a   : > { %v8098_v54 = vpop.permute.xlu2 %3602 }
 0x28b   : > { %v8105_v58 = vpop.f32.mrf.mxu3 }
 0x28d   : > { %3852 = vmatpush.bf16.xpose.msra.mxu1 %v3842_v45 }
 0x28e   : > { %5472 = vrot.lane.b32.xlu0 %v2744_v26, %s6919_s19  ;;  %4263 = vrot.lane.b32.xlu1 %v7981_v50, %s6920_s24 }
 0x28f   : > { %2498 = vmatpush.bf16.xpose.msrb.mxu0 %v2468_v4 }
 0x290   : > { %4261 = vrot.lane.b32.xlu2 %v8008_v0, %s6920_s24  ;;  %v8109_v39 = vpop.permute.xlu0 %4255  ;;  %v2843_v23 = vpop.permute.xlu1 %2842 }
 0x291   : > { %6121 = vmatmul.msk.bf16.gmra.mxu2 %vm12359_vm1, %v2843_v23 }
 0x292   : > { %v8114_v25 = vpop.permute.xlu2 %4534 }
 0x293   : > { %v8130_v28 = vpop.f32.mrf.mxu3 }
 0x295   : > { %3853 = vmatpush.bf16.xpose.msra.mxu1 %v3839_v30 }
 0x296   : > { %3780 = vrot.lane.b32.xlu0 %v7849_v5, %s6920_s24  ;;  %6111 = vmatmul.msk.bf16.vlgmr.msrb.gmra.mxu0 %vm12359_vm1, %v7659_v29 }
 0x297   : > { %5195 = vrot.lane.b32.xlu1 %v7981_v50, %s6919_s19 }
 0x298   : > { %5193 = vrot.lane.b32.xlu2 %v8008_v0, %s6919_s19  ;;  %v8124_v3 = vpop.permute.xlu0 %3307  ;;  %v8126_v24 = vpop.permute.xlu1 %4706 }
 0x299   : > { %12770 = vst [vmem:[#allocation35_spill] sm:$0xff] %v8124_v3 }
 0x29a   : > { %12771 = vst [vmem:[#allocation36_spill] sm:$0xff] %v8126_v24  ;;  %v8132_v5 = vpop.permute.xlu2 %5187 }
 0x29b   : > { %12772 = vst [vmem:[#allocation37_spill] sm:$0xff] %v8132_v5  ;;  %v8148_v26 = vpop.f32.mrf.mxu3 }
 0x29d   : > { %3854 = vmatpush.bf16.xpose.msra.mxu1 %v3836_v11 }
 0x29e   : > { %4542 = vrot.lane.b32.xlu0 %v8012_v27, %s6920_s24 }
 0x29f   : > { %2850 = vrot.lane.b32.xlu1 %v7895_v42, %s6917_s3 }
 0x2a0   : > { %3313 = vrot.lane.b32.xlu2 %v7851_v44, %s6917_s3  ;;  %v8140_v29 = vpop.permute.xlu0 %3774  ;;  %v8142_v0 = vpop.permute.xlu1 %4239 }
 0x2a1   : > { %12773 = vst [vmem:[#allocation38_spill] sm:$0xff] %v8140_v29 }
 0x2a2   : > { %v8146_v1 = vpop.permute.xlu2 %3604 }
 0x2a3   : > { %v8166_v6 = vpop.f32.mrf.mxu3 }
 0x2a5   : > { %3855 = vmatpush.bf16.xpose.msra.mxu1 %v3833_v34 }
 0x2a6   : > { %4714 = vrot.lane.b32.xlu0 %v7895_v42, %s6919_s19  ;;  %6112 = vmatmul.msk.bf16.gmra.mxu0 %vm12359_vm1, %v7731_v8 }
 0x2a7   : > { %4247 = vrot.lane.b32.xlu1 %v7897_v55, %s6920_s24 }
 0x2a8   : > { %4245 = vrot.lane.b32.xlu2 %v7851_v44, %s6920_s24  ;;  %v8158_v22 = vpop.permute.xlu0 %3325  ;;  %v8160_v31 = vpop.permute.xlu1 %5171 }
 0x2a9   : > { %12774 = vst [vmem:[#allocation39_spill] sm:$0xff] %v8160_v31 }
 0x2aa   : > { %v8164_v38 = vpop.permute.xlu2 %4536 }
 0x2ab   : > { %v8188_v45 = vpop.f32.mrf.mxu3 }
 0x2ad   : > { %3856 = vmatpush.bf16.xpose.msra.mxu1 %v3830_v41 }
 0x2ae   : > { %3612 = vrot.lane.b32.xlu0 %v7998_v18, %s6917_s3 }
 0x2af   : > { %5179 = vrot.lane.b32.xlu1 %v7897_v55, %s6919_s19 }
 0x2b0   : > { %3610 = vrot.lane.b32.xlu2 %v8012_v27, %s6917_s3  ;;  %v8174_v8 = vpop.permute.xlu0 %3309  ;;  %v8176_v37 = vpop.permute.xlu1 %5468 }
 0x2b1   : > { %12775 = vst [vmem:[#allocation40_spill] sm:$0xff] %v8174_v8 }
 0x2b2   : > { %v8180_v51 = vpop.permute.xlu2 %4257 }
 0x2b5   : > { %3857 = vmatpush.bf16.xpose.msra.mxu1 %v3827_v49 }
 0x2b6   : > { %5476 = vrot.lane.b32.xlu0 %v7998_v18, %s6919_s19  ;;  %6113 = vmatmul.msk.bf16.gmra.mxu0 %vm12359_vm1, %v12776_v53 }
 0x2b7   : > { %4265 = vrot.lane.b32.xlu1 %v7950_v7, %s6920_s24 }
 0x2b8   : > { %5474 = vrot.lane.b32.xlu2 %v8012_v27, %s6919_s19  ;;  %v8192_v4 = vpop.permute.xlu0 %4708  ;;  %v2845_v12 = vpop.permute.xlu1 %2844 }
 0x2b9   : > { %12777 = vst [vmem:[#allocation20_spill] sm:$0xff] %v8192_v4  ;;  %6122 = vmatmul.msk.bf16.gmra.mxu2 %vm12359_vm1, %v2845_v12  ;;  %v8207_v27 = vpop.f32.mrf.mxu3 }
 0x2ba   : > { %v8195_v23 = vpop.permute.xlu2 %5189 }
 0x2bb   : > { %12778 = vst [vmem:[#allocation41_spill] sm:$0xff] %v8195_v23 }
 0x2be   : > { %5197 = vrot.lane.b32.xlu0 %v7950_v7, %s6919_s19 }
 0x2bf   : > { %2852 = vrot.lane.b32.xlu1 %v7957_v63, %s6917_s3 }
 0x2c0   : > { %3331 = vrot.lane.b32.xlu2 %v7981_v50, %s6917_s3  ;;  %v8203_v30 = vpop.permute.xlu0 %4241  ;;  %v8205_v11 = vpop.permute.xlu1 %5470 }
 0x2c1   : > { %12779 = vst [vmem:[#allocation42_spill] sm:$0xff] %v8203_v30  ;;  %v8224_v53 = vpop.f32.mrf.mxu3 }
 0x2c2   : > { %v8209_v34 = vpop.permute.xlu2 %3776 }
 0x2c3   : > { %12780 = vst [vmem:[#allocation43_spill] sm:$0xff] %v8209_v34 }
 0x2c6   : > { %6114 = vmatmul.msk.bf16.gmra.mxu0 %vm12359_vm1, %v7868_v47  ;;  %3317 = vrot.lane.b32.xlu0 %v7959_v16, %s6917_s3 }
 0x2c7   : > { %3784 = vrot.lane.b32.xlu1 %v7957_v63, %s6920_s24 }
 0x2c8   : > { %3315 = vrot.lane.b32.xlu2 %v7897_v55, %s6917_s3  ;;  %v8219_v50 = vpop.permute.xlu0 %5173  ;;  %v8221_v41 = vpop.permute.xlu1 %5191 }
 0x2c9   : > { %12781 = vst [vmem:[#allocation44_spill] sm:$0xff] %v8219_v50  ;;  %v8238_v31 = vpop.f32.mrf.mxu3 }
 0x2ca   : > { %12782 = vst [vmem:[#allocation45_spill] sm:$0xff] %v8221_v41  ;;  %v2847_v49 = vpop.permute.xlu2 %2846 }
 0x2cb   : > { %6123 = vmatmul.msk.bf16.gmra.mxu2 %vm12359_vm1, %v2847_v49 }
 0x2ce   : > { %4249 = vrot.lane.b32.xlu0 %v7959_v16, %s6920_s24 }
 0x2cf   : > { %3614 = vrot.lane.b32.xlu1 %v7987_v21, %s6917_s3 }
 0x2d0   : > { %3782 = vrot.lane.b32.xlu2 %v7895_v42, %s6920_s24  ;;  %v8232_v47 = vpop.permute.xlu0 %3606  ;;  %v8234_v12 = vpop.permute.xlu1 %3311 }
 0x2d1   : > { %12783 = vst [vmem:[#allocation46_spill] sm:$0xff] %v8234_v12 }
 0x2d2   : > { %v8236_v50 = vpop.permute.xlu2 %4710 }
 0x2d3   : > { %12784 = vst [vmem:[#allocation47_spill] sm:$0xff] %v8236_v50 }
 0x2d6   : > { %6115 = vmatmul.msk.bf16.gmra.mxu0 %vm12359_vm1, %v7991_v59  ;;  %5181 = vrot.lane.b32.xlu0 %v7959_v16, %s6919_s19  ;;  %v8258_v59 = vpop.f32.mrf.mxu3 }
 0x2d7   : > { %4546 = vrot.lane.b32.xlu1 %v7987_v21, %s6920_s24 }
 0x2d8   : > { %4544 = vrot.lane.b32.xlu2 %v7998_v18, %s6920_s24  ;;  %v8248_v42 = vpop.permute.xlu0 %4538  ;;  %v8250_v49 = vpop.permute.xlu1 %3778 }
 0x2d9   : > { %12785 = vst [vmem:[#allocation48_spill] sm:$0xff] %v8250_v49 }
 0x2da   : > { %v8252_v9 = vpop.permute.xlu2 %5175 }
 0x2db   : > { %12786 = vst [vmem:[#allocation49_spill] sm:$0xff] %v8252_v9 }
 0x2de   : > { %5478 = vrot.lane.b32.xlu0 %v7987_v21, %s6919_s19  ;;  %v8278_v9 = vpop.f32.mrf.mxu3 }
 0x2df   : > { %1807 = vrot.lane.b32.xlu1 %v8066_v20, %s6921_s6 }
 0x2e0   : > { %3333 = vrot.lane.b32.xlu2 %v7950_v7, %s6917_s3  ;;  %v8262_v50 = vpop.permute.xlu0 %3327  ;;  %v8264_v18 = vpop.permute.xlu1 %4540 }
 0x2e2   : > { %v8266_v4 = vpop.permute.xlu2 %3329 }
 0x2e4   : > { %v8309_v34 = vpop.f32.mrf.mxu2 }
 0x2e6   : > { %6116 = vmatmul.msk.bf16.gmra.mxu0 %vm12359_vm1, %v7851_v44  ;;  %1805 = vrot.lane.b32.xlu0 %v8046_v57, %s6921_s6  ;;  %v8293_v62 = vpop.f32.mrf.mxu3 }
 0x2e7   : > { %1815 = vrot.lane.b32.xlu1 %v8148_v26, %s6921_s6  ;;  %12790 = vst [vmem:[#allocation53_spill] sm:$0xff] %v8293_v62 }
 0x2e8   : > { %4716 = vrot.lane.b32.xlu2 %v7957_v63, %s6919_s19  ;;  %v8276_v21 = vpop.permute.xlu0 %4259  ;;  %v2849_v7 = vpop.permute.xlu1 %2848 }
 0x2e9   : > { %6124 = vmatmul.msk.bf16.gmra.mxu2 %vm12359_vm1, %v2849_v7 }
 0x2ea   : > { %v4262_v60 = vpop.permute.xlu2 %4261 }
 0x2ee   : > { %1811 = vrot.lane.b32.xlu0 %v8105_v58, %s6921_s6  ;;  %v8311_v29 = vpop.f32.mrf.mxu3 }
 0x2ef   : > { %1821 = vrot.lane.b32.xlu1 %v8207_v27, %s6921_s6  ;;  %12793 = vst [vmem:[#allocation56_spill] sm:$0xff] %v8311_v29 }
 0x2f0   : > { %1803 = vrot.lane.b32.xlu2 %v8029_v19, %s6921_s6  ;;  %v8287_v44 = vpop.permute.xlu0 %4243  ;;  %v8289_v63 = vpop.permute.xlu1 %4712 }
 0x2f1   : > { %12787 = vst [vmem:[#allocation50_spill] sm:$0xff] %v8287_v44 }
 0x2f2   : > { %12788 = vst [vmem:[#allocation51_spill] sm:$0xff] %v8289_v63  ;;  %v8291_v24 = vpop.permute.xlu2 %5193 }
 0x2f3   : > { %12789 = vst [vmem:[#allocation52_spill] sm:$0xff] %v8291_v24 }
 0x2f6   : > { %6117 = vmatmul.msk.bf16.gmra.mxu0 %vm12359_vm1, %v7897_v55  ;;  %1817 = vrot.lane.b32.xlu0 %v8166_v6, %s6921_s6 }
 0x2f7   : > { %1827 = vrot.lane.b32.xlu1 %v8258_v59, %s6921_s6 }
 0x2f8   : > { %1809 = vrot.lane.b32.xlu2 %v8083_v43, %s6921_s6  ;;  %v8303_v7 = vpop.permute.xlu0 %3608  ;;  %v8305_v49 = vpop.permute.xlu1 %5177 }
 0x2f9   : > { %12791 = vst [vmem:[#allocation54_spill] sm:$0xff] %v8305_v49  ;;  %v8323_v49 = vpop.f32.mrf.mxu2 }
 0x2fa   : > { %v8307_v63 = vpop.permute.xlu2 %3313  ;;  %12795 = vst [vmem:[#allocation58_spill] sm:$0xff] %v8323_v49 }
 0x2fb   : > { %12792 = vst [vmem:[#allocation55_spill] sm:$0xff] %v8307_v63 }
 0x2fe   : > { %1823 = vrot.lane.b32.xlu0 %v8224_v53, %s6921_s6 }
 0x2ff   : > { %1833 = vrot.lane.b32.xlu1 %v8311_v29, %s6921_s6 }
 0x300   : > { %1813 = vrot.lane.b32.xlu2 %v8130_v28, %s6921_s6  ;;  %v8319_v55 = vpop.permute.xlu0 %5472  ;;  %v4264_v32 = vpop.permute.xlu1 %4263 }
 0x302   : > { %v8321_v14 = vpop.permute.xlu2 %4245 }
 0x303   : > { %12794 = vst [vmem:[#allocation57_spill] sm:$0xff] %v8321_v14 }
 0x304   : > { %v8337_v23 = vpop.f32.mrf.mxu2 }
 0x305   : > { %12798 = vst [vmem:[#allocation61_spill] sm:$0xff] %v8337_v23 }
 0x306   : > { %1829 = vrot.lane.b32.xlu0 %v8278_v9, %s6921_s6  ;;  %6118 = vmatmul.msk.bf16.gmra.mxu0 %vm12359_vm1, %v7959_v16 }
 0x307   : > { %2969 = vrot.lane.b32.xlu1 %v8323_v49, %s6921_s6 }
 0x308   : > { %1819 = vrot.lane.b32.xlu2 %v8188_v45, %s6921_s6  ;;  %v8333_v2 = vpop.permute.xlu0 %3780 }
 0x309   : > { %12796 = vst [vmem:[#allocation59_spill] sm:$0xff] %v8333_v2  ;;  %v8335_v48 = vpop.permute.xlu1 %5195 }
 0x30a   : > { %12797 = vst [vmem:[#allocation60_spill] sm:$0xff] %v8335_v48  ;;  %v3611_v5 = vpop.permute.xlu2 %3610 }
 0x30c   : > { %v8373_v3 = vpop.f32.mrf.mxu2 }
 0x30e   : > { %2967 = vrot.lane.b32.xlu0 %v8309_v34, %s6921_s6 }
 0x30f   : > { %2971 = vrot.lane.b32.xlu1 %v8337_v23, %s6921_s6 }
 0x310   : > { %1825 = vrot.lane.b32.xlu2 %v8238_v31, %s6921_s6  ;;  %v8345_v16 = vpop.permute.xlu0 %4542 }
 0x311   : > { %v2851_v41 = vpop.permute.xlu1 %2850 }
 0x312   : > { %6125 = vmatmul.msk.bf16.gmra.mxu2 %vm12359_vm1, %v2851_v41  ;;  %v8348_v2 = vpop.permute.xlu2 %5474 }
 0x318   : > { %1831 = vrot.lane.b32.xlu2 %v8293_v62, %s6921_s6  ;;  %v8352_v24 = vpop.permute.xlu0 %4714 }
 0x319   : > { %12799 = vst [vmem:[#allocation62_spill] sm:$0xff] %v8352_v24  ;;  %v8354_v48 = vpop.permute.xlu1 %4247 }
 0x31a   : > { %12800 = vst [vmem:[#allocation63_spill] sm:$0xff] %v8354_v48  ;;  %v3332_v63 = vpop.permute.xlu2 %3331  ;;  %v4310_v48 = vsel %vm12359_vm1, %v4264_v32, 0 }
 0x320   : > { %v3613_v49 = vpop.permute.xlu0 %3612 }
 0x321   : > { %v8356_v23 = vpop.permute.xlu1 %5179 }
 0x322   : > { %12801 = vst [vmem:[#allocation64_spill] sm:$0xff] %v8356_v23  ;;  %v8358_v29 = vpop.permute.xlu2 %3315 }
 0x323   : > { %12802 = vst [vmem:[#allocation65_spill] sm:$0xff] %v8358_v29  ;;  %v12339_v29 = vlaneseq }
 0x328   : > { %v8360_v12 = vpop.permute.xlu0 %5476 }
 0x329   : > { %v4266_v14 = vpop.permute.xlu1 %4265 }
 0x32a   : > { %v4313_v41 = vsel %vm12359_vm1, %v4266_v14, 0  ;;  %v8363_v8 = vpop.permute.xlu2 %3782  ;;  %v4307_v14 = vsel %vm12359_vm1, %v4262_v60, 0  ;;  %v4304_v60 = vsel %vm12359_vm1, %v8276_v21, 0  ;;  %v12814_v21 = vmov 0 }
 0x32b   : > { %12803 = vst [vmem:[#allocation66_spill] sm:$0xff] %v8363_v8  ;;  %4315 = vmatpush.bf16.xpose.msra.mxu2 %v4313_v41 }
 0x330   : > { %v8365_v44 = vpop.permute.xlu0 %5197 }
 0x331   : > { %12804 = vst [vmem:[#allocation67_spill] sm:$0xff] %v8365_v44  ;;  %v2853_v62 = vpop.permute.xlu1 %2852 }
 0x332   : > { %6126 = vmatmul.msk.bf16.gmra.mxu2 %vm12359_vm1, %v2853_v62  ;;  %v8368_v24 = vpop.permute.xlu2 %4544  ;;  %v8380_v62 = vshrl.u32 %v12339_v29, 7 }
 0x333   : > { %4316 = vmatpush.bf16.xpose.msra.mxu2 %v4310_v48 }
 0x334   : > { %12807 = vst [vmem:[#allocation70_spill] sm:$0xff] %v8380_v62  ;;  %v8385_v48 = vadd.s32 1, %v8380_v62  ;;  %v8399_v29 = vadd.s32 24, %v8380_v62 }
 0x336   : > { %12809 = vst [vmem:[#allocation72_spill] sm:$0xff] %v8385_v48 }
 0x337   : > { %12812 = vst [vmem:[#allocation75_spill] sm:$0xff] %v8399_v29 }
 0x338   : > { %v8371_v23 = vpop.permute.xlu0 %3317 }
 0x339   : > { %12805 = vst [vmem:[#allocation68_spill] sm:$0xff] %v8371_v23  ;;  %v8375_v30 = vpop.permute.xlu1 %3784 }
 0x33a   : > { %12806 = vst [vmem:[#allocation69_spill] sm:$0xff] %v8375_v30  ;;  %v3334_v41 = vpop.permute.xlu2 %3333  ;;  %v8391_v30 = vpop.f32.mrf.mxu2 }
 0x33b   : > { %4317 = vmatpush.bf16.xpose.msra.mxu2 %v4307_v14  ;;  %v3381_v8 = vsel %vm12359_vm1, %v3334_v41, 0  ;;  %v8395_v14 = vadd.s32 16, %v8380_v62  ;;  %v1401_v41 = vand.u32 1, %v8385_v48 }
 0x33c   : > { %3383 = vmatpush.bf16.xpose.msrb.mxu3 %v3381_v8  ;;  %v3378_v8 = vsel %vm12359_vm1, %v3332_v63, 0  ;;  %v8411_v63 = vadd.s32 1, %v8399_v29 }
 0x33d   : > { %12811 = vst [vmem:[#allocation74_spill] sm:$0xff] %v8395_v14  ;;  %vm8406_vm5 = vcmp.ne.s32.totalorder %v1401_v41, 0 }
 0x33e   : > { %v12815_v21 = vsel %vm8406_vm5, 4294967295, %v12814_v21  ;;  %12817 = vst [vmem:[#allocation78_spill] sm:$0xff] %v8411_v63 }
 0x33f   : > { %12816 = vst [vmem:[#allocation77_spill] sm:$0xff] %v12815_v21 }
 0x340   : > { %v8382_v44 = vpop.permute.xlu0 %4249 }
 0x341   : > { %12808 = vst [vmem:[#allocation71_spill] sm:$0xff] %v8382_v44  ;;  %v3615_v32 = vpop.permute.xlu1 %3614  ;;  %v4301_v44 = vsel %vm12359_vm1, %v8180_v51, 0 }
 0x342   : > { %3624 = vmatpush.bf16.msra.mxu0 %v3615_v32  ;;  %v8387_v23 = vpop.permute.xlu2 %4716  ;;  %v8402_v32 = vadd.s32 1, %v8395_v14  ;;  %v8431_v51 = vpop.f32.mrf.mxu2 }
 0x343   : > { %12810 = vst [vmem:[#allocation73_spill] sm:$0xff] %v8387_v23  ;;  %4318 = vmatpush.bf16.xpose.msra.mxu2 %v4304_v60 }
 0x344   : > { %3384 = vmatpush.bf16.xpose.msrb.mxu3 %v3378_v8  ;;  %v1403_v29 = vand.u32 1, %v8402_v32 }
 0x346   : > { %3625 = vmatpush.bf16.msra.mxu0 %v3613_v49  ;;  %v8418_v49 = vadd.s32 8, %v8380_v62  ;;  %vm8437_vm6 = vcmp.ne.s32.totalorder %v1403_v29, 0  ;;  %v4298_v29 = vsel %vm12359_vm1, %v8109_v39, 0 }
 0x348   : > { %v8404_v23 = vpop.permute.xlu0 %5181  ;;  %12818 = vst [vmem:[#allocation79_spill] sm:$0xff] %v8418_v49 }
 0x349   : > { %12813 = vst [vmem:[#allocation76_spill] sm:$0xff] %v8404_v23  ;;  %v8413_v60 = vpop.permute.xlu1 %4546  ;;  %v3375_v23 = vsel %vm12359_vm1, %v8266_v4, 0 }
 0x34a   : > { %3626 = vmatpush.bf16.msra.mxu0 %v3611_v5  ;;  %v1804_v8 = vpop.permute.xlu2 %1803  ;;  %v1404_v5 = vand.u32 1, %v8411_v63  ;;  %v8455_v63 = vadd.s32 32, %v8380_v62  ;;  %v8468_v39 = vpop.f32.mrf.mxu2 }
 0x34b   : > { %v8423_v41 = vsel %vm8406_vm5, %v1804_v8, %v8029_v19  ;;  %4319 = vmatpush.bf16.xpose.msra.mxu2 %v4301_v44  ;;  %v8435_v19 = vadd.s32 1, %v8418_v49  ;;  %v12820_v44 = vmov 0 }
 0x34c   : > { %3385 = vmatpush.bf16.xpose.msrb.mxu3 %v3375_v23  ;;  %1883 = vrot.lane.b32.xlu0 %v8423_v41, %s6922_s27  ;;  %v12821_v44 = vsel %vm8437_vm6, 4294967295, %v12820_v44  ;;  %vm8441_vm7 = vcmp.ne.s32.totalorder %v1404_v5, 0  ;;  %v12823_v23 = vmov 0  ;;  %12826 = vst [vmem:[#allocation83_spill] sm:$0xff] %v8455_v63 }
 0x34d   : > { %12819 = vst [vmem:[#allocation80_spill] sm:$0xff] %v8435_v19  ;;  %v12824_v23 = vsel %vm8441_vm7, 4294967295, %v12823_v23  ;;  %v1402_v49 = vand.u32 1, %v8435_v19 }
 0x34e   : > { %3627 = vmatpush.bf16.msra.mxu0 %v8303_v7  ;;  %12822 = vst [vmem:[#allocation81_spill] sm:$0xff] %v12821_v44 }
 0x34f   : > { %12825 = vst [vmem:[#allocation82_spill] sm:$0xff] %v12824_v23  ;;  %vm8471_vm8 = vcmp.ne.s32.totalorder %v1402_v49, 0  ;;  %v8490_v49 = vadd.s32 56, %v8380_v62 }
 0x350   : > { %v5479_v4 = vpop.permute.xlu0 %5478 }
 0x351   : > { %v1808_v8 = vpop.permute.xlu1 %1807  ;;  %12832 = vst [vmem:[#allocation87_spill] sm:$0xff] %v8490_v49 }
 0x352   : > { %v8448_v14 = vsel %vm8437_vm6, %v1808_v8, %v8066_v20  ;;  %3628 = vmatpush.bf16.msra.mxu0 %v8232_v47  ;;  %v1810_v7 = vpop.permute.xlu2 %1809  ;;  %v3372_v20 = vsel %vm12359_vm1, %v8262_v50, 0  ;;  %v12828_v47 = vmov 0 }
 0x353   : > { %v8460_v5 = vsel %vm8441_vm7, %v1810_v7, %v8083_v43  ;;  %1887 = vrot.lane.b32.xlu1 %v8448_v14, %s6922_s27  ;;  %4320 = vmatpush.bf16.xpose.msra.mxu2 %v4298_v29  ;;  %v12829_v47 = vsel %vm8471_vm8, 4294967295, %v12828_v47  ;;  %v8476_v43 = vadd.s32 1, %v8455_v63  ;;  %v4295_v7 = vsel %vm12359_vm1, %v8057_v40, 0 }
 0x354   : > { %12827 = vst [vmem:[#allocation84_spill] sm:$0xff] %v8460_v5  ;;  %1889 = vrot.lane.b32.xlu0 %v8460_v5, %s6922_s27  ;;  %3386 = vmatpush.bf16.xpose.msrb.mxu3 %v3372_v20  ;;  %v8493_v29 = vadd.s32 40, %v8380_v62  ;;  %v8500_v40 = vadd.s32 48, %v8380_v62 }
 0x355   : > { %12830 = vst [vmem:[#allocation85_spill] sm:$0xff] %v12829_v47 }
 0x356   : > { %3629 = vmatpush.bf16.msra.mxu0 %v8146_v1  ;;  %12831 = vst [vmem:[#allocation86_spill] sm:$0xff] %v8476_v43  ;;  %v1405_v1 = vand.u32 1, %v8476_v43  ;;  %v8517_v63 = vadd.s32 1, %v8493_v29 }
 0x357   : > { %12833 = vst [vmem:[#allocation88_spill] sm:$0xff] %v8493_v29  ;;  %v12843_v29 = vmov 0 }
 0x358   : > { %v1806_v8 = vpop.permute.xlu0 %1805  ;;  %12834 = vst [vmem:[#allocation89_spill] sm:$0xff] %v8500_v40  ;;  %vm8507_vm9 = vcmp.ne.s32.totalorder %v1405_v1, 0  ;;  %v4292_v1 = vsel %vm12359_vm1, %v7975_v17, 0  ;;  %v3366_v17 = vsel %vm12359_vm1, %v8092_v61, 0 }
 0x359   : > { %v8481_v50 = vsel %vm8471_vm8, %v1806_v8, %v8046_v57  ;;  %v3369_v57 = vsel %vm12359_vm1, %v8158_v22, 0  ;;  %v12836_v8 = vmov 0  ;;  %v8514_v22 = vpop.f32.mrf.mxu2  ;;  %12840 = vst [vmem:[#allocation91_spill] sm:$0xff] %v8517_v63  ;;  %v1816_v61 = vpop.permute.xlu1 %1815 }
 0x35a   : > { %3630 = vmatpush.bf16.msra.mxu0 %v8098_v54  ;;  %1885 = vrot.lane.b32.xlu2 %v8481_v50, %s6922_s27  ;;  %v12835_v54 = vld [vmem:[#allocation17_spill] sm:$0xff]  ;;  %v12837_v8 = vsel %vm8507_vm9, 4294967295, %v12836_v8 }
 0x35b   : > { %2973 = vrot.lane.b32.xlu1 %v8373_v3, %s6921_s6  ;;  %4321 = vmatpush.bf16.xpose.msra.mxu2 %v4295_v7  ;;  %v4780_v20 = vsel %vm12359_vm1, %v12835_v54, 0  ;;  %12838 = vst [vmem:[#allocation17_spill] sm:$0xff] %v12837_v8  ;;  %v8512_v7 = vadd.s32 1, %v8490_v49  ;;  %v1406_v49 = vand.u32 1, %v8517_v63  ;;  %v12927_v23 = vld [vmem:[#allocation84_spill] sm:$0xff]  ;;  %v12931_v8 = vld [vmem:[#allocation71_spill] sm:$0xff] }
 0x35c   : > { %2975 = vrot.lane.b32.xlu0 %v8391_v30, %s6921_s6  ;;  %3387 = vmatpush.bf16.xpose.msrb.mxu3 %v3369_v57  ;;  %v8520_v57 = vadd.s32 1, %v8500_v40 }
 0x35d   : > { %12839 = vst [vmem:[#allocation90_spill] sm:$0xff] %v8512_v7  ;;  %v1408_v54 = vand.u32 1, %v8512_v7  ;;  %vm8548_vm11 = vcmp.ne.s32.totalorder %v1406_v49, 0  ;;  %v12849_v7 = vmov 0 }
 0x35e   : > { %3631 = vmatpush.bf16.msra.mxu0 %v8023_v46  ;;  %12841 = vst [vmem:[#allocation92_spill] sm:$0xff] %v8520_v57 }
 0x35f   : > { %vm8542_vm10 = vcmp.ne.s32.totalorder %v1408_v54, 0 }
 0x360   : > { %v1812_v5 = vpop.permute.xlu0 %1811  ;;  %v12844_v29 = vsel %vm8542_vm10, 4294967295, %v12843_v29 }
 0x361   : > { %v8525_v46 = vsel %vm8507_vm9, %v1812_v5, %v8105_v58  ;;  %v12842_v58 = vld [vmem:[#allocation18_spill] sm:$0xff]  ;;  %v8546_v40 = vpop.f32.mrf.mxu2 }
 0x362   : > { %4782 = vmatpush.bf16.xpose.msrb.mxu0 %v4780_v20  ;;  %1891 = vrot.lane.b32.xlu2 %v8525_v46, %s6922_s27  ;;  %v1407_v20 = vand.u32 1, %v8520_v57  ;;  %v4777_v5 = vsel %vm12359_vm1, %v12842_v58, 0  ;;  %12845 = vst [vmem:[#allocation18_spill] sm:$0xff] %v12844_v29  ;;  %v12852_v58 = vld [vmem:[#allocation25_spill] sm:$0xff]  ;;  %v12954_v29 = vmov 0 }
 0x363   : > { %2977 = vrot.lane.b32.xlu1 %v8431_v51, %s6921_s6  ;;  %4322 = vmatpush.bf16.xpose.msra.mxu2 %v4292_v1  ;;  %v12846_v1 = vmov 0 }
 0x364   : > { %2979 = vrot.lane.b32.xlu0 %v8468_v39, %s6921_s6  ;;  %3388 = vmatpush.bf16.xpose.msrb.mxu3 %v3366_v17  ;;  %v12847_v1 = vsel %vm8548_vm11, 4294967295, %v12846_v1  ;;  %vm8552_vm12 = vcmp.ne.s32.totalorder %v1407_v20, 0  ;;  %v8577_v20 = vadd.s32 64, %v8380_v62 }
 0x365   : > { %12848 = vst [vmem:[#allocation93_spill] sm:$0xff] %v12847_v1  ;;  %v12850_v7 = vsel %vm8552_vm12, 4294967295, %v12849_v7 }
 0x366   : > { %12851 = vst [vmem:[#allocation94_spill] sm:$0xff] %v12850_v7  ;;  %v12945_v7 = vld [vmem:[#allocation68_spill] sm:$0xff] }
 0x367   : > { %12853 = vst [vmem:[#allocation25_spill] sm:$0xff] %v8577_v20 }
 0x368   : > { %v1818_v17 = vpop.permute.xlu0 %1817 }
 0x369   : > { %v8560_v54 = vsel %vm8542_vm10, %v1818_v17, %v8166_v6  ;;  %v3363_v6 = vsel %vm12359_vm1, %v8061_v10, 0 }
 0x36a   : > { %4783 = vmatpush.bf16.xpose.msrb.mxu0 %v4777_v5  ;;  %6143 = vmatmul.msk.bf16.vlgmr.msra.gmra.mxu2 %vm12359_vm1, %v12852_v58  ;;  %v12856_v5 = vld [vmem:[#allocation19_spill] sm:$0xff] }
 0x36b   : > { %5488 = vmatpush.bf16.msrb.mxu2 %v5479_v4  ;;  %v1814_v4 = vpop.permute.xlu2 %1813  ;;  %1897 = vrot.lane.b32.xlu2 %v8560_v54, %s6922_s27 }
 0x36c   : > { %v8565_v49 = vsel %vm8548_vm11, %v1814_v4, %v8130_v28  ;;  %v8582_v28 = vadd.s32 80, %v8380_v62  ;;  %3389 = vmatpush.bf16.xpose.msrb.mxu3 %v3363_v6  ;;  %v4774_v4 = vsel %vm12359_vm1, %v12856_v5, 0 }
 0x36d   : > { %1893 = vrot.lane.b32.xlu1 %v8565_v49, %s6922_s27 }
 0x36e   : > { %12854 = vst [vmem:[#allocation95_spill] sm:$0xff] %v8582_v28  ;;  %v8598_v17 = vadd.s32 1, %v8582_v28 }
 0x36f   : > { %5489 = vmatpush.bf16.msrb.mxu2 %v8360_v12  ;;  %v8574_v12 = vsel %vm8552_vm12, %v1816_v61, %v8148_v26  ;;  %v8590_v26 = vadd.s32 72, %v8380_v62  ;;  %v8595_v61 = vadd.s32 1, %v8577_v20 }
 0x370   : > { %1895 = vrot.lane.b32.xlu0 %v8574_v12, %s6922_s27  ;;  %12857 = vst [vmem:[#allocation19_spill] sm:$0xff] %v8598_v17  ;;  %v1411_v6 = vand.u32 1, %v8598_v17  ;;  %v1824_v5 = vpop.permute.xlu0 %1823  ;;  %v12862_v17 = vmov 0 }
 0x371   : > { %12855 = vst [vmem:[#allocation96_spill] sm:$0xff] %v8590_v26  ;;  %v8604_v10 = vadd.s32 1, %v8590_v26  ;;  %v1409_v58 = vand.u32 1, %v8595_v61  ;;  %v12861_v26 = vld [vmem:[#allocation21_spill] sm:$0xff] }
 0x372   : > { %4784 = vmatpush.bf16.xpose.msrb.mxu0 %v4774_v4  ;;  %v8613_v4 = vadd.s32 104, %v8380_v62  ;;  %v4771_v20 = vsel %vm12359_vm1, %v12861_v26, 0  ;;  %vm8628_vm14 = vcmp.ne.s32.totalorder %v1411_v6, 0  ;;  %v1822_v26 = vpop.permute.xlu1 %1821 }
 0x373   : > { %5490 = vmatpush.bf16.msrb.mxu2 %v8348_v2  ;;  %v8601_v2 = vpop.f32.mrf.mxu2  ;;  %12859 = vst [vmem:[#allocation98_spill] sm:$0xff] %v8604_v10  ;;  %v1410_v28 = vand.u32 1, %v8604_v10  ;;  %vm8624_vm13 = vcmp.ne.s32.totalorder %v1409_v58, 0  ;;  %v1442_v1 = vand.u32 2, %v8604_v10  ;;  %v12947_v10 = vmov 0 }
 0x374   : > { %12858 = vst [vmem:[#allocation97_spill] sm:$0xff] %v8601_v2  ;;  %2985 = vrot.lane.b32.xlu2 %v8601_v2, %s6921_s6  ;;  %v12863_v17 = vsel %vm8624_vm13, 4294967295, %v12862_v17  ;;  %v1820_v2 = vpop.permute.xlu2 %1819 }
 0x375   : > { %2981 = vrot.lane.b32.xlu1 %v8514_v22, %s6921_s6  ;;  %12860 = vst [vmem:[#allocation99_spill] sm:$0xff] %v8613_v4  ;;  %vm8636_vm15 = vcmp.ne.s32.totalorder %v1410_v28, 0  ;;  %v8643_v58 = vsel %vm8624_vm13, %v1820_v2, %v8188_v45 }
 0x376   : > { %12864 = vst [vmem:[#allocation21_spill] sm:$0xff] %v12863_v17  ;;  %v8666_v45 = vsel %vm8636_vm15, %v1822_v26, %v8207_v27  ;;  %v12878_v26 = vmov 0  ;;  %v12973_v17 = vmov 0 }
 0x377   : > { %5491 = vmatpush.bf16.msrb.mxu2 %v8319_v55  ;;  %v3360_v55 = vsel %vm12359_vm1, %v7979_v35, 0  ;;  %v8633_v35 = vadd.s32 1, %v8613_v4  ;;  %v12902_v4 = vmov 0 }
 0x378   : > { %2983 = vrot.lane.b32.xlu0 %v8546_v40, %s6921_s6  ;;  %3390 = vmatpush.bf16.xpose.msrb.mxu3 %v3360_v55 }
 0x379   : > { %v1414_v28 = vand.u32 1, %v8633_v35 }
 0x37a   : > { %4785 = vmatpush.bf16.xpose.msrb.mxu0 %v4771_v20  ;;  %v8650_v20 = vsel %vm8628_vm14, %v1824_v5, %v8224_v53  ;;  %6144 = vmatmul.msk.bf16.gmra.mxu2 %vm12359_vm1, %v8064_v15  ;;  %v8672_v15 = vadd.s32 96, %v8380_v62  ;;  %v12873_v53 = vld [vmem:[#allocation24_spill] sm:$0xff]  ;;  %v12874_v5 = vmov 0 }
 0x37b   : > { %5492 = vmatpush.bf16.msrb.mxu2 %v8205_v11  ;;  %v12865_v11 = vmov 0  ;;  %v8645_v6 = vpop.f32.mrf.mxu2  ;;  %v4768_v2 = vsel %vm12359_vm1, %v12873_v53, 0  ;;  %vm8682_vm0 = vcmp.ne.s32.totalorder %v1414_v28, 0  ;;  %v12881_v53 = vmov 0 }
 0x37c   : > { %v12866_v11 = vsel %vm8628_vm14, 4294967295, %v12865_v11  ;;  %1903 = vrot.lane.b32.xlu2 %v8650_v20, %s6922_s27  ;;  %12872 = vst [vmem:[#allocation103_spill] sm:$0xff] %v8672_v15  ;;  %v12875_v5 = vsel %vm8682_vm0, 4294967295, %v12874_v5  ;;  %v1826_v28 = vpop.permute.xlu2 %1825 }
 0x37d   : > { %12867 = vst [vmem:[#allocation100_spill] sm:$0xff] %v12866_v11  ;;  %1899 = vrot.lane.b32.xlu1 %v8643_v58, %s6922_s27 }
 0x37e   : > { %12876 = vst [vmem:[#allocation24_spill] sm:$0xff] %v12875_v5 }
 0x37f   : > { %5493 = vmatpush.bf16.msrb.mxu2 %v8176_v37  ;;  %v8656_v37 = vadd.s32 88, %v8380_v62  ;;  %6127 = vmatmul.msk.bf16.vlgmr.msrb.gmra.mxu3 %vm12359_vm1, %v8025_v36  ;;  %v8688_v36 = vadd.s32 1, %v8672_v15 }
 0x380   : > { %4556 = vmatpush.bf16.msra.mxu3 %v8413_v60  ;;  %v12868_v60 = vmov 0  ;;  %1901 = vrot.lane.b32.xlu0 %v8666_v45, %s6922_s27 }
 0x381   : > { %v12869_v60 = vsel %vm8636_vm15, 4294967295, %v12868_v60  ;;  %12871 = vst [vmem:[#allocation102_spill] sm:$0xff] %v8656_v37  ;;  %v8680_v27 = vadd.s32 1, %v8656_v37 }
 0x382   : > { %12870 = vst [vmem:[#allocation101_spill] sm:$0xff] %v12869_v60  ;;  %4786 = vmatpush.bf16.xpose.msrb.mxu0 %v4768_v2  ;;  %v1828_v2 = vpop.permute.xlu1 %1827 }
 0x383   : > { %5494 = vmatpush.bf16.msrb.mxu2 %v8094_v56  ;;  %v8701_v55 = vpop.f32.mrf.mxu2 }
 0x384   : > { %4557 = vmatpush.bf16.msra.mxu3 %v8368_v24  ;;  %v1830_v24 = vpop.permute.xlu0 %1829 }
 0x385   : > { %v8693_v56 = vsel %vm8682_vm0, %v1830_v24, %v8278_v9  ;;  %2987 = vrot.lane.b32.xlu1 %v8645_v6, %s6921_s6  ;;  %v12877_v9 = vld [vmem:[#allocation23_spill] sm:$0xff] }
 0x386   : > { %1909 = vrot.lane.b32.xlu2 %v8693_v56, %s6922_s27 }
 0x387   : > { %5495 = vmatpush.bf16.msrb.mxu2 %v8039_v52  ;;  %v1413_v52 = vand.u32 1, %v8688_v36 }
 0x388   : > { %4558 = vmatpush.bf16.msra.mxu3 %v8345_v16  ;;  %v1412_v16 = vand.u32 1, %v8680_v27  ;;  %2989 = vrot.lane.b32.xlu0 %v8701_v55, %s6921_s6 }
 0x389   : > { %vm8713_vm3 = vcmp.ne.s32.totalorder %v1413_v52, 0  ;;  %v12888_v52 = vld [vmem:[#allocation35_spill] sm:$0xff] }
 0x38a   : > { %vm8709_vm2 = vcmp.ne.s32.totalorder %v1412_v16, 0  ;;  %v12882_v53 = vsel %vm8713_vm3, 4294967295, %v12881_v53  ;;  %6145 = vmatmul.msk.bf16.gmra.mxu2 %vm12359_vm1, %v8142_v0  ;;  %v12885_v0 = vld [vmem:[#allocation27_spill] sm:$0xff] }
 0x38b   : > { %v12879_v26 = vsel %vm8709_vm2, 4294967295, %v12878_v26  ;;  %12883 = vst [vmem:[#allocation104_spill] sm:$0xff] %v12882_v53  ;;  %v8720_v37 = vsel %vm8709_vm2, %v1826_v28, %v8238_v31  ;;  %v8737_v31 = vsel %vm8713_vm3, %v1828_v2, %v8258_v59  ;;  %v12886_v59 = vld [vmem:[#allocation26_spill] sm:$0xff]  ;;  %v8766_v28 = vadd.s32 112, %v8380_v62 }
 0x38c   : > { %4559 = vmatpush.bf16.msra.mxu3 %v8264_v18  ;;  %v4765_v18 = vsel %vm12359_vm1, %v12877_v9, 0  ;;  %12880 = vst [vmem:[#allocation23_spill] sm:$0xff] %v12879_v26  ;;  %v2968_v24 = vpop.permute.xlu0 %2967  ;;  %v4759_v16 = vsel %vm12359_vm1, %v12886_v59, 0  ;;  %v12889_v9 = vld [vmem:[#allocation50_spill] sm:$0xff]  ;;  %v8772_v2 = vadd.s32 120, %v8380_v62  ;;  %v1444_v26 = vand.u32 2, %v8680_v27 }
 0x38d   : > { %4787 = vmatpush.bf16.xpose.msrb.mxu0 %v4765_v18  ;;  %1905 = vrot.lane.b32.xlu1 %v8720_v37, %s6922_s27  ;;  %v12890_v18 = vld [vmem:[#allocation40_spill] sm:$0xff]  ;;  %12891 = vst [vmem:[#allocation27_spill] sm:$0xff] %v8766_v28 }
 0x38e   : > { %vm1368_vm4 = vcmp.eq.s32.totalorder %v8772_v2, 127 }
 0x38f   : > { %6128 = vmatmul.msk.bf16.gmra.mxu3 %vm12359_vm1, %v8027_v13  ;;  %v12887_v13 = vld [vmem:[#allocation42_spill] sm:$0xff] }
 0x390   : > { %4560 = vmatpush.bf16.msra.mxu3 %v8248_v42  ;;  %v8725_v42 = vsel %vm8406_vm5, %v2968_v24, %v8309_v34  ;;  %1907 = vrot.lane.b32.xlu0 %v8737_v31, %s6922_s27  ;;  %v8769_v24 = vadd.s32 1, %v8766_v28  ;;  %12893 = vst [vmem:[#allocation42_spill] sm:$0xff] %v8772_v2  ;;  %vm12898_vm5 = vcmask 261120   ;;  %v12900_v28 = vld [vmem:[#allocation46_spill] sm:$0xff] }
 0x391   : > { %12884 = vst [vmem:[#allocation105_spill] sm:$0xff] %v8725_v42  ;;  %3015 = vrot.lane.b32.xlu2 %v8725_v42, %s6922_s27  ;;  %vm12901_vm0 = vmmov %vm12898_vm5 }
 0x392   : > { %12892 = vst [vmem:[#allocation26_spill] sm:$0xff] %v8769_v24  ;;  %v1415_v59 = vand.u32 1, %v8769_v24 }
 0x394   : > { %4561 = vmatpush.bf16.msra.mxu3 %v8164_v38  ;;  %v4762_v38 = vsel %vm12359_vm1, %v12885_v0, 0 }
 0x395   : > { %4788 = vmatpush.bf16.xpose.msrb.mxu0 %v4762_v38  ;;  %v8747_v34 = vpop.f32.mrf.mxu2 }
 0x396   : > { %2991 = vrot.lane.b32.xlu1 %v8747_v34, %s6921_s6 }
 0x398   : > { %4562 = vmatpush.bf16.msra.mxu3 %v8114_v25 }
 0x39a   : > { %6146 = vmatmul.msk.bf16.gmra.mxu2 %vm12359_vm1, %v12887_v13  ;;  %v1433_v13 = vand.u32 2, %v8385_v48 }
 0x39c   : > { %4563 = vmatpush.bf16.msra.mxu3 %v7983_v33  ;;  %v1834_v33 = vpop.permute.xlu1 %1833  ;;  %vm8792_vm3 = vcmp.ne.s32.totalorder %v1433_v13, 0  ;;  %v12909_v13 = vld [vmem:[#allocation56_spill] sm:$0xff] }
 0x39d   : > { %4789 = vmatpush.bf16.xpose.msrb.mxu0 %v4759_v16  ;;  %v8757_v25 = vpop.f32.mrf.mxu2  ;;  %v1384_v16 = vadd.s32 1, %v8772_v2  ;;  %v12903_v4 = vsel %vm8792_vm3, 4294967295, %v12902_v4  ;;  %v12905_v2 = vld [vmem:[#allocation53_spill] sm:$0xff] }
 0x39e   : > { %2993 = vrot.lane.b32.xlu0 %v8757_v25, %s6921_s6  ;;  %12904 = vst [vmem:[#allocation40_spill] sm:$0xff] %v12903_v4  ;;  %v12912_v4 = vmov 0 }
 0x39f   : > { %6129 = vmatmul.msk.bf16.gmra.mxu3 %vm12359_vm1, %v12888_v52  ;;  %v12894_v52 = vmov 0  ;;  %v8788_v21 = vsel %vm1368_vm4, 0, %v1384_v16  ;;  %vm12916_vm4 = vcmask 261120  }
 0x3a0   : > { %12899 = vst [vmem:[#allocation50_spill] sm:$0xff] %v8788_v21  ;;  %v1416_v42 = vand.u32 1, %v8788_v21 }
 0x3a4   : > { %v2970_v0 = vpop.permute.xlu1 %2969 }
 0x3aa   : > { %6147 = vmatmul.msk.bf16.gmra.mxu2 %vm12359_vm1, %v12889_v9  ;;  %v1832_v9 = vpop.permute.xlu2 %1831 }
 0x3ac   : > { %v2972_v15 = vpop.permute.xlu1 %2971 }
 0x3af   : > { %6130 = vmatmul.msk.bf16.gmra.mxu3 %vm12359_vm1, %v12890_v18  ;;  %vm8782_vm1 = vcmp.ne.s32.totalorder %v1415_v59, 0  ;;  %v12897_v18 = vld [vmem:[#allocation57_spill] sm:$0xff] }
 0x3b0   : > { %v12895_v52 = vsel %vm8782_vm1, 4294967295, %v12894_v52  ;;  %v8799_v59 = vsel %vm8782_vm1, %v1832_v9, %v12905_v2  ;;  %v12906_v2 = vmov 0 }
 0x3b1   : > { %12896 = vst [vmem:[#allocation35_spill] sm:$0xff] %v12895_v52 }
 0x3b5   : > { %v8774_v38 = vpop.f32.mrf.mxu2 }
 0x3b6   : > { %2995 = vrot.lane.b32.xlu1 %v8774_v38, %s6921_s6 }
 0x3ba   : > { %6148 = vmatmul.msk.bf16.gmra.mxu2 %vm12898_vm5, %v12897_v18  ;;  %vm8815_vm5 = vcmp.ne.s32.totalorder %v1416_v42, 0  ;;  %v12910_v18 = vld [vmem:[#allocation58_spill] sm:$0xff] }
 0x3bb   : > { %v12907_v2 = vsel %vm8815_vm5, 4294967295, %v12906_v2  ;;  %v8822_v9 = vsel %vm8815_vm5, %v1834_v33, %v12909_v13  ;;  %v8827_v21 = vsel %vm8471_vm8, %v2970_v0, %v12910_v18  ;;  %v1886_v33 = vpop.permute.xlu2 %1885  ;;  %v12915_v13 = vld [vmem:[#allocation63_spill] sm:$0xff]  ;;  %vm12918_vm8 = vmmov %vm12916_vm4  ;;  %v12919_v18 = vld [vmem:[#allocation61_spill] sm:$0xff] }
 0x3bc   : > { %12908 = vst [vmem:[#allocation57_spill] sm:$0xff] %v12907_v2  ;;  %v12917_v0 = vld [vmem:[#allocation55_spill] sm:$0xff]  ;;  %v8845_v47 = vsel %vm8437_vm6, %v2972_v15, %v12919_v18  ;;  %vm12932_vm6 = vcmask 261120  }
 0x3bd   : > { %v8801_v62 = vpop.f32.mrf.mxu2  ;;  %12911 = vst [vmem:[#allocation46_spill] sm:$0xff] %v8827_v21 }
 0x3be   : > { %1911 = vrot.lane.b32.xlu1 %v8799_v59, %s6922_s27  ;;  %2997 = vrot.lane.b32.xlu0 %v8801_v62, %s6921_s6 }
 0x3bf   : > { %6131 = vmatmul.msk.bf16.gmra.mxu3 %vm12901_vm0, %v12900_v28  ;;  %v1884_v28 = vpop.permute.xlu0 %1883 }
 0x3c0   : > { %v8811_v16 = vsel %vm8792_vm3, %v1884_v28, %v8423_v41  ;;  %v1434_v28 = vand.u32 2, %v8435_v19  ;;  %v1435_v19 = vand.u32 2, %v8402_v32 }
 0x3c1   : > { %1963 = vrot.lane.b32.xlu2 %v8811_v16, %s6923_s25 }
 0x3c2   : > { %vm8834_vm0 = vcmp.ne.s32.totalorder %v1434_v28, 0 }
 0x3c3   : > { %v12913_v4 = vsel %vm8834_vm0, 4294967295, %v12912_v4 }
 0x3c4   : > { %12914 = vst [vmem:[#allocation53_spill] sm:$0xff] %v12913_v4 }
 0x3c5   : > { %v1888_v41 = vpop.permute.xlu1 %1887 }
 0x3c6   : > { %3017 = vrot.lane.b32.xlu1 %v8827_v21, %s6922_s27  ;;  %1913 = vrot.lane.b32.xlu0 %v8822_v9, %s6922_s27  ;;  %v8850_v21 = vsel %vm8834_vm0, %v1886_v33, %v8481_v50  ;;  %v12921_v50 = vmov 0  ;;  %v12924_v33 = vmov 0 }
 0x3c7   : > { %v1890_v42 = vpop.permute.xlu0 %1889 }
 0x3ca   : > { %6149 = vmatmul.msk.bf16.gmra.mxu2 %vm12916_vm4, %v12915_v13 }
 0x3cd   : > { %v2974_v28 = vpop.permute.xlu1 %2973 }
 0x3ce   : > { %v8856_v13 = vsel %vm8441_vm7, %v2974_v28, %v8373_v3  ;;  %3019 = vrot.lane.b32.xlu0 %v8845_v47, %s6922_s27  ;;  %1965 = vrot.lane.b32.xlu1 %v8850_v21, %s6923_s25  ;;  %vm12934_vm7 = vmmov %vm12932_vm6 }
 0x3cf   : > { %6132 = vmatmul.msk.bf16.gmra.mxu3 %vm12918_vm8, %v12917_v0  ;;  %v2976_v15 = vpop.permute.xlu0 %2975  ;;  %v12920_v0 = vld [vmem:[#allocation78_spill] sm:$0xff]  ;;  %3021 = vrot.lane.b32.xlu2 %v8856_v13, %s6922_s27  ;;  %vm8865_vm8 = vcmp.ne.s32.totalorder %v1435_v19, 0  ;;  %v1437_v19 = vand.u32 2, %v8476_v43 }
 0x3d0   : > { %v1436_v18 = vand.u32 2, %v12920_v0  ;;  %v12922_v50 = vsel %vm8865_vm8, 4294967295, %v12921_v50  ;;  %v8876_v3 = vsel %vm8865_vm8, %v1888_v41, %v8448_v14  ;;  %v8881_v28 = vsel %vm8507_vm9, %v2976_v15, %v8391_v30  ;;  %v1892_v15 = vpop.permute.xlu2 %1891 }
 0x3d1   : > { %12923 = vst [vmem:[#allocation56_spill] sm:$0xff] %v12922_v50  ;;  %v1439_v30 = vand.u32 2, %v8520_v57  ;;  %vm8896_vm9 = vcmp.ne.s32.totalorder %v1437_v19, 0  ;;  %v12928_v41 = vmov 0 }
 0x3d2   : > { %vm8869_vm4 = vcmp.ne.s32.totalorder %v1436_v18, 0  ;;  %v12929_v41 = vsel %vm8896_vm9, 4294967295, %v12928_v41  ;;  %v8911_v43 = vsel %vm8896_vm9, %v1892_v15, %v8525_v46 }
 0x3d3   : > { %v12925_v33 = vsel %vm8869_vm4, 4294967295, %v12924_v33  ;;  %v8887_v18 = vsel %vm8869_vm4, %v1890_v42, %v12927_v23  ;;  %12930 = vst [vmem:[#allocation63_spill] sm:$0xff] %v12929_v41  ;;  %v12933_v23 = vld [vmem:[#allocation65_spill] sm:$0xff]  ;;  %vm8904_vm4 = vcmp.ne.s32.totalorder %v1439_v30, 0  ;;  %v12935_v42 = vmov 0 }
 0x3d4   : > { %12926 = vst [vmem:[#allocation58_spill] sm:$0xff] %v12925_v33  ;;  %v12936_v42 = vsel %vm8904_vm4, 4294967295, %v12935_v42 }
 0x3d5   : > { %v2978_v44 = vpop.permute.xlu1 %2977  ;;  %12937 = vst [vmem:[#allocation55_spill] sm:$0xff] %v12936_v42 }
 0x3d6   : > { %1967 = vrot.lane.b32.xlu0 %v8876_v3, %s6923_s25  ;;  %3023 = vrot.lane.b32.xlu1 %v8881_v28, %s6922_s27  ;;  %v8916_v19 = vsel %vm8548_vm11, %v2978_v44, %v8431_v51  ;;  %v12938_v51 = vmov 0  ;;  %vm8966_vm11 = vcmp.ne.s32.totalorder %v1442_v1, 0 }
 0x3d7   : > { %v2980_v14 = vpop.permute.xlu0 %2979  ;;  %1969 = vrot.lane.b32.xlu2 %v8887_v18, %s6923_s25  ;;  %v12948_v10 = vsel %vm8966_vm11, 4294967295, %v12947_v10 }
 0x3d8   : > { %v8937_v44 = vsel %vm8552_vm12, %v2980_v14, %v8468_v39  ;;  %v12942_v39 = vmov 0  ;;  %v1898_v14 = vpop.permute.xlu2 %1897  ;;  %vm12946_vm12 = vcmask 261120   ;;  %12949 = vst [vmem:[#allocation71_spill] sm:$0xff] %v12948_v10 }
 0x3da   : > { %6150 = vmatmul.msk.bf16.gmra.mxu2 %vm12932_vm6, %v12931_v8  ;;  %v1438_v8 = vand.u32 2, %v8517_v63 }
 0x3dc   : > { %vm8930_vm6 = vcmp.ne.s32.totalorder %v1438_v8, 0 }
 0x3dd   : > { %v12939_v51 = vsel %vm8930_vm6, 4294967295, %v12938_v51 }
 0x3de   : > { %3025 = vrot.lane.b32.xlu0 %v8916_v19, %s6922_s27  ;;  %1971 = vrot.lane.b32.xlu1 %v8911_v43, %s6923_s25  ;;  %12940 = vst [vmem:[#allocation61_spill] sm:$0xff] %v12939_v51 }
 0x3df   : > { %6133 = vmatmul.msk.bf16.gmra.mxu3 %vm12934_vm7, %v12933_v23  ;;  %v1894_v57 = vpop.permute.xlu1 %1893 }
 0x3e0   : > { %v8942_v15 = vsel %vm8930_vm6, %v1894_v57, %v8565_v49 }
 0x3e2   : > { %v1896_v30 = vpop.permute.xlu0 %1895 }
 0x3e3   : > { %v8926_v46 = vsel %vm8904_vm4, %v1896_v30, %v8574_v12  ;;  %v12941_v12 = vld [vmem:[#allocation90_spill] sm:$0xff] }
 0x3e4   : > { %1975 = vrot.lane.b32.xlu2 %v8926_v46, %s6923_s25  ;;  %v1440_v30 = vand.u32 2, %v12941_v12 }
 0x3e6   : > { %1973 = vrot.lane.b32.xlu0 %v8942_v15, %s6923_s25  ;;  %3027 = vrot.lane.b32.xlu1 %v8937_v44, %s6922_s27  ;;  %vm8950_vm7 = vcmp.ne.s32.totalorder %v1440_v30, 0  ;;  %v1441_v30 = vand.u32 2, %v8595_v61 }
 0x3e7   : > { %v2982_v23 = vpop.permute.xlu1 %2981  ;;  %v12943_v39 = vsel %vm8950_vm7, 4294967295, %v12942_v39  ;;  %v8959_v57 = vsel %vm8950_vm7, %v1898_v14, %v8560_v54  ;;  %v2986_v14 = vpop.permute.xlu2 %2985 }
 0x3e8   : > { %12944 = vst [vmem:[#allocation84_spill] sm:$0xff] %v12943_v39  ;;  %v8964_v49 = vsel %vm8542_vm10, %v2982_v23, %v8514_v22  ;;  %v12950_v22 = vmov 0 }
 0x3ea   : > { %v2984_v8 = vpop.permute.xlu0 %2983 }
 0x3eb   : > { %v8989_v1 = vsel %vm8624_vm13, %v2984_v8, %v8546_v40  ;;  %v1445_v40 = vand.u32 2, %v8688_v36  ;;  %vm12965_vm13 = vnez %v12875_v5 }
 0x3ed   : > { %vm9018_vm10 = vcmp.ne.s32.totalorder %v1445_v40, 0 }
 0x3ee   : > { %3029 = vrot.lane.b32.xlu0 %v8964_v49, %s6922_s27  ;;  %1977 = vrot.lane.b32.xlu1 %v8959_v57, %s6923_s25  ;;  %v12955_v29 = vsel %vm9018_vm10, 4294967295, %v12954_v29 }
 0x3ef   : > { %6134 = vmatmul.msk.bf16.gmra.mxu3 %vm12946_vm12, %v12945_v7  ;;  %v1900_v12 = vpop.permute.xlu1 %1899  ;;  %vm8982_vm12 = vcmp.ne.s32.totalorder %v1441_v30, 0  ;;  %12956 = vst [vmem:[#allocation68_spill] sm:$0xff] %v12955_v29  ;;  %v1904_v40 = vpop.permute.xlu2 %1903 }
 0x3f0   : > { %v12951_v22 = vsel %vm8982_vm12, 4294967295, %v12950_v22  ;;  %v8994_v23 = vsel %vm8982_vm12, %v1900_v12, %v8643_v58  ;;  %v12953_v58 = vld [vmem:[#allocation97_spill] sm:$0xff] }
 0x3f1   : > { %12952 = vst [vmem:[#allocation65_spill] sm:$0xff] %v12951_v22  ;;  %v9011_v12 = vsel %vm8636_vm15, %v2986_v14, %v12953_v58  ;;  %vm9039_vm15 = vcmp.ne.s32.totalorder %v1444_v26, 0  ;;  %v12961_v58 = vmov 0 }
 0x3f2   : > { %v1902_v7 = vpop.permute.xlu0 %1901  ;;  %v12962_v58 = vsel %vm9039_vm15, 4294967295, %v12961_v58 }
 0x3f3   : > { %v8978_v54 = vsel %vm8966_vm11, %v1902_v7, %v8666_v45 }
 0x3f4   : > { %1981 = vrot.lane.b32.xlu2 %v8978_v54, %s6923_s25 }
 0x3f6   : > { %1979 = vrot.lane.b32.xlu0 %v8994_v23, %s6923_s25  ;;  %3031 = vrot.lane.b32.xlu1 %v8989_v1, %s6922_s27 }
 0x3f7   : > { %v2988_v30 = vpop.permute.xlu1 %2987 }
 0x3f8   : > { %v9016_v8 = vsel %vm8628_vm14, %v2988_v30, %v8645_v6  ;;  %v12958_v30 = vmov 0 }
 0x3fa   : > { %v2990_v45 = vpop.permute.xlu0 %2989 }
 0x3fb   : > { %v9003_v7 = vsel %vm8709_vm2, %v2990_v45, %v8701_v55  ;;  %v12957_v55 = vld [vmem:[#allocation19_spill] sm:$0xff]  ;;  %vm12964_vm2 = vnez %v12882_v53  ;;  %v1447_v53 = vand.u32 2, %v8769_v24 }
 0x3fc   : > { %3037 = vrot.lane.b32.xlu2 %v9003_v7, %s6922_s27  ;;  %v1443_v45 = vand.u32 2, %v12957_v55  ;;  %12963 = vst [vmem:[#allocation19_spill] sm:$0xff] %v12962_v58  ;;  %v13031_v58 = vmov 0 }
 0x3fe   : > { %3033 = vrot.lane.b32.xlu0 %v9011_v12, %s6922_s27  ;;  %3035 = vrot.lane.b32.xlu1 %v9016_v8, %s6922_s27  ;;  %vm9035_vm14 = vcmp.ne.s32.totalorder %v1443_v45, 0 }
 0x3ff   : > { %v12959_v30 = vsel %vm9035_vm14, 4294967295, %v12958_v30  ;;  %v1906_v11 = vpop.permute.xlu1 %1905  ;;  %v9046_v60 = vsel %vm9035_vm14, %v1904_v40, %v8650_v20  ;;  %v1446_v20 = vand.u32 2, %v8633_v35  ;;  %v1910_v40 = vpop.permute.xlu2 %1909 }
 0x400   : > { %12960 = vst [vmem:[#allocation97_spill] sm:$0xff] %v12959_v30 }
 0x402   : > { %v1908_v14 = vpop.permute.xlu0 %1907 }
 0x403   : > { %v9031_v6 = vsel %vm9018_vm10, %v1908_v14, %v8737_v31  ;;  %v9051_v31 = vsel %vm9039_vm15, %v1906_v11, %v8720_v37  ;;  %vm9070_vm10 = vcmp.ne.s32.totalorder %v1446_v20, 0  ;;  %v12966_v37 = vmov 0 }
 0x404   : > { %1987 = vrot.lane.b32.xlu2 %v9031_v6, %s6923_s25  ;;  %v12967_v37 = vsel %vm9070_vm10, 4294967295, %v12966_v37 }
 0x405   : > { %12968 = vst [vmem:[#allocation106_spill] sm:$0xff] %v12967_v37 }
 0x406   : > { %1985 = vrot.lane.b32.xlu0 %v9051_v31, %s6923_s25  ;;  %1983 = vrot.lane.b32.xlu1 %v9046_v60, %s6923_s25 }
 0x408   : > { %v2992_v26 = vpop.permute.xlu1 %2991 }
 0x409   : > { %v9060_v45 = vsel %vm12964_vm2, %v2992_v26, %v8747_v34  ;;  %v9079_v34 = vsel %vm9070_vm10, %v1910_v40, %v8693_v56  ;;  %v3016_v26 = vpop.permute.xlu2 %3015  ;;  %v12970_v40 = vmov 0  ;;  %vm9096_vm2 = vcmp.ne.s32.totalorder %v1447_v53, 0 }
 0x40a   : > { %12969 = vst [vmem:[#allocation107_spill] sm:$0xff] %v9079_v34  ;;  %v12974_v17 = vsel %vm9096_vm2, 4294967295, %v12973_v17  ;;  %v1468_v53 = vand.u32 4, %v12920_v0 }
 0x40b   : > { %12975 = vst [vmem:[#allocation109_spill] sm:$0xff] %v12974_v17 }
 0x40e   : > { %3039 = vrot.lane.b32.xlu1 %v9060_v45, %s6922_s27 }
 0x410   : > { %v2994_v14 = vpop.permute.xlu0 %2993 }
 0x411   : > { %v9068_v11 = vsel %vm12965_vm13, %v2994_v14, %v8757_v25  ;;  %v1465_v14 = vand.u32 4, %v8385_v48  ;;  %v12984_v48 = vld [vmem:[#allocation105_spill] sm:$0xff] }
 0x412   : > { %3041 = vrot.lane.b32.xlu2 %v9068_v11, %s6922_s27 }
 0x413   : > { %vm9092_vm13 = vcmp.ne.s32.totalorder %v1465_v14, 0 }
 0x414   : > { %v12971_v40 = vsel %vm9092_vm13, 4294967295, %v12970_v40 }
 0x415   : > { %12972 = vst [vmem:[#allocation108_spill] sm:$0xff] %v12971_v40  ;;  %v1502_v40 = vand.u32 8, %v8517_v63 }
 0x416   : > { %1989 = vrot.lane.b32.xlu1 %v9079_v34, %s6923_s25 }
 0x41b   : > { %v1964_v5 = vpop.permute.xlu2 %1963 }
 0x428   : > { %v2996_v25 = vpop.permute.xlu1 %2995 }
 0x429   : > { %v9086_v20 = vsel %vm8782_vm1, %v2996_v25, %v8774_v38  ;;  %v3022_v56 = vpop.permute.xlu2 %3021  ;;  %v9103_v38 = vsel %vm9092_vm13, %v1964_v5, %v8811_v16  ;;  %v12977_v5 = vld [vmem:[#allocation50_spill] sm:$0xff]  ;;  %vm9123_vm1 = vcmp.ne.s32.totalorder %v1468_v53, 0 }
 0x42a   : > { %3043 = vrot.lane.b32.xlu1 %v9086_v20, %s6922_s27  ;;  %12976 = vst [vmem:[#allocation110_spill] sm:$0xff] %v9103_v38  ;;  %v1448_v16 = vand.u32 2, %v12977_v5 }
 0x430   : > { %v1912_v34 = vpop.permute.xlu1 %1911  ;;  %v2998_v52 = vpop.permute.xlu0 %2997 }
 0x431   : > { %v9108_v25 = vsel %vm9096_vm2, %v1912_v34, %v8799_v59  ;;  %v9113_v14 = vsel %vm8815_vm5, %v2998_v52, %v8801_v62  ;;  %v12978_v59 = vmov 0  ;;  %v1970_v62 = vpop.permute.xlu2 %1969  ;;  %vm9127_vm5 = vcmp.ne.s32.totalorder %v1448_v16, 0  ;;  %v12987_v16 = vld [vmem:[#allocation80_spill] sm:$0xff] }
 0x432   : > { %1991 = vrot.lane.b32.xlu0 %v9108_v25, %s6923_s25  ;;  %2043 = vrot.lane.b32.xlu1 %v9103_v38, %s6924_s28  ;;  %v12979_v59 = vsel %vm9123_vm1, 4294967295, %v12978_v59  ;;  %v12981_v52 = vmov 0  ;;  %v9134_v38 = vsel %vm8792_vm3, %v3016_v26, %v12984_v48  ;;  %v9139_v5 = vsel %vm9123_vm1, %v1970_v62, %v8887_v18 }
 0x433   : > { %3045 = vrot.lane.b32.xlu2 %v9113_v14, %s6922_s27  ;;  %12980 = vst [vmem:[#allocation111_spill] sm:$0xff] %v12979_v59  ;;  %v12982_v52 = vsel %vm9127_vm5, 4294967295, %v12981_v52  ;;  %v1466_v0 = vand.u32 4, %v12987_v16  ;;  %v12988_v48 = vmov 0 }
 0x434   : > { %12983 = vst [vmem:[#allocation112_spill] sm:$0xff] %v12982_v52 }
 0x435   : > { %12986 = vst [vmem:[#allocation105_spill] sm:$0xff] %v9139_v5  ;;  %vm9153_vm3 = vcmp.ne.s32.totalorder %v1466_v0, 0  ;;  %v1467_v0 = vand.u32 4, %v8402_v32 }
 0x436   : > { %v12989_v48 = vsel %vm9153_vm3, 4294967295, %v12988_v48 }
 0x437   : > { %12990 = vst [vmem:[#allocation113_spill] sm:$0xff] %v12989_v48  ;;  %vm9172_vm1 = vcmp.ne.s32.totalorder %v1467_v0, 0 }
 0x438   : > { %v3018_v34 = vpop.permute.xlu1 %3017  ;;  %v1914_v2 = vpop.permute.xlu0 %1913 }
 0x439   : > { %v9144_v53 = vsel %vm9127_vm5, %v1914_v2, %v8822_v9  ;;  %v12991_v9 = vld [vmem:[#allocation46_spill] sm:$0xff] }
 0x43a   : > { %3063 = vrot.lane.b32.xlu0 %v9134_v38, %s6923_s25  ;;  %2049 = vrot.lane.b32.xlu1 %v9139_v5, %s6924_s28  ;;  %v9165_v62 = vsel %vm8834_vm0, %v3018_v34, %v12991_v9  ;;  %v12992_v5 = vmov 0 }
 0x43b   : > { %1993 = vrot.lane.b32.xlu2 %v9144_v53, %s6923_s25  ;;  %v12993_v5 = vsel %vm9172_vm1, 4294967295, %v12992_v5 }
 0x43c   : > { %12994 = vst [vmem:[#allocation46_spill] sm:$0xff] %v12993_v5  ;;  %v13055_v5 = vld [vmem:[#allocation105_spill] sm:$0xff] }
 0x440   : > { %v1966_v18 = vpop.permute.xlu1 %1965  ;;  %v3020_v26 = vpop.permute.xlu0 %3019 }
 0x441   : > { %v9160_v2 = vsel %vm9153_vm3, %v1966_v18, %v8850_v21  ;;  %v9179_v18 = vsel %vm8865_vm8, %v3020_v26, %v8845_v47  ;;  %vm12995_vm8 = vnez %v12925_v33 }
 0x442   : > { %2045 = vrot.lane.b32.xlu0 %v9160_v2, %s6924_s28  ;;  %v9198_v47 = vsel %vm12995_vm8, %v3022_v56, %v8856_v13  ;;  %v13000_v56 = vld [vmem:[#allocation92_spill] sm:$0xff] }
 0x443   : > { %3065 = vrot.lane.b32.xlu2 %v9165_v62, %s6923_s25  ;;  %v1471_v33 = vand.u32 4, %v13000_v56 }
 0x448   : > { %v3024_v48 = vpop.permute.xlu1 %3023  ;;  %v1968_v21 = vpop.permute.xlu0 %1967 }
 0x449   : > { %v9184_v34 = vsel %vm9172_vm1, %v1968_v21, %v8876_v3  ;;  %v9193_v4 = vsel %vm8896_vm9, %v3024_v48, %v8881_v28  ;;  %v12996_v3 = vld [vmem:[#allocation86_spill] sm:$0xff]  ;;  %v12997_v21 = vmov 0 }
 0x44a   : > { %3067 = vrot.lane.b32.xlu0 %v9179_v18, %s6923_s25  ;;  %v1469_v26 = vand.u32 4, %v12996_v3 }
 0x44b   : > { %2047 = vrot.lane.b32.xlu2 %v9184_v34, %s6924_s28 }
 0x44c   : > { %vm9205_vm0 = vcmp.ne.s32.totalorder %v1469_v26, 0 }
 0x44d   : > { %v12998_v21 = vsel %vm9205_vm0, 4294967295, %v12997_v21 }
 0x44e   : > { %12999 = vst [vmem:[#allocation86_spill] sm:$0xff] %v12998_v21 }
 0x450   : > { %v1972_v9 = vpop.permute.xlu1 %1971  ;;  %v3026_v0 = vpop.permute.xlu0 %3025 }
 0x451   : > { %v9212_v48 = vsel %vm9205_vm0, %v1972_v9, %v8911_v43  ;;  %v9223_v26 = vsel %vm8930_vm6, %v3026_v0, %v8916_v19  ;;  %v1470_v43 = vand.u32 4, %v8517_v63  ;;  %v13004_v9 = vmov 0 }
 0x452   : > { %3071 = vrot.lane.b32.xlu0 %v9193_v4, %s6923_s25 }
 0x453   : > { %3069 = vrot.lane.b32.xlu2 %v9198_v47, %s6923_s25  ;;  %vm9236_vm8 = vcmp.ne.s32.totalorder %v1470_v43, 0  ;;  %v13008_v43 = vld [vmem:[#allocation90_spill] sm:$0xff] }
 0x454   : > { %v13005_v9 = vsel %vm9236_vm8, 4294967295, %v13004_v9  ;;  %v1472_v41 = vand.u32 4, %v13008_v43 }
 0x455   : > { %13006 = vst [vmem:[#allocation115_spill] sm:$0xff] %v13005_v9 }
 0x458   : > { %v3028_v50 = vpop.permute.xlu1 %3027  ;;  %v1974_v28 = vpop.permute.xlu0 %1973 }
 0x459   : > { %v9217_v13 = vsel %vm8904_vm4, %v3028_v50, %v8937_v44  ;;  %vm9232_vm4 = vcmp.ne.s32.totalorder %v1471_v33, 0  ;;  %v13001_v50 = vmov 0  ;;  %v1976_v44 = vpop.permute.xlu2 %1975  ;;  %v9253_v33 = vsel %vm9236_vm8, %v1974_v28, %v8942_v15 }
 0x45a   : > { %3075 = vrot.lane.b32.xlu1 %v9217_v13, %s6923_s25  ;;  %2051 = vrot.lane.b32.xlu0 %v9212_v48, %s6924_s28  ;;  %v13002_v50 = vsel %vm9232_vm4, 4294967295, %v13001_v50  ;;  %v9243_v42 = vsel %vm9232_vm4, %v1976_v44, %v8926_v46  ;;  %v1473_v46 = vand.u32 4, %v8595_v61  ;;  %v13012_v15 = vmov 0 }
 0x45b   : > { %3073 = vrot.lane.b32.xlu2 %v9223_v26, %s6923_s25  ;;  %13003 = vst [vmem:[#allocation114_spill] sm:$0xff] %v13002_v50 }
 0x45c   : > { %13007 = vst [vmem:[#allocation116_spill] sm:$0xff] %v9243_v42  ;;  %vm9267_vm6 = vcmp.ne.s32.totalorder %v1473_v46, 0  ;;  %v13015_v46 = vld [vmem:[#allocation98_spill] sm:$0xff] }
 0x45d   : > { %v13013_v15 = vsel %vm9267_vm6, 4294967295, %v13012_v15  ;;  %v1474_v56 = vand.u32 4, %v13015_v46 }
 0x45e   : > { %13014 = vst [vmem:[#allocation117_spill] sm:$0xff] %v13013_v15 }
 0x45f   : > { %vm9293_vm9 = vcmp.ne.s32.totalorder %v1474_v56, 0  ;;  %v1475_v56 = vand.u32 4, %v12957_v55 }
 0x460   : > { %v1978_v19 = vpop.permute.xlu1 %1977  ;;  %v3030_v0 = vpop.permute.xlu0 %3029 }
 0x461   : > { %v9248_v51 = vsel %vm8950_vm7, %v3030_v0, %v8964_v49  ;;  %vm9263_vm7 = vcmp.ne.s32.totalorder %v1472_v41, 0  ;;  %v13009_v49 = vmov 0  ;;  %v1982_v0 = vpop.permute.xlu2 %1981 }
 0x462   : > { %2055 = vrot.lane.b32.xlu1 %v9243_v42, %s6924_s28  ;;  %3077 = vrot.lane.b32.xlu0 %v9248_v51, %s6923_s25  ;;  %v13010_v49 = vsel %vm9263_vm7, 4294967295, %v13009_v49  ;;  %v9274_v39 = vsel %vm9263_vm7, %v1978_v19, %v8959_v57  ;;  %v13016_v57 = vmov 0 }
 0x463   : > { %2053 = vrot.lane.b32.xlu2 %v9253_v33, %s6924_s28  ;;  %13011 = vst [vmem:[#allocation90_spill] sm:$0xff] %v13010_v49  ;;  %v13017_v57 = vsel %vm9293_vm9, 4294967295, %v13016_v57  ;;  %v13069_v49 = vmov 0 }
 0x464   : > { %13018 = vst [vmem:[#allocation98_spill] sm:$0xff] %v13017_v57 }
 0x468   : > { %v3032_v28 = vpop.permute.xlu1 %3031  ;;  %v1980_v44 = vpop.permute.xlu0 %1979 }
 0x469   : > { %v9279_v42 = vsel %vm8982_vm12, %v3032_v28, %v8989_v1  ;;  %v9284_v41 = vsel %vm9267_vm6, %v1980_v44, %v8994_v23  ;;  %v9300_v23 = vsel %vm9293_vm9, %v1982_v0, %v8978_v54  ;;  %v1476_v54 = vand.u32 4, %v8680_v27  ;;  %v3038_v0 = vpop.permute.xlu2 %3037 }
 0x46a   : > { %3079 = vrot.lane.b32.xlu1 %v9279_v42, %s6923_s25  ;;  %2057 = vrot.lane.b32.xlu0 %v9274_v39, %s6924_s28  ;;  %v9331_v30 = vsel %vm9039_vm15, %v3038_v0, %v9003_v7  ;;  %vm13030_vm12 = vnez %v12955_v29 }
 0x46b   : > { %2059 = vrot.lane.b32.xlu2 %v9284_v41, %s6924_s28  ;;  %13025 = vst [vmem:[#allocation120_spill] sm:$0xff] %v9331_v30 }
 0x470   : > { %v3036_v1 = vpop.permute.xlu1 %3035  ;;  %v3034_v19 = vpop.permute.xlu0 %3033 }
 0x471   : > { %v9305_v28 = vsel %vm9035_vm14, %v3036_v1, %v9016_v8  ;;  %v9310_v44 = vsel %vm8966_vm11, %v3034_v19, %v9011_v12  ;;  %vm9320_vm14 = vcmp.ne.s32.totalorder %v1475_v56, 0  ;;  %v13019_v8 = vmov 0  ;;  %v1988_v7 = vpop.permute.xlu2 %1987 }
 0x472   : > { %2061 = vrot.lane.b32.xlu1 %v9300_v23, %s6924_s28  ;;  %3081 = vrot.lane.b32.xlu0 %v9310_v44, %s6923_s25  ;;  %v13020_v8 = vsel %vm9320_vm14, 4294967295, %v13019_v8  ;;  %vm9324_vm11 = vcmp.ne.s32.totalorder %v1476_v54, 0  ;;  %v13022_v12 = vmov 0  ;;  %v1477_v54 = vand.u32 4, %v8688_v36 }
 0x473   : > { %3083 = vrot.lane.b32.xlu2 %v9305_v28, %s6923_s25  ;;  %13021 = vst [vmem:[#allocation118_spill] sm:$0xff] %v13020_v8  ;;  %v13023_v12 = vsel %vm9324_vm11, 4294967295, %v13022_v12 }
 0x474   : > { %13024 = vst [vmem:[#allocation119_spill] sm:$0xff] %v13023_v12  ;;  %vm9350_vm15 = vcmp.ne.s32.totalorder %v1477_v54, 0 }
 0x478   : > { %v1984_v1 = vpop.permute.xlu1 %1983  ;;  %v1986_v19 = vpop.permute.xlu0 %1985 }
 0x479   : > { %v9336_v10 = vsel %vm9320_vm14, %v1984_v1, %v9046_v60  ;;  %v9341_v56 = vsel %vm9324_vm11, %v1986_v19, %v9051_v31  ;;  %v13027_v60 = vmov 0  ;;  %v9357_v31 = vsel %vm9350_vm15, %v1988_v7, %v9031_v6  ;;  %v3042_v54 = vpop.permute.xlu2 %3041 }
 0x47a   : > { %13026 = vst [vmem:[#allocation121_spill] sm:$0xff] %v9336_v10  ;;  %3085 = vrot.lane.b32.xlu1 %v9331_v30, %s6923_s25  ;;  %2063 = vrot.lane.b32.xlu0 %v9336_v10, %s6924_s28  ;;  %v13028_v60 = vsel %vm9350_vm15, 4294967295, %v13027_v60  ;;  %v1478_v19 = vand.u32 4, %v8633_v35  ;;  %v9376_v7 = vsel %vm9070_vm10, %v3042_v54, %v9068_v11  ;;  %v1479_v54 = vand.u32 4, %v8769_v24  ;;  %v13038_v24 = vld [vmem:[#allocation50_spill] sm:$0xff] }
 0x47b   : > { %2065 = vrot.lane.b32.xlu2 %v9341_v56, %s6924_s28  ;;  %13029 = vst [vmem:[#allocation122_spill] sm:$0xff] %v13028_v60  ;;  %v1480_v30 = vand.u32 4, %v13038_v24 }
 0x47c   : > { %vm9369_vm11 = vcmp.ne.s32.totalorder %v1478_v19, 0  ;;  %vm9397_vm10 = vcmp.ne.s32.totalorder %v1479_v54, 0 }
 0x47d   : > { %v13032_v58 = vsel %vm9369_vm11, 4294967295, %v13031_v58 }
 0x47e   : > { %13033 = vst [vmem:[#allocation123_spill] sm:$0xff] %v13032_v58 }
 0x480   : > { %v3040_v0 = vpop.permute.xlu1 %3039 }
 0x481   : > { %v9362_v1 = vsel %vm13030_vm12, %v3040_v0, %v9060_v45  ;;  %v13034_v45 = vld [vmem:[#allocation107_spill] sm:$0xff] }
 0x482   : > { %2067 = vrot.lane.b32.xlu1 %v9357_v31, %s6924_s28 }
 0x483   : > { %3087 = vrot.lane.b32.xlu2 %v9362_v1, %s6923_s25 }
 0x488   : > { %v1990_v6 = vpop.permute.xlu1 %1989 }
 0x489   : > { %v9381_v0 = vsel %vm9369_vm11, %v1990_v6, %v13034_v45  ;;  %v13035_v6 = vmov 0 }
 0x48a   : > { %3089 = vrot.lane.b32.xlu1 %v9376_v7, %s6923_s25  ;;  %2069 = vrot.lane.b32.xlu0 %v9381_v0, %s6924_s28  ;;  %v13036_v6 = vsel %vm9397_vm10, 4294967295, %v13035_v6 }
 0x48b   : > { %13037 = vst [vmem:[#allocation107_spill] sm:$0xff] %v13036_v6 }
 0x48d   : > { %v3046_v19 = vpop.permute.xlu2 %3045 }
 0x495   : > { %v1994_v29 = vpop.permute.xlu2 %1993 }
 0x49c   : > { %v3044_v22 = vpop.permute.xlu1 %3043 }
 0x49d   : > { %v9390_v37 = vsel %vm9096_vm2, %v3044_v22, %v9086_v20  ;;  %v9392_v11 = vpop.permute.xlu2 %3065  ;;  %v9413_v20 = vsel %vm9127_vm5, %v3046_v19, %v9113_v14  ;;  %vm9426_vm2 = vcmp.ne.s32.totalorder %v1480_v30, 0  ;;  %v13042_v14 = vmov 0 }
 0x49e   : > { %3091 = vrot.lane.b32.xlu0 %v9390_v37, %s6923_s25  ;;  %v9437_v19 = vsel %vm9426_vm2, %v1994_v29, %v9144_v53 }
 0x4a4   : > { %v1992_v45 = vpop.permute.xlu0 %1991  ;;  %v2044_v30 = vpop.permute.xlu1 %2043 }
 0x4a5   : > { %v9401_v12 = vpop.permute.xlu2 %2047  ;;  %v9406_v17 = vsel %vm9397_vm10, %v1992_v45, %v9108_v25  ;;  %v1498_v25 = vand.u32 8, %v12987_v16  ;;  %v13039_v45 = vmov 0  ;;  %v13062_v16 = vlaneseq }
 0x4a6   : > { %2071 = vrot.lane.b32.xlu2 %v9406_v17, %s6924_s28  ;;  %v13040_v45 = vsel %vm9426_vm2, 4294967295, %v13039_v45 }
 0x4a7   : > { %13041 = vst [vmem:[#allocation50_spill] sm:$0xff] %v13040_v45  ;;  %vm9430_vm5 = vcmp.ne.s32.totalorder %v1498_v25, 0 }
 0x4a8   : > { %v13043_v14 = vsel %vm9430_vm5, 4294967295, %v13042_v14 }
 0x4a9   : > { %13044 = vst [vmem:[#allocation124_spill] sm:$0xff] %v13043_v14 }
 0x4ac   : > { %v3064_v22 = vpop.permute.xlu0 %3063 }
 0x4ad   : > { %v9418_v54 = vsel %vm9092_vm13, %v3064_v22, %v9134_v38  ;;  %v3070_v10 = vpop.permute.xlu2 %3069  ;;  %vm13046_vm13 = vnez %v12979_v59 }
 0x4ae   : > { %3093 = vrot.lane.b32.xlu2 %v9413_v20, %s6923_s25  ;;  %3111 = vrot.lane.b32.xlu1 %v9418_v54, %s6924_s28  ;;  %v9453_v29 = vsel %vm13046_vm13, %v3070_v10, %v9198_v47  ;;  %v2050_v10 = vpop.permute.xlu1 %2049  ;;  %vm9470_vm13 = vcmp.ne.s32.totalorder %v1502_v40, 0  ;;  %v13052_v47 = vmov 0  ;;  %v13058_v40 = vld [vmem:[#allocation72_spill] sm:$0xff] }
 0x4af   : > { %v13053_v47 = vsel %vm9470_vm13, 4294967295, %v13052_v47  ;;  %v1497_v63 = vand.u32 8, %v13058_v40 }
 0x4b0   : > { %13054 = vst [vmem:[#allocation128_spill] sm:$0xff] %v13053_v47  ;;  %v12544_v47 = vmov 0.0  }
 0x4b4   : > { %v2046_v38 = vpop.permute.xlu0 %2045 }
 0x4b5   : > { %v9442_v22 = vsel %vm9430_vm5, %v2046_v38, %v9160_v2  ;;  %v9448_v25 = vpop.permute.xlu2 %3073  ;;  %v13048_v2 = vld [vmem:[#allocation78_spill] sm:$0xff] }
 0x4b6   : > { %13045 = vst [vmem:[#allocation125_spill] sm:$0xff] %v9442_v22  ;;  %2073 = vrot.lane.b32.xlu1 %v9437_v19, %s6924_s28  ;;  %2125 = vrot.lane.b32.xlu0 %v9442_v22, %s6925_s21  ;;  %v1500_v38 = vand.u32 8, %v13048_v2  ;;  %v13049_v22 = vmov 0 }
 0x4b7   : > { %v13129_v9 = vld [vmem:[#allocation128_spill] sm:$0xff] }
 0x4b8   : > { %vm9466_vm12 = vcmp.ne.s32.totalorder %v1500_v38, 0 }
 0x4b9   : > { %v13050_v22 = vsel %vm9466_vm12, 4294967295, %v13049_v22  ;;  %v9479_v59 = vsel %vm9466_vm12, %v2050_v10, %v13055_v5  ;;  %v9496_v5 = vand.u32 127, %v13062_v16  ;;  %v2500_v16 = vpop.f32.mrf.mxu0 }
 0x4ba   : > { %13051 = vst [vmem:[#allocation127_spill] sm:$0xff] %v13050_v22  ;;  %v13112_v22 = vmov 0.0  }
 0x4bb   : > { %13056 = vst [vmem:[#allocation105_spill] sm:$0xff] %v9479_v59 }
 0x4bc   : > { %v3068_v52 = vpop.permute.xlu0 %3067 }
 0x4bd   : > { %v9458_v53 = vsel %vm9172_vm1, %v3068_v52, %v9179_v18  ;;  %v2054_v52 = vpop.permute.xlu2 %2053  ;;  %vm9491_vm1 = vcmp.ne.s32.totalorder %v1497_v63, 0  ;;  %v13064_v63 = vld [vmem:[#allocation70_spill] sm:$0xff] }
 0x4be   : > { %13047 = vst [vmem:[#allocation126_spill] sm:$0xff] %v9458_v53  ;;  %3117 = vrot.lane.b32.xlu0 %v9453_v29, %s6924_s28  ;;  %3115 = vrot.lane.b32.xlu1 %v9458_v53, %s6924_s28  ;;  %v9484_v38 = vsel %vm9470_vm13, %v2054_v52, %v9253_v33  ;;  %v13059_v53 = vmov 0  ;;  %v13063_v52 = vld [vmem:[#allocation110_spill] sm:$0xff]  ;;  %vm1321_vm13 = vcmp.gt.s32.totalorder %v9496_v5, %v13064_v63  ;;  %v13066_v63 = vmov 0 }
 0x4bf   : > { %13057 = vst [vmem:[#allocation129_spill] sm:$0xff] %v9484_v38  ;;  %v13060_v53 = vsel %vm9491_vm1, 4294967295, %v13059_v53 }
 0x4c0   : > { %13061 = vst [vmem:[#allocation72_spill] sm:$0xff] %v13060_v53 }
 0x4c4   : > { %v9474_v18 = vpop.permute.xlu0 %3071 }
 0x4c6   : > { %2133 = vrot.lane.b32.xlu0 %v9484_v38, %s6925_s21  ;;  %2129 = vrot.lane.b32.xlu1 %v9479_v59, %s6925_s21  ;;  %v2107_v38 = vsel %vm9491_vm1, %v2044_v30, %v13063_v52  ;;  %v9513_v59 = vsel %vm1321_vm13, -1e+09, %v12544_v47  ;;  %v2060_v52 = vpop.permute.xlu2 %2059 }
 0x4c7   : > { %v2501_v40 = vadd.f32 %v2500_v16, %v2107_v38  ;;  %13065 = vst [vmem:[#allocation110_spill] sm:$0xff] %v9513_v59  ;;  %v1504_v38 = vand.u32 8, %v13008_v43 }
 0x4c9   : > { %v9523_v30 = vadd.f32 %v2501_v40, %v9513_v59  ;;  %vm9529_vm13 = vcmp.ne.s32.totalorder %v1504_v38, 0  ;;  %v1506_v38 = vand.u32 8, %v13015_v46 }
 0x4ca   : > { %v13067_v63 = vsel %vm9529_vm13, 4294967295, %v13066_v63 }
 0x4cb   : > { %13068 = vst [vmem:[#allocation70_spill] sm:$0xff] %v13067_v63 }
 0x4cc   : > { %v3076_v10 = vpop.permute.xlu1 %3075  ;;  %v9498_v2 = vpop.permute.xlu0 %2051 }
 0x4cd   : > { %v9503_v33 = vsel %vm9232_vm4, %v3076_v10, %v9217_v13  ;;  %vm9553_vm4 = vcmp.ne.s32.totalorder %v1506_v38, 0 }
 0x4ce   : > { %3123 = vrot.lane.b32.xlu1 %v9503_v33, %s6924_s28 }
 0x4d4   : > { %v9515_v14 = vpop.permute.xlu1 %2055  ;;  %v3078_v13 = vpop.permute.xlu0 %3077 }
 0x4d5   : > { %v9520_v10 = vsel %vm9263_vm7, %v3078_v13, %v9248_v51  ;;  %v1505_v13 = vand.u32 8, %v8595_v61 }
 0x4d6   : > { %3125 = vrot.lane.b32.xlu0 %v9520_v10, %s6924_s28 }
 0x4d7   : > { %2556 = vmax.xlane.f32.xlu2 %v9523_v30  ;;  %vm9549_vm7 = vcmp.ne.s32.totalorder %v1505_v13, 0 }
 0x4d8   : > { %v13070_v49 = vsel %vm9549_vm7, 4294967295, %v13069_v49  ;;  %v2115_v61 = vsel %vm9549_vm7, %v2060_v52, %v9284_v41  ;;  %v9582_v52 = vsel %vm9153_vm3, %v9392_v11, %v9165_v62  ;;  %v13079_v62 = vmov 0 }
 0x4d9   : > { %13071 = vst [vmem:[#allocation130_spill] sm:$0xff] %v13070_v49  ;;  %v13082_v11 = vmov 0 }
 0x4dc   : > { %v3080_v16 = vpop.permute.xlu1 %3079  ;;  %v2058_v47 = vpop.permute.xlu0 %2057 }
 0x4dd   : > { %v9536_v51 = vsel %vm9267_vm6, %v3080_v16, %v9279_v42  ;;  %v9541_v40 = vsel %vm9529_vm13, %v2058_v47, %v9274_v39  ;;  %v13072_v42 = vmov 0  ;;  %v3084_v39 = vpop.permute.xlu2 %3083 }
 0x4de   : > { %3127 = vrot.lane.b32.xlu0 %v9536_v51, %s6924_s28  ;;  %2137 = vrot.lane.b32.xlu1 %v9541_v40, %s6925_s21  ;;  %v13073_v42 = vsel %vm9553_vm4, 4294967295, %v13072_v42  ;;  %v9571_v50 = vsel %vm9320_vm14, %v3084_v39, %v9305_v28  ;;  %v1509_v28 = vand.u32 8, %v8688_v36  ;;  %v13076_v39 = vmov 0 }
 0x4df   : > { %13074 = vst [vmem:[#allocation131_spill] sm:$0xff] %v13073_v42 }
 0x4e4   : > { %v2062_v47 = vpop.permute.xlu1 %2061  ;;  %v3082_v13 = vpop.permute.xlu0 %3081 }
 0x4e5   : > { %v9563_v16 = vsel %vm9553_vm4, %v2062_v47, %v9300_v23  ;;  %v9576_v41 = vsel %vm9293_vm9, %v3082_v13, %v9310_v44  ;;  %v1508_v47 = vand.u32 8, %v8680_v27  ;;  %v1499_v44 = vand.u32 8, %v8402_v32 }
 0x4e6   : > { %2141 = vrot.lane.b32.xlu0 %v9563_v16, %s6925_s21  ;;  %2299 = vrot.lane.b32.xlu1 %v2115_v61, %s6920_s24  ;;  %v2066_v61 = vpop.permute.xlu2 %2065  ;;  %vm9597_vm9 = vcmp.ne.s32.totalorder %v1509_v28, 0 }
 0x4e7   : > { %vm9593_vm14 = vcmp.ne.s32.totalorder %v1508_v47, 0  ;;  %v13080_v62 = vsel %vm9597_vm9, 4294967295, %v13079_v62  ;;  %vm9601_vm6 = vcmp.ne.s32.totalorder %v1499_v44, 0 }
 0x4e8   : > { %v13077_v39 = vsel %vm9593_vm14, 4294967295, %v13076_v39  ;;  %13081 = vst [vmem:[#allocation133_spill] sm:$0xff] %v13080_v62  ;;  %v13083_v11 = vsel %vm9601_vm6, 4294967295, %v13082_v11  ;;  %v9608_v32 = vsel %vm9593_vm14, %v2066_v61, %v9341_v56  ;;  %v2109_v47 = vsel %vm9601_vm6, %v9401_v12, %v9184_v34 }
 0x4e9   : > { %13078 = vst [vmem:[#allocation132_spill] sm:$0xff] %v13077_v39  ;;  %v9635_v34 = vsel %vm9205_vm0, %v9474_v18, %v9193_v4  ;;  %v1510_v12 = vand.u32 8, %v8633_v35  ;;  %v13088_v18 = vmov 0 }
 0x4ea   : > { %13084 = vst [vmem:[#allocation134_spill] sm:$0xff] %v13083_v11 }
 0x4ec   : > { %v3086_v38 = vpop.permute.xlu1 %3085  ;;  %v2064_v44 = vpop.permute.xlu0 %2063 }
 0x4ee   : > { %3131 = vrot.lane.b32.xlu0 %v9571_v50, %s6924_s28  ;;  %3129 = vrot.lane.b32.xlu1 %v9576_v41, %s6924_s28  ;;  %v3088_v28 = vpop.permute.xlu2 %3087 }
 0x4ef   : > { %3113 = vrot.lane.b32.xlu2 %v9582_v52, %s6924_s28  ;;  %v9624_v61 = vsel %vm9350_vm15, %v3088_v28, %v9362_v1  ;;  %v1501_v1 = vand.u32 8, %v12996_v3  ;;  %vm9645_vm15 = vcmp.ne.s32.totalorder %v1510_v12, 0 }
 0x4f4   : > { %v2068_v13 = vpop.permute.xlu1 %2067 }
 0x4f5   : > { %v2119_v36 = vsel %vm9597_vm9, %v2068_v13, %v9357_v31  ;;  %v13085_v13 = vmov 0 }
 0x4f6   : > { %2227 = vrot.lane.b32.xlu0 %v2119_v36, %s6919_s19  ;;  %2145 = vrot.lane.b32.xlu1 %v9608_v32, %s6925_s21  ;;  %v13086_v13 = vsel %vm9645_vm15, 4294967295, %v13085_v13 }
 0x4f7   : > { %2127 = vrot.lane.b32.xlu2 %v2109_v47, %s6925_s21  ;;  %13087 = vst [vmem:[#allocation135_spill] sm:$0xff] %v13086_v13 }
 0x4fc   : > { %v3090_v56 = vpop.permute.xlu1 %3089  ;;  %v2070_v4 = vpop.permute.xlu0 %2069 }
 0x4fd   : > { %v9629_v31 = vsel %vm9369_vm11, %v3090_v56, %v9376_v7  ;;  %vm9649_vm11 = vcmp.ne.s32.totalorder %v1501_v1, 0  ;;  %v9656_v36 = vsel %vm9645_vm15, %v2070_v4, %v9381_v0  ;;  %v9674_v0 = vsel %vm9236_vm8, %v9448_v25, %v9223_v26  ;;  %v13095_v25 = vld [vmem:[#allocation116_spill] sm:$0xff] }
 0x4fe   : > { %3137 = vrot.lane.b32.xlu0 %v9629_v31, %s6924_s28  ;;  %3135 = vrot.lane.b32.xlu1 %v9624_v61, %s6924_s28  ;;  %v13089_v18 = vsel %vm9649_vm11, 4294967295, %v13088_v18  ;;  %v2111_v3 = vsel %vm9649_vm11, %v9498_v2, %v9212_v48  ;;  %v13091_v48 = vld [vmem:[#allocation92_spill] sm:$0xff]  ;;  %v13092_v26 = vmov 0  ;;  %v1507_v1 = vand.u32 8, %v12957_v55 }
 0x4ff   : > { %3119 = vrot.lane.b32.xlu2 %v9635_v34, %s6924_s28  ;;  %13090 = vst [vmem:[#allocation136_spill] sm:$0xff] %v13089_v18  ;;  %v1503_v2 = vand.u32 8, %v13091_v48  ;;  %v13096_v4 = vmov 0  ;;  %v1512_v48 = vand.u32 8, %v13038_v24  ;;  %v13103_v55 = vmov 0 }
 0x500   : > { %v2072_v7 = vpop.permute.xlu2 %2071  ;;  %vm9698_vm8 = vcmp.ne.s32.totalorder %v1507_v1, 0 }
 0x501   : > { %v13097_v4 = vsel %vm9698_vm8, 4294967295, %v13096_v4  ;;  %vm9712_vm0 = vcmp.ne.s32.totalorder %v1512_v48, 0 }
 0x502   : > { %13098 = vst [vmem:[#allocation116_spill] sm:$0xff] %v13097_v4  ;;  %v13104_v55 = vsel %vm9712_vm0, 4294967295, %v13103_v55 }
 0x506   : > { %2149 = vrot.lane.b32.xlu0 %v9656_v36, %s6925_s21 }
 0x507   : > { %2211 = vrot.lane.b32.xlu2 %v2111_v3, %s6919_s19 }
 0x508   : > { %v3094_v47 = vpop.permute.xlu2 %3093 }
 0x509   : > { %v9668_v28 = vsel %vm9426_vm2, %v3094_v47, %v9413_v20  ;;  %vm9688_vm2 = vcmp.ne.s32.totalorder %v1503_v2, 0  ;;  %v13100_v2 = vld [vmem:[#allocation120_spill] sm:$0xff] }
 0x50a   : > { %v13093_v26 = vsel %vm9688_vm2, 4294967295, %v13092_v26  ;;  %v2113_v12 = vsel %vm9688_vm2, %v9515_v14, %v13095_v25  ;;  %v13106_v25 = vld [vmem:[#allocation26_spill] sm:$0xff] }
 0x50b   : > { %13094 = vst [vmem:[#allocation92_spill] sm:$0xff] %v13093_v26 }
 0x50e   : > { %3141 = vrot.lane.b32.xlu0 %v9668_v28, %s6924_s28 }
 0x50f   : > { %3121 = vrot.lane.b32.xlu2 %v9674_v0, %s6924_s28 }
 0x510   : > { %v3092_v56 = vpop.permute.xlu0 %3091 }
 0x511   : > { %v9684_v20 = vsel %vm9397_vm10, %v3092_v56, %v9390_v37  ;;  %v13099_v37 = vld [vmem:[#allocation121_spill] sm:$0xff]  ;;  %v13101_v56 = vld [vmem:[#allocation119_spill] sm:$0xff] }
 0x512   : > { %3139 = vrot.lane.b32.xlu1 %v9684_v20, %s6924_s28  ;;  %v2117_v3 = vsel %vm9698_vm8, %v2064_v44, %v13099_v37  ;;  %vm13102_vm10 = vnez %v13101_v56  ;;  %13105 = vst [vmem:[#allocation121_spill] sm:$0xff] %v13104_v55  ;;  %v13114_v56 = vld [vmem:[#allocation78_spill] sm:$0xff] }
 0x513   : > { %v9710_v14 = vsel %vm13102_vm10, %v3086_v38, %v13100_v2  ;;  %v13107_v38 = vmov 0  ;;  %v1532_v8 = vand.u32 16, %v13114_v56 }
 0x517   : > { %2135 = vrot.lane.b32.xlu2 %v2113_v12, %s6925_s21  ;;  %v1511_v12 = vand.u32 8, %v13106_v25 }
 0x519   : > { %vm9726_vm10 = vcmp.ne.s32.totalorder %v1511_v12, 0 }
 0x51a   : > { %v13108_v38 = vsel %vm9726_vm10, 4294967295, %v13107_v38 }
 0x51b   : > { %13109 = vst [vmem:[#allocation120_spill] sm:$0xff] %v13108_v38 }
 0x51f   : > { %2143 = vrot.lane.b32.xlu2 %v2117_v3, %s6925_s21  ;;  %v2121_v3 = vsel %vm9726_vm10, %v2072_v7, %v9406_v17 }
 0x520   : > { %v3112_v47 = vpop.permute.xlu1 %3111 }
 0x521   : > { %v3143_v48 = vsel %vm9491_vm1, %v3112_v47, %v9418_v54  ;;  %v2502_v54 = vpop.f32.mrf.mxu0 }
 0x527   : > { %3133 = vrot.lane.b32.xlu2 %v9710_v14, %s6924_s28 }
 0x528   : > { %v2074_v44 = vpop.permute.xlu1 %2073  ;;  %v2126_v37 = vpop.permute.xlu0 %2125 }
 0x529   : > { %v9722_v1 = vsel %vm9712_vm0, %v2074_v44, %v9437_v19  ;;  %v3392_v19 = vpop.f32.mrf.mxu3 }
 0x52a   : > { %2153 = vrot.lane.b32.xlu1 %v9722_v1, %s6925_s21  ;;  %v3393_v2 = vadd.f32 %v3392_v19, %v3143_v48  ;;  %v13111_v19 = vld [vmem:[#allocation74_spill] sm:$0xff] }
 0x52c   : > { %v9743_v44 = vadd.f32 %v3393_v2, %v9513_v59  ;;  %v2505_v2 = vpop.f32.mrf.mxu0 }
 0x52f   : > { %2151 = vrot.lane.b32.xlu2 %v2121_v3, %s6925_s21 }
 0x530   : > { %v3118_v25 = vpop.permute.xlu0 %3117 }
 0x531   : > { %v9740_v12 = vsel %vm9466_vm12, %v3118_v25, %v9453_v29  ;;  %v9755_v29 = vpop.permute.xlu1 %3115  ;;  %vm1323_vm12 = vcmp.gt.s32.totalorder %v9496_v5, %v13111_v19 }
 0x532   : > { %v9762_v59 = vsel %vm1323_vm12, -1e+09, %v13112_v22  ;;  %vm9782_vm12 = vcmp.ne.s32.totalorder %v1532_v8, 0 }
 0x533   : > { %13113 = vst [vmem:[#allocation26_spill] sm:$0xff] %v9762_v59 }
 0x534   : > { %v9802_v8 = vpop.f32.mrf.mxu0 }
 0x537   : > { %3165 = vrot.lane.b32.xlu2 %v9740_v12, %s6925_s21 }
 0x538   : > { %3448 = vmax.xlane.f32.xlu0 %v9743_v44  ;;  %v9748_v7 = vpop.permute.xlu0 %2133 }
 0x548   : > { %v3126_v25 = vpop.permute.xlu0 %3125 }
 0x54a   : > { %v2557_v17 = vpop.xlane.xlu2 %2556 }
 0x550   : > { %v3128_v6 = vpop.permute.xlu0 %3127 }
 0x552   : > { %v3114_v47 = vpop.permute.xlu2 %3113 }
 0x553   : > { %v9753_v48 = vsel %vm9430_vm5, %v3114_v47, %v9582_v52  ;;  %v2130_v52 = vpop.permute.xlu1 %2129 }
 0x554   : > { %3161 = vrot.lane.b32.xlu1 %v9753_v48, %s6925_s21 }
 0x558   : > { %v9780_v57 = vpop.permute.xlu0 %2141 }
 0x55a   : > { %v2128_v53 = vpop.permute.xlu2 %2127 }
 0x55b   : > { %v2506_v45 = vadd.f32 %v2505_v2, %v2128_v53  ;;  %v3124_v19 = vpop.permute.xlu1 %3123  ;;  %v13115_v53 = vld [vmem:[#allocation80_spill] sm:$0xff] }
 0x55c   : > { %v1530_v2 = vand.u32 16, %v13115_v53  ;;  %v13123_v53 = vld [vmem:[#allocation125_spill] sm:$0xff] }
 0x55d   : > { %v9765_v60 = vadd.f32 %v2506_v45, %v9762_v59  ;;  %v3149_v45 = vsel %vm9688_vm2, %v3124_v19, %v9503_v33  ;;  %v9798_v19 = vsel %vm9529_vm13, %v3126_v25, %v9520_v10  ;;  %v2588_v10 = vsub.f32 %v9523_v30, %v2557_v17 }
 0x55e   : > { %vm9786_vm1 = vcmp.ne.s32.totalorder %v1530_v2, 0  ;;  %v13124_v2 = vld [vmem:[#allocation79_spill] sm:$0xff] }
 0x55f   : > { %2560 = vmax.xlane.f32.xlu0 %v9765_v60  ;;  %vm1322_vm2 = vcmp.gt.s32.totalorder %v9496_v5, %v13124_v2 }
 0x560   : > { %v9817_v26 = vpop.permute.xlu0 %3131  ;;  %v9820_v15 = vsel %vm1322_vm2, -1e+09, %v13112_v22 }
 0x562   : > { %v3120_v47 = vpop.permute.xlu2 %3119 }
 0x563   : > { %v3147_v3 = vsel %vm9649_vm11, %v3120_v47, %v9635_v34  ;;  %v13116_v34 = vmov 0  ;;  %v13122_v47 = vld [vmem:[#allocation105_spill] sm:$0xff]  ;;  %v2138_v63 = vpop.permute.xlu1 %2137  ;;  %vm13130_vm11 = vnez %v13129_v9 }
 0x564   : > { %3215 = vrot.lane.b32.xlu2 %v3147_v3, %s6919_s19  ;;  %v13117_v34 = vsel %vm9782_vm12, 4294967295, %v13116_v34  ;;  %v13119_v3 = vmov 0  ;;  %v9793_v18 = vsel %vm9782_vm12, %v2130_v52, %v13122_v47  ;;  %v2188_v52 = vsel %vm9786_vm1, %v2126_v37, %v13123_v53  ;;  %13128 = vst [vmem:[#allocation105_spill] sm:$0xff] %v9820_v15 }
 0x565   : > { %13118 = vst [vmem:[#allocation74_spill] sm:$0xff] %v13117_v34  ;;  %v13120_v3 = vsel %vm9786_vm1, 4294967295, %v13119_v3  ;;  %v2503_v25 = vadd.f32 %v2502_v54, %v2188_v52  ;;  %v13125_v47 = vmov 0  ;;  %v2604_v53 = vmul.f32 1.442695, %v2588_v10 }
 0x566   : > { %13121 = vst [vmem:[#allocation78_spill] sm:$0xff] %v13120_v3 }
 0x567   : > { %v9837_v54 = vadd.f32 %v2503_v25, %v9820_v15  ;;  %6427 = vpow2.f32 %v2604_v53 }
 0x56a   : > { %v9772_v58 = vpop.permute.xlu2 %2211 }
 0x56b   : > { %v2300_v10 = vpop.permute.xlu1 %2299 }
 0x56c   : > { %3171 = vrot.lane.b32.xlu2 %v3149_v45, %s6925_s21  ;;  %v1536_v45 = vand.u32 16, %v13008_v43 }
 0x56e   : > { %vm9813_vm13 = vcmp.ne.s32.totalorder %v1536_v45, 0  ;;  %v2510_v45 = vpop.f32.mrf.mxu0 }
 0x56f   : > { %v13126_v47 = vsel %vm9813_vm13, 4294967295, %v13125_v47  ;;  %v9830_v30 = vsel %vm9813_vm13, %v2138_v63, %v9541_v40  ;;  %v3151_v63 = vsel %vm9549_vm7, %v3128_v6, %v9536_v51  ;;  %v9845_v40 = vpop.eup %6427  ;;  %v1542_v51 = vand.u32 16, %v8633_v35 }
 0x570   : > { %13127 = vst [vmem:[#allocation80_spill] sm:$0xff] %v13126_v47 }
 0x571   : > { %vm9863_vm2 = vcmp.ne.s32.totalorder %v1542_v51, 0 }
 0x572   : > { %v3122_v33 = vpop.permute.xlu2 %3121 }
 0x573   : > { %2209 = vrot.lane.b32.xlu0 %v9793_v18, %s6919_s19  ;;  %v9825_v37 = vsel %vm13130_vm11, %v3122_v33, %v9674_v0  ;;  %v2228_v0 = vpop.permute.xlu0 %2227 }
 0x574   : > { %3173 = vrot.lane.b32.xlu2 %v9798_v19, %s6925_s21 }
 0x576   : > { %v9848_v52 = vpop.f32.mrf.mxu0 }
 0x57a   : > { %v2136_v17 = vpop.permute.xlu2 %2135 }
 0x57b   : > { %3169 = vrot.lane.b32.xlu0 %v9825_v37, %s6925_s21  ;;  %v9850_v2 = vpop.permute.xlu0 %3137 }
 0x57c   : > { %2217 = vrot.lane.b32.xlu2 %v9830_v30, %s6919_s19 }
 0x57e   : > { %2558 = vmax.xlane.f32.xlu1 %v9837_v54  ;;  %v9853_v53 = vpop.f32.mrf.mxu0 }
 0x582   : > { %v2144_v33 = vpop.permute.xlu2 %2143 }
 0x583   : > { %2215 = vrot.lane.b32.xlu0 %v2136_v17, %s6919_s19  ;;  %v2150_v17 = vpop.permute.xlu0 %2149 }
 0x584   : > { %3271 = vrot.lane.b32.xlu2 %v3151_v63, %s6920_s24  ;;  %v13131_v63 = vmov 0  ;;  %v2200_v49 = vsel %vm9863_vm2, %v2150_v17, %v9656_v36  ;;  %v13135_v36 = vld [vmem:[#allocation25_spill] sm:$0xff] }
 0x585   : > { %v13132_v63 = vsel %vm9863_vm2, 4294967295, %v13131_v63  ;;  %vm1329_vm7 = vcmp.gt.s32.totalorder %v9496_v5, %v13135_v36 }
 0x586   : > { %2636 = vadd.xlane.f32.xlu1 %v9845_v40  ;;  %13133 = vst [vmem:[#allocation125_spill] sm:$0xff] %v13132_v63  ;;  %v9870_v9 = vpop.f32.mrf.mxu0  ;;  %v9888_v11 = vsel %vm1329_vm7, -1e+09, %v13112_v22  ;;  %v13169_v63 = vld [vmem:[#allocation60_spill] sm:$0xff] }
 0x58a   : > { %v3134_v25 = vpop.permute.xlu2 %3133 }
 0x58b   : > { %v9858_v6 = vsel %vm9593_vm14, %v3134_v25, %v9710_v14  ;;  %v13134_v14 = vld [vmem:[#allocation126_spill] sm:$0xff]  ;;  %v3142_v25 = vpop.permute.xlu0 %3141 }
 0x58c   : > { %2303 = vrot.lane.b32.xlu2 %v2144_v33, %s6920_s24  ;;  %v3130_v33 = vpop.permute.xlu1 %3129  ;;  %v3145_v35 = vsel %vm9601_vm6, %v9755_v29, %v13134_v14  ;;  %v9881_v51 = vsel %vm9712_vm0, %v3142_v25, %v9668_v28  ;;  %v13136_v25 = vmov 0 }
 0x594   : > { %3181 = vrot.lane.b32.xlu2 %v9858_v6, %s6925_s21  ;;  %v2146_v39 = vpop.permute.xlu1 %2145 }
 0x59c   : > { %2229 = vrot.lane.b32.xlu2 %v2200_v49, %s6919_s19  ;;  %v2520_v49 = vpop.f32.mrf.mxu0  ;;  %v9894_v14 = vpop.permute.xlu1 %3135 }
 0x59d   : > { %v2521_v17 = vadd.f32 %v2520_v49, %v2300_v10  ;;  %v13138_v49 = vld [vmem:[#allocation83_spill] sm:$0xff] }
 0x59e   : > { %vm1325_vm7 = vcmp.gt.s32.totalorder %v9496_v5, %v13138_v49 }
 0x59f   : > { %3163 = vrot.lane.b32.xlu1 %v3145_v35, %s6925_s21  ;;  %v9891_v29 = vadd.f32 %v2521_v17, %v9888_v11  ;;  %v1538_v35 = vand.u32 16, %v13015_v46  ;;  %v2511_v17 = vadd.f32 %v2510_v45, %v9772_v58  ;;  %v9910_v55 = vsel %vm1325_vm7, -1e+09, %v13112_v22 }
 0x5a0   : > { %13139 = vst [vmem:[#allocation79_spill] sm:$0xff] %v9910_v55 }
 0x5a1   : > { %vm9897_vm0 = vcmp.ne.s32.totalorder %v1538_v35, 0  ;;  %v3394_v35 = vpop.f32.mrf.mxu3  ;;  %v9913_v21 = vadd.f32 %v2511_v17, %v9910_v55  ;;  %v13143_v17 = vmov 0 }
 0x5a2   : > { %v13137_v25 = vsel %vm9897_vm0, 4294967295, %v13136_v25  ;;  %v2196_v10 = vsel %vm9897_vm0, %v9780_v57, %v9563_v16  ;;  %v3153_v57 = vsel %vm9698_vm8, %v9817_v26, %v9571_v50  ;;  %v13140_v50 = vld [vmem:[#allocation91_spill] sm:$0xff]  ;;  %v13141_v26 = vmov 0 }
 0x5a4   : > { %3189 = vrot.lane.b32.xlu2 %v9881_v51, %s6925_s21  ;;  %v3140_v28 = vpop.permute.xlu1 %3139 }
 0x5ab   : > { %v3449_v45 = vpop.xlane.xlu0 %3448 }
 0x5ac   : > { %v2154_v36 = vpop.permute.xlu1 %2153 }
 0x5ad   : > { %2572 = vmax.xlane.f32.xlu0 %v9891_v29 }
 0x5c1   : > { %2301 = vrot.lane.b32.xlu0 %v2196_v10, %s6920_s24  ;;  %v1544_v10 = vand.u32 16, %v13038_v24 }
 0x5c3   : > { %vm9935_vm7 = vcmp.ne.s32.totalorder %v1544_v10, 0 }
 0x5c4   : > { %v13142_v26 = vsel %vm9935_vm7, 4294967295, %v13141_v26 }
 0x5c6   : > { %v3162_v46 = vpop.permute.xlu1 %3161 }
 0x5c7   : > { %v3192_v23 = vsel %vm9786_vm1, %v3162_v46, %v9753_v48  ;;  %v3157_v48 = vsel %vm9726_vm10, %v3140_v28, %v9684_v20  ;;  %v1564_v46 = vand.u32 32, %v13114_v56  ;;  %v9947_v20 = vsel %vm9935_vm7, %v2154_v36, %v9722_v1  ;;  %v13145_v28 = vld [vmem:[#allocation129_spill] sm:$0xff]  ;;  %v13148_v56 = vld [vmem:[#allocation75_spill] sm:$0xff] }
 0x5c8   : > { %v3395_v16 = vadd.f32 %v3394_v35, %v3192_v23  ;;  %v1534_v23 = vand.u32 16, %v13140_v50  ;;  %vm1324_vm8 = vcmp.gt.s32.totalorder %v9496_v5, %v13148_v56  ;;  %v9973_v50 = vsel %vm9553_vm4, %v3130_v33, %v9576_v41 }
 0x5c9   : > { %2564 = vmax.xlane.f32.xlu1 %v9913_v21  ;;  %3179 = vrot.lane.b32.xlu0 %v3153_v57, %s6925_s21  ;;  %vm9956_vm10 = vcmp.ne.s32.totalorder %v1564_v46, 0  ;;  %v13146_v57 = vmov 0 }
 0x5ca   : > { %v9925_v58 = vadd.f32 %v3395_v16, %v9820_v15  ;;  %vm9939_vm1 = vcmp.ne.s32.totalorder %v1534_v23, 0  ;;  %v13147_v57 = vsel %vm9956_vm10, 4294967295, %v13146_v57 }
 0x5cb   : > { %v13144_v17 = vsel %vm9939_vm1, 4294967295, %v13143_v17  ;;  %v2192_v35 = vsel %vm9939_vm1, %v9748_v7, %v13145_v28  ;;  %v9967_v7 = vsel %vm1324_vm8, -1e+09, %v13112_v22  ;;  %v13153_v28 = vld [vmem:[#allocation89_spill] sm:$0xff] }
 0x5cc   : > { %13149 = vst [vmem:[#allocation126_spill] sm:$0xff] %v9967_v7  ;;  %vm1327_vm4 = vcmp.gt.s32.totalorder %v9496_v5, %v13153_v28 }
 0x5cd   : > { %3450 = vmax.xlane.f32.xlu2 %v9925_v58 }
 0x5d1   : > { %2307 = vrot.lane.b32.xlu0 %v2228_v0, %s6920_s24  ;;  %v2152_v0 = vpop.permute.xlu2 %2151 }
 0x5d2   : > { %v2561_v49 = vpop.xlane.xlu0 %2560 }
 0x5d3   : > { %v2590_v1 = vsub.f32 %v9765_v60, %v2561_v49  ;;  %v1540_v60 = vand.u32 16, %v8680_v27 }
 0x5d5   : > { %v2608_v10 = vmul.f32 1.442695, %v2590_v1  ;;  %vm9984_vm8 = vcmp.ne.s32.totalorder %v1540_v60, 0 }
 0x5d6   : > { %v9991_v41 = vsel %vm9984_vm8, %v2146_v39, %v9608_v32  ;;  %v3155_v32 = vsel %vm9597_vm9, %v9894_v14, %v9624_v61 }
 0x5d7   : > { %6429 = vpow2.f32 %v2608_v10 }
 0x5d9   : > { %3187 = vrot.lane.b32.xlu0 %v3157_v48, %s6925_s21  ;;  %v3166_v23 = vpop.permute.xlu2 %3165 }
 0x5dd   : > { %v9995_v49 = vpop.eup %6429 }
 0x5e1   : > { %2233 = vrot.lane.b32.xlu0 %v9947_v20, %s6919_s19  ;;  %v9993_v33 = vpop.permute.xlu2 %3215 }
 0x5e2   : > { %2213 = vrot.lane.b32.xlu1 %v2192_v35, %s6919_s19  ;;  %v10003_v35 = vsel %vm1327_vm4, -1e+09, %v13112_v22 }
 0x5e3   : > { %13154 = vst [vmem:[#allocation83_spill] sm:$0xff] %v10003_v35 }
 0x5e5   : > { %v2210_v36 = vpop.permute.xlu0 %2209 }
 0x5e6   : > { %v2270_v16 = vsel %vm9956_vm10, %v2210_v36, %v9793_v18 }
 0x5e7   : > { %v2508_v48 = vadd.f32 %v9802_v8, %v2270_v16  ;;  %v13150_v8 = vmov 0  ;;  %v3480_v16 = vsub.f32 %v9743_v44, %v3449_v45  ;;  %v1568_v44 = vand.u32 32, %v13008_v43 }
 0x5e8   : > { %v13151_v8 = vsel %vm9984_vm8, 4294967295, %v13150_v8 }
 0x5e9   : > { %v9976_v46 = vadd.f32 %v2508_v48, %v9967_v7  ;;  %13152 = vst [vmem:[#allocation25_spill] sm:$0xff] %v13151_v8  ;;  %v10014_v36 = vpop.permute.xlu2 %3171  ;;  %v3496_v48 = vmul.f32 1.442695, %v3480_v16  ;;  %vm10034_vm4 = vcmp.ne.s32.totalorder %v1568_v44, 0 }
 0x5ea   : > { %3177 = vrot.lane.b32.xlu1 %v9973_v50, %s6925_s21 }
 0x5eb   : > { %2562 = vmax.xlane.f32.xlu2 %v9976_v46  ;;  %6431 = vpow2.f32 %v3496_v48 }
 0x5ed   : > { %v9982_v18 = vpop.permute.xlu0 %3169 }
 0x5f1   : > { %v2559_v10 = vpop.xlane.xlu1 %2558  ;;  %v10027_v14 = vpop.permute.xlu2 %3173 }
 0x5f2   : > { %2225 = vrot.lane.b32.xlu1 %v9991_v41, %s6919_s19  ;;  %v2589_v61 = vsub.f32 %v9837_v54, %v2559_v10  ;;  %v10029_v28 = vpop.eup %6431  ;;  %v10119_v4 = vsel %vm9813_vm13, %v10027_v14, %v9798_v19  ;;  %v1576_v14 = vand.u32 32, %v13038_v24 }
 0x5f3   : > { %2640 = vadd.xlane.f32.xlu2 %v9995_v49 }
 0x5f4   : > { %v2606_v60 = vmul.f32 1.442695, %v2589_v61  ;;  %v13158_v61 = vld [vmem:[#allocation96_spill] sm:$0xff] }
 0x5f5   : > { %v2216_v56 = vpop.permute.xlu0 %2215 }
 0x5f6   : > { %v2516_v1 = vadd.f32 %v9853_v53, %v2216_v56  ;;  %v10022_v53 = vsel %vm9645_vm15, %v9850_v2, %v9629_v31  ;;  %6433 = vpow2.f32 %v2606_v60  ;;  %v13155_v31 = vmov 0 }
 0x5f7   : > { %v13156_v31 = vsel %vm10034_vm4, 4294967295, %v13155_v31  ;;  %vm1330_vm15 = vcmp.gt.s32.totalorder %v9496_v5, %v13158_v61  ;;  %v13160_v61 = vld [vmem:[#allocation88_spill] sm:$0xff] }
 0x5f8   : > { %v10007_v39 = vadd.f32 %v2516_v1, %v10003_v35  ;;  %13157 = vst [vmem:[#allocation91_spill] sm:$0xff] %v13156_v31  ;;  %v10057_v44 = vsel %vm1330_vm15, -1e+09, %v13112_v22  ;;  %vm1326_vm15 = vcmp.gt.s32.totalorder %v9496_v5, %v13160_v61  ;;  %v13303_v31 = vld [vmem:[#allocation57_spill] sm:$0xff] }
 0x5f9   : > { %v2218_v2 = vpop.permute.xlu2 %2217  ;;  %13159 = vst [vmem:[#allocation129_spill] sm:$0xff] %v10057_v44 }
 0x5fa   : > { %3231 = vrot.lane.b32.xlu1 %v3155_v32, %s6919_s19  ;;  %v10043_v54 = vsel %vm10034_vm4, %v2218_v2, %v9830_v30  ;;  %v3397_v32 = vpop.f32.mrf.mxu3  ;;  %v2522_v30 = vpop.f32.mrf.mxu0 }
 0x5fb   : > { %2568 = vmax.xlane.f32.xlu2 %v10007_v39 }
 0x5fc   : > { %v10038_v45 = vpop.eup %6433 }
 0x602   : > { %3185 = vrot.lane.b32.xlu1 %v10022_v53, %s6925_s21  ;;  %v10098_v61 = vpop.f32.mrf.mxu3 }
 0x60a   : > { %2231 = vrot.lane.b32.xlu1 %v2152_v0, %s6919_s19  ;;  %v2637_v0 = vpop.xlane.xlu1 %2636 }
 0x60b   : > { %3528 = vadd.xlane.f32.xlu0 %v10029_v28 }
 0x612   : > { %v3164_v56 = vpop.permute.xlu1 %3163 }
 0x613   : > { %2638 = vadd.xlane.f32.xlu0 %v10038_v45  ;;  %2297 = vrot.lane.b32.xlu2 %v10043_v54, %s6920_s24  ;;  %v3398_v16 = vadd.f32 %v3397_v32, %v3164_v56  ;;  %v10063_v56 = vpop.permute.xlu2 %3271  ;;  %v10068_v32 = vsel %vm9782_vm12, %v3166_v23, %v9740_v12 }
 0x615   : > { %v10051_v48 = vadd.f32 %v3398_v16, %v9762_v59  ;;  %v10078_v59 = vsel %vm1326_vm15, -1e+09, %v13112_v22 }
 0x616   : > { %13161 = vst [vmem:[#allocation75_spill] sm:$0xff] %v10078_v59 }
 0x620   : > { %v10048_v1 = vpop.xlane.xlu0 %2572 }
 0x633   : > { %v2302_v10 = vpop.permute.xlu0 %2301 }
 0x634   : > { %3452 = vmax.xlane.f32.xlu1 %v10051_v48  ;;  %v2523_v60 = vadd.f32 %v2522_v30, %v2302_v10  ;;  %v10072_v10 = vpop.permute.xlu2 %2303 }
 0x636   : > { %v10060_v2 = vadd.f32 %v2523_v60, %v10057_v44 }
 0x63b   : > { %v3180_v60 = vpop.permute.xlu0 %3179 }
 0x63c   : > { %2574 = vmax.xlane.f32.xlu2 %v10060_v2  ;;  %v2565_v16 = vpop.xlane.xlu1 %2564  ;;  %v3182_v3 = vpop.permute.xlu2 %3181 }
 0x63d   : > { %v2592_v30 = vsub.f32 %v9913_v21, %v2565_v16  ;;  %v10089_v21 = vsel %vm9984_vm8, %v3182_v3, %v9858_v6  ;;  %vm10139_vm8 = vcmp.ne.s32.totalorder %v1576_v14, 0 }
 0x63f   : > { %v2612_v23 = vmul.f32 1.442695, %v2592_v30  ;;  %v10100_v30 = vpop.f32.mrf.mxu0 }
 0x641   : > { %6435 = vpow2.f32 %v2612_v23  ;;  %v3402_v23 = vpop.f32.mrf.mxu3 }
 0x642   : > { %v3403_v3 = vadd.f32 %v3402_v23, %v9993_v33  ;;  %v13162_v33 = vld [vmem:[#allocation103_spill] sm:$0xff]  ;;  %6437 = vrcp.f32 %v2637_v0 }
 0x643   : > { %vm1333_vm15 = vcmp.gt.s32.totalorder %v9496_v5, %v13162_v33 }
 0x644   : > { %v10108_v8 = vadd.f32 %v3403_v3, %v9910_v55  ;;  %v10128_v55 = vsel %vm1333_vm15, -1e+09, %v13112_v22  ;;  %vm13168_vm15 = vcmask 261120  }
 0x645   : > { %13163 = vst [vmem:[#allocation89_spill] sm:$0xff] %v10128_v55 }
 0x647   : > { %v10093_v16 = vpop.eup %6435  ;;  %v10105_v6 = vpop.f32.mrf.mxu0 }
 0x64d   : > { %3213 = vrot.lane.b32.xlu1 %v10068_v32, %s6919_s19 }
 0x64f   : > { %v2530_v23 = vpop.f32.mrf.mxu0 }
 0x654   : > { %v2214_v15 = vpop.permute.xlu1 %2213  ;;  %3275 = vrot.lane.b32.xlu2 %v3180_v60, %s6920_s24 }
 0x655   : > { %v2513_v12 = vadd.f32 %v9848_v52, %v2214_v15  ;;  %v2308_v15 = vpop.permute.xlu0 %2307 }
 0x657   : > { %v10083_v34 = vadd.f32 %v2513_v12, %v10078_v59 }
 0x659   : > { %2566 = vmax.xlane.f32.xlu0 %v10083_v34 }
 0x65c   : > { %3229 = vrot.lane.b32.xlu2 %v10089_v21, %s6919_s19  ;;  %v10096_v52 = vpop.permute.xlu1 %3177 }
 0x65d   : > { %v3188_v60 = vpop.permute.xlu0 %3187 }
 0x661   : > { %2644 = vadd.xlane.f32.xlu0 %v10093_v16 }
 0x664   : > { %v10102_v12 = vpop.permute.xlu1 %2225 }
 0x665   : > { %v2234_v38 = vpop.permute.xlu0 %2233 }
 0x66c   : > { %v10112_v13 = vpop.permute.xlu1 %3231 }
 0x674   : > { %v3186_v42 = vpop.permute.xlu1 %3185 }
 0x675   : > { %3219 = vrot.lane.b32.xlu0 %v10014_v36, %s6919_s19  ;;  %v2531_v36 = vadd.f32 %v2530_v23, %v2308_v15  ;;  %v3204_v19 = vsel %vm9863_vm2, %v3186_v42, %v10022_v53  ;;  %v13164_v15 = vmov 0  ;;  %v6438_v23 = vpop.eup %6437  ;;  %vm13170_vm2 = vmmov %vm13168_vm15 }
 0x676   : > { %v13165_v15 = vsel %vm10139_vm8, 4294967295, %v13164_v15  ;;  %v2684_v53 = vmul.f32 %v6438_v23, %v9845_v40  ;;  %v5242_v47 = vsel %vm13170_vm2, %v13169_v63, 0  ;;  %v2230_v40 = vpop.permute.xlu2 %2229  ;;  %v13171_v23 = vld [vmem:[#allocation52_spill] sm:$0xff]  ;;  %vm13172_vm13 = vmmov %vm13170_vm2 }
 0x677   : > { %3456 = vmax.xlane.f32.xlu1 %v10108_v8  ;;  %v10131_v62 = vadd.f32 %v2531_v36, %v10128_v55  ;;  %13166 = vst [vmem:[#allocation96_spill] sm:$0xff] %v13165_v15  ;;  %v10146_v36 = vsel %vm10139_vm8, %v2234_v38, %v9947_v20  ;;  %v3404_v20 = vpop.f32.mrf.mxu3 }
 0x67d   : > { %3221 = vrot.lane.b32.xlu0 %v10119_v4, %s6919_s19 }
 0x67e   : > { %v10125_v3 = vpop.xlane.xlu0 %3528 }
 0x685   : > { %3233 = vrot.lane.b32.xlu0 %v3204_v19, %s6919_s19  ;;  %2580 = vmax.xlane.f32.xlu2 %v10131_v62  ;;  %v3196_v19 = vsel %vm9939_vm1, %v9982_v18, %v9825_v37  ;;  %v5239_v37 = vsel %vm13172_vm13, %v13171_v23, 0  ;;  %vm13177_vm13 = vmmov %vm13170_vm2 }
 0x686   : > { %v2639_v33 = vpop.xlane.xlu0 %2638 }
 0x687   : > { %6439 = vrcp.f32 %v2639_v33  ;;  %v13167_v33 = vld [vmem:[#allocation67_spill] sm:$0xff] }
 0x688   : > { %v5245_v38 = vsel %vm13168_vm15, %v13167_v33, 0  ;;  %vm13174_vm15 = vmmov %vm13170_vm2 }
 0x68d   : > { %v6440_v42 = vpop.eup %6439  ;;  %2313 = vrot.lane.b32.xlu0 %v10146_v36, %s6920_s24 }
 0x68e   : > { %v2685_v0 = vmul.f32 %v6440_v42, %v10038_v45  ;;  %v10162_v45 = vpop.f32.mrf.mxu3  ;;  %v13173_v42 = vld [vmem:[#allocation45_spill] sm:$0xff] }
 0x690   : > { %3217 = vrot.lane.b32.xlu1 %v3196_v19, %s6919_s19  ;;  %v2700_v14 = vpack.c.bf16 %v2685_v0, %v2684_v53  ;;  %v5236_v53 = vsel %vm13174_vm15, %v13173_v42, 0  ;;  %v10171_v0 = vpop.permute.xlu1 %2231  ;;  %vm13179_vm15 = vmmov %vm13170_vm2 }
 0x692   : > { %2764 = vmatmul.bf16.vlgmr.msrb.gmra.mxu1 %v2700_v14 }
 0x693   : > { %5247 = vmatpush.bf16.xpose.msrb.mxu1 %v5245_v38 }
 0x696   : > { %v10167_v18 = vpop.f32.mrf.mxu3 }
 0x69b   : > { %5248 = vmatpush.bf16.xpose.msrb.mxu1 %v5242_v47  ;;  %v13175_v47 = vld [vmem:[#allocation41_spill] sm:$0xff] }
 0x69c   : > { %v5233_v63 = vsel %vm13170_vm2, %v13175_v47, 0  ;;  %v13178_v47 = vld [vmem:[#allocation30_spill] sm:$0xff] }
 0x69d   : > { %2309 = vrot.lane.b32.xlu2 %v2230_v40, %s6920_s24 }
 0x69e   : > { %v3412_v19 = vpop.f32.mrf.mxu3 }
 0x69f   : > { %v3413_v14 = vadd.f32 %v3412_v19, %v10063_v56 }
 0x6a1   : > { %v10177_v38 = vadd.f32 %v3413_v14, %v9888_v11  ;;  %v13180_v14 = vld [vmem:[#allocation29_spill] sm:$0xff] }
 0x6a3   : > { %5249 = vmatpush.bf16.xpose.msrb.mxu1 %v5239_v37 }
 0x6a5   : > { %3235 = vrot.lane.b32.xlu2 %v3188_v60, %s6919_s19  ;;  %v13176_v60 = vld [vmem:[#allocation37_spill] sm:$0xff] }
 0x6a6   : > { %v5230_v40 = vsel %vm13177_vm13, %v13176_v60, 0 }
 0x6a7   : > { %v3453_v33 = vpop.xlane.xlu1 %3452 }
 0x6a8   : > { %v3482_v23 = vsub.f32 %v10051_v48, %v3453_v33  ;;  %v5224_v48 = vsel %vm13170_vm2, %v13180_v14, 0 }
 0x6aa   : > { %v3500_v56 = vmul.f32 1.442695, %v3482_v23 }
 0x6ab   : > { %5250 = vmatpush.bf16.xpose.msrb.mxu1 %v5236_v53 }
 0x6ac   : > { %6441 = vpow2.f32 %v3500_v56 }
 0x6b2   : > { %v10195_v33 = vpop.eup %6441 }
 0x6b3   : > { %5251 = vmatpush.bf16.xpose.msrb.mxu1 %v5233_v63  ;;  %v5227_v63 = vsel %vm13179_vm15, %v13178_v47, 0  ;;  %vm12668_vm15 = vcmask 257024  }
 0x6ba   : > { %3464 = vmax.xlane.f32.xlu1 %v10177_v38 }
 0x6bb   : > { %5252 = vmatpush.bf16.xpose.msrb.mxu1 %v5230_v40 }
 0x6bf   : > { %v3214_v37 = vpop.permute.xlu1 %3213 }
 0x6c0   : > { %v3242_v42 = vsel %vm9956_vm10, %v3214_v37, %v10068_v32  ;;  %v3200_v32 = vsel %vm9897_vm0, %v10096_v52, %v9973_v50  ;;  %v2596_v37 = vsub.f32 %v9891_v29, %v10048_v1 }
 0x6c1   : > { %v3400_v53 = vadd.f32 %v10098_v61, %v3242_v42 }
 0x6c3   : > { %5253 = vmatpush.bf16.xpose.msrb.mxu1 %v5227_v63  ;;  %v10190_v19 = vadd.f32 %v3400_v53, %v9967_v7  ;;  %v2620_v53 = vmul.f32 1.442695, %v2596_v37 }
 0x6c5   : > { %3454 = vmax.xlane.f32.xlu0 %v10190_v19 }
 0x6cb   : > { %5254 = vmatpush.bf16.xpose.msrb.mxu1 %v5224_v48 }
 0x6cc   : > { %v2567_v40 = vpop.xlane.xlu0 %2566 }
 0x6cd   : > { %3532 = vadd.xlane.f32.xlu0 %v10195_v33  ;;  %v2593_v42 = vsub.f32 %v10083_v34, %v2567_v40  ;;  %v2526_v34 = vadd.f32 %v10100_v30, %v10072_v10 }
 0x6cf   : > { %v2614_v56 = vmul.f32 1.442695, %v2593_v42 }
 0x6d3   : > { %3273 = vrot.lane.b32.xlu1 %v3200_v32, %s6920_s24 }
 0x6d4   : > { %v10226_v48 = vpop.xlane.xlu0 %2644 }
 0x6ea   : > { %v3457_v61 = vpop.xlane.xlu1 %3456 }
 0x6eb   : > { %v3484_v60 = vsub.f32 %v10108_v8, %v3457_v61  ;;  %v13181_v8 = vld [vmem:[#allocation95_spill] sm:$0xff]  ;;  %v3190_v61 = vpop.permute.xlu2 %3189 }
 0x6ec   : > { %vm1331_vm13 = vcmp.gt.s32.totalorder %v9496_v5, %v13181_v8 }
 0x6ed   : > { %v3504_v23 = vmul.f32 1.442695, %v3484_v60  ;;  %v10221_v29 = vsel %vm1331_vm13, -1e+09, %v13112_v22  ;;  %v3220_v60 = vpop.permute.xlu0 %3219 }
 0x6ee   : > { %13182 = vst [vmem:[#allocation88_spill] sm:$0xff] %v10221_v29  ;;  %v10224_v63 = vadd.f32 %v2526_v34, %v10221_v29 }
 0x6ef   : > { %6443 = vpow2.f32 %v3504_v23  ;;  %v1572_v23 = vand.u32 32, %v8680_v27 }
 0x6f0   : > { %6445 = vpow2.f32 %v2620_v53 }
 0x6f1   : > { %6447 = vpow2.f32 %v2614_v56  ;;  %vm10235_vm2 = vcmp.ne.s32.totalorder %v1572_v23, 0  ;;  %v13183_v56 = vmov 0 }
 0x6f2   : > { %v13184_v56 = vsel %vm10235_vm2, 4294967295, %v13183_v56  ;;  %v2278_v27 = vsel %vm10235_vm2, %v10102_v12, %v9991_v41 }
 0x6f3   : > { %v3451_v40 = vpop.xlane.xlu2 %3450  ;;  %13185 = vst [vmem:[#allocation103_spill] sm:$0xff] %v13184_v56 }
 0x6f5   : > { %v10207_v47 = vpop.eup %6443 }
 0x6f6   : > { %3536 = vadd.xlane.f32.xlu2 %v10207_v47  ;;  %v10210_v50 = vpop.eup %6445 }
 0x6f7   : > { %v10212_v52 = vpop.eup %6447 }
 0x6fb   : > { %v2563_v53 = vpop.xlane.xlu2 %2562 }
 0x6fd   : > { %2652 = vadd.xlane.f32.xlu1 %v10210_v50 }
 0x6fe   : > { %2646 = vadd.xlane.f32.xlu2 %v10212_v52 }
 0x702   : > { %v3218_v1 = vpop.permute.xlu1 %3217 }
 0x703   : > { %v3405_v14 = vadd.f32 %v3404_v20, %v3218_v1  ;;  %v3222_v20 = vpop.permute.xlu0 %3221  ;;  %v10252_v34 = vpop.xlane.xlu2 %2640 }
 0x704   : > { %v10242_v8 = vsel %vm10034_vm4, %v3222_v20, %v10119_v4  ;;  %v10261_v4 = vsel %vm9935_vm7, %v3190_v61, %v9881_v51 }
 0x705   : > { %v10229_v32 = vadd.f32 %v3405_v14, %v10078_v59  ;;  %2576 = vmax.xlane.f32.xlu1 %v10224_v63 }
 0x707   : > { %3458 = vmax.xlane.f32.xlu0 %v10229_v32 }
 0x70b   : > { %v2569_v1 = vpop.xlane.xlu2 %2568 }
 0x70f   : > { %v2765_v10 = vpop.f32.mrf.mxu1 }
 0x710   : > { %v2805_v30 = vpack.c.bf16 %v2765_v10, %v2765_v10  ;;  %v3414_v10 = vpop.f32.mrf.mxu3 }
 0x712   : > { %2822 = vst.msk [vmem:[#allocation2] sm:$0xf] %vm12668_vm15, %v2805_v30 }
 0x713   : > { %v2298_v41 = vpop.permute.xlu2 %2297 }
 0x717   : > { %v2767_v37 = vpop.f32.mrf.mxu1 }
 0x718   : > { %v2806_v42 = vpack.c.bf16 %v2767_v37, %v2767_v37 }
 0x71a   : > { %2823 = vst.msk [vmem:[#allocation2 + $0x4] sm:$0xf] %vm12668_vm15, %v2806_v42 }
 0x71b   : > { %3269 = vrot.lane.b32.xlu0 %v10242_v8, %s6920_s24  ;;  %v2575_v14 = vpop.xlane.xlu2 %2574 }
 0x71c   : > { %v2597_v37 = vsub.f32 %v10060_v2, %v2575_v14 }
 0x71e   : > { %2305 = vrot.lane.b32.xlu1 %v2278_v27, %s6920_s24  ;;  %v2622_v61 = vmul.f32 1.442695, %v2597_v37  ;;  %v3481_v27 = vsub.f32 %v9925_v58, %v3451_v40  ;;  %v1600_v58 = vand.u32 64, %v13008_v43  ;;  %v3408_v40 = vadd.f32 %v10162_v45, %v3220_v60  ;;  %v10306_v37 = vpop.permute.xlu0 %3233 }
 0x71f   : > { %v2594_v43 = vsub.f32 %v10007_v39, %v2569_v1 }
 0x720   : > { %6449 = vpow2.f32 %v2622_v61  ;;  %vm10287_vm13 = vcmp.ne.s32.totalorder %v1600_v58, 0 }
 0x723   : > { %v3276_v20 = vpop.permute.xlu2 %3275 }
 0x726   : > { %3279 = vrot.lane.b32.xlu1 %v10112_v13, %s6920_s24 }
 0x72d   : > { %v3465_v12 = vpop.xlane.xlu1 %3464 }
 0x72e   : > { %2311 = vrot.lane.b32.xlu1 %v10171_v0, %s6920_s24  ;;  %v3417_v0 = vpop.f32.mrf.mxu3  ;;  %v3488_v39 = vsub.f32 %v10177_v38, %v3465_v12 }
 0x72f   : > { %v3418_v51 = vadd.f32 %v3417_v0, %v3276_v20  ;;  %v13186_v20 = vmov 0  ;;  %v13189_v0 = vld [vmem:[#allocation87_spill] sm:$0xff] }
 0x730   : > { %v13187_v20 = vsel %vm10287_vm13, 4294967295, %v13186_v20  ;;  %vm1328_vm15 = vcmp.gt.s32.totalorder %v9496_v5, %v13189_v0  ;;  %v1608_v0 = vand.u32 64, %v13038_v24 }
 0x731   : > { %v10271_v42 = vadd.f32 %v3418_v51, %v10221_v29  ;;  %13188 = vst [vmem:[#allocation67_spill] sm:$0xff] %v13187_v20  ;;  %v10309_v51 = vsel %vm1328_vm15, -1e+09, %v13112_v22 }
 0x732   : > { %13190 = vst [vmem:[#allocation60_spill] sm:$0xff] %v10309_v51  ;;  %vm10340_vm4 = vcmp.ne.s32.totalorder %v1608_v0, 0 }
 0x736   : > { %3237 = vrot.lane.b32.xlu1 %v10261_v4, %s6919_s19 }
 0x745   : > { %v3274_v30 = vpop.permute.xlu1 %3273 }
 0x746   : > { %v3415_v23 = vadd.f32 %v3414_v10, %v3274_v30  ;;  %v3498_v10 = vmul.f32 1.442695, %v3481_v27  ;;  %v10275_v30 = vpop.eup %6449 }
 0x748   : > { %v10266_v13 = vadd.f32 %v3415_v23, %v10057_v44  ;;  %6451 = vpow2.f32 %v3498_v10  ;;  %v2591_v23 = vsub.f32 %v9976_v46, %v2563_v53  ;;  %v3230_v46 = vpop.permute.xlu2 %3229  ;;  %v10292_v53 = vadd.f32 %v3408_v40, %v10003_v35  ;;  %v2532_v10 = vpop.f32.mrf.mxu0  ;;  %v13325_v35 = vld [vmem:[#allocation19_spill] sm:$0xff] }
 0x749   : > { %v3250_v45 = vsel %vm10235_vm2, %v3230_v46, %v10089_v21  ;;  %v2314_v21 = vpop.permute.xlu0 %2313  ;;  %v13191_v46 = vld [vmem:[#allocation99_spill] sm:$0xff] }
 0x74a   : > { %3466 = vmax.xlane.f32.xlu2 %v10266_v13  ;;  %v2610_v44 = vmul.f32 1.442695, %v2591_v23  ;;  %vm1334_vm15 = vcmp.gt.s32.totalorder %v9496_v5, %v13191_v46  ;;  %v2362_v46 = vsel %vm10340_vm4, %v2314_v21, %v10146_v36 }
 0x74c   : > { %6453 = vpow2.f32 %v2610_v44  ;;  %v2354_v44 = vsel %vm10287_vm13, %v2298_v41, %v10043_v54  ;;  %v2616_v54 = vmul.f32 1.442695, %v2594_v43  ;;  %v10332_v43 = vsel %vm1334_vm15, -1e+09, %v13112_v22 }
 0x74d   : > { %v2518_v60 = vadd.f32 %v9870_v9, %v2354_v44  ;;  %v3512_v9 = vmul.f32 1.442695, %v3488_v39  ;;  %13192 = vst [vmem:[#allocation52_spill] sm:$0xff] %v10332_v43  ;;  %v13194_v39 = vmov 0 }
 0x74e   : > { %v10279_v2 = vpop.eup %6451  ;;  %6455 = vpow2.f32 %v2616_v54  ;;  %v13195_v39 = vsel %vm10340_vm4, 4294967295, %v13194_v39 }
 0x74f   : > { %v10312_v41 = vadd.f32 %v2518_v60, %v10309_v51  ;;  %6457 = vpow2.f32 %v3512_v9  ;;  %13196 = vst [vmem:[#allocation45_spill] sm:$0xff] %v13195_v39 }
 0x750   : > { %v10316_v1 = vpop.xlane.xlu2 %2580  ;;  %v10328_v12 = vpop.f32.mrf.mxu0 }
 0x751   : > { %v3455_v23 = vpop.xlane.xlu0 %3454 }
 0x752   : > { %3468 = vmax.xlane.f32.xlu2 %v10271_v42  ;;  %v10282_v14 = vpop.eup %6453  ;;  %v3483_v29 = vsub.f32 %v10190_v19, %v3455_v23 }
 0x754   : > { %v10320_v27 = vpop.eup %6455  ;;  %v3502_v21 = vmul.f32 1.442695, %v3483_v29 }
 0x755   : > { %v10323_v58 = vpop.eup %6457 }
 0x758   : > { %v2310_v40 = vpop.permute.xlu2 %2309  ;;  %v2537_v0 = vpop.f32.mrf.mxu0 }
 0x759   : > { %v2533_v44 = vadd.f32 %v2532_v10, %v2310_v40  ;;  %v10344_v9 = vpop.xlane.xlu0 %3532  ;;  %v2538_v56 = vadd.f32 %v2537_v0, %v2362_v46 }
 0x75a   : > { %2654 = vadd.xlane.f32.xlu2 %v10275_v30 }
 0x75b   : > { %v10337_v60 = vadd.f32 %v2533_v44, %v10332_v43 }
 0x760   : > { %3530 = vadd.xlane.f32.xlu1 %v10279_v2 }
 0x768   : > { %2642 = vadd.xlane.f32.xlu1 %v10282_v14 }
 0x770   : > { %3460 = vmax.xlane.f32.xlu1 %v10292_v53  ;;  %v10318_v61 = vpop.xlane.xlu1 %2652 }
 0x772   : > { %3277 = vrot.lane.b32.xlu2 %v3250_v45, %s6920_s24  ;;  %v13193_v45 = vld [vmem:[#allocation102_spill] sm:$0xff] }
 0x773   : > { %vm1332_vm2 = vcmp.gt.s32.totalorder %v9496_v5, %v13193_v45  ;;  %v10359_v45 = vpop.f32.mrf.mxu3 }
 0x774   : > { %v10347_v10 = vsel %vm1332_vm2, -1e+09, %v13112_v22 }
 0x775   : > { %13197 = vst [vmem:[#allocation41_spill] sm:$0xff] %v10347_v10 }
 0x778   : > { %2570 = vmax.xlane.f32.xlu1 %v10312_v41  ;;  %v2577_v38 = vpop.xlane.xlu1 %2576 }
 0x779   : > { %v2598_v54 = vsub.f32 %v10224_v63, %v2577_v38  ;;  %v13198_v38 = vld [vmem:[#allocation42_spill] sm:$0xff] }
 0x77a   : > { %vm1336_vm15 = vcmp.gt.s32.totalorder %v9496_v5, %v13198_v38  ;;  %v3459_v36 = vpop.xlane.xlu0 %3458 }
 0x77b   : > { %v2624_v44 = vmul.f32 1.442695, %v2598_v54  ;;  %v3422_v19 = vpop.f32.mrf.mxu3 }
 0x77d   : > { %6459 = vpow2.f32 %v2624_v44 }
 0x77e   : > { %6461 = vpow2.f32 %v3502_v21 }
 0x780   : > { %2648 = vadd.xlane.f32.xlu1 %v10320_v27 }
 0x788   : > { %3544 = vadd.xlane.f32.xlu1 %v10323_v58 }
 0x78d   : > { %v3270_v23 = vpop.permute.xlu0 %3269 }
 0x78e   : > { %v3294_v29 = vsel %vm10287_vm13, %v3270_v23, %v10242_v8  ;;  %v3485_v8 = vsub.f32 %v10229_v32, %v3459_v36 }
 0x78f   : > { %v3410_v0 = vadd.f32 %v10167_v18, %v3294_v29  ;;  %v3236_v18 = vpop.permute.xlu2 %3235 }
 0x790   : > { %v2306_v24 = vpop.permute.xlu1 %2305  ;;  %2582 = vmax.xlane.f32.xlu1 %v10337_v60 }
 0x791   : > { %v2528_v40 = vadd.f32 %v10105_v6, %v2306_v24  ;;  %v10364_v6 = vsel %vm1336_vm15, -1e+09, %v13112_v22  ;;  %vm13202_vm15 = vcmask 257024  }
 0x792   : > { %13199 = vst [vmem:[#allocation37_spill] sm:$0xff] %v10364_v6  ;;  %v10367_v24 = vadd.f32 %v2538_v56, %v10364_v6 }
 0x793   : > { %v10355_v63 = vadd.f32 %v2528_v40, %v10347_v10  ;;  %v10370_v40 = vpop.eup %6459 }
 0x794   : > { %v10375_v38 = vpop.eup %6461 }
 0x795   : > { %2578 = vmax.xlane.f32.xlu0 %v10355_v63 }
 0x797   : > { %v10400_v23 = vpop.xlane.xlu2 %3536 }
 0x798   : > { %v3280_v54 = vpop.permute.xlu1 %3279 }
 0x799   : > { %v3423_v46 = vadd.f32 %v3422_v19, %v3280_v54  ;;  %v10392_v19 = vadd.f32 %v3410_v0, %v10309_v51  ;;  %v2600_v0 = vsub.f32 %v10131_v62, %v10316_v1 }
 0x79b   : > { %2586 = vmax.xlane.f32.xlu2 %v10367_v24  ;;  %v10381_v56 = vadd.f32 %v3423_v46, %v10128_v55  ;;  %v3506_v46 = vmul.f32 1.442695, %v3485_v8 }
 0x79d   : > { %2656 = vadd.xlane.f32.xlu0 %v10370_v40  ;;  %6463 = vpow2.f32 %v3506_v46 }
 0x79e   : > { %6465 = vrcp.f32 %v10125_v3 }
 0x7a0   : > { %v10373_v44 = vpop.permute.xlu1 %2311 }
 0x7a3   : > { %3534 = vadd.xlane.f32.xlu2 %v10375_v38  ;;  %v10403_v29 = vpop.eup %6463 }
 0x7a4   : > { %v6466_v55 = vpop.eup %6465 }
 0x7a5   : > { %3472 = vmax.xlane.f32.xlu0 %v10381_v56  ;;  %v3576_v36 = vmul.f32 %v6466_v55, %v10029_v28 }
 0x7a8   : > { %v3238_v21 = vpop.permute.xlu1 %3237 }
 0x7a9   : > { %v10389_v54 = vsel %vm10139_vm8, %v3238_v21, %v10261_v4  ;;  %v2647_v4 = vpop.xlane.xlu2 %2646 }
 0x7aa   : > { %3285 = vrot.lane.b32.xlu1 %v10389_v54, %s6920_s24 }
 0x7ab   : > { %3462 = vmax.xlane.f32.xlu2 %v10392_v19 }
 0x7b9   : > { %3281 = vrot.lane.b32.xlu0 %v10306_v37, %s6920_s24  ;;  %v2628_v37 = vmul.f32 1.442695, %v2600_v0 }
 0x7bd   : > { %v10408_v51 = vpop.xlane.xlu2 %3466 }
 0x7c5   : > { %v10415_v0 = vpop.xlane.xlu2 %3468 }
 0x7d3   : > { %v3531_v21 = vpop.xlane.xlu1 %3530 }
 0x7d4   : > { %6467 = vrcp.f32 %v3531_v21  ;;  %3538 = vadd.xlane.f32.xlu1 %v10403_v29 }
 0x7d5   : > { %6469 = vrcp.f32 %v10252_v34 }
 0x7d6   : > { %6471 = vpow2.f32 %v2628_v37 }
 0x7da   : > { %v6468_v32 = vpop.eup %6467 }
 0x7db   : > { %v3577_v3 = vmul.f32 %v6468_v32, %v10279_v2  ;;  %v2643_v8 = vpop.xlane.xlu1 %2642  ;;  %v6470_v62 = vpop.eup %6469 }
 0x7dc   : > { %6473 = vrcp.f32 %v2643_v8  ;;  %v10413_v1 = vpop.eup %6471  ;;  %v2686_v34 = vmul.f32 %v6470_v62, %v9995_v49  ;;  %v10423_v8 = vpop.xlane.xlu2 %2654 }
 0x7dd   : > { %v3592_v46 = vpack.c.bf16 %v3577_v3, %v3576_v36  ;;  %6475 = vrcp.f32 %v2647_v4 }
 0x7df   : > { %3632 = vmatmul.bf16.vlgmr.msra.gmra.mxu0 %v3592_v46 }
 0x7e2   : > { %v6474_v21 = vpop.eup %6473 }
 0x7e3   : > { %v3461_v20 = vpop.xlane.xlu1 %3460  ;;  %2660 = vadd.xlane.f32.xlu0 %v10413_v1  ;;  %v2687_v55 = vmul.f32 %v6474_v21, %v10282_v14  ;;  %v6476_v3 = vpop.eup %6475 }
 0x7e4   : > { %v3486_v28 = vsub.f32 %v10292_v53, %v3461_v20  ;;  %v2689_v20 = vmul.f32 %v6476_v3, %v10212_v52 }
 0x7e5   : > { %v2701_v2 = vpack.c.bf16 %v2687_v55, %v2686_v34 }
 0x7e6   : > { %v3508_v37 = vmul.f32 1.442695, %v3486_v28 }
 0x7e7   : > { %2769 = vmatmul.bf16.gmra.mxu1 %v2701_v2 }
 0x7e8   : > { %6477 = vpow2.f32 %v3508_v37 }
 0x7e9   : > { %6479 = vrcp.f32 %v10226_v48  ;;  %v3278_v48 = vpop.permute.xlu2 %3277 }
 0x7eb   : > { %v2571_v32 = vpop.xlane.xlu1 %2570 }
 0x7ec   : > { %v2595_v36 = vsub.f32 %v10312_v41, %v2571_v32  ;;  %v3420_v41 = vadd.f32 %v10359_v45, %v3278_v48  ;;  %v13200_v32 = vld [vmem:[#allocation27_spill] sm:$0xff] }
 0x7ed   : > { %vm1335_vm2 = vcmp.gt.s32.totalorder %v9496_v5, %v13200_v32 }
 0x7ee   : > { %v10425_v46 = vpop.eup %6477  ;;  %v2618_v49 = vmul.f32 1.442695, %v2595_v36  ;;  %v10436_v21 = vadd.f32 %v3420_v41, %v10347_v10  ;;  %v3489_v36 = vsub.f32 %v10266_v13, %v10408_v51  ;;  %v3424_v41 = vpop.f32.mrf.mxu3  ;;  %v13301_v10 = vld [vmem:[#allocation53_spill] sm:$0xff] }
 0x7ef   : > { %3540 = vadd.xlane.f32.xlu2 %v10425_v46  ;;  %v6480_v14 = vpop.eup %6479 }
 0x7f0   : > { %6481 = vpow2.f32 %v2618_v49  ;;  %v2688_v53 = vmul.f32 %v6480_v14, %v10093_v16  ;;  %v2536_v49 = vadd.f32 %v10328_v12, %v10373_v44 }
 0x7f2   : > { %v2702_v4 = vpack.c.bf16 %v2689_v20, %v2688_v53  ;;  %v10458_v20 = vsel %vm1335_vm2, -1e+09, %v13112_v22  ;;  %v3490_v22 = vsub.f32 %v10271_v42, %v10415_v0  ;;  %vm13203_vm2 = vmmov %vm13202_vm15 }
 0x7f3   : > { %13201 = vst [vmem:[#allocation30_spill] sm:$0xff] %v10458_v20  ;;  %v10465_v48 = vadd.f32 %v2536_v49, %v10458_v20 }
 0x7f4   : > { %v3516_v12 = vmul.f32 1.442695, %v3490_v22 }
 0x7f6   : > { %v10430_v62 = vpop.eup %6481 }
 0x7f7   : > { %2774 = vmatmul.bf16.gmra.mxu1 %v2702_v4  ;;  %3283 = vrot.lane.b32.xlu0 %v3236_v18, %s6920_s24  ;;  %v10446_v18 = vpop.xlane.xlu1 %2648  ;;  %v3514_v4 = vmul.f32 1.442695, %v3489_v36 }
 0x7f8   : > { %2650 = vadd.xlane.f32.xlu2 %v10430_v62 }
 0x7ff   : > { %v10460_v53 = vpop.xlane.xlu1 %3544 }
 0x800   : > { %3470 = vmax.xlane.f32.xlu2 %v10436_v21 }
 0x807   : > { %v2583_v44 = vpop.xlane.xlu1 %2582 }
 0x808   : > { %v2579_v34 = vpop.xlane.xlu0 %2578 }
 0x809   : > { %v2599_v52 = vsub.f32 %v10355_v63, %v2579_v34 }
 0x80b   : > { %v2626_v16 = vmul.f32 1.442695, %v2599_v52 }
 0x80d   : > { %6483 = vpow2.f32 %v2626_v16 }
 0x80e   : > { %v10440_v55 = vpop.xlane.xlu2 %2586  ;;  %6485 = vrcp.f32 %v10344_v9 }
 0x810   : > { %v10442_v28 = vpop.xlane.xlu0 %2656 }
 0x813   : > { %v10444_v2 = vpop.eup %6483 }
 0x814   : > { %2658 = vadd.xlane.f32.xlu2 %v10444_v2  ;;  %v6486_v3 = vpop.eup %6485 }
 0x815   : > { %v3578_v5 = vmul.f32 %v6486_v3, %v10195_v33 }
 0x816   : > { %v3535_v45 = vpop.xlane.xlu2 %3534 }
 0x817   : > { %6487 = vrcp.f32 %v3535_v45 }
 0x818   : > { %v3473_v37 = vpop.xlane.xlu0 %3472 }
 0x819   : > { %v3492_v63 = vsub.f32 %v10381_v56, %v3473_v37 }
 0x81b   : > { %v3520_v14 = vmul.f32 1.442695, %v3492_v63 }
 0x81c   : > { %v3286_v37 = vpop.permute.xlu1 %3285 }
 0x81d   : > { %v6488_v9 = vpop.eup %6487  ;;  %6489 = vpow2.f32 %v3520_v14 }
 0x81e   : > { %v3579_v56 = vmul.f32 %v6488_v9, %v10375_v38  ;;  %6491 = vpow2.f32 %v3514_v4  ;;  %v2601_v38 = vsub.f32 %v10337_v60, %v2583_v44  ;;  %v3463_v14 = vpop.xlane.xlu2 %3462 }
 0x81f   : > { %6493 = vpow2.f32 %v3516_v12 }
 0x820   : > { %v3593_v13 = vpack.c.bf16 %v3579_v56, %v3578_v5  ;;  %v2630_v16 = vmul.f32 1.442695, %v2601_v38 }
 0x821   : > { %2584 = vmax.xlane.f32.xlu0 %v10465_v48 }
 0x822   : > { %3637 = vmatmul.bf16.gmra.mxu0 %v3593_v13  ;;  %6495 = vpow2.f32 %v2630_v16 }
 0x823   : > { %v10470_v51 = vpop.eup %6489  ;;  %6497 = vrcp.f32 %v10400_v23  ;;  %v3427_v23 = vpop.f32.mrf.mxu3 }
 0x824   : > { %3552 = vadd.xlane.f32.xlu1 %v10470_v51  ;;  %v10473_v33 = vpop.eup %6491 }
 0x825   : > { %v10480_v0 = vpop.eup %6493 }
 0x828   : > { %v10484_v45 = vpop.eup %6495 }
 0x829   : > { %3546 = vadd.xlane.f32.xlu0 %v10473_v33  ;;  %v6498_v32 = vpop.eup %6497 }
 0x82a   : > { %v3580_v36 = vmul.f32 %v6498_v32, %v10207_v47 }
 0x82b   : > { %v3282_v34 = vpop.permute.xlu0 %3281  ;;  %v3429_v16 = vpop.f32.mrf.mxu3 }
 0x82c   : > { %v3425_v52 = vadd.f32 %v3424_v41, %v3282_v34  ;;  %v3302_v34 = vsel %vm10340_vm4, %v3286_v37, %v10389_v54  ;;  %vm13208_vm4 = vcmask 519424  }
 0x82d   : > { %v3430_v32 = vadd.f32 %v3429_v16, %v3302_v34  ;;  %vm13209_vm13 = vmmov %vm13208_vm4 }
 0x82e   : > { %v10478_v42 = vadd.f32 %v3425_v52, %v10332_v43  ;;  %vm13212_vm8 = vmmov %vm13208_vm4 }
 0x82f   : > { %v10512_v54 = vadd.f32 %v3430_v32, %v10364_v6 }
 0x830   : > { %3474 = vmax.xlane.f32.xlu2 %v10478_v42 }
 0x831   : > { %3548 = vadd.xlane.f32.xlu0 %v10480_v0 }
 0x839   : > { %2662 = vadd.xlane.f32.xlu0 %v10484_v45 }
 0x847   : > { %v3539_v60 = vpop.xlane.xlu1 %3538 }
 0x848   : > { %6499 = vrcp.f32 %v3539_v60  ;;  %v2603_v60 = vsub.f32 %v10367_v24, %v10440_v55  ;;  %v3487_v24 = vsub.f32 %v10392_v19, %v3463_v14 }
 0x849   : > { %6501 = vrcp.f32 %v10446_v18 }
 0x84e   : > { %v6500_v63 = vpop.eup %6499 }
 0x84f   : > { %v3581_v3 = vmul.f32 %v6500_v63, %v10403_v29  ;;  %v6502_v18 = vpop.eup %6501 }
 0x851   : > { %v3594_v49 = vpack.c.bf16 %v3581_v3, %v3580_v36  ;;  %v2634_v36 = vmul.f32 1.442695, %v2603_v60  ;;  %v2690_v3 = vmul.f32 %v6502_v18, %v10320_v27  ;;  %v3510_v27 = vmul.f32 1.442695, %v3487_v24 }
 0x853   : > { %3642 = vmatmul.bf16.gmra.mxu0 %v3594_v49 }
 0x856   : > { %v10492_v4 = vpop.xlane.xlu0 %2660 }
 0x85c   : > { %v10490_v9 = vpop.f32.mrf.mxu0 }
 0x862   : > { %v10494_v5 = vpop.xlane.xlu2 %3540 }
 0x864   : > { %v2770_v56 = vpop.f32.mrf.mxu1  ;;  %v3635_v13 = vpop.f32.mrf.mxu0 }
 0x865   : > { %v2807_v22 = vpack.c.bf16 %v2770_v56, %v2770_v56  ;;  %v3674_v12 = vpack.c.bf16 %v3635_v13, %v3635_v13 }
 0x867   : > { %2824 = vst.msk [vmem:[#allocation2 + $0x8] sm:$0xf] %vm13202_vm15, %v2807_v22  ;;  %3707 = vrot.lane.b32.xlu1 %v3674_v12, %s6919_s19  ;;  %vm13204_vm15 = vmmov %vm13203_vm2 }
 0x869   : > { %v3284_v47 = vpop.permute.xlu0 %3283 }
 0x86a   : > { %v3428_v29 = vadd.f32 %v3427_v23, %v3284_v47 }
 0x86b   : > { %v2651_v44 = vpop.xlane.xlu2 %2650 }
 0x86c   : > { %v10500_v38 = vadd.f32 %v3428_v29, %v10458_v20  ;;  %6503 = vrcp.f32 %v2651_v44  ;;  %v2772_v41 = vpop.f32.mrf.mxu1  ;;  %v13297_v20 = vld [vmem:[#allocation35_spill] sm:$0xff] }
 0x86d   : > { %v2808_v52 = vpack.c.bf16 %v2772_v41, %v2772_v41  ;;  %6505 = vpow2.f32 %v2634_v36  ;;  %vm13298_vm5 = vnez %v13297_v20 }
 0x86e   : > { %3476 = vmax.xlane.f32.xlu2 %v10500_v38  ;;  %6507 = vrcp.f32 %v10423_v8 }
 0x86f   : > { %2825 = vst.msk [vmem:[#allocation2 + $0xc] sm:$0xf] %vm13203_vm2, %v2808_v52  ;;  %6509 = vrcp.f32 %v10318_v61 }
 0x870   : > { %6511 = vpow2.f32 %v3510_v27 }
 0x872   : > { %v6504_v63 = vpop.eup %6503 }
 0x873   : > { %v2691_v49 = vmul.f32 %v6504_v63, %v10430_v62  ;;  %v10519_v55 = vpop.eup %6505  ;;  %v3471_v12 = vpop.xlane.xlu2 %3470 }
 0x874   : > { %v2775_v56 = vpop.f32.mrf.mxu1  ;;  %v6508_v22 = vpop.eup %6507 }
 0x875   : > { %v2809_v37 = vpack.c.bf16 %v2775_v56, %v2775_v56  ;;  %v2703_v13 = vpack.c.bf16 %v2691_v49, %v2690_v3  ;;  %v6510_v19 = vpop.eup %6509  ;;  %v2693_v14 = vmul.f32 %v6508_v22, %v10275_v30  ;;  %v3673_v49 = vpack.c.bf16 %v10490_v9, %v10490_v9 }
 0x876   : > { %3478 = vmax.xlane.f32.xlu2 %v10512_v54  ;;  %v2692_v47 = vmul.f32 %v6510_v19, %v10210_v50  ;;  %v10525_v8 = vpop.eup %6511 }
 0x877   : > { %2826 = vst.msk [vmem:[#allocation2 + $0x10] sm:$0xf] %vm13204_vm15, %v2809_v37  ;;  %2779 = vmatmul.bf16.gmra.mxu1 %v2703_v13  ;;  %vm12683_vm15 = vcmask 519424  }
 0x878   : > { %v2704_v61 = vpack.c.bf16 %v2693_v14, %v2692_v47 }
 0x87c   : > { %v2777_v62 = vpop.f32.mrf.mxu1 }
 0x87d   : > { %v2810_v23 = vpack.c.bf16 %v2777_v62, %v2777_v62  ;;  %v3491_v62 = vsub.f32 %v10436_v21, %v3471_v12 }
 0x87e   : > { %2666 = vadd.xlane.f32.xlu2 %v10519_v55 }
 0x87f   : > { %2827 = vst.msk [vmem:[#allocation2 + $0x14] sm:$0xf] %vm13203_vm2, %v2810_v23  ;;  %v3518_v9 = vmul.f32 1.442695, %v3491_v62 }
 0x886   : > { %3542 = vadd.xlane.f32.xlu2 %v10525_v8 }
 0x887   : > { %2784 = vmatmul.bf16.gmra.mxu1 %v2704_v61  ;;  %v2659_v29 = vpop.xlane.xlu2 %2658 }
 0x888   : > { %6513 = vrcp.f32 %v2659_v29 }
 0x889   : > { %6515 = vrcp.f32 %v10442_v28 }
 0x88e   : > { %v6514_v44 = vpop.eup %6513 }
 0x88f   : > { %v6516_v41 = vpop.eup %6515  ;;  %v2695_v34 = vmul.f32 %v6514_v44, %v10444_v2 }
 0x890   : > { %v2694_v52 = vmul.f32 %v6516_v41, %v10370_v40 }
 0x892   : > { %v2705_v50 = vpack.c.bf16 %v2695_v34, %v2694_v52 }
 0x894   : > { %v2585_v16 = vpop.xlane.xlu0 %2584 }
 0x895   : > { %v2602_v30 = vsub.f32 %v10465_v48, %v2585_v16 }
 0x897   : > { %v2632_v60 = vmul.f32 1.442695, %v2602_v30  ;;  %2789 = vmatmul.bf16.gmra.mxu1 %v2705_v50  ;;  %v10551_v22 = vpop.xlane.xlu1 %3552 }
 0x899   : > { %6517 = vpow2.f32 %v2632_v60 }
 0x89c   : > { %v10532_v18 = vpop.xlane.xlu0 %3546 }
 0x89f   : > { %v10534_v32 = vpop.eup %6517 }
 0x8a0   : > { %2664 = vadd.xlane.f32.xlu0 %v10534_v32 }
 0x8a3   : > { %v3475_v28 = vpop.xlane.xlu2 %3474 }
 0x8a4   : > { %v3493_v63 = vsub.f32 %v10478_v42, %v3475_v28  ;;  %v10538_v36 = vpop.xlane.xlu0 %3548 }
 0x8a6   : > { %v3522_v2 = vmul.f32 1.442695, %v3493_v63 }
 0x8a8   : > { %6519 = vpow2.f32 %v3522_v2 }
 0x8a9   : > { %6521 = vrcp.f32 %v10492_v4  ;;  %v3638_v4 = vpop.f32.mrf.mxu0 }
 0x8aa   : > { %v3675_v24 = vpack.c.bf16 %v3638_v4, %v3638_v4 }
 0x8ac   : > { %v2663_v40 = vpop.xlane.xlu0 %2662 }
 0x8ad   : > { %6523 = vrcp.f32 %v2663_v40 }
 0x8ae   : > { %v10541_v48 = vpop.eup %6519  ;;  %6525 = vpow2.f32 %v3518_v9 }
 0x8af   : > { %3554 = vadd.xlane.f32.xlu2 %v10541_v48  ;;  %v6522_v3 = vpop.eup %6521 }
 0x8b0   : > { %v2696_v42 = vmul.f32 %v6522_v3, %v10413_v1 }
 0x8b1   : > { %v3640_v27 = vpop.f32.mrf.mxu0 }
 0x8b2   : > { %v3676_v28 = vpack.c.bf16 %v3640_v27, %v3640_v27 }
 0x8b3   : > { %v6524_v56 = vpop.eup %6523 }
 0x8b4   : > { %3705 = vrot.lane.b32.xlu0 %v3673_v49, %s6919_s19  ;;  %v2697_v37 = vmul.f32 %v6524_v56, %v10484_v45  ;;  %v10555_v45 = vpop.eup %6525 }
 0x8b6   : > { %v2706_v13 = vpack.c.bf16 %v2697_v37, %v2696_v42 }
 0x8b8   : > { %2794 = vmatmul.bf16.gmra.mxu1 %v2706_v13 }
 0x8c7   : > { %3709 = vrot.lane.b32.xlu2 %v3675_v24, %s6919_s19 }
 0x8d0   : > { %v3643_v23 = vpop.f32.mrf.mxu0 }
 0x8d1   : > { %v3677_v42 = vpack.c.bf16 %v3643_v23, %v3643_v23 }
 0x8d8   : > { %v3645_v19 = vpop.f32.mrf.mxu0 }
 0x8d9   : > { %v3678_v14 = vpack.c.bf16 %v3645_v19, %v3645_v19  ;;  %v3708_v1 = vpop.permute.xlu1 %3707 }
 0x8da   : > { %3755 = vst.msk [vmem:[#allocation2 + $0x4] sm:$0xf] %vm12683_vm15, %v3708_v1  ;;  %vm13205_vm15 = vmmov %vm13203_vm2 }
 0x8db   : > { %3715 = vrot.lane.b32.xlu2 %v3678_v14, %s6919_s19 }
 0x8de   : > { %3550 = vadd.xlane.f32.xlu0 %v10555_v45 }
 0x8e1   : > { %v3477_v47 = vpop.xlane.xlu2 %3476 }
 0x8e2   : > { %v3494_v21 = vsub.f32 %v10500_v38, %v3477_v47 }
 0x8e4   : > { %v3524_v12 = vmul.f32 1.442695, %v3494_v21 }
 0x8e6   : > { %6527 = vpow2.f32 %v3524_v12  ;;  %v13210_v12 = vld [vmem:[#allocation31_spill] sm:$0xff] }
 0x8e9   : > { %v3479_v61 = vpop.xlane.xlu2 %3478 }
 0x8ea   : > { %v3495_v29 = vsub.f32 %v10512_v54, %v3479_v61 }
 0x8ec   : > { %v10560_v44 = vpop.eup %6527  ;;  %v3526_v41 = vmul.f32 1.442695, %v3495_v29 }
 0x8ed   : > { %3556 = vadd.xlane.f32.xlu0 %v10560_v44 }
 0x8ee   : > { %6529 = vpow2.f32 %v3526_v41 }
 0x8ef   : > { %6531 = vrcp.f32 %v10494_v5 }
 0x8f1   : > { %v2667_v34 = vpop.xlane.xlu2 %2666 }
 0x8f4   : > { %v10563_v52 = vpop.eup %6529  ;;  %v2780_v16 = vpop.f32.mrf.mxu1 }
 0x8f5   : > { %v2811_v30 = vpack.c.bf16 %v2780_v16, %v2780_v16  ;;  %3558 = vadd.xlane.f32.xlu1 %v10563_v52  ;;  %v6532_v60 = vpop.eup %6531  ;;  %v13217_v16 = vld [vmem:[#allocation38_spill] sm:$0xff] }
 0x8f6   : > { %v3582_v2 = vmul.f32 %v6532_v60, %v10425_v46 }
 0x8f7   : > { %2828 = vst.msk [vmem:[#allocation2 + $0x18] sm:$0xf] %vm13203_vm2, %v2811_v30 }
 0x8f9   : > { %v3543_v38 = vpop.xlane.xlu2 %3542 }
 0x8fa   : > { %6533 = vrcp.f32 %v3543_v38 }
 0x8fb   : > { %6535 = vrcp.f32 %v10532_v18 }
 0x8fc   : > { %v2782_v54 = vpop.f32.mrf.mxu1  ;;  %6537 = vrcp.f32 %v10460_v53 }
 0x8fd   : > { %v2812_v50 = vpack.c.bf16 %v2782_v54, %v2782_v54  ;;  %6539 = vrcp.f32 %v2667_v34  ;;  %v13214_v34 = vld [vmem:[#allocation33_spill] sm:$0xff] }
 0x8ff   : > { %2829 = vst.msk [vmem:[#allocation2 + $0x1c] sm:$0xf] %vm13205_vm15, %v2812_v50  ;;  %vm13206_vm15 = vmmov %vm13203_vm2 }
 0x900   : > { %v6534_v63 = vpop.eup %6533 }
 0x901   : > { %3711 = vrot.lane.b32.xlu0 %v3676_v28, %s6919_s19  ;;  %v3583_v40 = vmul.f32 %v6534_v63, %v10525_v8  ;;  %v6536_v5 = vpop.eup %6535  ;;  %v13219_v63 = vld [vmem:[#allocation43_spill] sm:$0xff] }
 0x902   : > { %v6538_v4 = vpop.eup %6537  ;;  %v3585_v46 = vmul.f32 %v6536_v5, %v10473_v33 }
 0x903   : > { %v3595_v3 = vpack.c.bf16 %v3583_v40, %v3582_v2  ;;  %v3584_v8 = vmul.f32 %v6538_v4, %v10323_v58  ;;  %v6540_v53 = vpop.eup %6539 }
 0x904   : > { %v2785_v49 = vpop.f32.mrf.mxu1  ;;  %v2699_v19 = vmul.f32 %v6540_v53, %v10519_v55 }
 0x905   : > { %v2813_v56 = vpack.c.bf16 %v2785_v49, %v2785_v49  ;;  %3647 = vmatmul.bf16.gmra.mxu0 %v3595_v3  ;;  %v3596_v18 = vpack.c.bf16 %v3585_v46, %v3584_v8  ;;  %v13226_v46 = vld [vmem:[#allocation22_spill] sm:$0xff] }
 0x906   : > { %v13228_v8 = vld [vmem:[#allocation66_spill] sm:$0xff] }
 0x907   : > { %2830 = vst.msk [vmem:[#allocation2 + $0x20] sm:$0xf] %vm13203_vm2, %v2813_v56 }
 0x90c   : > { %v2787_v37 = vpop.f32.mrf.mxu1 }
 0x90d   : > { %v2814_v13 = vpack.c.bf16 %v2787_v37, %v2787_v37 }
 0x90e   : > { %3713 = vrot.lane.b32.xlu1 %v3677_v42, %s6919_s19 }
 0x90f   : > { %2831 = vst.msk [vmem:[#allocation2 + $0x24] sm:$0xf] %vm13206_vm15, %v2814_v13  ;;  %vm13207_vm15 = vmmov %vm13203_vm2 }
 0x910   : > { %vm13213_vm10 = vmmov %vm13207_vm15 }
 0x911   : > { %vm13216_vm7 = vmmov %vm13213_vm10 }
 0x913   : > { %v2665_v24 = vpop.xlane.xlu0 %2664 }
 0x914   : > { %v2790_v27 = vpop.f32.mrf.mxu1  ;;  %6541 = vrcp.f32 %v2665_v24 }
 0x915   : > { %v2815_v62 = vpack.c.bf16 %v2790_v27, %v2790_v27  ;;  %3652 = vmatmul.bf16.gmra.mxu0 %v3596_v18  ;;  %6543 = vrcp.f32 %v10538_v36  ;;  %v13229_v27 = vld [vmem:[#allocation32_spill] sm:$0xff] }
 0x917   : > { %2832 = vst.msk [vmem:[#allocation2 + $0x28] sm:$0xf] %vm13203_vm2, %v2815_v62  ;;  %vm13211_vm2 = vcmask 261120  }
 0x91a   : > { %v6542_v23 = vpop.eup %6541 }
 0x91b   : > { %v2698_v9 = vmul.f32 %v6542_v23, %v10534_v32  ;;  %v6544_v38 = vpop.eup %6543 }
 0x91c   : > { %v2792_v14 = vpop.f32.mrf.mxu1  ;;  %v3586_v50 = vmul.f32 %v6544_v38, %v10480_v0  ;;  %v13221_v0 = vld [vmem:[#allocation48_spill] sm:$0xff] }
 0x91d   : > { %v2816_v1 = vpack.c.bf16 %v2792_v14, %v2792_v14  ;;  %v2707_v33 = vpack.c.bf16 %v2699_v19, %v2698_v9  ;;  %v13235_v9 = vld [vmem:[#allocation36_spill] sm:$0xff] }
 0x91e   : > { %v13237_v19 = vld [vmem:[#allocation28_spill] sm:$0xff] }
 0x91f   : > { %2833 = vst.msk [vmem:[#allocation2 + $0x2c] sm:$0xf] %vm13207_vm15, %v2816_v1  ;;  %2799 = vmatmul.bf16.gmra.mxu1 %v2707_v33  ;;  %vm13215_vm15 = vmmov %vm13211_vm2 }
 0x922   : > { %v3555_v58 = vpop.xlane.xlu2 %3554 }
 0x926   : > { %v3706_v47 = vpop.permute.xlu0 %3705 }
 0x927   : > { %3754 = vst.msk [vmem:[#allocation2] sm:$0xf] %vm13208_vm4, %v3706_v47  ;;  %vm13218_vm4 = vmmov %vm13211_vm2  ;;  %v13241_v47 = vld [vmem:[#allocation34_spill] sm:$0xff] }
 0x92a   : > { %v3710_v21 = vpop.permute.xlu2 %3709 }
 0x92b   : > { %3756 = vst.msk [vmem:[#allocation2 + $0x8] sm:$0xf] %vm13209_vm13, %v3710_v21  ;;  %vm13224_vm13 = vmmov %vm13211_vm2 }
 0x92f   : > { %6135 = vmatmul.msk.bf16.vlgmr.msra.gmra.mxu1 %vm13211_vm2, %v13210_v12 }
 0x935   : > { %v3716_v61 = vpop.permute.xlu2 %3715  ;;  %v2795_v32 = vpop.f32.mrf.mxu1 }
 0x936   : > { %3759 = vst.msk [vmem:[#allocation2 + $0x14] sm:$0xf] %vm13212_vm8, %v3716_v61  ;;  %v2817_v55 = vpack.c.bf16 %v2795_v32, %v2795_v32 }
 0x938   : > { %2834 = vst.msk [vmem:[#allocation2 + $0x30] sm:$0xf] %vm13213_vm10, %v2817_v55  ;;  %vm13220_vm10 = vmmov %vm13211_vm2 }
 0x93d   : > { %v2797_v29 = vpop.f32.mrf.mxu1 }
 0x93e   : > { %v2818_v41 = vpack.c.bf16 %v2797_v29, %v2797_v29  ;;  %v13243_v29 = vld [vmem:[#allocation47_spill] sm:$0xff] }
 0x93f   : > { %6136 = vmatmul.msk.bf16.gmra.mxu1 %vm13215_vm15, %v13214_v34  ;;  %vm13227_vm15 = vmmov %vm13218_vm4 }
 0x940   : > { %2835 = vst.msk [vmem:[#allocation2 + $0x34] sm:$0xf] %vm13216_vm7, %v2818_v41  ;;  %vm13222_vm7 = vmmov %vm13211_vm2  ;;  %v13245_v41 = vld [vmem:[#allocation39_spill] sm:$0xff] }
 0x941   : > { %vm13225_vm2 = vmmov %vm13212_vm8 }
 0x94f   : > { %6137 = vmatmul.msk.bf16.gmra.mxu1 %vm13218_vm4, %v13217_v16 }
 0x951   : > { %v3551_v30 = vpop.xlane.xlu0 %3550 }
 0x952   : > { %6545 = vrcp.f32 %v3551_v30 }
 0x953   : > { %6547 = vrcp.f32 %v3555_v58  ;;  %v13239_v58 = vld [vmem:[#allocation20_spill] sm:$0xff] }
 0x954   : > { %6549 = vrcp.f32 %v10551_v22 }
 0x958   : > { %v6546_v54 = vpop.eup %6545 }
 0x959   : > { %v3587_v60 = vmul.f32 %v6546_v54, %v10555_v45  ;;  %v6548_v2 = vpop.eup %6547 }
 0x95a   : > { %v6550_v40 = vpop.eup %6549  ;;  %v3589_v36 = vmul.f32 %v6548_v2, %v10541_v48 }
 0x95b   : > { %v3597_v28 = vpack.c.bf16 %v3587_v60, %v3586_v50  ;;  %v3588_v3 = vmul.f32 %v6550_v40, %v10470_v51  ;;  %v13223_v51 = vld [vmem:[#allocation59_spill] sm:$0xff]  ;;  %v13249_v60 = vld [vmem:[#allocation44_spill] sm:$0xff] }
 0x95c   : > { %v13247_v50 = vld [vmem:[#allocation51_spill] sm:$0xff] }
 0x95d   : > { %3657 = vmatmul.bf16.gmra.mxu0 %v3597_v28  ;;  %v3598_v5 = vpack.c.bf16 %v3589_v36, %v3588_v3  ;;  %v13252_v3 = vld [vmem:[#allocation62_spill] sm:$0xff] }
 0x95f   : > { %6138 = vmatmul.msk.bf16.gmra.mxu1 %vm13220_vm10, %v13219_v63  ;;  %vm13230_vm10 = vmmov %vm13218_vm4 }
 0x960   : > { %v3557_v49 = vpop.xlane.xlu0 %3556 }
 0x968   : > { %v3559_v56 = vpop.xlane.xlu1 %3558 }
 0x969   : > { %6551 = vrcp.f32 %v3559_v56 }
 0x96a   : > { %6553 = vrcp.f32 %v3557_v49  ;;  %v13254_v49 = vld [vmem:[#allocation49_spill] sm:$0xff] }
 0x96d   : > { %3662 = vmatmul.bf16.gmra.mxu0 %v3598_v5 }
 0x96f   : > { %6139 = vmatmul.msk.bf16.gmra.mxu1 %vm13222_vm7, %v13221_v0  ;;  %v6552_v42 = vpop.eup %6551  ;;  %vm13231_vm7 = vcmask 257024  }
 0x970   : > { %v6554_v22 = vpop.eup %6553  ;;  %v3591_v37 = vmul.f32 %v6552_v42, %v10563_v52 }
 0x971   : > { %v3590_v48 = vmul.f32 %v6554_v22, %v10560_v44  ;;  %v13232_v44 = vld [vmem:[#allocation69_spill] sm:$0xff] }
 0x972   : > { %v13258_v22 = vld [vmem:[#allocation73_spill] sm:$0xff] }
 0x973   : > { %v3712_v45 = vpop.permute.xlu0 %3711  ;;  %v3599_v13 = vpack.c.bf16 %v3591_v37, %v3590_v48  ;;  %v13260_v37 = vld [vmem:[#allocation54_spill] sm:$0xff] }
 0x974   : > { %3757 = vst.msk [vmem:[#allocation2 + $0xc] sm:$0xf] %vm13212_vm8, %v3712_v45  ;;  %vm13233_vm8 = vmmov %vm13218_vm4 }
 0x97d   : > { %3667 = vmatmul.bf16.gmra.mxu0 %v3599_v13 }
 0x97f   : > { %6140 = vmatmul.msk.bf16.gmra.mxu1 %vm13224_vm13, %v13223_v51  ;;  %vm13234_vm13 = vmmov %vm13231_vm7 }
 0x980   : > { %v3714_v4 = vpop.permute.xlu1 %3713 }
 0x981   : > { %3758 = vst.msk [vmem:[#allocation2 + $0x10] sm:$0xf] %vm13225_vm2, %v3714_v4  ;;  %vm13236_vm2 = vmmov %vm13218_vm4 }
 0x982   : > { %v3648_v53 = vpop.f32.mrf.mxu0 }
 0x983   : > { %v3679_v32 = vpack.c.bf16 %v3648_v53, %v3648_v53 }
 0x98a   : > { %v3650_v1 = vpop.f32.mrf.mxu0 }
 0x98b   : > { %v3680_v16 = vpack.c.bf16 %v3650_v1, %v3650_v1 }
 0x98d   : > { %6151 = vmatmul.msk.bf16.vlgmr.msrb.gmra.mxu0 %vm13227_vm15, %v13226_v46  ;;  %vm13238_vm15 = vmmov %vm13236_vm2  ;;  %v13263_v46 = vld [vmem:[#allocation64_spill] sm:$0xff] }
 0x98f   : > { %6141 = vmatmul.msk.bf16.gmra.mxu1 %vm13218_vm4, %v13228_v8  ;;  %vm13240_vm4 = vmmov %vm13236_vm2 }
 0x992   : > { %v3653_v21 = vpop.f32.mrf.mxu0 }
 0x993   : > { %v3681_v12 = vpack.c.bf16 %v3653_v21, %v3653_v21 }
 0x99a   : > { %v3655_v34 = vpop.f32.mrf.mxu0 }
 0x99b   : > { %v3682_v63 = vpack.c.bf16 %v3655_v34, %v3655_v34 }
 0x99c   : > { %v2800_v24 = vpop.f32.mrf.mxu1 }
 0x99d   : > { %v2819_v18 = vpack.c.bf16 %v2800_v24, %v2800_v24  ;;  %6152 = vmatmul.msk.bf16.gmra.mxu0 %vm13230_vm10, %v13229_v27  ;;  %vm13242_vm10 = vmmov %vm13236_vm2 }
 0x99f   : > { %2836 = vst.msk [vmem:[#allocation2 + $0x38] sm:$0xf] %vm13231_vm7, %v2819_v18  ;;  %6142 = vmatmul.msk.bf16.gmra.mxu1 %vm13233_vm8, %v13232_v44  ;;  %vm13244_vm7 = vmmov %vm13236_vm2 }
 0x9a0   : > { %vm13246_vm8 = vmmov %vm13236_vm2 }
 0x9a4   : > { %v2802_v52 = vpop.f32.mrf.mxu1 }
 0x9a5   : > { %v2820_v62 = vpack.c.bf16 %v2802_v52, %v2802_v52 }
 0x9a7   : > { %2837 = vst.msk [vmem:[#allocation2 + $0x3c] sm:$0xf] %vm13234_vm13, %v2820_v62  ;;  %vm13248_vm13 = vmmov %vm13236_vm2  ;;  %v13265_v62 = vld [vmem:[#allocation76_spill] sm:$0xff] }
 0x9ac   : > { %v10620_v23 = vpop.f32.mrf.mxu1 }
 0x9ad   : > { %3899 = vrot.lane.b32.xlu0 %v10620_v23, %s6921_s6  ;;  %6153 = vmatmul.msk.bf16.gmra.mxu0 %vm13236_vm2, %v13235_v9  ;;  %v13268_v9 = vld [vmem:[#allocation77_spill] sm:$0xff] }
 0x9af   : > { %6159 = vmatmul.msk.bf16.vlgmr.msrb.gmra.mxu1 %vm13238_vm15, %v13237_v19  ;;  %vm13253_vm15 = vmmov %vm13236_vm2 }
 0x9b4   : > { %v10628_v14 = vpop.f32.mrf.mxu1 }
 0x9b5   : > { %3901 = vrot.lane.b32.xlu1 %v10628_v14, %s6921_s6 }
 0x9bc   : > { %v10632_v33 = vpop.f32.mrf.mxu1 }
 0x9bd   : > { %3903 = vrot.lane.b32.xlu2 %v10632_v33, %s6921_s6  ;;  %6154 = vmatmul.msk.bf16.gmra.mxu0 %vm13240_vm4, %v13239_v58  ;;  %vm13255_vm4 = vmmov %vm13236_vm2 }
 0x9bf   : > { %6160 = vmatmul.msk.bf16.gmra.mxu1 %vm13242_vm10, %v13241_v47  ;;  %vm13259_vm10 = vmmov %vm13236_vm2  ;;  %v13270_v47 = vld [vmem:[#allocation85_spill] sm:$0xff] }
 0x9c4   : > { %v10640_v61 = vpop.f32.mrf.mxu1 }
 0x9c5   : > { %3721 = vrot.lane.b32.xlu2 %v3681_v12, %s6919_s19  ;;  %3905 = vrot.lane.b32.xlu0 %v10640_v61, %s6921_s6 }
 0x9cc   : > { %v10645_v55 = vpop.f32.mrf.mxu1 }
 0x9cd   : > { %3717 = vrot.lane.b32.xlu0 %v3679_v32, %s6919_s19  ;;  %3907 = vrot.lane.b32.xlu1 %v10645_v55, %s6921_s6 }
 0x9ce   : > { %6155 = vmatmul.msk.bf16.gmra.mxu0 %vm13244_vm7, %v13243_v29  ;;  %vm13261_vm7 = vmmov %vm13236_vm2  ;;  %v13272_v29 = vld [vmem:[#allocation82_spill] sm:$0xff] }
 0x9cf   : > { %6161 = vmatmul.msk.bf16.gmra.mxu1 %vm13246_vm8, %v13245_v41  ;;  %vm13264_vm8 = vmmov %vm13236_vm2 }
 0x9d4   : > { %v10654_v30 = vpop.f32.mrf.mxu1 }
 0x9d5   : > { %3719 = vrot.lane.b32.xlu1 %v3680_v16, %s6919_s19  ;;  %3909 = vrot.lane.b32.xlu0 %v10654_v30, %s6921_s6  ;;  %v13274_v16 = vld [vmem:[#allocation81_spill] sm:$0xff] }
 0x9da   : > { %v3658_v38 = vpop.f32.mrf.mxu0 }
 0x9db   : > { %v3683_v5 = vpack.c.bf16 %v3658_v38, %v3658_v38 }
 0x9dc   : > { %v10659_v54 = vpop.f32.mrf.mxu1 }
 0x9dd   : > { %3911 = vrot.lane.b32.xlu0 %v10659_v54, %s6921_s6 }
 0x9de   : > { %6156 = vmatmul.msk.bf16.gmra.mxu0 %vm13248_vm13, %v13247_v50  ;;  %vm13266_vm13 = vmmov %vm13236_vm2 }
 0x9df   : > { %6162 = vmatmul.msk.bf16.gmra.mxu1 %vm13236_vm2, %v13249_v60  ;;  %vm13267_vm2 = vcmask 519424  }
 0x9e2   : > { %v10667_v28 = vpop.f32.mrf.mxu0 }
 0x9e3   : > { %13250 = vst [vmem:[#allocation29_spill] sm:$0xff] %v10667_v28 }
 0x9e4   : > { %v10669_v2 = vpop.f32.mrf.mxu1 }
 0x9e5   : > { %3723 = vrot.lane.b32.xlu0 %v3682_v63, %s6919_s19  ;;  %3913 = vrot.lane.b32.xlu2 %v10669_v2, %s6921_s6  ;;  %v13276_v63 = vld [vmem:[#allocation17_spill] sm:$0xff] }
 0x9ea   : > { %v10674_v40 = vpop.f32.mrf.mxu0 }
 0x9eb   : > { %13251 = vst [vmem:[#allocation95_spill] sm:$0xff] %v10674_v40 }
 0x9ec   : > { %v10676_v36 = vpop.f32.mrf.mxu1 }
 0x9ed   : > { %3915 = vrot.lane.b32.xlu2 %v10676_v36, %s6921_s6 }
 0x9ee   : > { %6157 = vmatmul.msk.bf16.gmra.mxu0 %vm13253_vm15, %v13252_v3  ;;  %vm13269_vm15 = vnez %v13268_v9 }
 0x9ef   : > { %6163 = vmatmul.msk.bf16.gmra.mxu1 %vm13255_vm4, %v13254_v49  ;;  %vm13271_vm4 = vnez %v13270_v47 }
 0x9f2   : > { %v10684_v56 = vpop.f32.mrf.mxu0 }
 0x9f3   : > { %13256 = vst [vmem:[#allocation87_spill] sm:$0xff] %v10684_v56  ;;  %v13295_v56 = vld [vmem:[#allocation24_spill] sm:$0xff] }
 0x9f4   : > { %v10686_v0 = vpop.f32.mrf.mxu1  ;;  %vm13296_vm6 = vnez %v13295_v56 }
 0x9f5   : > { %3917 = vrot.lane.b32.xlu0 %v10686_v0, %s6921_s6  ;;  %3725 = vrot.lane.b32.xlu2 %v3683_v5, %s6919_s19 }
 0x9fa   : > { %v10691_v45 = vpop.f32.mrf.mxu0 }
 0x9fb   : > { %13257 = vst [vmem:[#allocation99_spill] sm:$0xff] %v10691_v45 }
 0x9fc   : > { %v10693_v42 = vpop.f32.mrf.mxu1 }
 0x9fd   : > { %3919 = vrot.lane.b32.xlu2 %v10693_v42, %s6921_s6 }
 0x9fe   : > { %6158 = vmatmul.msk.bf16.gmra.mxu0 %vm13259_vm10, %v13258_v22  ;;  %vm13273_vm10 = vnez %v13272_v29  ;;  %v13279_v22 = vld [vmem:[#allocation93_spill] sm:$0xff] }
 0x9ff   : > { %6164 = vmatmul.msk.bf16.gmra.mxu1 %vm13261_vm7, %v13260_v37  ;;  %vm13275_vm7 = vnez %v13274_v16  ;;  %vm13280_vm0 = vnez %v13279_v22  ;;  %v13311_v16 = vld [vmem:[#allocation56_spill] sm:$0xff] }
 0xa02   : > { %v10701_v48 = vpop.f32.mrf.mxu0 }
 0xa03   : > { %13262 = vst [vmem:[#allocation102_spill] sm:$0xff] %v10701_v48  ;;  %v13293_v48 = vld [vmem:[#allocation104_spill] sm:$0xff] }
 0xa04   : > { %v10703_v13 = vpop.f32.mrf.mxu1  ;;  %vm13294_vm11 = vnez %v13293_v48  ;;  %v13330_v48 = vld [vmem:[#allocation109_spill] sm:$0xff] }
 0xa05   : > { %3921 = vrot.lane.b32.xlu2 %v10703_v13, %s6921_s6 }
 0xa0a   : > { %v10707_v51 = vpop.f32.mrf.mxu0 }
 0xa0c   : > { %v10709_v4 = vpop.f32.mrf.mxu1 }
 0xa0d   : > { %3923 = vrot.lane.b32.xlu2 %v10709_v4, %s6921_s6 }
 0xa0f   : > { %6165 = vmatmul.msk.bf16.gmra.mxu1 %vm13264_vm8, %v13263_v46  ;;  %vm13277_vm8 = vnez %v13276_v63 }
 0xa12   : > { %v10715_v8 = vpop.f32.mrf.mxu0 }
 0xa14   : > { %v10717_v24 = vpop.f32.mrf.mxu1 }
 0xa15   : > { %3925 = vrot.lane.b32.xlu1 %v10717_v24, %s6921_s6 }
 0xa17   : > { %v3904_v18 = vpop.permute.xlu2 %3903 }
 0xa18   : > { %v10774_v38 = vsel %vm13275_vm7, %v3904_v18, %v10632_v33  ;;  %v13281_v18 = vld [vmem:[#allocation21_spill] sm:$0xff] }
 0xa1a   : > { %v10721_v27 = vpop.f32.mrf.mxu0 }
 0xa1b   : > { %4835 = vrot.lane.b32.xlu2 %v10721_v27, %s6921_s6 }
 0xa1c   : > { %v10725_v44 = vpop.f32.mrf.mxu1 }
 0xa1d   : > { %3927 = vrot.lane.b32.xlu0 %v10725_v44, %s6921_s6 }
 0xa1f   : > { %v3722_v52 = vpop.permute.xlu2 %3721  ;;  %6166 = vmatmul.msk.bf16.gmra.mxu1 %vm13266_vm13, %v13265_v62  ;;  %v3900_v53 = vpop.permute.xlu0 %3899  ;;  %vm13278_vm13 = vmmov %vm13267_vm2 }
 0xa20   : > { %3762 = vst.msk [vmem:[#allocation2 + $0x20] sm:$0xf] %vm13267_vm2, %v3722_v52  ;;  %v10735_v19 = vsel %vm13269_vm15, %v3900_v53, %v10620_v23  ;;  %v13283_v53 = vld [vmem:[#allocation94_spill] sm:$0xff] }
 0xa21   : > { %3947 = vrot.lane.b32.xlu1 %v10735_v19, %s6922_s27  ;;  %vm13284_vm1 = vnez %v13283_v53 }
 0xa22   : > { %v10739_v1 = vpop.f32.mrf.mxu0 }
 0xa24   : > { %v10752_v23 = vpop.f32.mrf.mxu1 }
 0xa25   : > { %4831 = vrot.lane.b32.xlu0 %v10707_v51, %s6921_s6 }
 0xa27   : > { %v3902_v58 = vpop.permute.xlu1 %3901 }
 0xa28   : > { %v10746_v21 = vsel %vm13271_vm4, %v3902_v58, %v10628_v14 }
 0xa29   : > { %3949 = vrot.lane.b32.xlu1 %v10746_v21, %s6922_s27 }
 0xa2a   : > { %v10750_v12 = vpop.f32.mrf.mxu0 }
 0xa2d   : > { %3929 = vrot.lane.b32.xlu0 %v10752_v23, %s6921_s6 }
 0xa31   : > { %4837 = vrot.lane.b32.xlu1 %v10739_v1, %s6921_s6 }
 0xa32   : > { %v10758_v32 = vpop.f32.mrf.mxu0 }
 0xa35   : > { %4833 = vrot.lane.b32.xlu0 %v10715_v8, %s6921_s6 }
 0xa37   : > { %v3906_v14 = vpop.permute.xlu0 %3905 }
 0xa38   : > { %v10765_v41 = vsel %vm13273_vm10, %v3906_v14, %v10640_v61 }
 0xa39   : > { %3953 = vrot.lane.b32.xlu1 %v10765_v41, %s6922_s27 }
 0xa3a   : > { %v10769_v34 = vpop.f32.mrf.mxu0 }
 0xa3d   : > { %3951 = vrot.lane.b32.xlu0 %v10774_v38, %s6922_s27 }
 0xa3f   : > { %v3908_v50 = vpop.permute.xlu1 %3907  ;;  %v3914_v60 = vpop.permute.xlu2 %3913 }
 0xa40   : > { %v10781_v61 = vsel %vm13277_vm8, %v3908_v50, %v10645_v55  ;;  %v3718_v3 = vpop.permute.xlu0 %3717  ;;  %v13285_v50 = vld [vmem:[#allocation18_spill] sm:$0xff] }
 0xa41   : > { %3760 = vst.msk [vmem:[#allocation2 + $0x18] sm:$0xf] %vm13278_vm13, %v3718_v3  ;;  %3955 = vrot.lane.b32.xlu2 %v10781_v61, %s6922_s27  ;;  %4839 = vrot.lane.b32.xlu1 %v10750_v12, %s6921_s6  ;;  %vm13282_vm13 = vnez %v13281_v18  ;;  %vm13286_vm12 = vnez %v13285_v50 }
 0xa42   : > { %v10788_v33 = vpop.f32.mrf.mxu0  ;;  %v10826_v3 = vsel %vm13286_vm12, %v3914_v60, %v10669_v2 }
 0xa45   : > { %4845 = vrot.lane.b32.xlu0 %v10788_v33, %s6921_s6 }
 0xa47   : > { %v3720_v49 = vpop.permute.xlu1 %3719  ;;  %v3916_v5 = vpop.permute.xlu2 %3915 }
 0xa48   : > { %3761 = vst.msk [vmem:[#allocation2 + $0x1c] sm:$0xf] %vm13267_vm2, %v3720_v49  ;;  %v3910_v55 = vpop.permute.xlu0 %3909  ;;  %v10807_v52 = vsel %vm13282_vm13, %v3916_v5, %v10676_v36 }
 0xa49   : > { %v10796_v37 = vsel %vm13280_vm0, %v3910_v55, %v10654_v30  ;;  %4841 = vrot.lane.b32.xlu1 %v10758_v32, %s6921_s6  ;;  %v13287_v55 = vld [vmem:[#allocation23_spill] sm:$0xff] }
 0xa4a   : > { %3957 = vrot.lane.b32.xlu2 %v10796_v37, %s6922_s27  ;;  %vm13288_vm9 = vnez %v13287_v55 }
 0xa4b   : > { %v10802_v46 = vpop.f32.mrf.mxu0 }
 0xa4d   : > { %3963 = vrot.lane.b32.xlu0 %v10807_v52, %s6922_s27 }
 0xa4f   : > { %v3726_v62 = vpop.permute.xlu2 %3725 }
 0xa50   : > { %3764 = vst.msk [vmem:[#allocation2 + $0x28] sm:$0xf] %vm13267_vm2, %v3726_v62  ;;  %v3912_v30 = vpop.permute.xlu0 %3911 }
 0xa51   : > { %v10815_v58 = vsel %vm13284_vm1, %v3912_v30, %v10659_v54  ;;  %4843 = vrot.lane.b32.xlu1 %v10769_v34, %s6921_s6  ;;  %v13289_v30 = vld [vmem:[#allocation101_spill] sm:$0xff] }
 0xa52   : > { %3959 = vrot.lane.b32.xlu2 %v10815_v58, %s6922_s27 }
 0xa53   : > { %v10821_v36 = vpop.f32.mrf.mxu0 }
 0xa57   : > { %v3920_v14 = vpop.permute.xlu2 %3919 }
 0xa58   : > { %v3724_v49 = vpop.permute.xlu0 %3723 }
 0xa59   : > { %3763 = vst.msk [vmem:[#allocation2 + $0x24] sm:$0xf] %vm13267_vm2, %v3724_v49  ;;  %3961 = vrot.lane.b32.xlu1 %v10826_v3, %s6922_s27  ;;  %vm13290_vm2 = vnez %v13289_v30 }
 0xa5b   : > { %v10831_v54 = vpop.f32.mrf.mxu0 }
 0xa5f   : > { %v3922_v5 = vpop.permute.xlu2 %3921 }
 0xa60   : > { %v10836_v62 = vsel %vm13288_vm9, %v3922_v5, %v10703_v13  ;;  %v13291_v5 = vld [vmem:[#allocation100_spill] sm:$0xff] }
 0xa61   : > { %4847 = vrot.lane.b32.xlu1 %v10802_v46, %s6921_s6  ;;  %3969 = vrot.lane.b32.xlu2 %v10836_v62, %s6922_s27  ;;  %vm13292_vm14 = vnez %v13291_v5 }
 0xa62   : > { %v10860_v45 = vsel %vm13292_vm14, %v3920_v14, %v10693_v42 }
 0xa63   : > { %v10842_v2 = vpop.f32.mrf.mxu0 }
 0xa67   : > { %v3918_v60 = vpop.permute.xlu0 %3917 }
 0xa68   : > { %v10847_v49 = vsel %vm13290_vm2, %v3918_v60, %v10686_v0  ;;  %v3924_v0 = vpop.permute.xlu2 %3923 }
 0xa69   : > { %4849 = vrot.lane.b32.xlu1 %v10821_v36, %s6921_s6  ;;  %3965 = vrot.lane.b32.xlu0 %v10847_v49, %s6922_s27  ;;  %v10871_v40 = vsel %vm13294_vm11, %v3924_v0, %v10709_v4 }
 0xa6b   : > { %v10853_v13 = vpop.f32.mrf.mxu0 }
 0xa6c   : > { %4855 = vrot.lane.b32.xlu2 %v10853_v13, %s6921_s6 }
 0xa71   : > { %4851 = vrot.lane.b32.xlu1 %v10831_v54, %s6921_s6  ;;  %3967 = vrot.lane.b32.xlu0 %v10860_v45, %s6922_s27 }
 0xa73   : > { %v10866_v60 = vpop.f32.mrf.mxu0 }
 0xa79   : > { %4853 = vrot.lane.b32.xlu1 %v10842_v2, %s6921_s6  ;;  %3971 = vrot.lane.b32.xlu0 %v10871_v40, %s6922_s27 }
 0xa7b   : > { %v10877_v42 = vpop.f32.mrf.mxu0 }
 0xa81   : > { %4859 = vrot.lane.b32.xlu1 %v10877_v42, %s6921_s6  ;;  %4857 = vrot.lane.b32.xlu0 %v10866_v60, %s6921_s6 }
 0xa83   : > { %v10890_v28 = vpop.f32.mrf.mxu0 }
 0xa87   : > { %v3926_v14 = vpop.permute.xlu1 %3925 }
 0xa88   : > { %v10886_v4 = vsel %vm13296_vm6, %v3926_v14, %v10717_v24  ;;  %v13299_v24 = vld [vmem:[#allocation40_spill] sm:$0xff]  ;;  %vm13302_vm6 = vnez %v13301_v10 }
 0xa89   : > { %3973 = vrot.lane.b32.xlu0 %v10886_v4, %s6922_s27  ;;  %vm13300_vm3 = vnez %v13299_v24 }
 0xa8f   : > { %v3928_v0 = vpop.permute.xlu0 %3927 }
 0xa90   : > { %v10895_v6 = vsel %vm13298_vm5, %v3928_v0, %v10725_v44 }
 0xa91   : > { %4861 = vrot.lane.b32.xlu0 %v10890_v28, %s6921_s6  ;;  %3975 = vrot.lane.b32.xlu1 %v10895_v6, %s6922_s27  ;;  %s5832_s6 = scalar_lea.sflag [#allocation5], %s7097_s11 }
 0xa93   : > { %v3948_v39 = vpop.permute.xlu1 %3947 }
 0xa94   : > { %v10904_v14 = vsel %vm13300_vm3, %v3948_v39, %v10735_v19  ;;  %v4836_v39 = vpop.permute.xlu2 %4835  ;;  %vm13304_vm3 = vnez %v13303_v31 }
 0xa95   : > { %3995 = vrot.lane.b32.xlu2 %v10904_v14, %s6923_s25  ;;  %v10960_v47 = vsel %vm13275_vm7, %v4836_v39, %v10721_v27  ;;  %vm13312_vm7 = vnez %v13311_v16  ;;  %v13345_v16 = vld [vmem:[#allocation46_spill] sm:$0xff] }
 0xa97   : > { %v4832_v43 = vpop.permute.xlu0 %4831 }
 0xa98   : > { %v10911_v44 = vsel %vm13269_vm15, %v4832_v43, %v10707_v51 }
 0xa99   : > { %4879 = vrot.lane.b32.xlu1 %v10911_v44, %s6922_s27 }
 0xa9b   : > { %v3950_v0 = vpop.permute.xlu1 %3949 }
 0xa9c   : > { %v10918_v59 = vsel %vm13302_vm6, %v3950_v0, %v10746_v21  ;;  %v3956_v21 = vpop.permute.xlu2 %3955 }
 0xa9d   : > { %3997 = vrot.lane.b32.xlu2 %v10918_v59, %s6923_s25 }
 0xa9f   : > { %v3930_v19 = vpop.permute.xlu0 %3929 }
 0xaa0   : > { %v10925_v9 = vsel %vm13304_vm3, %v3930_v19, %v10752_v23  ;;  %v13305_v19 = vld [vmem:[#allocation63_spill] sm:$0xff] }
 0xaa1   : > { %3977 = vrot.lane.b32.xlu1 %v10925_v9, %s6922_s27  ;;  %vm13306_vm15 = vnez %v13305_v19 }
 0xaa2   : > { %v10946_v29 = vsel %vm13306_vm15, %v3956_v21, %v10781_v61 }
 0xaa3   : > { %v4838_v43 = vpop.permute.xlu1 %4837 }
 0xaa4   : > { %v10932_v51 = vsel %vm13273_vm10, %v4838_v43, %v10739_v1  ;;  %v13307_v1 = vld [vmem:[#allocation58_spill] sm:$0xff] }
 0xaa5   : > { %4885 = vrot.lane.b32.xlu0 %v10932_v51, %s6922_s27  ;;  %vm13308_vm10 = vnez %v13307_v1 }
 0xaa7   : > { %v4834_v0 = vpop.permute.xlu0 %4833 }
 0xaa8   : > { %v10939_v15 = vsel %vm13271_vm4, %v4834_v0, %v10715_v8  ;;  %v3958_v0 = vpop.permute.xlu2 %3957 }
 0xaa9   : > { %4881 = vrot.lane.b32.xlu1 %v10939_v15, %s6922_s27 }
 0xaab   : > { %v3954_v23 = vpop.permute.xlu1 %3953 }
 0xaac   : > { %v10951_v43 = vsel %vm13308_vm10, %v3954_v23, %v10765_v41  ;;  %v13309_v41 = vld [vmem:[#allocation61_spill] sm:$0xff] }
 0xaad   : > { %4001 = vrot.lane.b32.xlu2 %v10951_v43, %s6923_s25  ;;  %4003 = vrot.lane.b32.xlu0 %v10946_v29, %s6923_s25  ;;  %vm13310_vm4 = vnez %v13309_v41 }
 0xaae   : > { %v10967_v21 = vsel %vm13310_vm4, %v3958_v0, %v10796_v37  ;;  %v13313_v0 = vld [vmem:[#allocation65_spill] sm:$0xff] }
 0xaaf   : > { %v3952_v8 = vpop.permute.xlu0 %3951 }
 0xab0   : > { %v10981_v39 = vsel %vm13312_vm7, %v3952_v8, %v10774_v38  ;;  %v3960_v22 = vpop.permute.xlu2 %3959 }
 0xab1   : > { %4883 = vrot.lane.b32.xlu1 %v10960_v47, %s6922_s27 }
 0xab3   : > { %v4840_v61 = vpop.permute.xlu1 %4839 }
 0xab4   : > { %v10972_v23 = vsel %vm13277_vm8, %v4840_v61, %v10750_v12  ;;  %vm13314_vm8 = vnez %v13313_v0 }
 0xab5   : > { %4887 = vrot.lane.b32.xlu2 %v10972_v23, %s6922_s27  ;;  %4005 = vrot.lane.b32.xlu0 %v10967_v21, %s6923_s25 }
 0xab7   : > { %v4846_v27 = vpop.permute.xlu0 %4845 }
 0xab8   : > { %v11002_v8 = vsel %vm13286_vm12, %v4846_v27, %v10788_v33 }
 0xab9   : > { %3999 = vrot.lane.b32.xlu1 %v10981_v39, %s6923_s25 }
 0xabb   : > { %v4842_v37 = vpop.permute.xlu1 %4841 }
 0xabc   : > { %v10988_v12 = vsel %vm13280_vm0, %v4842_v37, %v10758_v32  ;;  %v13315_v37 = vld [vmem:[#allocation55_spill] sm:$0xff] }
 0xabd   : > { %4889 = vrot.lane.b32.xlu2 %v10988_v12, %s6922_s27  ;;  %vm13316_vm0 = vnez %v13315_v37 }
 0xabf   : > { %v3964_v63 = vpop.permute.xlu0 %3963 }
 0xac0   : > { %v10995_v61 = vsel %vm13314_vm8, %v3964_v63, %v10807_v52  ;;  %v11016_v63 = vsel %vm13316_vm0, %v3960_v22, %v10815_v58 }
 0xac1   : > { %4011 = vrot.lane.b32.xlu1 %v10995_v61, %s6923_s25 }
 0xac3   : > { %v4844_v38 = vpop.permute.xlu1 %4843 }
 0xac4   : > { %v11007_v32 = vsel %vm13284_vm1, %v4844_v38, %v10769_v34  ;;  %v13317_v34 = vld [vmem:[#allocation84_spill] sm:$0xff] }
 0xac5   : > { %4891 = vrot.lane.b32.xlu0 %v11007_v32, %s6922_s27  ;;  %4893 = vrot.lane.b32.xlu2 %v11002_v8, %s6922_s27  ;;  %vm13318_vm1 = vnez %v13317_v34 }
 0xacb   : > { %v3962_v52 = vpop.permute.xlu1 %3961 }
 0xacc   : > { %v11023_v53 = vsel %vm13318_vm1, %v3962_v52, %v10826_v3  ;;  %v13319_v3 = vld [vmem:[#allocation71_spill] sm:$0xff] }
 0xacd   : > { %4007 = vrot.lane.b32.xlu0 %v11016_v63, %s6923_s25  ;;  %vm13320_vm12 = vnez %v13319_v3 }
 0xad3   : > { %v4848_v33 = vpop.permute.xlu1 %4847 }
 0xad4   : > { %v11028_v50 = vsel %vm13282_vm13, %v4848_v33, %v10802_v46 }
 0xad5   : > { %4009 = vrot.lane.b32.xlu0 %v11023_v53, %s6923_s25  ;;  %4895 = vrot.lane.b32.xlu2 %v11028_v50, %s6922_s27 }
 0xadb   : > { %v4850_v58 = vpop.permute.xlu1 %4849  ;;  %v3966_v27 = vpop.permute.xlu0 %3965 }
 0xadc   : > { %v11037_v38 = vsel %vm13290_vm2, %v4850_v58, %v10821_v36  ;;  %v11042_v22 = vsel %vm13320_vm12, %v3966_v27, %v10847_v49  ;;  %v13321_v36 = vld [vmem:[#allocation97_spill] sm:$0xff]  ;;  %v3970_v49 = vpop.permute.xlu2 %3969  ;;  %vm13326_vm2 = vnez %v13325_v35 }
 0xadd   : > { %4897 = vrot.lane.b32.xlu2 %v11037_v38, %s6922_s27  ;;  %4013 = vrot.lane.b32.xlu1 %v11042_v22, %s6923_s25  ;;  %vm13322_vm13 = vnez %v13321_v36  ;;  %v11079_v55 = vsel %vm13326_vm2, %v3970_v49, %v10836_v62  ;;  %v13327_v62 = vld [vmem:[#allocation106_spill] sm:$0xff] }
 0xae3   : > { %v4852_v46 = vpop.permute.xlu1 %4851  ;;  %v3968_v18 = vpop.permute.xlu0 %3967 }
 0xae4   : > { %v11051_v52 = vsel %vm13292_vm14, %v4852_v46, %v10831_v54  ;;  %v11056_v30 = vsel %vm13322_vm13, %v3968_v18, %v10860_v45  ;;  %v13323_v54 = vld [vmem:[#allocation68_spill] sm:$0xff]  ;;  %v4856_v45 = vpop.permute.xlu2 %4855 }
 0xae5   : > { %4899 = vrot.lane.b32.xlu2 %v11051_v52, %s6922_s27  ;;  %4015 = vrot.lane.b32.xlu1 %v11056_v30, %s6923_s25  ;;  %vm13324_vm14 = vnez %v13323_v54 }
 0xaeb   : > { %v4854_v33 = vpop.permute.xlu1 %4853  ;;  %v3972_v58 = vpop.permute.xlu0 %3971 }
 0xaec   : > { %v11065_v5 = vsel %vm13288_vm9, %v4854_v33, %v10842_v2  ;;  %v11070_v27 = vsel %vm13324_vm14, %v3972_v58, %v10871_v40  ;;  %v11093_v58 = vsel %vm13294_vm11, %v4856_v45, %v10853_v13  ;;  %vm13328_vm9 = vnez %v13327_v62 }
 0xaed   : > { %4901 = vrot.lane.b32.xlu0 %v11065_v5, %s6922_s27  ;;  %4019 = vrot.lane.b32.xlu1 %v11070_v27, %s6923_s25  ;;  %vm13331_vm11 = vnez %v13330_v48  ;;  %v13359_v48 = vld [vmem:[#allocation123_spill] sm:$0xff] }
 0xaef   : > { %v3996_v40 = vpop.permute.xlu2 %3995 }
 0xaf3   : > { %v4860_v46 = vpop.permute.xlu1 %4859  ;;  %v4858_v18 = vpop.permute.xlu0 %4857 }
 0xaf4   : > { %v11084_v2 = vsel %vm13298_vm5, %v4860_v46, %v10877_v42  ;;  %vm13329_vm5 = vnez %v13295_v56 }
 0xaf5   : > { %4017 = vrot.lane.b32.xlu0 %v11079_v55, %s6923_s25  ;;  %4907 = vrot.lane.b32.xlu2 %v11084_v2, %s6922_s27  ;;  %v11107_v46 = vsel %vm13329_vm5, %v4858_v18, %v10866_v60 }
 0xaf7   : > { %v3998_v20 = vpop.permute.xlu2 %3997 }
 0xafb   : > { %v3974_v33 = vpop.permute.xlu0 %3973 }
 0xafc   : > { %v11098_v49 = vsel %vm13328_vm9, %v3974_v33, %v10886_v4  ;;  %v13332_v4 = vld [vmem:[#allocation108_spill] sm:$0xff] }
 0xafd   : > { %4903 = vrot.lane.b32.xlu0 %v11093_v58, %s6922_s27  ;;  %4021 = vrot.lane.b32.xlu1 %v11098_v49, %s6923_s25  ;;  %vm13333_vm9 = vnez %v13332_v4 }
 0xafe   : > { %v11117_v45 = vsel %vm13333_vm9, %v3996_v40, %v10904_v14  ;;  %vm13336_vm9 = vnez %v13299_v24 }
 0xb03   : > { %v3976_v42 = vpop.permute.xlu1 %3975  ;;  %v4862_v56 = vpop.permute.xlu0 %4861 }
 0xb04   : > { %v11112_v13 = vsel %vm13331_vm11, %v3976_v42, %v10895_v6  ;;  %v13334_v6 = vld [vmem:[#allocation113_spill] sm:$0xff]  ;;  %v11138_v40 = vsel %vm13304_vm3, %v4862_v56, %v10890_v28 }
 0xb05   : > { %4023 = vrot.lane.b32.xlu2 %v11112_v13, %s6923_s25  ;;  %4905 = vrot.lane.b32.xlu0 %v11107_v46, %s6922_s27  ;;  %vm13335_vm5 = vnez %v13334_v6 }
 0xb06   : > { %4043 = vrot.lane.b32.xlu1 %v11117_v45, %s6924_s28  ;;  %v11128_v33 = vsel %vm13335_vm5, %v3998_v20, %v10918_v59  ;;  %v13337_v20 = vld [vmem:[#allocation111_spill] sm:$0xff] }
 0xb07   : > { %v4002_v60 = vpop.permute.xlu2 %4001  ;;  %vm13338_vm5 = vnez %v13337_v20 }
 0xb08   : > { %v11149_v24 = vsel %vm13338_vm5, %v4002_v60, %v10951_v43 }
 0xb0b   : > { %v4880_v18 = vpop.permute.xlu1 %4879 }
 0xb0c   : > { %v11133_v14 = vsel %vm13336_vm9, %v4880_v18, %v10911_v44  ;;  %v13339_v44 = vld [vmem:[#allocation112_spill] sm:$0xff] }
 0xb0d   : > { %4927 = vrot.lane.b32.xlu2 %v11133_v14, %s6923_s25  ;;  %4045 = vrot.lane.b32.xlu0 %v11128_v33, %s6924_s28  ;;  %vm13340_vm9 = vnez %v13339_v44 }
 0xb0e   : > { %4909 = vrot.lane.b32.xlu1 %v11138_v40, %s6922_s27  ;;  %s6847_s27 = sshra.s32 %s5847_s22, 4  ;;  %s6848_s27 = int_to_ptr.hbm [resolvable:$true] %s6847_s27 }
 0xb0f   : > { %v4888_v28 = vpop.permute.xlu2 %4887  ;;  %s6849_s17 = scalar_lea.hbm %s6848_s27, 128  ;;  %p6854_p11 = scmp.lt.s32.totalorder %s6848_s27, %s12333_s10 }
 0xb10   : > { %p6850_p1 = scmp.ne.s32.totalorder %s6848_s27, %s6849_s17 }
 0xb12   : > { %p6851_p4 = pnand %p6850_p1, %p7067_p3 }
 0xb13   : > { %v3978_v59 = vpop.permute.xlu1 %3977 }
 0xb14   : > { %v11154_v31 = vsel %vm13340_vm9, %v3978_v59, %v10925_v9  ;;  %v11170_v9 = vsel %vm13306_vm15, %v4888_v28, %v10972_v23  ;;  %v13341_v59 = vld [vmem:[#allocation86_spill] sm:$0xff]  ;;  %v13343_v23 = vld [vmem:[#allocation115_spill] sm:$0xff]  ;;  %vm13346_vm15 = vnez %v13345_v16  ;;  %v13370_v16 = vld [vmem:[#allocation124_spill] sm:$0xff]  ;;  %p6852_p8 = pneg %p6851_p4 }
 0xb15   : > { %4025 = vrot.lane.b32.xlu2 %v11154_v31, %s6923_s25  ;;  %4049 = vrot.lane.b32.xlu0 %v11149_v24, %s6924_s28  ;;  %vm13342_vm3 = vnez %v13341_v59 }
 0xb17   : > { %v4886_v42 = vpop.permute.xlu0 %4885 }
 0xb18   : > { %v11163_v56 = vsel %vm13308_vm10, %v4886_v42, %v10932_v51  ;;  %v4890_v51 = vpop.permute.xlu2 %4889 }
 0xb19   : > { %4933 = vrot.lane.b32.xlu1 %v11163_v56, %s6923_s25 }
 0xb1b   : > { %v4882_v43 = vpop.permute.xlu1 %4881 }
 0xb1c   : > { %v11175_v60 = vsel %vm13302_vm6, %v4882_v43, %v10939_v15  ;;  %vm13344_vm6 = vnez %v13343_v23 }
 0xb1d   : > { %4929 = vrot.lane.b32.xlu2 %v11175_v60, %s6923_s25  ;;  %4935 = vrot.lane.b32.xlu0 %v11170_v9, %s6923_s25 }
 0xb1f   : > { %v4004_v1 = vpop.permute.xlu0 %4003 }
 0xb20   : > { %v11184_v19 = vsel %vm13342_vm3, %v4004_v1, %v10946_v29  ;;  %v4894_v42 = vpop.permute.xlu2 %4893 }
 0xb23   : > { %v4884_v18 = vpop.permute.xlu1 %4883 }
 0xb24   : > { %v11189_v10 = vsel %vm13312_vm7, %v4884_v18, %v10960_v47  ;;  %v11205_v47 = vsel %vm13310_vm4, %v4890_v51, %v10988_v12  ;;  %v13347_v51 = vld [vmem:[#allocation117_spill] sm:$0xff] }
 0xb25   : > { %4931 = vrot.lane.b32.xlu2 %v11189_v10, %s6923_s25  ;;  %4051 = vrot.lane.b32.xlu0 %v11184_v19, %s6924_s28  ;;  %vm13348_vm10 = vnez %v13347_v51 }
 0xb27   : > { %v4006_v15 = vpop.permute.xlu0 %4005 }
 0xb28   : > { %v11198_v28 = vsel %vm13344_vm6, %v4006_v15, %v10967_v21  ;;  %v13349_v15 = vld [vmem:[#allocation114_spill] sm:$0xff] }
 0xb29   : > { %4053 = vrot.lane.b32.xlu1 %v11198_v28, %s6924_s28  ;;  %vm13350_vm4 = vnez %v13349_v15 }
 0xb2b   : > { %v4000_v29 = vpop.permute.xlu1 %3999 }
 0xb2c   : > { %v11210_v43 = vsel %vm13346_vm15, %v4000_v29, %v10981_v39 }
 0xb2d   : > { %4047 = vrot.lane.b32.xlu2 %v11210_v43, %s6924_s28  ;;  %4937 = vrot.lane.b32.xlu0 %v11205_v47, %s6923_s25 }
 0xb2f   : > { %v4896_v21 = vpop.permute.xlu2 %4895 }
 0xb30   : > { %v11219_v1 = vsel %vm13314_vm8, %v4896_v21, %v11028_v50  ;;  %v13351_v21 = vld [vmem:[#allocation90_spill] sm:$0xff] }
 0xb31   : > { %vm13352_vm7 = vnez %v13351_v21 }
 0xb33   : > { %v4012_v12 = vpop.permute.xlu1 %4011 }
 0xb34   : > { %v11233_v18 = vsel %vm13348_vm10, %v4012_v12, %v10995_v61  ;;  %v11254_v61 = vsel %vm13318_vm1, %v4894_v42, %v11002_v8  ;;  %v13353_v8 = vld [vmem:[#allocation98_spill] sm:$0xff] }
 0xb35   : > { %4943 = vrot.lane.b32.xlu0 %v11219_v1, %s6923_s25  ;;  %vm13354_vm8 = vnez %v13353_v8 }
 0xb37   : > { %v4892_v41 = vpop.permute.xlu0 %4891  ;;  %v4898_v0 = vpop.permute.xlu2 %4897 }
 0xb38   : > { %v11226_v39 = vsel %vm13316_vm0, %v4892_v41, %v11007_v32  ;;  %v11247_v32 = vsel %vm13320_vm12, %v4898_v0, %v11037_v38  ;;  %v13355_v41 = vld [vmem:[#allocation118_spill] sm:$0xff]  ;;  %vm13360_vm12 = vnez %v13359_v48 }
 0xb39   : > { %4939 = vrot.lane.b32.xlu1 %v11226_v39, %s6923_s25  ;;  %vm13356_vm0 = vnez %v13355_v41 }
 0xb3d   : > { %4059 = vrot.lane.b32.xlu0 %v11233_v18, %s6924_s28 }
 0xb3f   : > { %v4008_v50 = vpop.permute.xlu0 %4007  ;;  %v4900_v29 = vpop.permute.xlu2 %4899 }
 0xb40   : > { %v11240_v37 = vsel %vm13350_vm4, %v4008_v50, %v11016_v63  ;;  %v11261_v63 = vsel %vm13322_vm13, %v4900_v29, %v11051_v52 }
 0xb41   : > { %4055 = vrot.lane.b32.xlu1 %v11240_v37, %s6924_s28 }
 0xb45   : > { %4945 = vrot.lane.b32.xlu0 %v11247_v32, %s6923_s25 }
 0xb47   : > { %v4010_v3 = vpop.permute.xlu0 %4009 }
 0xb48   : > { %v11268_v34 = vsel %vm13352_vm7, %v4010_v3, %v11023_v53 }
 0xb49   : > { %4941 = vrot.lane.b32.xlu1 %v11254_v61, %s6923_s25 }
 0xb4d   : > { %4947 = vrot.lane.b32.xlu0 %v11261_v63, %s6923_s25 }
 0xb4f   : > { %v4014_v38 = vpop.permute.xlu1 %4013  ;;  %v4908_v52 = vpop.permute.xlu2 %4907 }
 0xb50   : > { %v11273_v42 = vsel %vm13354_vm8, %v4014_v38, %v11042_v22  ;;  %v11289_v22 = vsel %vm13331_vm11, %v4908_v52, %v11084_v2  ;;  %v13357_v38 = vld [vmem:[#allocation119_spill] sm:$0xff]  ;;  %vm13366_vm11 = vnez %v13327_v62 }
 0xb51   : > { %4061 = vrot.lane.b32.xlu2 %v11273_v42, %s6924_s28  ;;  %4057 = vrot.lane.b32.xlu1 %v11268_v34, %s6924_s28  ;;  %vm13358_vm1 = vnez %v13357_v38 }
 0xb57   : > { %v4016_v36 = vpop.permute.xlu1 %4015 }
 0xb58   : > { %v11282_v12 = vsel %vm13356_vm0, %v4016_v36, %v11056_v30 }
 0xb59   : > { %4063 = vrot.lane.b32.xlu0 %v11282_v12, %s6924_s28 }
 0xb5f   : > { %v4024_v53 = vpop.permute.xlu2 %4023  ;;  %v4902_v0 = vpop.permute.xlu0 %4901 }
 0xb60   : > { %v11294_v50 = vsel %vm13326_vm2, %v4902_v0, %v11065_v5  ;;  %v4020_v30 = vpop.permute.xlu1 %4019  ;;  %vm13363_vm2 = vnez %v13334_v6 }
 0xb61   : > { %4955 = vrot.lane.b32.xlu0 %v11289_v22, %s6923_s25  ;;  %4949 = vrot.lane.b32.xlu1 %v11294_v50, %s6923_s25 }
 0xb67   : > { %v4928_v29 = vpop.permute.xlu2 %4927  ;;  %v4018_v3 = vpop.permute.xlu0 %4017 }
 0xb68   : > { %v11303_v2 = vsel %vm13358_vm1, %v4018_v3, %v11079_v55  ;;  %v13361_v3 = vld [vmem:[#allocation107_spill] sm:$0xff] }
 0xb69   : > { %4065 = vrot.lane.b32.xlu1 %v11303_v2, %s6924_s28  ;;  %vm13362_vm13 = vnez %v13361_v3  ;;  %v13397_v3 = vld [vmem:[#allocation135_spill] sm:$0xff] }
 0xb6a   : > { %v11324_v7 = vsel %vm13362_vm13, %v4024_v53, %v11112_v13 }
 0xb6f   : > { %v4026_v35 = vpop.permute.xlu2 %4025  ;;  %v4022_v5 = vpop.permute.xlu1 %4021 }
 0xb70   : > { %v11310_v52 = vsel %vm13360_vm12, %v4022_v5, %v11098_v49  ;;  %v4904_v36 = vpop.permute.xlu0 %4903  ;;  %v13364_v5 = vld [vmem:[#allocation122_spill] sm:$0xff] }
 0xb71   : > { %v11315_v0 = vsel %vm13324_vm14, %v4904_v36, %v11093_v58  ;;  %4069 = vrot.lane.b32.xlu2 %v11310_v52, %s6924_s28  ;;  %vm13365_vm14 = vnez %v13364_v5 }
 0xb72   : > { %4951 = vrot.lane.b32.xlu1 %v11315_v0, %s6923_s25  ;;  %v11334_v36 = vsel %vm13365_vm14, %v4020_v30, %v11070_v27 }
 0xb77   : > { %v4930_v55 = vpop.permute.xlu2 %4929 }
 0xb78   : > { %v11329_v49 = vsel %vm13363_vm2, %v4930_v55, %v11175_v60  ;;  %v4044_v54 = vpop.permute.xlu1 %4043  ;;  %v4906_v58 = vpop.permute.xlu0 %4905 }
 0xb79   : > { %4071 = vrot.lane.b32.xlu2 %v11324_v7, %s6924_s28  ;;  %4977 = vrot.lane.b32.xlu0 %v11329_v49, %s6924_s28  ;;  %v11350_v27 = vsel %vm13366_vm11, %v4906_v58, %v11107_v46  ;;  %v13368_v46 = vld [vmem:[#allocation50_spill] sm:$0xff]  ;;  %v13374_v58 = vld [vmem:[#allocation136_spill] sm:$0xff] }
 0xb7a   : > { %4067 = vrot.lane.b32.xlu1 %v11334_v36, %s6924_s28  ;;  %vm13369_vm2 = vnez %v13368_v46 }
 0xb7f   : > { %v4932_v13 = vpop.permute.xlu2 %4931 }
 0xb80   : > { %v11345_v6 = vsel %vm13346_vm15, %v4932_v13, %v11189_v10  ;;  %v4910_v60 = vpop.permute.xlu1 %4909  ;;  %v4046_v53 = vpop.permute.xlu0 %4045  ;;  %vm13367_vm15 = vnez %v13332_v4 }
 0xb81   : > { %v11355_v30 = vsel %vm13340_vm9, %v4910_v60, %v11138_v40  ;;  %4979 = vrot.lane.b32.xlu0 %v11345_v6, %s6924_s28  ;;  %v11366_v62 = vsel %vm13367_vm15, %v4928_v29, %v11133_v14  ;;  %v11371_v40 = vsel %vm13369_vm2, %v4026_v35, %v11154_v31  ;;  %vm13371_vm9 = vnez %v13370_v16  ;;  %v13372_v31 = vld [vmem:[#allocation134_spill] sm:$0xff] }
 0xb82   : > { %4957 = vrot.lane.b32.xlu2 %v11355_v30, %s6923_s25  ;;  %4953 = vrot.lane.b32.xlu1 %v11350_v27, %s6923_s25  ;;  %v11380_v55 = vsel %vm13371_vm9, %v4046_v53, %v11128_v33  ;;  %vm13373_vm11 = vnez %v13372_v31 }
 0xb87   : > { %v4048_v14 = vpop.permute.xlu2 %4047 }
 0xb88   : > { %v4050_v10 = vpop.permute.xlu0 %4049  ;;  %v4077_v29 = vsel %vm13373_vm11, %v4048_v14, %v11210_v43  ;;  %v13376_v43 = vld [vmem:[#allocation72_spill] sm:$0xff] }
 0xb89   : > { %vm13377_vm15 = vnez %v13376_v43 }
 0xb8a   : > { %4073 = vrot.lane.b32.xlu2 %v11371_v40, %s6924_s28  ;;  %4975 = vrot.lane.b32.xlu1 %v11366_v62, %s6924_s28  ;;  %v4075_v60 = vsel %vm13377_vm15, %v4044_v54, %v11117_v45  ;;  %v13379_v45 = vld [vmem:[#allocation92_spill] sm:$0xff] }
 0xb8b   : > { %v4934_v33 = vpop.permute.xlu1 %4933 }
 0xb8c   : > { %v11398_v59 = vsel %vm13338_vm5, %v4934_v33, %v11163_v56  ;;  %vm13380_vm5 = vnez %v13379_v45 }
 0xb90   : > { %v4936_v44 = vpop.permute.xlu0 %4935 }
 0xb91   : > { %v11385_v4 = vsel %vm13342_vm3, %v4936_v44, %v11170_v9  ;;  %vm13375_vm3 = vnez %v13374_v58  ;;  %v4324_v44 = vpop.f32.mrf.mxu2 }
 0xb92   : > { %4093 = vrot.lane.b32.xlu2 %v11380_v55, %s6925_s21  ;;  %4983 = vrot.lane.b32.xlu0 %v11385_v4, %s6924_s28  ;;  %v4325_v20 = vadd.f32 %v4324_v44, %v4075_v60 }
 0xb98   : > { %v4052_v35 = vpop.permute.xlu0 %4051 }
 0xb99   : > { %v4079_v13 = vsel %vm13375_vm3, %v4052_v35, %v11184_v19 }
 0xb9a   : > { %4095 = vrot.lane.b32.xlu2 %v4077_v29, %s6925_s21  ;;  %v13378_v29 = vld [vmem:[#allocation110_spill] sm:$0xff] }
 0xb9b   : > { %v4054_v9 = vpop.permute.xlu1 %4053  ;;  %v11417_v19 = vadd.f32 %v4325_v20, %v13378_v29 }
 0xba0   : > { %v4938_v56 = vpop.permute.xlu0 %4937 }
 0xba2   : > { %4981 = vrot.lane.b32.xlu2 %v11398_v59, %s6924_s28 }
 0xba8   : > { %v4944_v35 = vpop.permute.xlu0 %4943 }
 0xba9   : > { %v11448_v21 = vsel %vm13348_vm10, %v4944_v35, %v11219_v1  ;;  %v13385_v1 = vld [vmem:[#allocation128_spill] sm:$0xff] }
 0xbaa   : > { %4147 = vrot.lane.b32.xlu2 %v4079_v13, %s6919_s19  ;;  %vm13386_vm10 = vnez %v13385_v1 }
 0xbab   : > { %v4940_v53 = vpop.permute.xlu1 %4939  ;;  %v11469_v51 = vsel %vm13386_vm10, %v4054_v9, %v11198_v28  ;;  %v13389_v28 = vld [vmem:[#allocation130_spill] sm:$0xff]  ;;  %v4062_v9 = vpop.permute.xlu2 %4061 }
 0xbac   : > { %v11412_v14 = vsel %vm13350_vm4, %v4940_v53, %v11226_v39  ;;  %v13381_v53 = vld [vmem:[#allocation70_spill] sm:$0xff] }
 0xbad   : > { %vm13382_vm4 = vnez %v13381_v53 }
 0xbb0   : > { %v4060_v15 = vpop.permute.xlu0 %4059 }
 0xbb2   : > { %4987 = vrot.lane.b32.xlu2 %v11412_v14, %s6924_s28 }
 0xbb3   : > { %v4056_v33 = vpop.permute.xlu1 %4055 }
 0xbb4   : > { %4380 = vmax.xlane.f32.xlu1 %v11417_v19  ;;  %v4081_v54 = vsel %vm13380_vm5, %v4056_v33, %v11240_v37  ;;  %v13383_v37 = vld [vmem:[#allocation127_spill] sm:$0xff] }
 0xbb5   : > { %vm13384_vm3 = vnez %v13383_v37 }
 0xbb6   : > { %v11441_v20 = vsel %vm13384_vm3, %v4050_v10, %v11149_v24 }
 0xbba   : > { %4103 = vrot.lane.b32.xlu2 %v4081_v54, %s6925_s21 }
 0xbbb   : > { %v4942_v13 = vpop.permute.xlu1 %4941 }
 0xbbc   : > { %v11427_v39 = vsel %vm13352_vm7, %v4942_v13, %v11254_v61  ;;  %v4946_v61 = vpop.permute.xlu0 %4945  ;;  %vm13390_vm7 = vnez %v13389_v28 }
 0xbbd   : > { %v4083_v41 = vsel %vm13390_vm7, %v4060_v15, %v11233_v18  ;;  %v11494_v54 = vsel %vm13354_vm8, %v4946_v61, %v11247_v32  ;;  %v13393_v15 = vld [vmem:[#allocation131_spill] sm:$0xff]  ;;  %v13395_v61 = vld [vmem:[#allocation116_spill] sm:$0xff] }
 0xbbe   : > { %vm13396_vm8 = vnez %v13395_v61 }
 0xbc2   : > { %4989 = vrot.lane.b32.xlu2 %v11427_v39, %s6924_s28 }
 0xbc3   : > { %v4058_v60 = vpop.permute.xlu1 %4057 }
 0xbc4   : > { %v11434_v44 = vsel %vm13382_vm4, %v4058_v60, %v11268_v34  ;;  %v11455_v34 = vsel %vm13344_vm6, %v4938_v56, %v11205_v47  ;;  %v4948_v24 = vpop.permute.xlu0 %4947  ;;  %v13387_v47 = vld [vmem:[#allocation132_spill] sm:$0xff] }
 0xbc5   : > { %v11462_v10 = vsel %vm13356_vm0, %v4948_v24, %v11261_v63  ;;  %vm13388_vm6 = vnez %v13387_v47 }
 0xbca   : > { %4105 = vrot.lane.b32.xlu2 %v11434_v44, %s6925_s21 }
 0xbcb   : > { %v4070_v60 = vpop.permute.xlu2 %4069 }
 0xbcc   : > { %v4064_v35 = vpop.permute.xlu0 %4063 }
 0xbcd   : > { %4097 = vrot.lane.b32.xlu1 %v11441_v20, %s6925_s21 }
 0xbd2   : > { %4991 = vrot.lane.b32.xlu2 %v11448_v21, %s6924_s28 }
 0xbd3   : > { %v4950_v33 = vpop.permute.xlu1 %4949 }
 0xbd4   : > { %v11483_v63 = vsel %vm13358_vm1, %v4950_v33, %v11294_v50  ;;  %v13391_v50 = vld [vmem:[#allocation133_spill] sm:$0xff]  ;;  %v4956_v18 = vpop.permute.xlu0 %4955  ;;  %vm13394_vm1 = vnez %v13393_v15 }
 0xbd5   : > { %4985 = vrot.lane.b32.xlu1 %v11455_v34, %s6924_s28  ;;  %vm13392_vm0 = vnez %v13391_v50  ;;  %v11505_v33 = vsel %vm13394_vm1, %v4062_v9, %v11273_v42  ;;  %v11510_v32 = vsel %vm13362_vm13, %v4956_v18, %v11289_v22  ;;  %v4072_v42 = vpop.permute.xlu2 %4071  ;;  %v4085_v22 = vsel %vm13396_vm8, %v4064_v35, %v11282_v12 }
 0xbd6   : > { %vm13398_vm13 = vnez %v13397_v3 }
 0xbd7   : > { %v11529_v48 = vsel %vm13398_vm13, %v4070_v60, %v11310_v52 }
 0xbda   : > { %4995 = vrot.lane.b32.xlu2 %v11462_v10, %s6924_s28 }
 0xbdb   : > { %v4066_v23 = vpop.permute.xlu1 %4065 }
 0xbdc   : > { %v11474_v56 = vsel %vm13388_vm6, %v4066_v23, %v11303_v2  ;;  %v13399_v23 = vld [vmem:[#allocation120_spill] sm:$0xff] }
 0xbdd   : > { %4101 = vrot.lane.b32.xlu1 %v11469_v51, %s6925_s21  ;;  %4113 = vrot.lane.b32.xlu0 %v11474_v56, %s6925_s21 }
 0xbe2   : > { %4997 = vrot.lane.b32.xlu2 %v11483_v63, %s6924_s28 }
 0xbe4   : > { %v4952_v2 = vpop.permute.xlu1 %4951 }
 0xbe5   : > { %4203 = vrot.lane.b32.xlu1 %v4083_v41, %s6920_s24  ;;  %v11537_v24 = vsel %vm13365_vm14, %v4952_v2, %v11315_v0 }
 0xbeb   : > { %v4978_v52 = vpop.permute.xlu0 %4977 }
 0xbec   : > { %v4068_v38 = vpop.permute.xlu1 %4067  ;;  %v11554_v0 = vsel %vm13371_vm9, %v4978_v52, %v11329_v49  ;;  %v5256_v49 = vpop.f32.mrf.mxu1 }
 0xbed   : > { %v4087_v13 = vsel %vm13392_vm0, %v4068_v38, %v11334_v36  ;;  %4993 = vrot.lane.b32.xlu1 %v11494_v54, %s6924_s28  ;;  %v4326_v38 = vpop.f32.mrf.mxu2 }
 0xbee   : > { %4163 = vrot.lane.b32.xlu0 %v4087_v13, %s6919_s19 }
 0xbf4   : > { %v4954_v8 = vpop.permute.xlu1 %4953 }
 0xbf5   : > { %v11515_v36 = vsel %vm13360_vm12, %v4954_v8, %v11350_v27  ;;  %4109 = vrot.lane.b32.xlu1 %v11505_v33, %s6925_s21  ;;  %v4958_v27 = vpop.permute.xlu2 %4957  ;;  %vm13400_vm12 = vnez %v13399_v23  ;;  %v4329_v8 = vpop.f32.mrf.mxu2 }
 0xbf6   : > { %5001 = vrot.lane.b32.xlu2 %v11515_v36, %s6924_s28  ;;  %5003 = vrot.lane.b32.xlu0 %v11510_v32, %s6924_s28  ;;  %v11542_v12 = vsel %vm13369_vm2, %v4958_v27, %v11355_v30  ;;  %v4089_v41 = vsel %vm13400_vm12, %v4072_v42, %v11324_v7  ;;  %v13401_v30 = vld [vmem:[#allocation121_spill] sm:$0xff]  ;;  %v4980_v42 = vpop.permute.xlu0 %4979 }
 0xbf7   : > { %vm13402_vm14 = vnez %v13401_v30  ;;  %v13405_v27 = vld [vmem:[#allocation105_spill] sm:$0xff] }
 0xbfc   : > { %v4976_v2 = vpop.permute.xlu1 %4975 }
 0xbfd   : > { %4111 = vrot.lane.b32.xlu1 %v4085_v22, %s6925_s21  ;;  %v4074_v5 = vpop.permute.xlu2 %4073  ;;  %v5007_v7 = vsel %vm13377_vm15, %v4976_v2, %v11366_v62 }
 0xbfe   : > { %4117 = vrot.lane.b32.xlu2 %v11529_v48, %s6925_s21  ;;  %v11562_v46 = vsel %vm13402_vm14, %v4074_v5, %v11371_v40  ;;  %v5257_v16 = vadd.f32 %v5256_v49, %v5007_v7  ;;  %v13403_v40 = vld [vmem:[#allocation78_spill] sm:$0xff] }
 0xbff   : > { %vm13404_vm2 = vnez %v13403_v40  ;;  %v13406_v5 = vld [vmem:[#allocation74_spill] sm:$0xff] }
 0xc00   : > { %v11570_v9 = vadd.f32 %v5257_v16, %v13378_v29  ;;  %v5009_v29 = vsel %vm13373_vm11, %v4980_v42, %v11345_v6  ;;  %vm13407_vm9 = vnez %v13406_v5  ;;  %vm13409_vm11 = vnez %v13144_v17 }
 0xc04   : > { %v4984_v42 = vpop.permute.xlu0 %4983 }
 0xc05   : > { %4999 = vrot.lane.b32.xlu1 %v11537_v24, %s6924_s28  ;;  %v4094_v35 = vpop.permute.xlu2 %4093 }
 0xc06   : > { %5005 = vrot.lane.b32.xlu2 %v11542_v12, %s6924_s28  ;;  %v4124_v60 = vsel %vm13404_vm2, %v4094_v35, %v11380_v55  ;;  %v11585_v55 = vpop.f32.mrf.mxu2 }
 0xc07   : > { %v4327_v62 = vadd.f32 %v4326_v38, %v4124_v60 }
 0xc09   : > { %v11582_v52 = vadd.f32 %v4327_v62, %v13405_v27 }
 0xc0d   : > { %4119 = vrot.lane.b32.xlu1 %v4089_v41, %s6925_s21  ;;  %v4096_v18 = vpop.permute.xlu2 %4095 }
 0xc0e   : > { %5025 = vrot.lane.b32.xlu2 %v11554_v0, %s6925_s21  ;;  %v4330_v7 = vadd.f32 %v4329_v8, %v4096_v18  ;;  %v4334_v37 = vpop.f32.mrf.mxu2 }
 0xc15   : > { %4121 = vrot.lane.b32.xlu1 %v11562_v46, %s6925_s21  ;;  %v4982_v41 = vpop.permute.xlu2 %4981 }
 0xc1d   : > { %v4148_v16 = vpop.permute.xlu2 %4147 }
 0xc20   : > { %5312 = vmax.xlane.f32.xlu0 %v11570_v9 }
 0xc27   : > { %v4381_v13 = vpop.xlane.xlu1 %4380 }
 0xc28   : > { %v4412_v43 = vsub.f32 %v11417_v19, %v4381_v13  ;;  %v11590_v19 = vsel %vm13384_vm3, %v4982_v41, %v11398_v59  ;;  %v13408_v59 = vld [vmem:[#allocation26_spill] sm:$0xff]  ;;  %v4988_v13 = vpop.permute.xlu2 %4987  ;;  %vm13410_vm3 = vnez %v13374_v58 }
 0xc29   : > { %v11605_v49 = vadd.f32 %v4330_v7, %v13408_v59 }
 0xc2a   : > { %v4428_v22 = vmul.f32 1.442695, %v4412_v43  ;;  %v5011_v43 = vsel %vm13410_vm3, %v4984_v42, %v11385_v4  ;;  %v13411_v4 = vld [vmem:[#allocation80_spill] sm:$0xff] }
 0xc2b   : > { %vm13412_vm15 = vnez %v13411_v4 }
 0xc2c   : > { %6555 = vpow2.f32 %v4428_v22 }
 0xc30   : > { %v4104_v1 = vpop.permute.xlu2 %4103 }
 0xc32   : > { %v11594_v6 = vpop.eup %6555 }
 0xc34   : > { %5027 = vrot.lane.b32.xlu0 %v5009_v29, %s6925_s21 }
 0xc37   : > { %4382 = vmax.xlane.f32.xlu2 %v11582_v52 }
 0xc38   : > { %v4990_v62 = vpop.permute.xlu2 %4989 }
 0xc3c   : > { %5029 = vrot.lane.b32.xlu0 %v11590_v19, %s6925_s21 }
 0xc3f   : > { %v4098_v31 = vpop.permute.xlu1 %4097  ;;  %4460 = vadd.xlane.f32.xlu2 %v11594_v6 }
 0xc40   : > { %v11600_v2 = vsel %vm13407_vm9, %v4098_v31, %v11441_v20  ;;  %v11615_v20 = vpop.f32.mrf.mxu2  ;;  %v4106_v22 = vpop.permute.xlu2 %4105 }
 0xc41   : > { %4145 = vrot.lane.b32.xlu1 %v11600_v2, %s6919_s19  ;;  %v11644_v41 = vsel %vm13412_vm15, %v4106_v22, %v11434_v44 }
 0xc47   : > { %v4986_v35 = vpop.permute.xlu1 %4985  ;;  %4384 = vmax.xlane.f32.xlu2 %v11605_v49 }
 0xc48   : > { %v11611_v38 = vsel %vm13386_vm10, %v4986_v35, %v11455_v34  ;;  %v11621_v8 = vpop.f32.mrf.mxu2  ;;  %v5013_v34 = vsel %vm13380_vm5, %v4988_v13, %v11412_v14  ;;  %v11637_v14 = vsel %vm13382_vm4, %v4990_v62, %v11427_v39  ;;  %v4992_v39 = vpop.permute.xlu2 %4991  ;;  %vm13413_vm5 = vnez %v13137_v25 }
 0xc49   : > { %5033 = vrot.lane.b32.xlu1 %v11611_v38, %s6925_s21  ;;  %v4335_v13 = vadd.f32 %v4334_v37, %v4148_v16  ;;  %v13415_v37 = vld [vmem:[#allocation25_spill] sm:$0xff]  ;;  %v5015_v47 = vsel %vm13390_vm7, %v4992_v39, %v11448_v21  ;;  %vm13420_vm7 = vnez %v13147_v57 }
 0xc4a   : > { %vm13416_vm4 = vnez %v13415_v37  ;;  %v13417_v21 = vld [vmem:[#allocation125_spill] sm:$0xff] }
 0xc4b   : > { %vm13418_vm10 = vnez %v13417_v21 }
 0xc4f   : > { %v4102_v60 = vpop.permute.xlu1 %4101 }
 0xc50   : > { %v4128_v18 = vsel %vm13409_vm11, %v4102_v60, %v11469_v51  ;;  %v11632_v51 = vpop.f32.mrf.mxu2  ;;  %v4996_v60 = vpop.permute.xlu2 %4995 }
 0xc51   : > { %4149 = vrot.lane.b32.xlu0 %v4128_v18, %s6919_s19 }
 0xc57   : > { %v4204_v29 = vpop.permute.xlu1 %4203 }
 0xc58   : > { %v4344_v45 = vpop.f32.mrf.mxu2  ;;  %v4998_v15 = vpop.permute.xlu2 %4997 }
 0xc59   : > { %5035 = vrot.lane.b32.xlu0 %v5013_v34, %s6925_s21  ;;  %v4345_v58 = vadd.f32 %v4344_v45, %v4204_v29  ;;  %v13414_v34 = vld [vmem:[#allocation79_spill] sm:$0xff] }
 0xc5b   : > { %v11647_v7 = vadd.f32 %v4345_v58, %v9888_v11 }
 0xc5f   : > { %5079 = vrot.lane.b32.xlu2 %v5011_v43, %s6919_s19  ;;  %v4994_v31 = vpop.permute.xlu1 %4993 }
 0xc60   : > { %v11655_v53 = vsel %vm13394_vm1, %v4994_v31, %v11494_v54  ;;  %v5017_v54 = vsel %vm13396_vm8, %v4996_v60, %v11462_v10  ;;  %v11682_v10 = vsel %vm13388_vm6, %v4998_v15, %v11483_v63  ;;  %v5002_v61 = vpop.permute.xlu2 %5001  ;;  %vm13419_vm6 = vnez %v13142_v26  ;;  %v5258_v31 = vpop.f32.mrf.mxu1 }
 0xc61   : > { %4151 = vrot.lane.b32.xlu0 %v4104_v1, %s6919_s19  ;;  %v11664_v1 = vadd.f32 %v4335_v13, %v13414_v34  ;;  %v11699_v29 = vsel %vm13398_vm13, %v5002_v61, %v11515_v36 }
 0xc67   : > { %v4110_v44 = vpop.permute.xlu1 %4109 }
 0xc68   : > { %v4132_v35 = vsel %vm13413_vm5, %v4110_v44, %v11505_v33  ;;  %v4114_v33 = vpop.permute.xlu0 %4113  ;;  %v4118_v62 = vpop.permute.xlu2 %4117 }
 0xc69   : > { %5037 = vrot.lane.b32.xlu0 %v11637_v14, %s6925_s21  ;;  %v11675_v16 = vsel %vm13416_vm4, %v4114_v33, %v11474_v56 }
 0xc6f   : > { %v4112_v18 = vpop.permute.xlu1 %4111 }
 0xc70   : > { %v4164_v63 = vpop.permute.xlu0 %4163  ;;  %v5006_v45 = vpop.permute.xlu2 %5005 }
 0xc71   : > { %4153 = vrot.lane.b32.xlu0 %v11644_v41, %s6919_s19  ;;  %v11706_v28 = vsel %vm13402_vm14, %v5006_v45, %v11542_v12  ;;  %vm4685_vm14 = vcmask 781824  }
 0xc73   : > { %4396 = vmax.xlane.f32.xlu1 %v11647_v7 }
 0xc77   : > { %v5000_v42 = vpop.permute.xlu1 %4999 }
 0xc78   : > { %v5019_v56 = vsel %vm13392_vm0, %v5000_v42, %v11537_v24  ;;  %v5004_v50 = vpop.permute.xlu0 %5003  ;;  %v4136_v24 = vsel %vm13418_vm10, %v4118_v62, %v11529_v48  ;;  %v5026_v22 = vpop.permute.xlu2 %5025 }
 0xc79   : > { %5041 = vrot.lane.b32.xlu0 %v11655_v53, %s6925_s21  ;;  %v5021_v30 = vsel %vm13400_vm12, %v5004_v50, %v11510_v32 }
 0xc7f   : > { %v4120_v43 = vpop.permute.xlu1 %4119 }
 0xc81   : > { %4205 = vrot.lane.b32.xlu0 %v4132_v35, %s6920_s24 }
 0xc87   : > { %v4122_v3 = vpop.permute.xlu1 %4121 }
 0xc88   : > { %4388 = vmax.xlane.f32.xlu2 %v11664_v1  ;;  %v11717_v58 = vsel %vm13419_vm6, %v4122_v3, %v11562_v46  ;;  %v5261_v46 = vpop.f32.mrf.mxu1 }
 0xc89   : > { %5043 = vrot.lane.b32.xlu0 %v5017_v54, %s6925_s21 }
 0xc8c   : > { %4207 = vrot.lane.b32.xlu1 %v4112_v18, %s6920_s24  ;;  %v5056_v18 = vsel %vm13404_vm2, %v5026_v22, %v11554_v0  ;;  %vm5617_vm2 = vcmask 1044224  }
 0xc8d   : > { %v5259_v15 = vadd.f32 %v5258_v31, %v5056_v18 }
 0xc8f   : > { %v11740_v61 = vadd.f32 %v5259_v15, %v13405_v27  ;;  %v13421_v27 = vld [vmem:[#allocation126_spill] sm:$0xff]  ;;  %v13423_v15 = vld [vmem:[#allocation96_spill] sm:$0xff] }
 0xc90   : > { %vm13424_vm0 = vnez %v13423_v15 }
 0xc91   : > { %4161 = vrot.lane.b32.xlu0 %v11675_v16, %s6919_s19 }
 0xc93   : > { %v5313_v36 = vpop.xlane.xlu0 %5312 }
 0xc94   : > { %5045 = vrot.lane.b32.xlu1 %v11682_v10, %s6925_s21  ;;  %v5344_v12 = vsub.f32 %v11570_v9, %v5313_v36 }
 0xc96   : > { %v5360_v48 = vmul.f32 1.442695, %v5344_v12 }
 0xc98   : > { %6557 = vpow2.f32 %v5360_v48 }
 0xc99   : > { %4167 = vrot.lane.b32.xlu0 %v4120_v43, %s6919_s19  ;;  %v11742_v43 = vpop.f32.mrf.mxu1 }
 0xc9c   : > { %5095 = vrot.lane.b32.xlu1 %v5019_v56, %s6919_s19 }
 0xc9e   : > { %v11726_v44 = vpop.eup %6557 }
 0xca0   : > { %5135 = vrot.lane.b32.xlu2 %v5015_v47, %s6920_s24 }
 0xca4   : > { %4211 = vrot.lane.b32.xlu1 %v4164_v63, %s6920_s24 }
 0xca6   : > { %v5028_v35 = vpop.permute.xlu0 %5027 }
 0xca7   : > { %v5262_v9 = vadd.f32 %v5261_v46, %v5028_v35 }
 0xca8   : > { %5049 = vrot.lane.b32.xlu2 %v11699_v29, %s6925_s21 }
 0xca9   : > { %v11732_v60 = vadd.f32 %v5262_v9, %v13408_v59 }
 0xcaa   : > { %v4383_v39 = vpop.xlane.xlu2 %4382 }
 0xcac   : > { %5053 = vrot.lane.b32.xlu1 %v11706_v28, %s6925_s21 }
 0xcae   : > { %v5030_v42 = vpop.permute.xlu0 %5029 }
 0xcb0   : > { %4165 = vrot.lane.b32.xlu2 %v4136_v24, %s6919_s19  ;;  %v4413_v24 = vsub.f32 %v11582_v52, %v4383_v39 }
 0xcb2   : > { %v11729_v13 = vpop.xlane.xlu2 %4460  ;;  %v4430_v36 = vmul.f32 1.442695, %v4413_v24 }
 0xcb3   : > { %v4146_v33 = vpop.permute.xlu1 %4145 }
 0xcb4   : > { %4169 = vrot.lane.b32.xlu1 %v11717_v58, %s6919_s19  ;;  %v4174_v59 = vsel %vm13420_vm7, %v4146_v33, %v11600_v2 }
 0xcb5   : > { %v4332_v40 = vadd.f32 %v11585_v55, %v4174_v59  ;;  %v13425_v59 = vld [vmem:[#allocation91_spill] sm:$0xff] }
 0xcb6   : > { %vm13426_vm1 = vnez %v13425_v59 }
 0xcb7   : > { %v11760_v56 = vadd.f32 %v4332_v40, %v13421_v27 }
 0xcb8   : > { %5051 = vrot.lane.b32.xlu2 %v5021_v30, %s6925_s21 }
 0xcba   : > { %v4385_v32 = vpop.xlane.xlu2 %4384 }
 0xcbb   : > { %v4414_v23 = vsub.f32 %v11605_v49, %v4385_v32  ;;  %v11750_v49 = vsel %vm13407_vm9, %v5030_v42, %v11590_v19  ;;  %v5266_v19 = vpop.f32.mrf.mxu1  ;;  %v5034_v63 = vpop.permute.xlu1 %5033  ;;  %vm13447_vm9 = vcmask 519424  }
 0xcbc   : > { %v5060_v4 = vsel %vm13409_vm11, %v5034_v63, %v11611_v38  ;;  %vm13448_vm11 = vmmov %vm13447_vm9 }
 0xcbd   : > { %v4432_v54 = vmul.f32 1.442695, %v4414_v23  ;;  %v13422_v23 = vld [vmem:[#allocation83_spill] sm:$0xff]  ;;  %vm13449_vm3 = vmmov %vm13447_vm9 }
 0xcbf   : > { %6559 = vpow2.f32 %v4432_v54 }
 0xcc0   : > { %6561 = vpow2.f32 %v4430_v36 }
 0xcc1   : > { %6563 = vrcp.f32 %v11729_v13 }
 0xcc2   : > { %v5080_v2 = vpop.permute.xlu2 %5079 }
 0xcc3   : > { %5392 = vadd.xlane.f32.xlu0 %v11726_v44  ;;  %v4150_v62 = vpop.permute.xlu0 %4149  ;;  %v5267_v5 = vadd.f32 %v5266_v19, %v5080_v2  ;;  %v11805_v38 = vpop.f32.mrf.mxu1 }
 0xcc5   : > { %v11755_v0 = vpop.eup %6559  ;;  %v11764_v47 = vadd.f32 %v5267_v5, %v13414_v34  ;;  %v13427_v5 = vld [vmem:[#allocation75_spill] sm:$0xff] }
 0xcc6   : > { %v11781_v31 = vpop.eup %6561 }
 0xccb   : > { %5316 = vmax.xlane.f32.xlu0 %v11732_v60  ;;  %v5036_v45 = vpop.permute.xlu0 %5035  ;;  %v11807_v42 = vpop.f32.mrf.mxu1 }
 0xcd3   : > { %v4152_v55 = vpop.permute.xlu0 %4151  ;;  %v11813_v19 = vpop.f32.mrf.mxu1 }
 0xcdb   : > { %v5038_v12 = vpop.permute.xlu0 %5037 }
 0xcdc   : > { %v5062_v30 = vsel %vm13412_vm15, %v5038_v12, %v11637_v14  ;;  %v4340_v14 = vadd.f32 %v11621_v8, %v4152_v55  ;;  %v5276_v55 = vpop.f32.mrf.mxu1  ;;  %vm13450_vm15 = vmmov %vm13449_vm3 }
 0xcde   : > { %5314 = vmax.xlane.f32.xlu1 %v11740_v61  ;;  %v11795_v18 = vadd.f32 %v4340_v14, %v13422_v23 }
 0xcdf   : > { %5077 = vrot.lane.b32.xlu0 %v11750_v49, %s6919_s19 }
 0xce1   : > { %4464 = vadd.xlane.f32.xlu2 %v11755_v0 }
 0xce3   : > { %v4154_v17 = vpop.permute.xlu0 %4153 }
 0xce4   : > { %v4178_v40 = vsel %vm13426_vm1, %v4154_v17, %v11644_v41 }
 0xce6   : > { %4386 = vmax.xlane.f32.xlu1 %v11760_v56  ;;  %v11767_v50 = vpop.xlane.xlu1 %4396 }
 0xceb   : > { %v5042_v8 = vpop.permute.xlu0 %5041 }
 0xcee   : > { %5320 = vmax.xlane.f32.xlu1 %v11764_v47 }
 0xcf3   : > { %v4206_v2 = vpop.permute.xlu0 %4205 }
 0xcf9   : > { %5083 = vrot.lane.b32.xlu2 %v5036_v45, %s6919_s19 }
 0xcfb   : > { %v11771_v3 = vpop.xlane.xlu2 %4388  ;;  %v5044_v45 = vpop.permute.xlu0 %5043 }
 0xcfe   : > { %v11773_v22 = vpop.permute.xlu1 %4207 }
 0xd03   : > { %v5136_v34 = vpop.permute.xlu2 %5135  ;;  %v4162_v41 = vpop.permute.xlu0 %4161 }
 0xd04   : > { %v5277_v24 = vadd.f32 %v5276_v55, %v5136_v34  ;;  %v13429_v34 = vld [vmem:[#allocation103_spill] sm:$0xff] }
 0xd05   : > { %vm13430_vm8 = vnez %v13429_v34 }
 0xd06   : > { %v11778_v48 = vpop.permute.xlu1 %5045  ;;  %v11821_v36 = vadd.f32 %v5277_v24, %v9888_v11 }
 0xd07   : > { %5085 = vrot.lane.b32.xlu1 %v5062_v30, %s6919_s19  ;;  %v11859_v21 = vsel %vm13416_vm4, %v11778_v48, %v11682_v10 }
 0xd09   : > { %4462 = vadd.xlane.f32.xlu0 %v11781_v31 }
 0xd0b   : > { %v5050_v52 = vpop.permute.xlu2 %5049  ;;  %v11824_v12 = vpop.permute.xlu0 %4167 }
 0xd0c   : > { %v5068_v25 = vsel %vm13418_vm10, %v5050_v52, %v11699_v29  ;;  %v6564_v29 = vpop.eup %6563 }
 0xd0d   : > { %v4508_v13 = vmul.f32 %v6564_v29, %v11594_v6 }
 0xd0e   : > { %v11784_v39 = vpop.permute.xlu1 %5095 }
 0xd13   : > { %v4166_v35 = vpop.permute.xlu2 %4165 }
 0xd16   : > { %v11786_v46 = vpop.permute.xlu1 %4211 }
 0xd1b   : > { %v5052_v9 = vpop.permute.xlu2 %5051 }
 0xd1c   : > { %5099 = vrot.lane.b32.xlu1 %v5052_v9, %s6919_s19  ;;  %v4346_v9 = vpop.f32.mrf.mxu2 }
 0xd1d   : > { %5081 = vrot.lane.b32.xlu0 %v5060_v4, %s6919_s19  ;;  %v4347_v4 = vadd.f32 %v4346_v9, %v4206_v2 }
 0xd1e   : > { %v5054_v32 = vpop.permute.xlu1 %5053 }
 0xd1f   : > { %v11872_v37 = vsel %vm13419_vm6, %v5054_v32, %v11706_v28  ;;  %v13433_v28 = vld [vmem:[#allocation60_spill] sm:$0xff] }
 0xd22   : > { %4392 = vmax.xlane.f32.xlu2 %v11795_v18 }
 0xd26   : > { %v4170_v54 = vpop.permute.xlu1 %4169 }
 0xd27   : > { %v11801_v33 = vsel %vm13424_vm0, %v4170_v54, %v11717_v58  ;;  %v4337_v58 = vadd.f32 %v11615_v20, %v4150_v62  ;;  %v13428_v20 = vld [vmem:[#allocation129_spill] sm:$0xff]  ;;  %v5064_v54 = vsel %vm13413_vm5, %v5042_v8, %v11655_v53  ;;  %vm13451_vm5 = vmmov %vm13449_vm3 }
 0xd28   : > { %4217 = vrot.lane.b32.xlu1 %v11801_v33, %s6920_s24  ;;  %v11827_v62 = vadd.f32 %v4347_v4, %v13428_v20 }
 0xd29   : > { %v11817_v63 = vadd.f32 %v4337_v58, %v13427_v5  ;;  %v4182_v58 = vsel %vm13430_vm8, %v4162_v41, %v11675_v16  ;;  %v13431_v41 = vld [vmem:[#allocation67_spill] sm:$0xff] }
 0xd2a   : > { %vm13432_vm13 = vnez %v13431_v41 }
 0xd36   : > { %v11832_v17 = vpop.xlane.xlu0 %5392 }
 0xd3a   : > { %4201 = vrot.lane.b32.xlu2 %v4178_v40, %s6920_s24 }
 0xd3e   : > { %v5317_v2 = vpop.xlane.xlu0 %5316 }
 0xd47   : > { %4390 = vmax.xlane.f32.xlu0 %v11817_v63 }
 0xd4f   : > { %5328 = vmax.xlane.f32.xlu0 %v11821_v36 }
 0xd51   : > { %v5315_v14 = vpop.xlane.xlu1 %5314  ;;  %v5078_v53 = vpop.permute.xlu0 %5077 }
 0xd52   : > { %v5345_v6 = vsub.f32 %v11740_v61, %v5315_v14  ;;  %v5346_v14 = vsub.f32 %v11732_v60, %v5317_v2 }
 0xd54   : > { %v11861_v52 = vpop.xlane.xlu2 %4464  ;;  %v5362_v48 = vmul.f32 1.442695, %v5345_v6 }
 0xd59   : > { %v4387_v11 = vpop.xlane.xlu1 %4386 }
 0xd61   : > { %v11840_v55 = vpop.xlane.xlu1 %5320 }
 0xd63   : > { %5137 = vrot.lane.b32.xlu0 %v5064_v54, %s6920_s24  ;;  %4398 = vmax.xlane.f32.xlu2 %v11827_v62 }
 0xd6b   : > { %4209 = vrot.lane.b32.xlu0 %v4182_v58, %s6920_s24  ;;  %v5364_v58 = vmul.f32 1.442695, %v5346_v14 }
 0xd73   : > { %5097 = vrot.lane.b32.xlu0 %v5068_v25, %s6919_s19 }
 0xd79   : > { %v5086_v8 = vpop.permute.xlu1 %5085 }
 0xd7a   : > { %v11848_v24 = vsel %vm13426_vm1, %v5086_v8, %v5062_v30 }
 0xd7b   : > { %5133 = vrot.lane.b32.xlu1 %v11848_v24, %s6920_s24  ;;  %5139 = vrot.lane.b32.xlu2 %v5044_v45, %s6920_s24  ;;  %v5084_v45 = vpop.permute.xlu2 %5083 }
 0xd7c   : > { %4213 = vrot.lane.b32.xlu0 %v4166_v35, %s6920_s24  ;;  %v4463_v16 = vpop.xlane.xlu0 %4462 }
 0xd7d   : > { %6565 = vrcp.f32 %v4463_v16 }
 0xd7e   : > { %6567 = vpow2.f32 %v5362_v48 }
 0xd83   : > { %v6566_v30 = vpop.eup %6565  ;;  %5093 = vrot.lane.b32.xlu2 %v11859_v21, %s6919_s19 }
 0xd84   : > { %v4509_v59 = vmul.f32 %v6566_v30, %v11781_v31  ;;  %v6568_v54 = vpop.eup %6567 }
 0xd86   : > { %v4524_v35 = vpack.c.bf16 %v4509_v59, %v4508_v13 }
 0xd88   : > { %4564 = vmatmul.bf16.vlgmr.msra.gmra.mxu3 %v4524_v35 }
 0xd8b   : > { %5143 = vrot.lane.b32.xlu2 %v11784_v39, %s6920_s24  ;;  %v4415_v39 = vsub.f32 %v11760_v56, %v4387_v11  ;;  %v5106_v56 = vsel %vm13420_vm7, %v5078_v53, %v11750_v49 }
 0xd8c   : > { %v5264_v11 = vadd.f32 %v11742_v43, %v5106_v56 }
 0xd8d   : > { %v4434_v26 = vmul.f32 1.442695, %v4415_v39 }
 0xd8e   : > { %v11901_v25 = vadd.f32 %v5264_v11, %v13421_v27  ;;  %v5278_v27 = vpop.f32.mrf.mxu1  ;;  %v5100_v29 = vpop.permute.xlu1 %5099 }
 0xd8f   : > { %6569 = vpow2.f32 %v4434_v26  ;;  %v5082_v8 = vpop.permute.xlu0 %5081 }
 0xd90   : > { %6571 = vpow2.f32 %v5364_v58  ;;  %v5269_v49 = vadd.f32 %v11805_v38, %v5082_v8 }
 0xd91   : > { %6573 = vrcp.f32 %v11832_v17 }
 0xd92   : > { %v11909_v60 = vadd.f32 %v5269_v49, %v13427_v5 }
 0xd93   : > { %5101 = vrot.lane.b32.xlu2 %v11872_v37, %s6919_s19 }
 0xd95   : > { %v11876_v10 = vpop.xlane.xlu2 %4392  ;;  %v11887_v61 = vpop.eup %6569 }
 0xd9a   : > { %v11920_v30 = vpop.permute.xlu1 %4217 }
 0xd9d   : > { %v4202_v31 = vpop.permute.xlu2 %4201 }
 0xd9e   : > { %v4226_v9 = vsel %vm13432_vm13, %v4202_v31, %v4178_v40  ;;  %v5272_v40 = vadd.f32 %v11807_v42, %v5084_v45  ;;  %v11904_v42 = vpop.eup %6571 }
 0xd9f   : > { %v4342_v4 = vadd.f32 %v11632_v51, %v4226_v9 }
 0xda0   : > { %v11895_v51 = vadd.f32 %v5272_v40, %v13422_v23 }
 0xda1   : > { %v11884_v32 = vadd.f32 %v4342_v4, %v13433_v28  ;;  %v11945_v4 = vpop.f32.mrf.mxu2 }
 0xda5   : > { %4394 = vmax.xlane.f32.xlu1 %v11884_v32 }
 0xda6   : > { %5394 = vadd.xlane.f32.xlu0 %v6568_v54 }
 0xda9   : > { %v4351_v49 = vpop.f32.mrf.mxu2 }
 0xdae   : > { %4466 = vadd.xlane.f32.xlu0 %v11887_v61 }
 0xdb6   : > { %5324 = vmax.xlane.f32.xlu0 %v11895_v51 }
 0xdba   : > { %v4391_v57 = vpop.xlane.xlu0 %4390 }
 0xdbb   : > { %v4417_v17 = vsub.f32 %v11817_v63, %v4391_v57 }
 0xdbc   : > { %5318 = vmax.xlane.f32.xlu2 %v11901_v25 }
 0xdbd   : > { %v4438_v58 = vmul.f32 1.442695, %v4417_v17 }
 0xdc2   : > { %v11912_v43 = vpop.xlane.xlu0 %5328 }
 0xdc4   : > { %5396 = vadd.xlane.f32.xlu2 %v11904_v42 }
 0xdcc   : > { %5322 = vmax.xlane.f32.xlu2 %v11909_v60 }
 0xdd5   : > { %v5138_v23 = vpop.permute.xlu0 %5137 }
 0xdd6   : > { %v5279_v2 = vadd.f32 %v5278_v27, %v5138_v23  ;;  %v11918_v16 = vpop.xlane.xlu2 %4398  ;;  %v5348_v27 = vsub.f32 %v11764_v47, %v11840_v55  ;;  %v4354_v47 = vpop.f32.mrf.mxu2 }
 0xdd8   : > { %v11915_v53 = vadd.f32 %v5279_v2, %v13428_v20  ;;  %v13435_v2 = vld [vmem:[#allocation41_spill] sm:$0xff] }
 0xdda   : > { %5330 = vmax.xlane.f32.xlu1 %v11915_v53 }
 0xddd   : > { %v4210_v45 = vpop.permute.xlu0 %4209 }
 0xdde   : > { %v5140_v38 = vpop.permute.xlu2 %5139  ;;  %v4352_v63 = vadd.f32 %v4351_v49, %v4210_v45  ;;  %v13436_v45 = vld [vmem:[#allocation89_spill] sm:$0xff] }
 0xde5   : > { %v5098_v48 = vpop.permute.xlu0 %5097 }
 0xde6   : > { %v5094_v59 = vpop.permute.xlu2 %5093 }
 0xde7   : > { %v5114_v6 = vsel %vm13430_vm8, %v5094_v59, %v11859_v21  ;;  %v6574_v21 = vpop.eup %6573 }
 0xde8   : > { %v5440_v41 = vmul.f32 %v6574_v21, %v11726_v44  ;;  %v13434_v44 = vld [vmem:[#allocation88_spill] sm:$0xff] }
 0xded   : > { %v5134_v5 = vpop.permute.xlu1 %5133 }
 0xdee   : > { %v5158_v13 = vsel %vm13432_vm13, %v5134_v5, %v11848_v24  ;;  %v11941_v34 = vpop.permute.xlu2 %5143 }
 0xdef   : > { %v5274_v35 = vadd.f32 %v11813_v19, %v5158_v13  ;;  %v11938_v19 = vpop.permute.xlu0 %4213  ;;  %v4355_v13 = vadd.f32 %v4354_v47, %v11786_v46 }
 0xdf1   : > { %v11927_v20 = vadd.f32 %v5274_v35, %v13433_v28  ;;  %v5281_v28 = vpop.f32.mrf.mxu1 }
 0xdf2   : > { %v5282_v40 = vadd.f32 %v5281_v28, %v5140_v38 }
 0xdf3   : > { %5326 = vmax.xlane.f32.xlu2 %v11927_v20  ;;  %5141 = vrot.lane.b32.xlu1 %v5114_v6, %s6920_s24  ;;  %v11971_v6 = vadd.f32 %v4355_v13, %v13436_v45 }
 0xdf6   : > { %v5102_v56 = vpop.permute.xlu2 %5101 }
 0xdf7   : > { %v11982_v46 = vsel %vm13424_vm0, %v5102_v56, %v11872_v37  ;;  %v4418_v37 = vsub.f32 %v11795_v18, %v11876_v10  ;;  %v4416_v10 = vsub.f32 %v11664_v1, %v11771_v3 }
 0xdfb   : > { %5145 = vrot.lane.b32.xlu1 %v5098_v48, %s6920_s24 }
 0xe03   : > { %5147 = vrot.lane.b32.xlu1 %v5100_v29, %s6920_s24 }
 0xe0b   : > { %4215 = vrot.lane.b32.xlu2 %v11824_v12, %s6920_s24 }
 0xe19   : > { %v5395_v24 = vpop.xlane.xlu0 %5394 }
 0xe1a   : > { %6575 = vrcp.f32 %v5395_v24  ;;  %v5283_v24 = vpop.f32.mrf.mxu1 }
 0xe1b   : > { %6577 = vrcp.f32 %v11861_v52 }
 0xe20   : > { %v6576_v31 = vpop.eup %6575 }
 0xe21   : > { %v5441_v9 = vmul.f32 %v6576_v31, %v6568_v54  ;;  %v4467_v39 = vpop.xlane.xlu0 %4466  ;;  %v6578_v26 = vpop.eup %6577  ;;  %v11951_v54 = vadd.f32 %v5282_v40, %v13434_v44 }
 0xe22   : > { %6579 = vrcp.f32 %v4467_v39  ;;  %v4510_v11 = vmul.f32 %v6578_v26, %v11755_v0  ;;  %v5368_v0 = vmul.f32 1.442695, %v5348_v27  ;;  %v4420_v27 = vsub.f32 %v11647_v7, %v11767_v50 }
 0xe23   : > { %v5456_v12 = vpack.c.bf16 %v5441_v9, %v5440_v41  ;;  %6581 = vpow2.f32 %v4438_v58  ;;  %v4356_v41 = vpop.f32.mrf.mxu2  ;;  %v11990_v9 = vpop.f32.mrf.mxu1 }
 0xe24   : > { %v4357_v17 = vadd.f32 %v4356_v41, %v11938_v19  ;;  %v4444_v50 = vmul.f32 1.442695, %v4420_v27 }
 0xe25   : > { %5496 = vmatmul.bf16.vlgmr.msrb.gmra.mxu2 %v5456_v12 }
 0xe28   : > { %v6580_v14 = vpop.eup %6579 }
 0xe29   : > { %v4511_v52 = vmul.f32 %v6580_v14, %v11887_v61  ;;  %v11958_v61 = vadd.f32 %v4352_v63, %v13435_v2  ;;  %v5325_v38 = vpop.xlane.xlu0 %5324  ;;  %v11960_v5 = vpop.eup %6581  ;;  %v13438_v63 = vld [vmem:[#allocation45_spill] sm:$0xff] }
 0xe2a   : > { %v5350_v55 = vsub.f32 %v11895_v51, %v5325_v38  ;;  %v11986_v51 = vpop.xlane.xlu1 %4394  ;;  %vm13439_vm12 = vnez %v13438_v63 }
 0xe2b   : > { %v4525_v8 = vpack.c.bf16 %v4511_v52, %v4510_v11  ;;  %v11995_v15 = vpop.f32.mrf.mxu2  ;;  %v5288_v40 = vpop.f32.mrf.mxu1  ;;  %v4440_v11 = vmul.f32 1.442695, %v4418_v37  ;;  %v13437_v52 = vld [vmem:[#allocation52_spill] sm:$0xff]  ;;  %v4234_v18 = vsel %vm13439_vm12, %v11920_v30, %v11801_v33  ;;  %v13440_v30 = vld [vmem:[#allocation37_spill] sm:$0xff] }
 0xe2c   : > { %v5372_v59 = vmul.f32 1.442695, %v5350_v55  ;;  %v12002_v58 = vadd.f32 %v4357_v17, %v13437_v52 }
 0xe2d   : > { %4569 = vmatmul.bf16.gmra.mxu3 %v4525_v8  ;;  %5332 = vmax.xlane.f32.xlu1 %v11951_v54 }
 0xe2f   : > { %v5319_v57 = vpop.xlane.xlu2 %5318 }
 0xe30   : > { %v5347_v23 = vsub.f32 %v11901_v25, %v5319_v57  ;;  %v4350_v57 = vadd.f32 %v11945_v4, %v11773_v22 }
 0xe32   : > { %v5366_v29 = vmul.f32 1.442695, %v5347_v23 }
 0xe33   : > { %v4361_v19 = vpop.f32.mrf.mxu2 }
 0xe34   : > { %6583 = vpow2.f32 %v5366_v29  ;;  %4402 = vmax.xlane.f32.xlu2 %v11958_v61  ;;  %v4362_v7 = vadd.f32 %v4361_v19, %v4234_v18 }
 0xe35   : > { %6585 = vpow2.f32 %v5368_v0  ;;  %4470 = vadd.xlane.f32.xlu1 %v11960_v5  ;;  %v4436_v0 = vmul.f32 1.442695, %v4416_v10 }
 0xe36   : > { %6587 = vpow2.f32 %v5372_v59  ;;  %v12024_v1 = vadd.f32 %v4362_v7, %v13440_v30 }
 0xe37   : > { %v11988_v31 = vpop.xlane.xlu2 %5396  ;;  %6589 = vpow2.f32 %v4440_v11 }
 0xe38   : > { %6591 = vpow2.f32 %v4444_v50 }
 0xe39   : > { %6593 = vpow2.f32 %v4436_v0 }
 0xe3a   : > { %v11966_v25 = vpop.eup %6583 }
 0xe3b   : > { %v11968_v35 = vpop.eup %6585  ;;  %5398 = vadd.xlane.f32.xlu0 %v11966_v25 }
 0xe3c   : > { %5400 = vadd.xlane.f32.xlu2 %v11968_v35  ;;  %v11976_v48 = vpop.eup %6587 }
 0xe3d   : > { %4404 = vmax.xlane.f32.xlu1 %v11971_v6  ;;  %v12026_v3 = vpop.eup %6589 }
 0xe3f   : > { %v5323_v26 = vpop.xlane.xlu2 %5322 }
 0xe40   : > { %v5349_v22 = vsub.f32 %v11909_v60, %v5323_v26  ;;  %v5291_v60 = vpop.f32.mrf.mxu1 }
 0xe42   : > { %v5370_v4 = vmul.f32 1.442695, %v5349_v22 }
 0xe45   : > { %5404 = vadd.xlane.f32.xlu1 %v11976_v48 }
 0xe48   : > { %v5293_v10 = vpop.f32.mrf.mxu1 }
 0xe4d   : > { %v5331_v21 = vpop.xlane.xlu1 %5330 }
 0xe4f   : > { %5149 = vrot.lane.b32.xlu0 %v11982_v46, %s6920_s24 }
 0xe65   : > { %v5142_v39 = vpop.permute.xlu1 %5141 }
 0xe66   : > { %v5284_v12 = vadd.f32 %v5283_v24, %v5142_v39  ;;  %v5327_v8 = vpop.xlane.xlu2 %5326 }
 0xe67   : > { %v5351_v23 = vsub.f32 %v11927_v20, %v5327_v8  ;;  %v5353_v20 = vsub.f32 %v11915_v53, %v5331_v21  ;;  %v4421_v53 = vsub.f32 %v11827_v62, %v11918_v16  ;;  %v13441_v21 = vld [vmem:[#allocation30_spill] sm:$0xff]  ;;  %v5287_v62 = vadd.f32 %v11990_v9, %v11941_v34 }
 0xe68   : > { %v11993_v28 = vadd.f32 %v5284_v12, %v13435_v2  ;;  %v12021_v2 = vadd.f32 %v4350_v57, %v13434_v44  ;;  %v12033_v44 = vpop.eup %6591  ;;  %v4419_v12 = vsub.f32 %v11884_v32, %v11986_v51 }
 0xe69   : > { %v5374_v33 = vmul.f32 1.442695, %v5351_v23  ;;  %v5378_v29 = vmul.f32 1.442695, %v5353_v20  ;;  %v12035_v38 = vpop.eup %6593  ;;  %v4446_v59 = vmul.f32 1.442695, %v4421_v53  ;;  %v12059_v26 = vadd.f32 %v5287_v62, %v13436_v45 }
 0xe6a   : > { %5334 = vmax.xlane.f32.xlu2 %v11993_v28  ;;  %v4442_v16 = vmul.f32 1.442695, %v4419_v12 }
 0xe6b   : > { %6595 = vpow2.f32 %v5374_v33 }
 0xe6c   : > { %6597 = vpow2.f32 %v5370_v4 }
 0xe6d   : > { %v5146_v56 = vpop.permute.xlu1 %5145  ;;  %6599 = vpow2.f32 %v5378_v29 }
 0xe6e   : > { %v5289_v14 = vadd.f32 %v5288_v40, %v5146_v56  ;;  %6601 = vpow2.f32 %v4446_v59  ;;  %v4216_v51 = vpop.permute.xlu2 %4215 }
 0xe6f   : > { %6603 = vpow2.f32 %v4442_v16  ;;  %v4360_v17 = vadd.f32 %v11995_v15, %v4216_v51 }
 0xe70   : > { %v12005_v49 = vadd.f32 %v5289_v14, %v13437_v52 }
 0xe71   : > { %v12037_v47 = vpop.eup %6595  ;;  %v12070_v34 = vadd.f32 %v4360_v17, %v13441_v21 }
 0xe72   : > { %4406 = vmax.xlane.f32.xlu2 %v12002_v58  ;;  %5338 = vmax.xlane.f32.xlu1 %v12005_v49  ;;  %v12044_v24 = vpop.eup %6597 }
 0xe73   : > { %v12049_v39 = vpop.eup %6599 }
 0xe74   : > { %v12061_v37 = vpop.eup %6601 }
 0xe75   : > { %v5148_v55 = vpop.permute.xlu1 %5147  ;;  %v12065_v32 = vpop.eup %6603 }
 0xe76   : > { %v5292_v13 = vadd.f32 %v5291_v60, %v5148_v55 }
 0xe78   : > { %v12047_v41 = vadd.f32 %v5292_v13, %v13441_v21 }
 0xe79   : > { %4400 = vmax.xlane.f32.xlu0 %v12021_v2 }
 0xe7a   : > { %4472 = vadd.xlane.f32.xlu2 %v12026_v3  ;;  %4410 = vmax.xlane.f32.xlu1 %v12024_v1 }
 0xe81   : > { %4468 = vadd.xlane.f32.xlu0 %v12035_v38 }
 0xe82   : > { %5406 = vadd.xlane.f32.xlu2 %v12037_v47  ;;  %4476 = vadd.xlane.f32.xlu1 %v12033_v44 }
 0xe89   : > { %5402 = vadd.xlane.f32.xlu0 %v12044_v24 }
 0xe8a   : > { %5340 = vmax.xlane.f32.xlu2 %v12047_v41  ;;  %5410 = vadd.xlane.f32.xlu1 %v12049_v39 }
 0xe91   : > { %5336 = vmax.xlane.f32.xlu0 %v12059_v26 }
 0xe92   : > { %4478 = vadd.xlane.f32.xlu2 %v12061_v37 }
 0xe99   : > { %4474 = vadd.xlane.f32.xlu0 %v12065_v32 }
 0xea0   : > { %v5333_v9 = vpop.xlane.xlu1 %5332 }
 0xea1   : > { %v5354_v45 = vsub.f32 %v11951_v54, %v5333_v9  ;;  %4408 = vmax.xlane.f32.xlu0 %v12070_v34  ;;  %v5352_v54 = vsub.f32 %v11821_v36, %v11912_v43 }
 0xea3   : > { %v5380_v40 = vmul.f32 1.442695, %v5354_v45  ;;  %v5376_v23 = vmul.f32 1.442695, %v5352_v54 }
 0xea5   : > { %6605 = vpow2.f32 %v5380_v40 }
 0xea6   : > { %6607 = vrcp.f32 %v11988_v31 }
 0xea7   : > { %v4403_v7 = vpop.xlane.xlu2 %4402 }
 0xea8   : > { %v4471_v31 = vpop.xlane.xlu1 %4470 }
 0xeab   : > { %v12074_v56 = vpop.eup %6605 }
 0xeac   : > { %5412 = vadd.xlane.f32.xlu1 %v12074_v56  ;;  %v6608_v11 = vpop.eup %6607 }
 0xead   : > { %v5442_v52 = vmul.f32 %v6608_v11, %v11904_v42  ;;  %v4423_v42 = vsub.f32 %v11958_v61, %v4403_v7 }
 0xeae   : > { %v5399_v14 = vpop.xlane.xlu0 %5398 }
 0xeaf   : > { %6609 = vrcp.f32 %v5399_v14  ;;  %v5401_v0 = vpop.xlane.xlu2 %5400 }
 0xeb0   : > { %6611 = vpow2.f32 %v5376_v23  ;;  %v4405_v36 = vpop.xlane.xlu1 %4404 }
 0xeb5   : > { %v6610_v15 = vpop.eup %6609 }
 0xeb6   : > { %v5443_v8 = vmul.f32 %v6610_v15, %v11966_v25  ;;  %v4450_v25 = vmul.f32 1.442695, %v4423_v42  ;;  %v12090_v43 = vpop.eup %6611  ;;  %v4565_v42 = vpop.f32.mrf.mxu3 }
 0xeb8   : > { %v5457_v27 = vpack.c.bf16 %v5443_v8, %v5442_v52  ;;  %6613 = vpow2.f32 %v4450_v25 }
 0xeba   : > { %5501 = vmatmul.bf16.gmra.mxu2 %v5457_v27 }
 0xebe   : > { %v12094_v33 = vpop.eup %6613 }
 0xec1   : > { %v5150_v18 = vpop.permute.xlu0 %5149 }
 0xec2   : > { %v5166_v19 = vsel %vm13439_vm12, %v5150_v18, %v11982_v46  ;;  %v4424_v46 = vsub.f32 %v11971_v6, %v4405_v36 }
 0xec3   : > { %v5294_v57 = vadd.f32 %v5293_v10, %v5166_v19 }
 0xec4   : > { %v4452_v63 = vmul.f32 1.442695, %v4424_v46 }
 0xec5   : > { %v12086_v50 = vadd.f32 %v5294_v57, %v13440_v30  ;;  %v5405_v30 = vpop.xlane.xlu1 %5404 }
 0xec6   : > { %6615 = vpow2.f32 %v4452_v63 }
 0xec7   : > { %5342 = vmax.xlane.f32.xlu0 %v12086_v50 }
 0xecc   : > { %v12097_v20 = vpop.eup %6615 }
 0xecf   : > { %5408 = vadd.xlane.f32.xlu0 %v12090_v43 }
 0xed7   : > { %4482 = vadd.xlane.f32.xlu0 %v12094_v33 }
 0xedd   : > { %v5335_v22 = vpop.xlane.xlu2 %5334 }
 0xede   : > { %v5355_v16 = vsub.f32 %v11993_v28, %v5335_v22 }
 0xedf   : > { %4484 = vadd.xlane.f32.xlu0 %v12097_v20 }
 0xee5   : > { %v4407_v61 = vpop.xlane.xlu2 %4406  ;;  %v5339_v4 = vpop.xlane.xlu1 %5338 }
 0xee6   : > { %v4425_v29 = vsub.f32 %v12002_v58, %v4407_v61  ;;  %v5357_v55 = vsub.f32 %v12005_v49, %v5339_v4  ;;  %v5382_v49 = vmul.f32 1.442695, %v5355_v16  ;;  %v5497_v4 = vpop.f32.mrf.mxu2 }
 0xee8   : > { %v4454_v6 = vmul.f32 1.442695, %v4425_v29  ;;  %v5386_v60 = vmul.f32 1.442695, %v5357_v55 }
 0xeea   : > { %6617 = vpow2.f32 %v4454_v6 }
 0xeeb   : > { %6619 = vpow2.f32 %v5386_v60 }
 0xeec   : > { %v4401_v53 = vpop.xlane.xlu0 %4400 }
 0xeed   : > { %v4422_v13 = vsub.f32 %v12021_v2, %v4401_v53  ;;  %v4473_v59 = vpop.xlane.xlu2 %4472  ;;  %v4411_v19 = vpop.xlane.xlu1 %4410 }
 0xeee   : > { %v4427_v23 = vsub.f32 %v12024_v1, %v4411_v19 }
 0xeef   : > { %v4448_v21 = vmul.f32 1.442695, %v4422_v13  ;;  %v4567_v13 = vpop.f32.mrf.mxu3 }
 0xef0   : > { %v12103_v12 = vpop.eup %6617 }
 0xef1   : > { %v12105_v62 = vpop.eup %6619  ;;  %6621 = vpow2.f32 %v4448_v21  ;;  %4486 = vadd.xlane.f32.xlu1 %v12103_v12 }
 0xef2   : > { %5418 = vadd.xlane.f32.xlu0 %v12105_v62  ;;  %6623 = vrcp.f32 %v4471_v31 }
 0xef4   : > { %v4469_v58 = vpop.xlane.xlu0 %4468 }
 0xef5   : > { %6625 = vrcp.f32 %v4469_v58  ;;  %v5407_v51 = vpop.xlane.xlu2 %5406 }
 0xef6   : > { %6627 = vpow2.f32 %v5382_v49 }
 0xef7   : > { %v12110_v17 = vpop.eup %6621  ;;  %6629 = vrcp.f32 %v5401_v0 }
 0xef8   : > { %4480 = vadd.xlane.f32.xlu2 %v12110_v17  ;;  %v6624_v2 = vpop.eup %6623 }
 0xef9   : > { %v4513_v40 = vmul.f32 %v6624_v2, %v11960_v5  ;;  %v4570_v2 = vpop.f32.mrf.mxu3 }
 0xefb   : > { %v6626_v9 = vpop.eup %6625 }
 0xefc   : > { %v5403_v45 = vpop.xlane.xlu0 %5402  ;;  %v4512_v28 = vmul.f32 %v6626_v9, %v12035_v38  ;;  %v12116_v52 = vpop.eup %6627  ;;  %v4607_v9 = vpack.c.bf16 %v4570_v2, %v4570_v2 }
 0xefd   : > { %6631 = vrcp.f32 %v5403_v45  ;;  %v5341_v14 = vpop.xlane.xlu2 %5340  ;;  %v6630_v27 = vpop.eup %6629 }
 0xefe   : > { %v5358_v11 = vsub.f32 %v12047_v41, %v5341_v14  ;;  %v4526_v15 = vpack.c.bf16 %v4513_v40, %v4512_v28  ;;  %v5444_v10 = vmul.f32 %v6630_v27, %v11968_v35  ;;  %v4458_v35 = vmul.f32 1.442695, %v4427_v23 }
 0xf00   : > { %v5388_v8 = vmul.f32 1.442695, %v5358_v11  ;;  %5414 = vadd.xlane.f32.xlu2 %v12116_v52  ;;  %4574 = vmatmul.bf16.gmra.mxu3 %v4526_v15 }
 0xf01   : > { %v4572_v19 = vpop.f32.mrf.mxu3 }
 0xf02   : > { %6633 = vpow2.f32 %v5388_v8 }
 0xf03   : > { %v6632_v54 = vpop.eup %6631  ;;  %6635 = vrcp.f32 %v5407_v51  ;;  %v4605_v51 = vpack.c.bf16 %v4565_v42, %v4565_v42 }
 0xf04   : > { %v5337_v18 = vpop.xlane.xlu0 %5336  ;;  %v5445_v38 = vmul.f32 %v6632_v54, %v12044_v24 }
 0xf05   : > { %v5356_v5 = vsub.f32 %v12059_v26, %v5337_v18  ;;  %v4479_v60 = vpop.xlane.xlu2 %4478 }
 0xf06   : > { %v5458_v31 = vpack.c.bf16 %v5445_v38, %v5444_v10 }
 0xf07   : > { %v5384_v41 = vmul.f32 1.442695, %v5356_v5  ;;  %v5537_v5 = vpack.c.bf16 %v5497_v4, %v5497_v4 }
 0xf08   : > { %v12122_v57 = vpop.eup %6633  ;;  %5506 = vmatmul.bf16.gmra.mxu2 %v5458_v31  ;;  %v4608_v31 = vpack.c.bf16 %v4572_v19, %v4572_v19 }
 0xf09   : > { %6637 = vpow2.f32 %v5384_v41  ;;  %5420 = vadd.xlane.f32.xlu0 %v12122_v57  ;;  %v6636_v24 = vpop.eup %6635 }
 0xf0a   : > { %6639 = vrcp.f32 %v5405_v30  ;;  %v5447_v46 = vmul.f32 %v6636_v24, %v12037_v47  ;;  %v4477_v47 = vpop.xlane.xlu1 %4476 }
 0xf0b   : > { %6641 = vrcp.f32 %v4473_v59 }
 0xf0c   : > { %v4475_v7 = vpop.xlane.xlu0 %4474 }
 0xf0d   : > { %6643 = vrcp.f32 %v4475_v7 }
 0xf0e   : > { %6645 = vpow2.f32 %v4458_v35 }
 0xf0f   : > { %v12126_v26 = vpop.eup %6637 }
 0xf10   : > { %v6640_v25 = vpop.eup %6639  ;;  %5416 = vadd.xlane.f32.xlu2 %v12126_v26 }
 0xf11   : > { %v6642_v36 = vpop.eup %6641  ;;  %v5446_v0 = vmul.f32 %v6640_v25, %v11976_v48  ;;  %v4606_v48 = vpack.c.bf16 %v4567_v13, %v4567_v13 }
 0xf12   : > { %v4514_v30 = vmul.f32 %v6642_v36, %v12026_v3  ;;  %v5411_v11 = vpop.xlane.xlu1 %5410 }
 0xf13   : > { %v6644_v1 = vpop.eup %6643  ;;  %v5459_v29 = vpack.c.bf16 %v5447_v46, %v5446_v0 }
 0xf14   : > { %v4409_v63 = vpop.xlane.xlu0 %4408  ;;  %v4515_v22 = vmul.f32 %v6644_v1, %v12065_v32  ;;  %v12134_v6 = vpop.eup %6645 }
 0xf15   : > { %v4426_v61 = vsub.f32 %v12070_v34, %v4409_v63  ;;  %v5499_v34 = vpop.f32.mrf.mxu2 }
 0xf16   : > { %v4527_v55 = vpack.c.bf16 %v4515_v22, %v4514_v30  ;;  %v5538_v21 = vpack.c.bf16 %v5499_v34, %v5499_v34 }
 0xf17   : > { %v4456_v53 = vmul.f32 1.442695, %v4426_v61  ;;  %v6284_v61 = vld [vmem:[#allocation11 + $0x38] sm:$0xff] }
 0xf18   : > { %5511 = vmatmul.bf16.gmra.mxu2 %v5459_v29  ;;  %4490 = vadd.xlane.f32.xlu2 %v12134_v6 }
 0xf19   : > { %6647 = vpow2.f32 %v4456_v53  ;;  %4579 = vmatmul.bf16.gmra.mxu3 %v4527_v55 }
 0xf1a   : > { %6649 = vrcp.f32 %v4479_v60  ;;  %5766 = vmatpush.bf16.xpose.msrb.mxu3 %v6284_v61 }
 0xf1b   : > { %6651 = vrcp.f32 %v4477_v47 }
 0xf1d   : > { %4639 = vrot.lane.b32.xlu0 %v4606_v48, %s6920_s24 }
 0xf1f   : > { %v12138_v3 = vpop.eup %6647  ;;  %v5413_v7 = vpop.xlane.xlu1 %5412 }
 0xf20   : > { %v6650_v32 = vpop.eup %6649  ;;  %4488 = vadd.xlane.f32.xlu1 %v12138_v3 }
 0xf21   : > { %v6652_v59 = vpop.eup %6651  ;;  %v4517_v16 = vmul.f32 %v6650_v32, %v12061_v37 }
 0xf22   : > { %v4516_v58 = vmul.f32 %v6652_v59, %v12033_v44 }
 0xf24   : > { %v4528_v49 = vpack.c.bf16 %v4517_v16, %v4516_v58 }
 0xf25   : > { %5571 = vrot.lane.b32.xlu0 %v5538_v21, %s6917_s3 }
 0xf29   : > { %4584 = vmatmul.bf16.gmra.mxu3 %v4528_v49 }
 0xf30   : > { %4637 = vrot.lane.b32.xlu2 %v4605_v51, %s6920_s24  ;;  %v6282_v51 = vld [vmem:[#allocation11 + $0x28] sm:$0xff] }
 0xf38   : > { %4641 = vrot.lane.b32.xlu2 %v4607_v9, %s6920_s24 }
 0xf3a   : > { %v5343_v45 = vpop.xlane.xlu0 %5342 }
 0xf3b   : > { %v5359_v28 = vsub.f32 %v12086_v50, %v5343_v45 }
 0xf3d   : > { %v5390_v40 = vmul.f32 1.442695, %v5359_v28  ;;  %v5502_v14 = vpop.f32.mrf.mxu2  ;;  %v6281_v28 = vld [vmem:[#allocation11 + $0x20] sm:$0xff] }
 0xf3e   : > { %v5539_v37 = vpack.c.bf16 %v5502_v14, %v5502_v14 }
 0xf3f   : > { %6653 = vpow2.f32 %v5390_v40 }
 0xf40   : > { %5573 = vrot.lane.b32.xlu0 %v5539_v37, %s6917_s3  ;;  %6655 = vrcp.f32 %v5411_v11 }
 0xf42   : > { %v5409_v44 = vpop.xlane.xlu0 %5408 }
 0xf43   : > { %6657 = vrcp.f32 %v5409_v44 }
 0xf45   : > { %v12148_v15 = vpop.eup %6653  ;;  %v5504_v8 = vpop.f32.mrf.mxu2 }
 0xf46   : > { %v5540_v27 = vpack.c.bf16 %v5504_v8, %v5504_v8  ;;  %5422 = vadd.xlane.f32.xlu1 %v12148_v15  ;;  %v6656_v54 = vpop.eup %6655 }
 0xf47   : > { %v5449_v10 = vmul.f32 %v6656_v54, %v12049_v39 }
 0xf48   : > { %5575 = vrot.lane.b32.xlu2 %v5540_v27, %s6917_s3 }
 0xf49   : > { %v6658_v50 = vpop.eup %6657 }
 0xf4a   : > { %v5448_v18 = vmul.f32 %v6658_v50, %v12090_v43  ;;  %v4483_v41 = vpop.xlane.xlu0 %4482 }
 0xf4b   : > { %6659 = vrcp.f32 %v4483_v41  ;;  %v6279_v41 = vld [vmem:[#allocation11 + $0x10] sm:$0xff] }
 0xf4c   : > { %v5460_v38 = vpack.c.bf16 %v5449_v10, %v5448_v18  ;;  %v6280_v18 = vld [vmem:[#allocation11 + $0x18] sm:$0xff] }
 0xf4e   : > { %5516 = vmatmul.bf16.gmra.mxu2 %v5460_v38 }
 0xf51   : > { %v6660_v35 = vpop.eup %6659 }
 0xf52   : > { %v4519_v42 = vmul.f32 %v6660_v35, %v12094_v33  ;;  %v4485_v46 = vpop.xlane.xlu0 %4484 }
 0xf5f   : > { %5569 = vrot.lane.b32.xlu1 %v5537_v5, %s6917_s3 }
 0xf64   : > { %v4487_v25 = vpop.xlane.xlu1 %4486 }
 0xf65   : > { %v5419_v29 = vpop.xlane.xlu0 %5418 }
 0xf67   : > { %4643 = vrot.lane.b32.xlu1 %v4608_v31, %s6920_s24 }
 0xf6b   : > { %v4481_v23 = vpop.xlane.xlu2 %4480 }
 0xf6c   : > { %6661 = vrcp.f32 %v4481_v23  ;;  %v6278_v23 = vld [vmem:[#allocation11 + $0x8] sm:$0xff] }
 0xf6d   : > { %6663 = vrcp.f32 %v5413_v7 }
 0xf72   : > { %v6662_v24 = vpop.eup %6661 }
 0xf73   : > { %v5415_v43 = vpop.xlane.xlu2 %5414  ;;  %v4518_v39 = vmul.f32 %v6662_v24, %v12110_v17  ;;  %v6664_v1 = vpop.eup %6663 }
 0xf74   : > { %6665 = vrcp.f32 %v5415_v43  ;;  %v5450_v0 = vmul.f32 %v6664_v1, %v12074_v56  ;;  %v6283_v56 = vld [vmem:[#allocation11 + $0x30] sm:$0xff]  ;;  %v6277_v43 = vld [vmem:[#allocation11] sm:$0xff] }
 0xf75   : > { %v4529_v36 = vpack.c.bf16 %v4519_v42, %v4518_v39  ;;  %6667 = vrcp.f32 %v4487_v25  ;;  %5767 = vmatpush.bf16.xpose.msrb.mxu3 %v6283_v56  ;;  %v13442_v25 = vld [vmem:[#allocation29_spill] sm:$0xff] }
 0xf76   : > { %6669 = vrcp.f32 %v4485_v46 }
 0xf77   : > { %4589 = vmatmul.bf16.gmra.mxu3 %v4529_v36  ;;  %6671 = vrcp.f32 %v5419_v29  ;;  %v3684_v36 = vpack.c.bf16 %v13442_v25, %v13442_v25  ;;  %v12234_v25 = vld [vmem:[%s12330_s7] ss:$0 sm:$0xff] }
 0xf7a   : > { %v6666_v63 = vpop.eup %6665 }
 0xf7b   : > { %v5451_v30 = vmul.f32 %v6666_v63, %v12116_v52  ;;  %v6668_v4 = vpop.eup %6667 }
 0xf7c   : > { %v6670_v33 = vpop.eup %6669  ;;  %v4521_v17 = vmul.f32 %v6668_v4, %v12103_v12  ;;  %v12163_v52 = vpop.xlane.xlu0 %5420 }
 0xf7d   : > { %v5461_v22 = vpack.c.bf16 %v5451_v30, %v5450_v0  ;;  %v4520_v53 = vmul.f32 %v6670_v33, %v12097_v20  ;;  %v6672_v48 = vpop.eup %6671  ;;  %5768 = vmatpush.bf16.xpose.msrb.mxu3 %v6282_v51 }
 0xf7e   : > { %v5453_v21 = vmul.f32 %v6672_v48, %v12105_v62 }
 0xf7f   : > { %5521 = vmatmul.bf16.gmra.mxu2 %v5461_v22  ;;  %v4530_v47 = vpack.c.bf16 %v4521_v17, %v4520_v53 }
 0xf83   : > { %v4575_v55 = vpop.f32.mrf.mxu3  ;;  %v5417_v60 = vpop.xlane.xlu2 %5416 }
 0xf84   : > { %v4609_v13 = vpack.c.bf16 %v4575_v55, %v4575_v55  ;;  %6673 = vrcp.f32 %v5417_v60 }
 0xf85   : > { %5769 = vmatpush.bf16.xpose.msrb.mxu3 %v6281_v28 }
 0xf86   : > { %4645 = vrot.lane.b32.xlu1 %v4609_v13, %s6920_s24 }
 0xf87   : > { %4594 = vmatmul.bf16.gmra.mxu3 %v4530_v47 }
 0xf8a   : > { %v6674_v32 = vpop.eup %6673 }
 0xf8b   : > { %v4577_v34 = vpop.f32.mrf.mxu3  ;;  %v5507_v59 = vpop.f32.mrf.mxu2  ;;  %v5452_v12 = vmul.f32 %v6674_v32, %v12126_v26 }
 0xf8c   : > { %v4610_v16 = vpack.c.bf16 %v4577_v34, %v4577_v34  ;;  %v5541_v20 = vpack.c.bf16 %v5507_v59, %v5507_v59  ;;  %v4491_v58 = vpop.xlane.xlu2 %4490 }
 0xf8d   : > { %v5462_v49 = vpack.c.bf16 %v5453_v21, %v5452_v12  ;;  %6675 = vrcp.f32 %v4491_v58  ;;  %5770 = vmatpush.bf16.xpose.msrb.mxu3 %v6280_v18  ;;  %v13443_v58 = vld [vmem:[#allocation87_spill] sm:$0xff] }
 0xf8e   : > { %4647 = vrot.lane.b32.xlu0 %v4610_v16, %s6920_s24  ;;  %5577 = vrot.lane.b32.xlu2 %v5541_v20, %s6917_s3  ;;  %v13446_v18 = vld [vmem:[#allocation99_spill] sm:$0xff] }
 0xf8f   : > { %5526 = vmatmul.bf16.gmra.mxu2 %v5462_v49  ;;  %v4640_v2 = vpop.permute.xlu0 %4639  ;;  %v3686_v49 = vpack.c.bf16 %v13443_v58, %v13443_v58 }
 0xf90   : > { %4687 = vst.msk [vmem:[#allocation2 + $0x4] sm:$0xf] %vm4685_vm14, %v4640_v2  ;;  %v13444_v2 = vld [vmem:[#allocation95_spill] sm:$0xff] }
 0xf93   : > { %v5509_v9 = vpop.f32.mrf.mxu2  ;;  %v4489_v26 = vpop.xlane.xlu1 %4488 }
 0xf94   : > { %v5542_v45 = vpack.c.bf16 %v5509_v9, %v5509_v9  ;;  %v4638_v62 = vpop.permute.xlu2 %4637  ;;  %6677 = vrcp.f32 %v4489_v26  ;;  %v6676_v14 = vpop.eup %6675  ;;  %v3685_v9 = vpack.c.bf16 %v13444_v2, %v13444_v2 }
 0xf95   : > { %4686 = vst.msk [vmem:[#allocation2] sm:$0xf] %vm4685_vm14, %v4638_v62  ;;  %v4523_v8 = vmul.f32 %v6676_v14, %v12134_v6  ;;  %5771 = vmatpush.bf16.xpose.msrb.mxu3 %v6279_v41  ;;  %6679 = vrcp.f32 %v12163_v52 }
 0xf96   : > { %5579 = vrot.lane.b32.xlu1 %v5542_v45, %s6917_s3 }
 0xf97   : > { %v5572_v40 = vpop.permute.xlu0 %5571 }
 0xf98   : > { %5619 = vst.msk [vmem:[#allocation2 + $0x4] sm:$0xf] %vm5617_vm2, %v5572_v40 }
 0xf9a   : > { %v6678_v11 = vpop.eup %6677 }
 0xf9b   : > { %v5512_v37 = vpop.f32.mrf.mxu2  ;;  %v4522_v44 = vmul.f32 %v6678_v11, %v12138_v3  ;;  %v6680_v46 = vpop.eup %6679 }
 0xf9c   : > { %v5543_v27 = vpack.c.bf16 %v5512_v37, %v5512_v37  ;;  %v4642_v54 = vpop.permute.xlu2 %4641  ;;  %v4580_v50 = vpop.f32.mrf.mxu3  ;;  %v5454_v63 = vmul.f32 %v6680_v46, %v12122_v57 }
 0xf9d   : > { %4688 = vst.msk [vmem:[#allocation2 + $0x8] sm:$0xf] %vm4685_vm14, %v4642_v54  ;;  %v4611_v10 = vpack.c.bf16 %v4580_v50, %v4580_v50  ;;  %v4531_v38 = vpack.c.bf16 %v4523_v8, %v4522_v44  ;;  %5772 = vmatpush.bf16.xpose.msrb.mxu3 %v6278_v23 }
 0xf9e   : > { %5581 = vrot.lane.b32.xlu1 %v5543_v27, %s6917_s3  ;;  %v13445_v27 = vld [vmem:[#allocation102_spill] sm:$0xff] }
 0xf9f   : > { %4649 = vrot.lane.b32.xlu0 %v4611_v10, %s6920_s24  ;;  %4599 = vmatmul.bf16.gmra.mxu3 %v4531_v38  ;;  %v3688_v54 = vpack.c.bf16 %v13445_v27, %v13445_v27  ;;  %v3687_v10 = vpack.c.bf16 %v13446_v18, %v13446_v18 }
 0xfa3   : > { %v5514_v5 = vpop.f32.mrf.mxu2 }
 0xfa4   : > { %v5544_v19 = vpack.c.bf16 %v5514_v5, %v5514_v5  ;;  %v4582_v31 = vpop.f32.mrf.mxu3  ;;  %v5576_v55 = vpop.permute.xlu2 %5575 }
 0xfa5   : > { %v4612_v3 = vpack.c.bf16 %v4582_v31, %v4582_v31  ;;  %5773 = vmatpush.bf16.xpose.msrb.mxu3 %v6277_v43 }
 0xfa7   : > { %5583 = vrot.lane.b32.xlu0 %v5544_v19, %s6917_s3  ;;  %4651 = vrot.lane.b32.xlu2 %v4612_v3, %s6920_s24 }
 0xfac   : > { %v4585_v6 = vpop.f32.mrf.mxu3 }
 0xfad   : > { %v4613_v7 = vpack.c.bf16 %v4585_v6, %v4585_v6 }
 0xfaf   : > { %4653 = vrot.lane.b32.xlu2 %v4613_v7, %s6920_s24 }
 0xfb2   : > { %v5574_v35 = vpop.permute.xlu0 %5573 }
 0xfb3   : > { %5620 = vst.msk [vmem:[#allocation2 + $0x8] sm:$0xf] %vm5617_vm2, %v5574_v35 }
 0xfb4   : > { %v4587_v24 = vpop.f32.mrf.mxu3 }
 0xfb5   : > { %v4614_v39 = vpack.c.bf16 %v4587_v24, %v4587_v24 }
 0xfb7   : > { %4655 = vrot.lane.b32.xlu1 %v4614_v39, %s6920_s24 }
 0xfb9   : > { %v5423_v42 = vpop.xlane.xlu1 %5422 }
 0xfba   : > { %6681 = vrcp.f32 %v5423_v42 }
 0xfbf   : > { %3727 = vrot.lane.b32.xlu1 %v3684_v36, %s6919_s19 }
 0xfc0   : > { %v6682_v1 = vpop.eup %6681 }
 0xfc1   : > { %v5455_v0 = vmul.f32 %v6682_v1, %v12148_v15 }
 0xfc3   : > { %v5463_v30 = vpack.c.bf16 %v5455_v0, %v5454_v63 }
 0xfc5   : > { %5531 = vmatmul.bf16.gmra.mxu2 %v5463_v30 }
 0xfd1   : > { %v5570_v22 = vpop.permute.xlu1 %5569  ;;  %v5517_v61 = vpop.f32.mrf.mxu2 }
 0xfd2   : > { %5618 = vst.msk [vmem:[#allocation2] sm:$0xf] %vm5617_vm2, %v5570_v22  ;;  %v5545_v4 = vpack.c.bf16 %v5517_v61, %v5517_v61 }
 0xfd4   : > { %5585 = vrot.lane.b32.xlu0 %v5545_v4, %s6917_s3 }
 0xfd9   : > { %v4644_v29 = vpop.permute.xlu1 %4643  ;;  %v5519_v33 = vpop.f32.mrf.mxu2  ;;  %v6269_v17 = vld [vmem:[#allocation2] sm:$0xff] }
 0xfda   : > { %4689 = vst.msk [vmem:[#allocation2 + $0xc] sm:$0xf] %vm4685_vm14, %v4644_v29  ;;  %v5546_v60 = vpack.c.bf16 %v5519_v33, %v5519_v33  ;;  %5774 = vmatmul.bf16.vlgmr.msrb.gmra.mxu3 %v6269_v17 }
 0xfdb   : > { %5621 = vst.msk [vmem:[#allocation2 + $0xc] sm:$0xf] %vm5617_vm2, %v5576_v55 }
 0xfdc   : > { %5587 = vrot.lane.b32.xlu2 %v5546_v60, %s6917_s3 }
 0xfe2   : > { %v6270_v57 = vld [vmem:[#allocation2 + $0x8] sm:$0xff] }
 0xfe8   : > { %v5578_v53 = vpop.permute.xlu2 %5577 }
 0xfea   : > { %5779 = vmatmul.bf16.gmra.mxu3 %v6270_v57 }
 0xff8   : > { %v4646_v15 = vpop.permute.xlu1 %4645 }
 0xff9   : > { %4690 = vst.msk [vmem:[#allocation2 + $0x10] sm:$0xf] %vm4685_vm14, %v4646_v15 }
 0xffa   : > { %5622 = vst.msk [vmem:[#allocation2 + $0x10] sm:$0xf] %vm5617_vm2, %v5578_v53  ;;  %v4590_v13 = vpop.f32.mrf.mxu3 }
 0xffb   : > { %v4615_v47 = vpack.c.bf16 %v4590_v13, %v4590_v13 }
 0xffd   : > { %4657 = vrot.lane.b32.xlu0 %v4615_v47, %s6920_s24 }
0x1000   : > { %v4648_v56 = vpop.permute.xlu0 %4647 }
0x1001   : > { %v4652_v52 = vpop.permute.xlu2 %4651  ;;  %4691 = vst.msk [vmem:[#allocation2 + $0x14] sm:$0xf] %vm4685_vm14, %v4648_v56 }
0x1002   : > { %4693 = vst.msk [vmem:[#allocation2 + $0x1c] sm:$0xf] %vm4685_vm14, %v4652_v52  ;;  %v4592_v48 = vpop.f32.mrf.mxu3  ;;  %v5522_v32 = vpop.f32.mrf.mxu2 }
0x1003   : > { %v4616_v34 = vpack.c.bf16 %v4592_v48, %v4592_v48  ;;  %v5547_v59 = vpack.c.bf16 %v5522_v32, %v5522_v32 }
0x1005   : > { %5589 = vrot.lane.b32.xlu1 %v5547_v59, %s6917_s3  ;;  %4659 = vrot.lane.b32.xlu2 %v4616_v34, %s6920_s24 }
0x1008   : > { %v5580_v12 = vpop.permute.xlu1 %5579 }
0x1009   : > { %v4654_v21 = vpop.permute.xlu2 %4653  ;;  %5623 = vst.msk [vmem:[#allocation2 + $0x14] sm:$0xf] %vm5617_vm2, %v5580_v12 }
0x100a   : > { %4694 = vst.msk [vmem:[#allocation2 + $0x20] sm:$0xf] %vm4685_vm14, %v4654_v21  ;;  %v4595_v16 = vpop.f32.mrf.mxu3  ;;  %v5524_v20 = vpop.f32.mrf.mxu2 }
0x100b   : > { %v5548_v51 = vpack.c.bf16 %v5524_v20, %v5524_v20  ;;  %v4617_v14 = vpack.c.bf16 %v4595_v16, %v4595_v16 }
0x100d   : > { %3731 = vrot.lane.b32.xlu1 %v3686_v49, %s6919_s19  ;;  %5591 = vrot.lane.b32.xlu0 %v5548_v51, %s6917_s3 }
0x100e   : > { %3729 = vrot.lane.b32.xlu2 %v3685_v9, %s6919_s19 }
0x1010   : > { %v5582_v26 = vpop.permute.xlu1 %5581  ;;  %v6271_v45 = vld [vmem:[#allocation2 + $0x10] sm:$0xff] }
0x1011   : > { %v4650_v62 = vpop.permute.xlu0 %4649  ;;  %5784 = vmatmul.bf16.gmra.mxu3 %v6271_v45 }
0x1012   : > { %4692 = vst.msk [vmem:[#allocation2 + $0x18] sm:$0xf] %vm4685_vm14, %v4650_v62  ;;  %v4597_v28 = vpop.f32.mrf.mxu3  ;;  %v5527_v40 = vpop.f32.mrf.mxu2 }
0x1013   : > { %5624 = vst.msk [vmem:[#allocation2 + $0x18] sm:$0xf] %vm5617_vm2, %v5582_v26  ;;  %v4618_v11 = vpack.c.bf16 %v4597_v28, %v4597_v28  ;;  %v5549_v37 = vpack.c.bf16 %v5527_v40, %v5527_v40 }
0x1015   : > { %4661 = vrot.lane.b32.xlu0 %v4617_v14, %s6920_s24  ;;  %5593 = vrot.lane.b32.xlu1 %v5549_v37, %s6917_s3 }
0x1016   : > { %4663 = vrot.lane.b32.xlu2 %v4618_v11, %s6920_s24 }
0x1019   : > { %v5584_v44 = vpop.permute.xlu0 %5583 }
0x101a   : > { %5625 = vst.msk [vmem:[#allocation2 + $0x1c] sm:$0xf] %vm5617_vm2, %v5584_v44  ;;  %v5529_v8 = vpop.f32.mrf.mxu2 }
0x101b   : > { %v5550_v50 = vpack.c.bf16 %v5529_v8, %v5529_v8 }
0x101d   : > { %3735 = vrot.lane.b32.xlu1 %v3688_v54, %s6919_s19  ;;  %5595 = vrot.lane.b32.xlu0 %v5550_v50, %s6917_s3 }
0x101e   : > { %3733 = vrot.lane.b32.xlu2 %v3687_v10, %s6919_s19  ;;  %s6853_s19 = scalar_lea.hbm %s12333_s10, 256 }
0x101f   : > { %p6855_p2 = scmp.lt.s32.totalorder %s6853_s19, %s6849_s17 }
0x1021   : > { %v6272_v38 = vld [vmem:[#allocation2 + $0x18] sm:$0xff]  ;;  %p6856_p9 = por %p6855_p2, %p6854_p11 }
0x1022   : > { %v4600_v5 = vpop.f32.mrf.mxu3  ;;  %5789 = vmatmul.bf16.gmra.mxu3 %v6272_v38 }
0x1023   : > { %v4619_v19 = vpack.c.bf16 %v4600_v5, %v4600_v5  ;;  %p6857_p10 = pnand %p6856_p9, %p6852_p8 }
0x1025   : > { %4665 = vrot.lane.b32.xlu0 %v4619_v19, %s6920_s24 }
0x1029   : > { %v4656_v31 = vpop.permute.xlu1 %4655 }
0x102a   : > { %4695 = vst.msk [vmem:[#allocation2 + $0x24] sm:$0xf] %vm4685_vm14, %v4656_v31  ;;  %v4602_v3 = vpop.f32.mrf.mxu3 }
0x102b   : > { %v4620_v41 = vpack.c.bf16 %v4602_v3, %v4602_v3 }
0x102d   : > { %4667 = vrot.lane.b32.xlu2 %v4620_v41, %s6920_s24 }
0x1031   : > { %v3728_v6 = vpop.permute.xlu1 %3727 }
0x1032   : > { %3765 = vst.msk [vmem:[#allocation2 + $0x2c] sm:$0xf] %vm13447_vm9, %v3728_v6 }
0x1036   : > { %v5588_v23 = vpop.permute.xlu2 %5587 }
0x1037   : > { %5627 = vst.msk [vmem:[#allocation2 + $0x24] sm:$0xf] %vm5617_vm2, %v5588_v23 }
0x1046   : > { %v5586_v7 = vpop.permute.xlu0 %5585 }
0x1047   : > { %5626 = vst.msk [vmem:[#allocation2 + $0x20] sm:$0xf] %vm5617_vm2, %v5586_v7 }
0x1048   : > { %v5532_v35 = vpop.f32.mrf.mxu2 }
0x1049   : > { %v5551_v24 = vpack.c.bf16 %v5532_v35, %v5532_v35 }
0x104b   : > { %5597 = vrot.lane.b32.xlu1 %v5551_v24, %s6917_s3 }
0x104e   : > { %v6273_v43 = vld [vmem:[#allocation2 + $0x20] sm:$0xff] }
0x104f   : > { %5794 = vmatmul.bf16.gmra.mxu3 %v6273_v43 }
0x1050   : > { %v5534_v39 = vpop.f32.mrf.mxu2 }
0x1051   : > { %v5552_v42 = vpack.c.bf16 %v5534_v39, %v5534_v39 }
0x1053   : > { %5599 = vrot.lane.b32.xlu0 %v5552_v42, %s6917_s3 }
0x105d   : > { %v5775_v36 = vpop.f32.mrf.mxu3 }
0x105e   : > { %v5776_v1 = vadd.f32 %v12234_v25, %v5775_v36 }
0x105f   : > { %v4660_v46 = vpop.permute.xlu2 %4659 }
0x1060   : > { %4697 = vst.msk [vmem:[#allocation2 + $0x2c] sm:$0xf] %vm4685_vm14, %v4660_v46 }
0x1061   : > { %5815 = vst [vmem:[%s12240_s12] sm:$0xff] %v5776_v1 }
0x1065   : > { %v5777_v63 = vpop.f32.mrf.mxu3 }
0x1066   : > { %v5778_v0 = vadd.f32 %v12234_v25, %v5777_v63 }
0x1068   : > { %v3730_v30 = vpop.permute.xlu2 %3729  ;;  %5816 = vst [vmem:[%s12240_s12 + $0x8] sm:$0xff] %v5778_v0 }
0x1069   : > { %3766 = vst.msk [vmem:[#allocation2 + $0x30] sm:$0xf] %vm13448_vm11, %v3730_v30 }
0x106d   : > { %v5780_v22 = vpop.f32.mrf.mxu3 }
0x106e   : > { %v5781_v61 = vadd.f32 %v12234_v25, %v5780_v22 }
0x106f   : > { %v4658_v4 = vpop.permute.xlu0 %4657 }
0x1070   : > { %v4664_v29 = vpop.permute.xlu2 %4663  ;;  %4696 = vst.msk [vmem:[#allocation2 + $0x28] sm:$0xf] %vm4685_vm14, %v4658_v4 }
0x1071   : > { %5817 = vst [vmem:[%s12240_s12 + $0x10] sm:$0xff] %v5781_v61 }
0x1075   : > { %v5782_v33 = vpop.f32.mrf.mxu3 }
0x1076   : > { %v5783_v55 = vadd.f32 %v12234_v25, %v5782_v33 }
0x1077   : > { %v5590_v17 = vpop.permute.xlu1 %5589 }
0x1078   : > { %5628 = vst.msk [vmem:[#allocation2 + $0x28] sm:$0xf] %vm5617_vm2, %v5590_v17  ;;  %v3734_v60 = vpop.permute.xlu2 %3733 }
0x1079   : > { %3768 = vst.msk [vmem:[#allocation2 + $0x38] sm:$0xf] %vm13449_vm3, %v3734_v60 }
0x107a   : > { %5818 = vst [vmem:[%s12240_s12 + $0x18] sm:$0xff] %v5783_v55 }
0x107f   : > { %v3732_v57 = vpop.permute.xlu1 %3731  ;;  %v5592_v15 = vpop.permute.xlu0 %5591 }
0x1080   : > { %3767 = vst.msk [vmem:[#allocation2 + $0x34] sm:$0xf] %vm13450_vm15, %v3732_v57 }
0x1081   : > { %4699 = vst.msk [vmem:[#allocation2 + $0x34] sm:$0xf] %vm4685_vm14, %v4664_v29 }
0x1082   : > { %5629 = vst.msk [vmem:[#allocation2 + $0x2c] sm:$0xf] %vm5617_vm2, %v5592_v15 }
0x1087   : > { %v5594_v53 = vpop.permute.xlu1 %5593  ;;  %v4662_v13 = vpop.permute.xlu0 %4661 }
0x1088   : > { %4698 = vst.msk [vmem:[#allocation2 + $0x30] sm:$0xf] %vm4685_vm14, %v4662_v13  ;;  %v4668_v52 = vpop.permute.xlu2 %4667 }
0x1089   : > { %v6274_v47 = vld [vmem:[#allocation2 + $0x28] sm:$0xff]  ;;  %5630 = vst.msk [vmem:[#allocation2 + $0x30] sm:$0xf] %vm5617_vm2, %v5594_v53 }
0x108a   : > { %5799 = vmatmul.bf16.gmra.mxu3 %v6274_v47 }
0x108f   : > { %v3736_v56 = vpop.permute.xlu1 %3735  ;;  %v5596_v48 = vpop.permute.xlu0 %5595 }
0x1090   : > { %3769 = vst.msk [vmem:[#allocation2 + $0x3c] sm:$0xf] %vm13451_vm5, %v3736_v56 }
0x1091   : > { %4701 = vst.msk [vmem:[#allocation2 + $0x3c] sm:$0xf] %vm4685_vm14, %v4668_v52 }
0x1092   : > { %5631 = vst.msk [vmem:[#allocation2 + $0x34] sm:$0xf] %vm5617_vm2, %v5596_v48 }
0x1094   : > { %v5785_v32 = vpop.f32.mrf.mxu3 }
0x1095   : > { %v5786_v34 = vadd.f32 %v12234_v25, %v5785_v32 }
0x1097   : > { %5819 = vst [vmem:[%s12240_s12 + $0x20] sm:$0xff] %v5786_v34  ;;  %v4666_v59 = vpop.permute.xlu0 %4665 }
0x1098   : > { %4700 = vst.msk [vmem:[#allocation2 + $0x38] sm:$0xf] %vm4685_vm14, %v4666_v59 }
0x1099   : > { %v6275_v12 = vld [vmem:[#allocation2 + $0x30] sm:$0xff] }
0x109a   : > { %5804 = vmatmul.bf16.gmra.mxu3 %v6275_v12 }
0x109c   : > { %v5787_v21 = vpop.f32.mrf.mxu3 }
0x109d   : > { %v5788_v16 = vadd.f32 %v12234_v25, %v5787_v21 }
0x109f   : > { %5820 = vst [vmem:[%s12240_s12 + $0x28] sm:$0xff] %v5788_v16 }
0x10a5   : > { %v5790_v20 = vpop.f32.mrf.mxu3 }
0x10a6   : > { %v5791_v58 = vadd.f32 %v12234_v25, %v5790_v20 }
0x10a8   : > { %5821 = vst [vmem:[%s12240_s12 + $0x30] sm:$0xff] %v5791_v58 }
0x10ad   : > { %v5792_v49 = vpop.f32.mrf.mxu3 }
0x10ae   : > { %v5793_v51 = vadd.f32 %v12234_v25, %v5792_v49 }
0x10b0   : > { %5822 = vst [vmem:[%s12240_s12 + $0x38] sm:$0xff] %v5793_v51 }
0x10bd   : > { %v5598_v2 = vpop.permute.xlu1 %5597 }
0x10be   : > { %5632 = vst.msk [vmem:[#allocation2 + $0x38] sm:$0xf] %vm5617_vm2, %v5598_v2 }
0x10c5   : > { %v5600_v9 = vpop.permute.xlu0 %5599 }
0x10c6   : > { %5633 = vst.msk [vmem:[#allocation2 + $0x3c] sm:$0xf] %vm5617_vm2, %v5600_v9 }
0x10cd   : > { %v6276_v26 = vld [vmem:[#allocation2 + $0x38] sm:$0xff] }
0x10ce   : > { %5809 = vmatmul.bf16.gmra.mxu3 %v6276_v26 }
0x10d2   : > { %v5795_v45 = vpop.f32.mrf.mxu3 }
0x10d3   : > { %v5796_v62 = vadd.f32 %v12234_v25, %v5795_v45 }
0x10d5   : > { %5823 = vst [vmem:[%s12240_s12 + $0x40] sm:$0xff] %v5796_v62 }
0x10da   : > { %v5797_v28 = vpop.f32.mrf.mxu3 }
0x10db   : > { %v5798_v40 = vadd.f32 %v12234_v25, %v5797_v28 }
0x10dd   : > { %5824 = vst [vmem:[%s12240_s12 + $0x48] sm:$0xff] %v5798_v40 }
0x110d   : > { %v5800_v14 = vpop.f32.mrf.mxu3 }
0x110e   : > { %v5801_v11 = vadd.f32 %v12234_v25, %v5800_v14 }
0x1110   : > { %5825 = vst [vmem:[%s12240_s12 + $0x50] sm:$0xff] %v5801_v11 }
0x1115   : > { %v5802_v37 = vpop.f32.mrf.mxu3 }
0x1116   : > { %v5803_v44 = vadd.f32 %v12234_v25, %v5802_v37 }
0x1118   : > { %5826 = vst [vmem:[%s12240_s12 + $0x58] sm:$0xff] %v5803_v44 }
0x111d   : > { %v5805_v8 = vpop.f32.mrf.mxu3 }
0x111e   : > { %v5806_v27 = vadd.f32 %v12234_v25, %v5805_v8 }
0x1120   : > { %5827 = vst [vmem:[%s12240_s12 + $0x60] sm:$0xff] %v5806_v27 }
0x1125   : > { %v5807_v54 = vpop.f32.mrf.mxu3 }
0x1126   : > { %v5808_v50 = vadd.f32 %v12234_v25, %v5807_v54 }
0x1128   : > { %5828 = vst [vmem:[%s12240_s12 + $0x68] sm:$0xff] %v5808_v50 }
0x1151   : > { %v5810_v18 = vpop.f32.mrf.mxu3 }
0x1152   : > { %v5811_v10 = vadd.f32 %v12234_v25, %v5810_v18 }
0x1154   : > { %5829 = vst [vmem:[%s12240_s12 + $0x70] sm:$0xff] %v5811_v10 }
0x1159   : > { %v5812_v38 = vpop.f32.mrf.mxu3 }
0x115a   : > { %v5813_v5 = vadd.f32 %v12234_v25, %v5812_v38 }
0x115c   : > { %5830 = vst [vmem:[%s12240_s12 + $0x78] sm:$0xff] %v5813_v5 }
0x115d   : > { %6860 = shalt.err (!%p6857_p10)
}
0x115e   : > { %s6927_s11 = smov 128  }
0x115f   : > { %6304 = dma.vmem_to_hbm [thread:$0]  (%p7067_p3), %s5845_s26, 2048, %s5847_s22, %s5832_s6, %s6927_s11, %s6927_s11, %s6924_s28  }
0x1160 PF: > { %s5861_s12 = sand.u32 1, %s6895_s13   ;;  %p13452_p12 = scmp.ge.s32.totalorder %s6907_s16, 2 }
0x1161   : > { %s5862_s3 = scalar_lea.sflag [#allocation5], %s5861_s12 }
0x1162   : > { %p6324_p13 = pnand %p13452_p12, %p7018_p6 }
0x1164   : > { %p6325_p0 = pneg %p6324_p13 }
0x1166   : > { %6890 = dma.done.wait (%p6325_p0), %s5862_s3, 2048  }
0x1167   : > { %6892 = vsyncadd (%p6325_p0), %s5862_s3, 4294965248  ;;  %p25_p5 = scmp.ge.s32.totalorder %s7057_s30, 4   ;;  %s13453_s13 = smov %s6899_s14 }
0x1168   : > { %s13454_s14 = smov %s6903_s15  ;;  %s13455_s15 = smov %s7073_s1 }
0x1169   : > { %s13456_s16 = smov %s7057_s30  ;;  %27 = sbr.rel (!%p25_p5) target bundleno = 12 (0xc), region = 121 }
0x116e   :  { %5868 = vsyncpa [#allocation4], 1 }
0x116f   :  { %5870 = vsyncpa [#allocation4 + $0x1], 1 }
0x1170   :  { %5871 = vsyncpa [#allocation7], 1 }
0x1171   :  { %5872 = vsyncpa [#allocation10], 1 }
0x1172   :  { %5873 = vsyncpa [#allocation5], 1 }
0x1173   :  { %5875 = vsyncpa [#allocation5 + $0x1], 1 }

</bundles_post_ra>
